<compile_context>
chip_gen: v7x
topology: tpu7x:2x2x1
jax: 0.10.0
libtpu: 0.0.40
codegen_flags: <defaults>
</compile_context>

<pallas_src>
import math

import jax
import jax.numpy as jnp
from jax import lax
from jax.experimental import pallas as pl
from jax.experimental.pallas import tpu as pltpu

EPS = 1e-5

# Static channel plan for layers=(1,1,1,1): (Cin, Cout, has_downsample)
_PLAN = ((64, 64, False), (64, 128, True), (128, 256, True), (256, 512, True))


# ---------------------------------------------------------------------------
# Fused whole-network kernel
# ---------------------------------------------------------------------------
def _make_fused_kernel(N, W):
    R = 2 * N
    f32 = jnp.float32
    bf16 = jnp.bfloat16

    def kernel(x_ref, stem_ref, shifts_ref, b1_ref, b2_ref, b3_hbm, b4_hbm,
               fc_ref, o_ref, b3_vmem, b4_vmem, dma_sem):
        # ---- kick off weight prefetch for blocks 3/4 (overlaps early compute)
        cp3 = pltpu.make_async_copy(b3_hbm, b3_vmem, dma_sem.at[0])
        cp4 = pltpu.make_async_copy(b4_hbm, b4_vmem, dma_sem.at[1])
        cp3.start()
        cp4.start()

        # ---- hoisted W-boundary edge masks (computed once) -----------------
        col3 = lax.broadcasted_iota(jnp.int32, (1, W, 1), 1)
        mask_l3 = (col3 > 0).astype(f32)          # zero where w == 0
        mask_r3 = (col3 < W - 1).astype(f32)      # zero where w == W-1
        col2 = lax.broadcasted_iota(jnp.int32, (1, W), 1)
        mask_l2 = (col2 > 0).astype(f32)
        mask_r2 = (col2 < W - 1).astype(f32)

        # ---- stem: conv1 (1->64, k=(2,3), pad (1,1)) + LC + bn1 + relu ------
        # One MXU matmul: (N*W, 8) taps x (8, 128) weight; cols 0..63 = I rows,
        # cols 64..127 = Q rows.  bn1 scale is folded into the weight columns.
        x = x_ref[...]                            # (N, 2, W) f32
        x0 = x[:, 0, :]
        x1 = x[:, 1, :]

        def taps(row):                            # (N, W) -> 3x (N, W)
            return (pltpu.roll(row, shift=1, axis=1) * mask_l2,       # x[w-1]
                    row,
                    pltpu.roll(row, shift=W - 1, axis=1) * mask_r2)   # x[w+1]

        x0l, x0c, x0r = taps(x0)
        x1l, x1c, x1r = taps(x1)
        zero = jnp.zeros_like(x0c)
        tap8 = jnp.stack([x0l, x0c, x0r, x1l, x1c, x1r, zero, zero],
                         axis=-1).reshape(N * W, 8)
        stem_out = jnp.dot(tap8, stem_ref[...],
                           preferred_element_type=f32).reshape(N, W, 128)
        b0 = shifts_ref[0, :64]
        i_ch = jnp.maximum(stem_out[:, :, :64] + b0[None, None, :], 0.0)
        q_ch = jnp.maximum(stem_out[:, :, 64:] + b0[None, None, :], 0.0)
        # rows 0..N-1 are the I rows, rows N..2N-1 the Q rows (undone at pooling)
        feat = jnp.concatenate([i_ch, q_ch], axis=0)        # (2N, W, 64) f32

        # ---- fused conv helpers (BN scale already folded into weights) -----
        def conv1x3(xin, wmat, shift, relu, residual=None):
            # xin (R, W, Cin) f32 ; wmat (3*Cin, Cout) bf16 ; shift (Cout,) f32
            Cin = xin.shape[-1]
            xl = (pltpu.roll(xin, shift=1, axis=1) * mask_l3).astype(bf16)
            xc = xin.astype(bf16)
            xr = (pltpu.roll(xin, shift=W - 1, axis=1) * mask_r3).astype(bf16)
            xt = jnp.concatenate([xl, xc, xr], axis=-1).reshape(R * W, 3 * Cin)
            Cout = wmat.shape[-1]
            out = jnp.dot(xt, wmat,
                          preferred_element_type=f32).reshape(R, W, Cout)
            out = out + shift[None, None, :]
            if residual is not None:
                out = out + residual
            if relu:
                out = jnp.maximum(out, 0.0)
            return out

        def conv1x1(xin, wmat, shift):
            Cin = xin.shape[-1]
            Cout = wmat.shape[-1]
            out = jnp.dot(xin.reshape(R * W, Cin).astype(bf16), wmat,
                          preferred_element_type=f32).reshape(R, W, Cout)
            return out + shift[None, None, :]

        # ---- residual blocks -------------------------------------------------
        sidx = 1
        for bi, (cin, cout, ds) in enumerate(_PLAN):
            if bi == 2:
                cp3.wait()          # weights prefetched behind stem/blk1/blk2
                wref = b3_vmem
            elif bi == 3:
                cp4.wait()
                wref = b4_vmem
            else:
                wref = (b1_ref, b2_ref)[bi]
            w1 = wref[0:3 * cin, :]
            w2 = wref[3 * cin:3 * (cin + cout), :]
            s1 = shifts_ref[sidx, :cout]
            s2 = shifts_ref[sidx + 1, :cout]
            if ds:
                wd = wref[3 * (cin + cout):3 * (cin + cout) + cin, :]
                sd = shifts_ref[sidx + 2, :cout]
                identity = conv1x1(feat, wd, sd)
                sidx += 3
            else:
                identity = feat
                sidx += 2
            out1 = conv1x3(feat, w1, s1, relu=True)
            feat = conv1x3(out1, w2, s2, relu=True, residual=identity)

        # ---- head: AdaptiveAvgPool2d((1,1)) + flatten + Linear ---------------
        pooled_rows = jnp.sum(feat, axis=1)                 # (2N, 512)
        pooled = (pooled_rows[:N] + pooled_rows[N:]) * (1.0 / (2.0 * W))
        fcw = fc_ref[0:512, :]
        fcb = fc_ref[512, :]
        o_ref[...] = jnp.dot(pooled, fcw, preferred_element_type=f32) + fcb[None, :]

    return kernel


# ---------------------------------------------------------------------------
# Parameters (deterministic, matching the PyTorch __init__ shapes / init style)
# ---------------------------------------------------------------------------
def init_params(key, num_classes=11):
    keys = iter(jax.random.split(key, 32))

    def kaiming(k, cout, cin, kh, kw):
        # kaiming_normal_(mode='fan_out', nonlinearity='linear'): std = 1/sqrt(fan_out)
        fan_out = cout * kh * kw
        std = 1.0 / math.sqrt(fan_out)
        return std * jax.random.normal(k, (cout, cin, kh, kw), jnp.float32)

    def bn(c):
        gamma = jnp.ones((c,), jnp.float32)
        beta = jnp.zeros((c,), jnp.float32)
        mean = jnp.zeros((c,), jnp.float32)
        var = jnp.ones((c,), jnp.float32)
        scale = gamma / jnp.sqrt(var + EPS)
        shift = beta - mean * scale
        return scale, shift

    def pad512(v):
        return jnp.pad(v, (0, 512 - v.shape[0]))

    def stack1x3(w, scale):
        # (cout, cin, 1, 3) -> (3*cin, cout); rows kw-major [x[w-1], x[w], x[w+1]];
        # BN scale folded into the output-channel columns.
        wkc = jnp.transpose(w[:, :, 0, :], (2, 1, 0))       # (3, cin, cout)
        cin = w.shape[1]
        cout = w.shape[0]
        return (wkc * scale[None, None, :]).reshape(3 * cin, cout)

    params = {}
    shift_rows = []

    # stem: conv1 (64,1,2,3) + LC + folded bn1 -> one (8, 128) matmul weight
    wc1 = kaiming(next(keys), 64, 1, 2, 3)                  # (64, 1, 2, 3)
    w_kh0 = jnp.transpose(wc1[:, 0, 0, :], (1, 0))          # (3, 64) tap-major
    w_kh1 = jnp.transpose(wc1[:, 0, 1, :], (1, 0))          # (3, 64)
    s0, b0 = bn(64)
    # cols 0..63  -> I = taps(x0) @ w_kh1 - taps(x1) @ w_kh0
    # cols 64..127-> Q = taps(x0) @ w_kh0 + taps(x1) @ w_kh1
    stem_w = jnp.concatenate([
        jnp.concatenate([w_kh1, w_kh0], axis=1),            # rows for x0 taps
        jnp.concatenate([-w_kh0, w_kh1], axis=1),           # rows for x1 taps
    ], axis=0)                                              # (6, 128)
    stem_w = stem_w * jnp.concatenate([s0, s0])[None, :]    # fold bn1 scale
    stem_w = jnp.pad(stem_w, ((0, 2), (0, 0)))              # K: 6 -> 8 (alignment)
    params['stem_w'] = stem_w
    shift_rows.append(pad512(b0))

    blk_w = []
    for cin, cout, ds in _PLAN:
        s1, b1 = bn(cout)
        w1 = stack1x3(kaiming(next(keys), cout, cin, 1, 3), s1)
        s2, b2 = bn(cout)
        w2 = stack1x3(kaiming(next(keys), cout, cout, 1, 3), s2)
        parts = [w1, w2]
        shift_rows += [pad512(b1), pad512(b2)]
        if ds:                                              # downsample conv1x1 + bn
            sd, bd = bn(cout)
            wd = jnp.transpose(kaiming(next(keys), cout, cin, 1, 1)[:, :, 0, 0],
                               (1, 0))                      # (cin, cout)
            parts.append(wd * sd[None, :])
            shift_rows.append(pad512(bd))
        blk_w.append(jnp.concatenate(parts, axis=0).astype(jnp.bfloat16))
    params['blk_w'] = blk_w
    params['shifts'] = jnp.stack(shift_rows, axis=0)        # (12, 512) f32

    bound = 1.0 / math.sqrt(512)                            # nn.Linear default init
    fc_w = jax.random.uniform(next(keys), (512, num_classes), jnp.float32,
                              -bound, bound)
    fc_b = jax.random.uniform(next(keys), (num_classes,), jnp.float32,
                              -bound, bound)
    params['fc_wb'] = jnp.concatenate([fc_w, fc_b[None, :]], axis=0)  # (513, nc)
    return params


# ---------------------------------------------------------------------------
# Full forward: one fused pallas_call (activations resident in VMEM,
# heavy late-block weights prefetched behind early compute)
# ---------------------------------------------------------------------------
def resnet_c_forward(x_nchw, params):
    N, Cin, H, W = x_nchw.shape
    assert Cin == 1 and H == 2, "ResNet_c expects NCHW input with C=1, H=2"
    x = x_nchw[:, 0]                                        # (N, 2, W)
    num_classes = params['fc_wb'].shape[-1]
    b1, b2, b3, b4 = params['blk_w']

    args = [x, params['stem_w'], params['shifts'], b1, b2, b3, b4, params['fc_wb']]
    vmem = pl.BlockSpec(memory_space=pltpu.MemorySpace.VMEM)
    anyspec = pl.BlockSpec(memory_space=pl.ANY)             # manual DMA in-kernel
    in_specs = [vmem, vmem, vmem, vmem, vmem, anyspec, anyspec, vmem]

    # advisory cost estimate for XLA scheduling
    R = 2 * N
    flops = 2 * N * W * 8 * 128 + 2 * N * 512 * num_classes
    for cin, cout, ds in _PLAN:
        flops += 2 * R * W * (3 * cin * cout + 3 * cout * cout
                              + (cin * cout if ds else 0))
    bytes_accessed = sum(int(a.size) * a.dtype.itemsize for a in args) \
        + N * num_classes * 4

    kernel = _make_fused_kernel(N, W)
    return pl.pallas_call(
        kernel,
        out_shape=jax.ShapeDtypeStruct((N, num_classes), jnp.float32),
        in_specs=in_specs,
        out_specs=vmem,
        scratch_shapes=[
            pltpu.VMEM(b3.shape, jnp.bfloat16),             # block-3 weight buffer
            pltpu.VMEM(b4.shape, jnp.bfloat16),             # block-4 weight buffer
            pltpu.SemaphoreType.DMA((2,)),
        ],
        compiler_params=pltpu.CompilerParams(vmem_limit_bytes=32 * 1024 * 1024),
        cost_estimate=pl.CostEstimate(flops=flops, transcendentals=0,
                                      bytes_accessed=bytes_accessed),
    )(*args)


if __name__ == "__main__":
    key = jax.random.PRNGKey(0)
    pkey, xkey = jax.random.split(key)
    params = init_params(pkey, num_classes=11)
    # NCHW input, like the PyTorch module: (batch=2, channels=1, H=2, W=16)
    x = jax.random.normal(xkey, (2, 1, 2, 16), jnp.float32)
    logits = jax.jit(resnet_c_forward)(x, params)
    jax.block_until_ready(logits)
    assert logits.shape == (2, 11) and logits.dtype == jnp.float32
    print("KERNEL_OK")
</pallas_src>

<mosaic_0001>
module attributes {stable_mosaic.version = 11 : i64} {
  func.func @kernel(%arg0: memref<2x2x16xf32, #tpu.memory_space<vmem>>, %arg1: memref<8x128xf32, #tpu.memory_space<vmem>>, %arg2: memref<12x512xf32, #tpu.memory_space<vmem>>, %arg3: memref<384x64xbf16, #tpu.memory_space<vmem>>, %arg4: memref<640x128xbf16, #tpu.memory_space<vmem>>, %arg5: memref<1280x256xbf16, #tpu.memory_space<any>>, %arg6: memref<2560x512xbf16, #tpu.memory_space<any>>, %arg7: memref<513x11xf32, #tpu.memory_space<vmem>>, %arg8: memref<2x11xf32, #tpu.memory_space<vmem>>, %arg9: memref<1280x256xbf16, #tpu.memory_space<vmem>>, %arg10: memref<2560x512xbf16, #tpu.memory_space<vmem>>, %arg11: memref<2x!tpu.dma_semaphore, #tpu.memory_space<semaphore_mem>>) attributes {dimension_semantics = [], scalar_prefetch = 0 : i64, scratch_operands = 3 : i64, tpu.core_type = #tpu.core_type<tc>} {
    %c0_i32 = arith.constant 0 : i32
    %0 = tpu.memref_slice %arg11[%c0_i32] : memref<2x!tpu.dma_semaphore, #tpu.memory_space<semaphore_mem>> -> memref<1x!tpu.dma_semaphore, #tpu.memory_space<semaphore_mem>>
    %1 = tpu.memref_squeeze %0 : memref<1x!tpu.dma_semaphore, #tpu.memory_space<semaphore_mem>> -> memref<!tpu.dma_semaphore, #tpu.memory_space<semaphore_mem>>
    tpu.enqueue_dma source(%arg5 : memref<1280x256xbf16, #tpu.memory_space<any>>) target(%arg9 : memref<1280x256xbf16, #tpu.memory_space<vmem>>) target_semaphore(%1 : memref<!tpu.dma_semaphore, #tpu.memory_space<semaphore_mem>>)
    %c1_i32 = arith.constant 1 : i32
    %2 = tpu.memref_slice %arg11[%c1_i32] : memref<2x!tpu.dma_semaphore, #tpu.memory_space<semaphore_mem>> -> memref<1x!tpu.dma_semaphore, #tpu.memory_space<semaphore_mem>>
    %3 = tpu.memref_squeeze %2 : memref<1x!tpu.dma_semaphore, #tpu.memory_space<semaphore_mem>> -> memref<!tpu.dma_semaphore, #tpu.memory_space<semaphore_mem>>
    tpu.enqueue_dma source(%arg6 : memref<2560x512xbf16, #tpu.memory_space<any>>) target(%arg10 : memref<2560x512xbf16, #tpu.memory_space<vmem>>) target_semaphore(%3 : memref<!tpu.dma_semaphore, #tpu.memory_space<semaphore_mem>>)
    %4 = tpu.iota {dimensions = array<i32: 1>} : vector<1x16x1xi32>
    %c0_i32_0 = arith.constant 0 : i32
    %5 = vector.broadcast %c0_i32_0 : i32 to vector<1x16x1xi32>
    %6 = arith.cmpi sgt, %4, %5 : vector<1x16x1xi32>
    %7 = arith.extui %6 : vector<1x16x1xi1> to vector<1x16x1xi32>
    %8 = arith.sitofp %7 : vector<1x16x1xi32> to vector<1x16x1xf32>
    %c15_i32 = arith.constant 15 : i32
    %9 = vector.broadcast %c15_i32 : i32 to vector<1x16x1xi32>
    %10 = arith.cmpi slt, %4, %9 : vector<1x16x1xi32>
    %11 = arith.extui %10 : vector<1x16x1xi1> to vector<1x16x1xi32>
    %12 = arith.sitofp %11 : vector<1x16x1xi32> to vector<1x16x1xf32>
    %13 = tpu.iota {dimensions = array<i32: 1>} : vector<1x16xi32>
    %c0_i32_1 = arith.constant 0 : i32
    %14 = vector.broadcast %c0_i32_1 : i32 to vector<1x16xi32>
    %15 = arith.cmpi sgt, %13, %14 : vector<1x16xi32>
    %16 = arith.extui %15 : vector<1x16xi1> to vector<1x16xi32>
    %17 = arith.sitofp %16 : vector<1x16xi32> to vector<1x16xf32>
    %c15_i32_2 = arith.constant 15 : i32
    %18 = vector.broadcast %c15_i32_2 : i32 to vector<1x16xi32>
    %19 = arith.cmpi slt, %13, %18 : vector<1x16xi32>
    %20 = arith.extui %19 : vector<1x16xi1> to vector<1x16xi32>
    %21 = arith.sitofp %20 : vector<1x16xi32> to vector<1x16xf32>
    %c0 = arith.constant 0 : index
    %c0_3 = arith.constant 0 : index
    %c0_4 = arith.constant 0 : index
    %22 = vector.load %arg0[%c0, %c0_3, %c0_4] : memref<2x2x16xf32, #tpu.memory_space<vmem>>, vector<2x2x16xf32>
    %23 = vector.extract_strided_slice %22 {offsets = [0, 0, 0], sizes = [2, 1, 16], strides = [1, 1, 1]} : vector<2x2x16xf32> to vector<2x1x16xf32>
    %24 = vector.shape_cast %23 : vector<2x1x16xf32> to vector<2x16xf32>
    %25 = vector.extract_strided_slice %22 {offsets = [0, 1, 0], sizes = [2, 1, 16], strides = [1, 1, 1]} : vector<2x2x16xf32> to vector<2x1x16xf32>
    %26 = vector.shape_cast %25 : vector<2x1x16xf32> to vector<2x16xf32>
    %c1_i32_5 = arith.constant 1 : i32
    %27 = tpu.dynamic_rotate %24 by %c1_i32_5 dim 1 : vector<2x16xf32>, i32 -> vector<2x16xf32>
    %28 = vector.broadcast %17 : vector<1x16xf32> to vector<2x16xf32>
    %29 = arith.mulf %27, %28 : vector<2x16xf32>
    %c15_i32_6 = arith.constant 15 : i32
    %30 = tpu.dynamic_rotate %24 by %c15_i32_6 dim 1 : vector<2x16xf32>, i32 -> vector<2x16xf32>
    %31 = vector.broadcast %21 : vector<1x16xf32> to vector<2x16xf32>
    %32 = arith.mulf %30, %31 : vector<2x16xf32>
    %c1_i32_7 = arith.constant 1 : i32
    %33 = tpu.dynamic_rotate %26 by %c1_i32_7 dim 1 : vector<2x16xf32>, i32 -> vector<2x16xf32>
    %34 = vector.broadcast %17 : vector<1x16xf32> to vector<2x16xf32>
    %35 = arith.mulf %33, %34 : vector<2x16xf32>
    %c15_i32_8 = arith.constant 15 : i32
    %36 = tpu.dynamic_rotate %26 by %c15_i32_8 dim 1 : vector<2x16xf32>, i32 -> vector<2x16xf32>
    %37 = vector.broadcast %21 : vector<1x16xf32> to vector<2x16xf32>
    %38 = arith.mulf %36, %37 : vector<2x16xf32>
    %cst = arith.constant 0.000000e+00 : f32
    %39 = vector.broadcast %cst : f32 to vector<2x16xf32>
    %40 = vector.shape_cast %29 : vector<2x16xf32> to vector<2x16x1xf32>
    %41 = vector.shape_cast %24 : vector<2x16xf32> to vector<2x16x1xf32>
    %42 = vector.shape_cast %32 : vector<2x16xf32> to vector<2x16x1xf32>
    %43 = vector.shape_cast %35 : vector<2x16xf32> to vector<2x16x1xf32>
    %44 = vector.shape_cast %26 : vector<2x16xf32> to vector<2x16x1xf32>
    %45 = vector.shape_cast %38 : vector<2x16xf32> to vector<2x16x1xf32>
    %46 = vector.shape_cast %39 : vector<2x16xf32> to vector<2x16x1xf32>
    %47 = vector.shape_cast %39 : vector<2x16xf32> to vector<2x16x1xf32>
    %48 = tpu.concatenate %40, %41, %42, %43, %44, %45, %46, %47 in 2 : vector<2x16x1xf32>, vector<2x16x1xf32>, vector<2x16x1xf32>, vector<2x16x1xf32>, vector<2x16x1xf32>, vector<2x16x1xf32>, vector<2x16x1xf32>, vector<2x16x1xf32> -> vector<2x16x8xf32>
    %49 = vector.shape_cast %48 : vector<2x16x8xf32> to vector<32x8xf32>
    %c0_9 = arith.constant 0 : index
    %c0_10 = arith.constant 0 : index
    %50 = vector.load %arg1[%c0_9, %c0_10] : memref<8x128xf32, #tpu.memory_space<vmem>>, vector<8x128xf32>
    %cst_11 = arith.constant dense<0.000000e+00> : vector<32x128xf32>
    %51 = tpu.matmul %49, %50, %cst_11 {dimension_numbers = #tpu.dot_dimension_numbers<[1], [0], [0], [1], [0, 0, 1, 1], [], []>} : vector<32x8xf32>, vector<8x128xf32>, vector<32x128xf32> -> vector<32x128xf32>
    %52 = vector.shape_cast %51 : vector<32x128xf32> to vector<2x16x128xf32>
    %c0_12 = arith.constant 0 : index
    %c0_13 = arith.constant 0 : index
    %53 = vector.load %arg2[%c0_12, %c0_13] : memref<12x512xf32, #tpu.memory_space<vmem>>, vector<1x64xf32>
    %54 = vector.shape_cast %53 : vector<1x64xf32> to vector<64xf32>
    %55 = vector.extract_strided_slice %52 {offsets = [0, 0, 0], sizes = [2, 16, 64], strides = [1, 1, 1]} : vector<2x16x128xf32> to vector<2x16x64xf32>
    %56 = vector.shape_cast %54 : vector<64xf32> to vector<1x1x64xf32>
    %57 = vector.broadcast %56 : vector<1x1x64xf32> to vector<2x16x64xf32>
    %58 = arith.addf %55, %57 : vector<2x16x64xf32>
    %cst_14 = arith.constant 0.000000e+00 : f32
    %59 = vector.broadcast %cst_14 : f32 to vector<2x16x64xf32>
    %60 = arith.maximumf %58, %59 : vector<2x16x64xf32>
    %61 = vector.extract_strided_slice %52 {offsets = [0, 0, 64], sizes = [2, 16, 64], strides = [1, 1, 1]} : vector<2x16x128xf32> to vector<2x16x64xf32>
    %62 = vector.shape_cast %54 : vector<64xf32> to vector<1x1x64xf32>
    %63 = vector.broadcast %62 : vector<1x1x64xf32> to vector<2x16x64xf32>
    %64 = arith.addf %61, %63 : vector<2x16x64xf32>
    %cst_15 = arith.constant 0.000000e+00 : f32
    %65 = vector.broadcast %cst_15 : f32 to vector<2x16x64xf32>
    %66 = arith.maximumf %64, %65 : vector<2x16x64xf32>
    %67 = tpu.concatenate %60, %66 in 0 : vector<2x16x64xf32>, vector<2x16x64xf32> -> vector<4x16x64xf32>
    %c0_16 = arith.constant 0 : index
    %c0_17 = arith.constant 0 : index
    %68 = vector.load %arg3[%c0_16, %c0_17] : memref<384x64xbf16, #tpu.memory_space<vmem>>, vector<192x64xbf16>
    %c192 = arith.constant 192 : index
    %c0_18 = arith.constant 0 : index
    %69 = vector.load %arg3[%c192, %c0_18] : memref<384x64xbf16, #tpu.memory_space<vmem>>, vector<192x64xbf16>
    %c1 = arith.constant 1 : index
    %c0_19 = arith.constant 0 : index
    %70 = vector.load %arg2[%c1, %c0_19] : memref<12x512xf32, #tpu.memory_space<vmem>>, vector<1x64xf32>
    %71 = vector.shape_cast %70 : vector<1x64xf32> to vector<64xf32>
    %c2 = arith.constant 2 : index
    %c0_20 = arith.constant 0 : index
    %72 = vector.load %arg2[%c2, %c0_20] : memref<12x512xf32, #tpu.memory_space<vmem>>, vector<1x64xf32>
    %73 = vector.shape_cast %72 : vector<1x64xf32> to vector<64xf32>
    %c1_i32_21 = arith.constant 1 : i32
    %74 = tpu.dynamic_rotate %67 by %c1_i32_21 dim 1 : vector<4x16x64xf32>, i32 -> vector<4x16x64xf32>
    %75 = vector.broadcast %8 : vector<1x16x1xf32> to vector<4x16x64xf32>
    %76 = arith.mulf %74, %75 : vector<4x16x64xf32>
    %77 = arith.truncf %76 : vector<4x16x64xf32> to vector<4x16x64xbf16>
    %78 = arith.truncf %67 : vector<4x16x64xf32> to vector<4x16x64xbf16>
    %c15_i32_22 = arith.constant 15 : i32
    %79 = tpu.dynamic_rotate %67 by %c15_i32_22 dim 1 : vector<4x16x64xf32>, i32 -> vector<4x16x64xf32>
    %80 = vector.broadcast %12 : vector<1x16x1xf32> to vector<4x16x64xf32>
    %81 = arith.mulf %79, %80 : vector<4x16x64xf32>
    %82 = arith.truncf %81 : vector<4x16x64xf32> to vector<4x16x64xbf16>
    %83 = tpu.concatenate %77, %78, %82 in 2 : vector<4x16x64xbf16>, vector<4x16x64xbf16>, vector<4x16x64xbf16> -> vector<4x16x192xbf16>
    %84 = vector.shape_cast %83 : vector<4x16x192xbf16> to vector<64x192xbf16>
    %cst_23 = arith.constant dense<0.000000e+00> : vector<64x64xf32>
    %85 = tpu.matmul %84, %68, %cst_23 {dimension_numbers = #tpu.dot_dimension_numbers<[1], [0], [0], [1], [0, 0, 1, 1], [], []>} : vector<64x192xbf16>, vector<192x64xbf16>, vector<64x64xf32> -> vector<64x64xf32>
    %86 = vector.shape_cast %85 : vector<64x64xf32> to vector<4x16x64xf32>
    %87 = vector.shape_cast %71 : vector<64xf32> to vector<1x1x64xf32>
    %88 = vector.broadcast %87 : vector<1x1x64xf32> to vector<4x16x64xf32>
    %89 = arith.addf %86, %88 : vector<4x16x64xf32>
    %cst_24 = arith.constant 0.000000e+00 : f32
    %90 = vector.broadcast %cst_24 : f32 to vector<4x16x64xf32>
    %91 = arith.maximumf %89, %90 : vector<4x16x64xf32>
    %c1_i32_25 = arith.constant 1 : i32
    %92 = tpu.dynamic_rotate %91 by %c1_i32_25 dim 1 : vector<4x16x64xf32>, i32 -> vector<4x16x64xf32>
    %93 = vector.broadcast %8 : vector<1x16x1xf32> to vector<4x16x64xf32>
    %94 = arith.mulf %92, %93 : vector<4x16x64xf32>
    %95 = arith.truncf %94 : vector<4x16x64xf32> to vector<4x16x64xbf16>
    %96 = arith.truncf %91 : vector<4x16x64xf32> to vector<4x16x64xbf16>
    %c15_i32_26 = arith.constant 15 : i32
    %97 = tpu.dynamic_rotate %91 by %c15_i32_26 dim 1 : vector<4x16x64xf32>, i32 -> vector<4x16x64xf32>
    %98 = vector.broadcast %12 : vector<1x16x1xf32> to vector<4x16x64xf32>
    %99 = arith.mulf %97, %98 : vector<4x16x64xf32>
    %100 = arith.truncf %99 : vector<4x16x64xf32> to vector<4x16x64xbf16>
    %101 = tpu.concatenate %95, %96, %100 in 2 : vector<4x16x64xbf16>, vector<4x16x64xbf16>, vector<4x16x64xbf16> -> vector<4x16x192xbf16>
    %102 = vector.shape_cast %101 : vector<4x16x192xbf16> to vector<64x192xbf16>
    %cst_27 = arith.constant dense<0.000000e+00> : vector<64x64xf32>
    %103 = tpu.matmul %102, %69, %cst_27 {dimension_numbers = #tpu.dot_dimension_numbers<[1], [0], [0], [1], [0, 0, 1, 1], [], []>} : vector<64x192xbf16>, vector<192x64xbf16>, vector<64x64xf32> -> vector<64x64xf32>
    %104 = vector.shape_cast %103 : vector<64x64xf32> to vector<4x16x64xf32>
    %105 = vector.shape_cast %73 : vector<64xf32> to vector<1x1x64xf32>
    %106 = vector.broadcast %105 : vector<1x1x64xf32> to vector<4x16x64xf32>
    %107 = arith.addf %104, %106 : vector<4x16x64xf32>
    %108 = arith.addf %107, %67 : vector<4x16x64xf32>
    %cst_28 = arith.constant 0.000000e+00 : f32
    %109 = vector.broadcast %cst_28 : f32 to vector<4x16x64xf32>
    %110 = arith.maximumf %108, %109 : vector<4x16x64xf32>
    %c0_29 = arith.constant 0 : index
    %c0_30 = arith.constant 0 : index
    %111 = vector.load %arg4[%c0_29, %c0_30] : memref<640x128xbf16, #tpu.memory_space<vmem>>, vector<192x128xbf16>
    %c192_31 = arith.constant 192 : index
    %c0_32 = arith.constant 0 : index
    %112 = vector.load %arg4[%c192_31, %c0_32] : memref<640x128xbf16, #tpu.memory_space<vmem>>, vector<384x128xbf16>
    %c3 = arith.constant 3 : index
    %c0_33 = arith.constant 0 : index
    %113 = vector.load %arg2[%c3, %c0_33] : memref<12x512xf32, #tpu.memory_space<vmem>>, vector<1x128xf32>
    %114 = vector.shape_cast %113 : vector<1x128xf32> to vector<128xf32>
    %c4 = arith.constant 4 : index
    %c0_34 = arith.constant 0 : index
    %115 = vector.load %arg2[%c4, %c0_34] : memref<12x512xf32, #tpu.memory_space<vmem>>, vector<1x128xf32>
    %116 = vector.shape_cast %115 : vector<1x128xf32> to vector<128xf32>
    %c576 = arith.constant 576 : index
    %c0_35 = arith.constant 0 : index
    %117 = vector.load %arg4[%c576, %c0_35] : memref<640x128xbf16, #tpu.memory_space<vmem>>, vector<64x128xbf16>
    %c5 = arith.constant 5 : index
    %c0_36 = arith.constant 0 : index
    %118 = vector.load %arg2[%c5, %c0_36] : memref<12x512xf32, #tpu.memory_space<vmem>>, vector<1x128xf32>
    %119 = vector.shape_cast %118 : vector<1x128xf32> to vector<128xf32>
    %120 = vector.shape_cast %110 : vector<4x16x64xf32> to vector<64x64xf32>
    %121 = arith.truncf %120 : vector<64x64xf32> to vector<64x64xbf16>
    %cst_37 = arith.constant dense<0.000000e+00> : vector<64x128xf32>
    %122 = tpu.matmul %121, %117, %cst_37 {dimension_numbers = #tpu.dot_dimension_numbers<[1], [0], [0], [1], [0, 0, 1, 1], [], []>} : vector<64x64xbf16>, vector<64x128xbf16>, vector<64x128xf32> -> vector<64x128xf32>
    %123 = vector.shape_cast %122 : vector<64x128xf32> to vector<4x16x128xf32>
    %124 = vector.shape_cast %119 : vector<128xf32> to vector<1x1x128xf32>
    %125 = vector.broadcast %124 : vector<1x1x128xf32> to vector<4x16x128xf32>
    %126 = arith.addf %123, %125 : vector<4x16x128xf32>
    %c1_i32_38 = arith.constant 1 : i32
    %127 = tpu.dynamic_rotate %110 by %c1_i32_38 dim 1 : vector<4x16x64xf32>, i32 -> vector<4x16x64xf32>
    %128 = vector.broadcast %8 : vector<1x16x1xf32> to vector<4x16x64xf32>
    %129 = arith.mulf %127, %128 : vector<4x16x64xf32>
    %130 = arith.truncf %129 : vector<4x16x64xf32> to vector<4x16x64xbf16>
    %131 = arith.truncf %110 : vector<4x16x64xf32> to vector<4x16x64xbf16>
    %c15_i32_39 = arith.constant 15 : i32
    %132 = tpu.dynamic_rotate %110 by %c15_i32_39 dim 1 : vector<4x16x64xf32>, i32 -> vector<4x16x64xf32>
    %133 = vector.broadcast %12 : vector<1x16x1xf32> to vector<4x16x64xf32>
    %134 = arith.mulf %132, %133 : vector<4x16x64xf32>
    %135 = arith.truncf %134 : vector<4x16x64xf32> to vector<4x16x64xbf16>
    %136 = tpu.concatenate %130, %131, %135 in 2 : vector<4x16x64xbf16>, vector<4x16x64xbf16>, vector<4x16x64xbf16> -> vector<4x16x192xbf16>
    %137 = vector.shape_cast %136 : vector<4x16x192xbf16> to vector<64x192xbf16>
    %cst_40 = arith.constant dense<0.000000e+00> : vector<64x128xf32>
    %138 = tpu.matmul %137, %111, %cst_40 {dimension_numbers = #tpu.dot_dimension_numbers<[1], [0], [0], [1], [0, 0, 1, 1], [], []>} : vector<64x192xbf16>, vector<192x128xbf16>, vector<64x128xf32> -> vector<64x128xf32>
    %139 = vector.shape_cast %138 : vector<64x128xf32> to vector<4x16x128xf32>
    %140 = vector.shape_cast %114 : vector<128xf32> to vector<1x1x128xf32>
    %141 = vector.broadcast %140 : vector<1x1x128xf32> to vector<4x16x128xf32>
    %142 = arith.addf %139, %141 : vector<4x16x128xf32>
    %cst_41 = arith.constant 0.000000e+00 : f32
    %143 = vector.broadcast %cst_41 : f32 to vector<4x16x128xf32>
    %144 = arith.maximumf %142, %143 : vector<4x16x128xf32>
    %c1_i32_42 = arith.constant 1 : i32
    %145 = tpu.dynamic_rotate %144 by %c1_i32_42 dim 1 : vector<4x16x128xf32>, i32 -> vector<4x16x128xf32>
    %146 = vector.broadcast %8 : vector<1x16x1xf32> to vector<4x16x128xf32>
    %147 = arith.mulf %145, %146 : vector<4x16x128xf32>
    %148 = arith.truncf %147 : vector<4x16x128xf32> to vector<4x16x128xbf16>
    %149 = arith.truncf %144 : vector<4x16x128xf32> to vector<4x16x128xbf16>
    %c15_i32_43 = arith.constant 15 : i32
    %150 = tpu.dynamic_rotate %144 by %c15_i32_43 dim 1 : vector<4x16x128xf32>, i32 -> vector<4x16x128xf32>
    %151 = vector.broadcast %12 : vector<1x16x1xf32> to vector<4x16x128xf32>
    %152 = arith.mulf %150, %151 : vector<4x16x128xf32>
    %153 = arith.truncf %152 : vector<4x16x128xf32> to vector<4x16x128xbf16>
    %154 = tpu.concatenate %148, %149, %153 in 2 : vector<4x16x128xbf16>, vector<4x16x128xbf16>, vector<4x16x128xbf16> -> vector<4x16x384xbf16>
    %155 = vector.shape_cast %154 : vector<4x16x384xbf16> to vector<64x384xbf16>
    %cst_44 = arith.constant dense<0.000000e+00> : vector<64x128xf32>
    %156 = tpu.matmul %155, %112, %cst_44 {dimension_numbers = #tpu.dot_dimension_numbers<[1], [0], [0], [1], [0, 0, 1, 1], [], []>} : vector<64x384xbf16>, vector<384x128xbf16>, vector<64x128xf32> -> vector<64x128xf32>
    %157 = vector.shape_cast %156 : vector<64x128xf32> to vector<4x16x128xf32>
    %158 = vector.shape_cast %116 : vector<128xf32> to vector<1x1x128xf32>
    %159 = vector.broadcast %158 : vector<1x1x128xf32> to vector<4x16x128xf32>
    %160 = arith.addf %157, %159 : vector<4x16x128xf32>
    %161 = arith.addf %160, %126 : vector<4x16x128xf32>
    %cst_45 = arith.constant 0.000000e+00 : f32
    %162 = vector.broadcast %cst_45 : f32 to vector<4x16x128xf32>
    %163 = arith.maximumf %161, %162 : vector<4x16x128xf32>
    %c0_i32_46 = arith.constant 0 : i32
    %164 = tpu.memref_slice %arg11[%c0_i32_46] : memref<2x!tpu.dma_semaphore, #tpu.memory_space<semaphore_mem>> -> memref<1x!tpu.dma_semaphore, #tpu.memory_space<semaphore_mem>>
    %165 = tpu.memref_squeeze %164 : memref<1x!tpu.dma_semaphore, #tpu.memory_space<semaphore_mem>> -> memref<!tpu.dma_semaphore, #tpu.memory_space<semaphore_mem>>
    tpu.wait_dma2 semaphore(%165 : memref<!tpu.dma_semaphore, #tpu.memory_space<semaphore_mem>>) src(%arg5 : memref<1280x256xbf16, #tpu.memory_space<any>>) dst(%arg9 : memref<1280x256xbf16, #tpu.memory_space<vmem>>)
    %c0_47 = arith.constant 0 : index
    %c0_48 = arith.constant 0 : index
    %166 = vector.load %arg9[%c0_47, %c0_48] : memref<1280x256xbf16, #tpu.memory_space<vmem>>, vector<384x256xbf16>
    %c384 = arith.constant 384 : index
    %c0_49 = arith.constant 0 : index
    %167 = vector.load %arg9[%c384, %c0_49] : memref<1280x256xbf16, #tpu.memory_space<vmem>>, vector<768x256xbf16>
    %c6 = arith.constant 6 : index
    %c0_50 = arith.constant 0 : index
    %168 = vector.load %arg2[%c6, %c0_50] : memref<12x512xf32, #tpu.memory_space<vmem>>, vector<1x256xf32>
    %169 = vector.shape_cast %168 : vector<1x256xf32> to vector<256xf32>
    %c7 = arith.constant 7 : index
    %c0_51 = arith.constant 0 : index
    %170 = vector.load %arg2[%c7, %c0_51] : memref<12x512xf32, #tpu.memory_space<vmem>>, vector<1x256xf32>
    %171 = vector.shape_cast %170 : vector<1x256xf32> to vector<256xf32>
    %c1152 = arith.constant 1152 : index
    %c0_52 = arith.constant 0 : index
    %172 = vector.load %arg9[%c1152, %c0_52] : memref<1280x256xbf16, #tpu.memory_space<vmem>>, vector<128x256xbf16>
    %c8 = arith.constant 8 : index
    %c0_53 = arith.constant 0 : index
    %173 = vector.load %arg2[%c8, %c0_53] : memref<12x512xf32, #tpu.memory_space<vmem>>, vector<1x256xf32>
    %174 = vector.shape_cast %173 : vector<1x256xf32> to vector<256xf32>
    %175 = vector.shape_cast %163 : vector<4x16x128xf32> to vector<64x128xf32>
    %176 = arith.truncf %175 : vector<64x128xf32> to vector<64x128xbf16>
    %cst_54 = arith.constant dense<0.000000e+00> : vector<64x256xf32>
    %177 = tpu.matmul %176, %172, %cst_54 {dimension_numbers = #tpu.dot_dimension_numbers<[1], [0], [0], [1], [0, 0, 1, 1], [], []>} : vector<64x128xbf16>, vector<128x256xbf16>, vector<64x256xf32> -> vector<64x256xf32>
    %178 = vector.shape_cast %177 : vector<64x256xf32> to vector<4x16x256xf32>
    %179 = vector.shape_cast %174 : vector<256xf32> to vector<1x1x256xf32>
    %180 = vector.broadcast %179 : vector<1x1x256xf32> to vector<4x16x256xf32>
    %181 = arith.addf %178, %180 : vector<4x16x256xf32>
    %c1_i32_55 = arith.constant 1 : i32
    %182 = tpu.dynamic_rotate %163 by %c1_i32_55 dim 1 : vector<4x16x128xf32>, i32 -> vector<4x16x128xf32>
    %183 = vector.broadcast %8 : vector<1x16x1xf32> to vector<4x16x128xf32>
    %184 = arith.mulf %182, %183 : vector<4x16x128xf32>
    %185 = arith.truncf %184 : vector<4x16x128xf32> to vector<4x16x128xbf16>
    %186 = arith.truncf %163 : vector<4x16x128xf32> to vector<4x16x128xbf16>
    %c15_i32_56 = arith.constant 15 : i32
    %187 = tpu.dynamic_rotate %163 by %c15_i32_56 dim 1 : vector<4x16x128xf32>, i32 -> vector<4x16x128xf32>
    %188 = vector.broadcast %12 : vector<1x16x1xf32> to vector<4x16x128xf32>
    %189 = arith.mulf %187, %188 : vector<4x16x128xf32>
    %190 = arith.truncf %189 : vector<4x16x128xf32> to vector<4x16x128xbf16>
    %191 = tpu.concatenate %185, %186, %190 in 2 : vector<4x16x128xbf16>, vector<4x16x128xbf16>, vector<4x16x128xbf16> -> vector<4x16x384xbf16>
    %192 = vector.shape_cast %191 : vector<4x16x384xbf16> to vector<64x384xbf16>
    %cst_57 = arith.constant dense<0.000000e+00> : vector<64x256xf32>
    %193 = tpu.matmul %192, %166, %cst_57 {dimension_numbers = #tpu.dot_dimension_numbers<[1], [0], [0], [1], [0, 0, 1, 1], [], []>} : vector<64x384xbf16>, vector<384x256xbf16>, vector<64x256xf32> -> vector<64x256xf32>
    %194 = vector.shape_cast %193 : vector<64x256xf32> to vector<4x16x256xf32>
    %195 = vector.shape_cast %169 : vector<256xf32> to vector<1x1x256xf32>
    %196 = vector.broadcast %195 : vector<1x1x256xf32> to vector<4x16x256xf32>
    %197 = arith.addf %194, %196 : vector<4x16x256xf32>
    %cst_58 = arith.constant 0.000000e+00 : f32
    %198 = vector.broadcast %cst_58 : f32 to vector<4x16x256xf32>
    %199 = arith.maximumf %197, %198 : vector<4x16x256xf32>
    %c1_i32_59 = arith.constant 1 : i32
    %200 = tpu.dynamic_rotate %199 by %c1_i32_59 dim 1 : vector<4x16x256xf32>, i32 -> vector<4x16x256xf32>
    %201 = vector.broadcast %8 : vector<1x16x1xf32> to vector<4x16x256xf32>
    %202 = arith.mulf %200, %201 : vector<4x16x256xf32>
    %203 = arith.truncf %202 : vector<4x16x256xf32> to vector<4x16x256xbf16>
    %204 = arith.truncf %199 : vector<4x16x256xf32> to vector<4x16x256xbf16>
    %c15_i32_60 = arith.constant 15 : i32
    %205 = tpu.dynamic_rotate %199 by %c15_i32_60 dim 1 : vector<4x16x256xf32>, i32 -> vector<4x16x256xf32>
    %206 = vector.broadcast %12 : vector<1x16x1xf32> to vector<4x16x256xf32>
    %207 = arith.mulf %205, %206 : vector<4x16x256xf32>
    %208 = arith.truncf %207 : vector<4x16x256xf32> to vector<4x16x256xbf16>
    %209 = tpu.concatenate %203, %204, %208 in 2 : vector<4x16x256xbf16>, vector<4x16x256xbf16>, vector<4x16x256xbf16> -> vector<4x16x768xbf16>
    %210 = vector.shape_cast %209 : vector<4x16x768xbf16> to vector<64x768xbf16>
    %cst_61 = arith.constant dense<0.000000e+00> : vector<64x256xf32>
    %211 = tpu.matmul %210, %167, %cst_61 {dimension_numbers = #tpu.dot_dimension_numbers<[1], [0], [0], [1], [0, 0, 1, 1], [], []>} : vector<64x768xbf16>, vector<768x256xbf16>, vector<64x256xf32> -> vector<64x256xf32>
    %212 = vector.shape_cast %211 : vector<64x256xf32> to vector<4x16x256xf32>
    %213 = vector.shape_cast %171 : vector<256xf32> to vector<1x1x256xf32>
    %214 = vector.broadcast %213 : vector<1x1x256xf32> to vector<4x16x256xf32>
    %215 = arith.addf %212, %214 : vector<4x16x256xf32>
    %216 = arith.addf %215, %181 : vector<4x16x256xf32>
    %cst_62 = arith.constant 0.000000e+00 : f32
    %217 = vector.broadcast %cst_62 : f32 to vector<4x16x256xf32>
    %218 = arith.maximumf %216, %217 : vector<4x16x256xf32>
    %c1_i32_63 = arith.constant 1 : i32
    %219 = tpu.memref_slice %arg11[%c1_i32_63] : memref<2x!tpu.dma_semaphore, #tpu.memory_space<semaphore_mem>> -> memref<1x!tpu.dma_semaphore, #tpu.memory_space<semaphore_mem>>
    %220 = tpu.memref_squeeze %219 : memref<1x!tpu.dma_semaphore, #tpu.memory_space<semaphore_mem>> -> memref<!tpu.dma_semaphore, #tpu.memory_space<semaphore_mem>>
    tpu.wait_dma2 semaphore(%220 : memref<!tpu.dma_semaphore, #tpu.memory_space<semaphore_mem>>) src(%arg6 : memref<2560x512xbf16, #tpu.memory_space<any>>) dst(%arg10 : memref<2560x512xbf16, #tpu.memory_space<vmem>>)
    %c0_64 = arith.constant 0 : index
    %c0_65 = arith.constant 0 : index
    %221 = vector.load %arg10[%c0_64, %c0_65] : memref<2560x512xbf16, #tpu.memory_space<vmem>>, vector<768x512xbf16>
    %c768 = arith.constant 768 : index
    %c0_66 = arith.constant 0 : index
    %222 = vector.load %arg10[%c768, %c0_66] : memref<2560x512xbf16, #tpu.memory_space<vmem>>, vector<1536x512xbf16>
    %c9 = arith.constant 9 : index
    %c0_67 = arith.constant 0 : index
    %223 = vector.load %arg2[%c9, %c0_67] : memref<12x512xf32, #tpu.memory_space<vmem>>, vector<1x512xf32>
    %224 = vector.shape_cast %223 : vector<1x512xf32> to vector<512xf32>
    %c10 = arith.constant 10 : index
    %c0_68 = arith.constant 0 : index
    %225 = vector.load %arg2[%c10, %c0_68] : memref<12x512xf32, #tpu.memory_space<vmem>>, vector<1x512xf32>
    %226 = vector.shape_cast %225 : vector<1x512xf32> to vector<512xf32>
    %c2304 = arith.constant 2304 : index
    %c0_69 = arith.constant 0 : index
    %227 = vector.load %arg10[%c2304, %c0_69] : memref<2560x512xbf16, #tpu.memory_space<vmem>>, vector<256x512xbf16>
    %c11 = arith.constant 11 : index
    %c0_70 = arith.constant 0 : index
    %228 = vector.load %arg2[%c11, %c0_70] : memref<12x512xf32, #tpu.memory_space<vmem>>, vector<1x512xf32>
    %229 = vector.shape_cast %228 : vector<1x512xf32> to vector<512xf32>
    %230 = vector.shape_cast %218 : vector<4x16x256xf32> to vector<64x256xf32>
    %231 = arith.truncf %230 : vector<64x256xf32> to vector<64x256xbf16>
    %cst_71 = arith.constant dense<0.000000e+00> : vector<64x512xf32>
    %232 = tpu.matmul %231, %227, %cst_71 {dimension_numbers = #tpu.dot_dimension_numbers<[1], [0], [0], [1], [0, 0, 1, 1], [], []>} : vector<64x256xbf16>, vector<256x512xbf16>, vector<64x512xf32> -> vector<64x512xf32>
    %233 = vector.shape_cast %232 : vector<64x512xf32> to vector<4x16x512xf32>
    %234 = vector.shape_cast %229 : vector<512xf32> to vector<1x1x512xf32>
    %235 = vector.broadcast %234 : vector<1x1x512xf32> to vector<4x16x512xf32>
    %236 = arith.addf %233, %235 : vector<4x16x512xf32>
    %c1_i32_72 = arith.constant 1 : i32
    %237 = tpu.dynamic_rotate %218 by %c1_i32_72 dim 1 : vector<4x16x256xf32>, i32 -> vector<4x16x256xf32>
    %238 = vector.broadcast %8 : vector<1x16x1xf32> to vector<4x16x256xf32>
    %239 = arith.mulf %237, %238 : vector<4x16x256xf32>
    %240 = arith.truncf %239 : vector<4x16x256xf32> to vector<4x16x256xbf16>
    %241 = arith.truncf %218 : vector<4x16x256xf32> to vector<4x16x256xbf16>
    %c15_i32_73 = arith.constant 15 : i32
    %242 = tpu.dynamic_rotate %218 by %c15_i32_73 dim 1 : vector<4x16x256xf32>, i32 -> vector<4x16x256xf32>
    %243 = vector.broadcast %12 : vector<1x16x1xf32> to vector<4x16x256xf32>
    %244 = arith.mulf %242, %243 : vector<4x16x256xf32>
    %245 = arith.truncf %244 : vector<4x16x256xf32> to vector<4x16x256xbf16>
    %246 = tpu.concatenate %240, %241, %245 in 2 : vector<4x16x256xbf16>, vector<4x16x256xbf16>, vector<4x16x256xbf16> -> vector<4x16x768xbf16>
    %247 = vector.shape_cast %246 : vector<4x16x768xbf16> to vector<64x768xbf16>
    %cst_74 = arith.constant dense<0.000000e+00> : vector<64x512xf32>
    %248 = tpu.matmul %247, %221, %cst_74 {dimension_numbers = #tpu.dot_dimension_numbers<[1], [0], [0], [1], [0, 0, 1, 1], [], []>} : vector<64x768xbf16>, vector<768x512xbf16>, vector<64x512xf32> -> vector<64x512xf32>
    %249 = vector.shape_cast %248 : vector<64x512xf32> to vector<4x16x512xf32>
    %250 = vector.shape_cast %224 : vector<512xf32> to vector<1x1x512xf32>
    %251 = vector.broadcast %250 : vector<1x1x512xf32> to vector<4x16x512xf32>
    %252 = arith.addf %249, %251 : vector<4x16x512xf32>
    %cst_75 = arith.constant 0.000000e+00 : f32
    %253 = vector.broadcast %cst_75 : f32 to vector<4x16x512xf32>
    %254 = arith.maximumf %252, %253 : vector<4x16x512xf32>
    %c1_i32_76 = arith.constant 1 : i32
    %255 = tpu.dynamic_rotate %254 by %c1_i32_76 dim 1 : vector<4x16x512xf32>, i32 -> vector<4x16x512xf32>
    %256 = vector.broadcast %8 : vector<1x16x1xf32> to vector<4x16x512xf32>
    %257 = arith.mulf %255, %256 : vector<4x16x512xf32>
    %258 = arith.truncf %257 : vector<4x16x512xf32> to vector<4x16x512xbf16>
    %259 = arith.truncf %254 : vector<4x16x512xf32> to vector<4x16x512xbf16>
    %c15_i32_77 = arith.constant 15 : i32
    %260 = tpu.dynamic_rotate %254 by %c15_i32_77 dim 1 : vector<4x16x512xf32>, i32 -> vector<4x16x512xf32>
    %261 = vector.broadcast %12 : vector<1x16x1xf32> to vector<4x16x512xf32>
    %262 = arith.mulf %260, %261 : vector<4x16x512xf32>
    %263 = arith.truncf %262 : vector<4x16x512xf32> to vector<4x16x512xbf16>
    %264 = tpu.concatenate %258, %259, %263 in 2 : vector<4x16x512xbf16>, vector<4x16x512xbf16>, vector<4x16x512xbf16> -> vector<4x16x1536xbf16>
    %265 = vector.shape_cast %264 : vector<4x16x1536xbf16> to vector<64x1536xbf16>
    %cst_78 = arith.constant dense<0.000000e+00> : vector<64x512xf32>
    %266 = tpu.matmul %265, %222, %cst_78 {dimension_numbers = #tpu.dot_dimension_numbers<[1], [0], [0], [1], [0, 0, 1, 1], [], []>} : vector<64x1536xbf16>, vector<1536x512xbf16>, vector<64x512xf32> -> vector<64x512xf32>
    %267 = vector.shape_cast %266 : vector<64x512xf32> to vector<4x16x512xf32>
    %268 = vector.shape_cast %226 : vector<512xf32> to vector<1x1x512xf32>
    %269 = vector.broadcast %268 : vector<1x1x512xf32> to vector<4x16x512xf32>
    %270 = arith.addf %267, %269 : vector<4x16x512xf32>
    %271 = arith.addf %270, %236 : vector<4x16x512xf32>
    %cst_79 = arith.constant 0.000000e+00 : f32
    %272 = vector.broadcast %cst_79 : f32 to vector<4x16x512xf32>
    %273 = arith.maximumf %271, %272 : vector<4x16x512xf32>
    %cst_80 = arith.constant dense<0.000000e+00> : vector<4x512xf32>
    %274 = vector.multi_reduction <add>, %273, %cst_80 [1] : vector<4x16x512xf32> to vector<4x512xf32>
    %275 = vector.extract_strided_slice %274 {offsets = [0, 0], sizes = [2, 512], strides = [1, 1]} : vector<4x512xf32> to vector<2x512xf32>
    %276 = vector.extract_strided_slice %274 {offsets = [2, 0], sizes = [2, 512], strides = [1, 1]} : vector<4x512xf32> to vector<2x512xf32>
    %277 = arith.addf %275, %276 : vector<2x512xf32>
    %cst_81 = arith.constant 3.125000e-02 : f32
    %278 = vector.broadcast %cst_81 : f32 to vector<2x512xf32>
    %279 = arith.mulf %277, %278 : vector<2x512xf32>
    %c0_82 = arith.constant 0 : index
    %c0_83 = arith.constant 0 : index
    %280 = vector.load %arg7[%c0_82, %c0_83] : memref<513x11xf32, #tpu.memory_space<vmem>>, vector<512x11xf32>
    %c512 = arith.constant 512 : index
    %c0_84 = arith.constant 0 : index
    %281 = vector.load %arg7[%c512, %c0_84] : memref<513x11xf32, #tpu.memory_space<vmem>>, vector<1x11xf32>
    %282 = vector.shape_cast %281 : vector<1x11xf32> to vector<11xf32>
    %cst_85 = arith.constant dense<0.000000e+00> : vector<2x11xf32>
    %283 = tpu.matmul %279, %280, %cst_85 {dimension_numbers = #tpu.dot_dimension_numbers<[1], [0], [0], [1], [0, 0, 1, 1], [], []>} : vector<2x512xf32>, vector<512x11xf32>, vector<2x11xf32> -> vector<2x11xf32>
    %284 = vector.shape_cast %282 : vector<11xf32> to vector<1x11xf32>
    %285 = vector.broadcast %284 : vector<1x11xf32> to vector<2x11xf32>
    %286 = arith.addf %283, %285 : vector<2x11xf32>
    %c0_86 = arith.constant 0 : index
    %c0_87 = arith.constant 0 : index
    %287 = vector.load %arg8[%c0_86, %c0_87] : memref<2x11xf32, #tpu.memory_space<vmem>>, vector<2x11xf32>
    tpu.vector_store %arg8[%c0_86, %c0_87], %286 {strides = array<i32>} : memref<2x11xf32, #tpu.memory_space<vmem>>, vector<2x11xf32>,
    return
  }
}

</mosaic_0001>

<bundles_post_ra>
// kernel: resnet_c_forward.1
= control target key start
LH: loop header
LB: loop body
LE: loop exit
PB: predicated region body
PF: predicated region fallthrough
CT: control target
= control target key end

     0   :  { %13 = vsyncpa [#allocation6], 0  ;;  %s9216_s0 = inlined_call_operand.hbm [shape: f32[2,2,16], index: 0, kind: input, shape index: {}]   ;;  %s9217_s1 = inlined_call_operand.hbm [shape: f32[8,128], index: 1, kind: input, shape index: {}]   ;;  %s9218_s2 = inlined_call_operand.hbm [shape: f32[12,512], index: 2, kind: input, shape index: {}]   ;;  %s9219_s3 = inlined_call_operand.vmem [shape: bf16[384,64], index: 3, kind: input, shape index: {}]   ;;  %s9220_s4 = inlined_call_operand.hbm [shape: bf16[640,128], index: 4, kind: input, shape index: {}]   ;;  %s9221_s5 = inlined_call_operand.hbm [shape: bf16[1280,256], index: 5, kind: input, shape index: {}]   ;;  %s9222_s6 = inlined_call_operand.hbm [shape: bf16[2560,512], index: 6, kind: input, shape index: {}]   ;;  %s9223_s7 = inlined_call_operand.vmem [shape: f32[513,11], index: 7, kind: input, shape index: {}]   ;;  %s9224_s8 = inlined_call_operand.hbm [shape: f32[2,11], index: 8, kind: output, shape index: {}]  }
   0x1   :  { %14 = vsyncpa [#allocation9], 0 }
   0x2   :  { %15 = vsyncpa [#allocation12], 0 }
   0x3   :  { %16 = vsyncpa [#allocation7], 0  ;;  %s6917_s27 = smov [#allocation8]   ;;  %s6918_s29 = smov [#allocation5]  }
   0x4   :  { %s35_s28 = sshll.u32 %s6917_s27, 4  ;;  %s22_s30 = sshll.u32 %s6918_s29, 4  ;;  %s36_s28 = int_to_ptr.vmem [resolvable:$true] %s35_s28  ;;  %s6985_s30 = int_to_ptr.vmem [resolvable:$true] %s22_s30 }
   0x5   :  { %s6795_s11 = scalar_lea.hbm %s9217_s1, 128 }
   0x6   :  { %p6796_p0 = scmp.ne.s32.totalorder %s9217_s1, %s6795_s11  ;;  %p6799_p1 = scmp.lt.u32.totalorder %s6795_s11, %s9217_s1 }
   0x8   :  { %p6801_p2 = pnand %p6799_p1, %p6796_p0 }
   0xa   :  { %6804 = shalt.err (!%p6801_p2)
}
   0xb   :  { %s6805_s16 = scalar_lea.vmem %s36_s28, 128  ;;  %p6810_p4 = scmp.lt.s32.totalorder %s36_s28, %s36_s28 }
   0xc   :  { %p6806_p3 = scmp.ne.s32.totalorder %s36_s28, %s6805_s16  ;;  %p6811_p5 = scmp.lt.s32.totalorder %s6805_s16, %s6805_s16 }
   0xe   :  { %p6812_p6 = por %p6811_p5, %p6810_p4 }
  0x10   :  { %p6813_p7 = pnand %p6812_p6, %p6806_p3 }
  0x12   :  { %6816 = shalt.err (!%p6813_p7)
}
  0x13   :  { %38 = dma.hbm_to_vmem [thread:$0]  %s9217_s1, 128, %s36_s28, [#allocation9]  }
  0x14   :  { %s6817_s21 = scalar_lea.hbm %s9216_s0, 64 }
  0x15   :  { %p6818_p8 = scmp.ne.s32.totalorder %s9216_s0, %s6817_s21  ;;  %p6821_p9 = scmp.lt.u32.totalorder %s6817_s21, %s9216_s0 }
  0x17   :  { %p6823_p10 = pnand %p6821_p9, %p6818_p8 }
  0x19   :  { %6826 = shalt.err (!%p6823_p10)
}
  0x1a   :  { %s6827_s26 = scalar_lea.vmem %s6985_s30, 64  ;;  %p6832_p12 = scmp.lt.s32.totalorder %s6985_s30, %s6985_s30 }
  0x1b   :  { %p6828_p11 = scmp.ne.s32.totalorder %s6985_s30, %s6827_s26  ;;  %p6833_p13 = scmp.lt.s32.totalorder %s6827_s26, %s6827_s26 }
  0x1d   :  { %p6834_p0 = por %p6833_p13, %p6832_p12 }
  0x1f   :  { %p6835_p1 = pnand %p6834_p0, %p6828_p11 }
  0x21   :  { %6838 = shalt.err (!%p6835_p1)
}
  0x22   :  { %s6919_s1 = smov 32   ;;  %s6920_s27 = smov 2  }
  0x23   :  { %28 = dma.hbm_to_vmem [thread:$0]  %s9216_s0, 64, %s6985_s30, [#allocation6], %s6919_s1, %s6919_s1, %s6920_s27  }
  0x24   :  { %s6921_s9 = smov [#allocation10]   ;;  %s6922_s11 = smov [#allocation11]  }
  0x25   :  { %s44_s10 = sshll.u32 %s6921_s9, 4  ;;  %s58_s12 = sshll.u32 %s6922_s11, 4  ;;  %s45_s10 = int_to_ptr.vmem [resolvable:$true] %s44_s10  ;;  %s59_s12 = int_to_ptr.vmem [resolvable:$true] %s58_s12 }
  0x26   :  { %s6839_s15 = scalar_lea.hbm %s9218_s2, 1024 }
  0x27   :  { %p6840_p2 = scmp.ne.s32.totalorder %s9218_s2, %s6839_s15  ;;  %p6843_p3 = scmp.lt.u32.totalorder %s6839_s15, %s9218_s2 }
  0x29   :  { %p6845_p4 = pnand %p6843_p3, %p6840_p2 }
  0x2b   :  { %6848 = shalt.err (!%p6845_p4)
}
  0x2c   :  { %s6849_s0 = scalar_lea.vmem %s45_s10, 1024  ;;  %p6854_p6 = scmp.lt.s32.totalorder %s45_s10, %s45_s10 }
  0x2d   :  { %p6850_p5 = scmp.ne.s32.totalorder %s45_s10, %s6849_s0  ;;  %p6855_p7 = scmp.lt.s32.totalorder %s6849_s0, %s6849_s0 }
  0x2f   :  { %p6856_p8 = por %p6855_p7, %p6854_p6 }
  0x31   :  { %p6857_p9 = pnand %p6856_p8, %p6850_p5 }
  0x33   :  { %6860 = shalt.err (!%p6857_p9)
}
  0x34   :  { %s6923_s30 = smov 512   ;;  %s6861_s24 = scalar_lea.hbm %s9220_s4, 5120 }
  0x35   :  { %50 = dma.hbm_to_vmem [thread:$0]  %s9218_s2, 1024, %s45_s10, [#allocation9], %s6923_s30, %s6923_s30, %s6919_s1  }
  0x36   :  { %p6862_p10 = scmp.ne.s32.totalorder %s9220_s4, %s6861_s24  ;;  %p6865_p11 = scmp.lt.u32.totalorder %s6861_s24, %s9220_s4 }
  0x38   :  { %p6867_p12 = pnand %p6865_p11, %p6862_p10 }
  0x3a   :  { %6870 = shalt.err (!%p6867_p12)
}
  0x3b   :  { %s6871_s9 = scalar_lea.vmem %s59_s12, 5120  ;;  %p6876_p0 = scmp.lt.s32.totalorder %s59_s12, %s59_s12 }
  0x3c   :  { %p6872_p13 = scmp.ne.s32.totalorder %s59_s12, %s6871_s9  ;;  %p6877_p1 = scmp.lt.s32.totalorder %s6871_s9, %s6871_s9 }
  0x3e   :  { %p6878_p2 = por %p6877_p1, %p6876_p0 }
  0x40   :  { %p6879_p3 = pnand %p6878_p2, %p6872_p13 }
  0x42   :  { %6882 = shalt.err (!%p6879_p3)
}
  0x43   :  { %s6924_s2 = smov 64   ;;  %s6925_s1 = smov 4  }
  0x44   :  { %64 = dma.hbm_to_vmem [thread:$0]  %s9220_s4, 5120, %s59_s12, [#allocation12], %s6924_s2, %s6924_s2, %s6925_s1  }
  0x45   :  { %6905 = dma.done.wait [#allocation6], 64  }
  0x46   :  { %6906 = vsyncadd [#allocation6], 4294967232 }
  0x47   :  { %6907 = dma.done.wait [#allocation9], 1152  }
  0x48   :  { %6908 = vsyncadd [#allocation9], 4294966144 }
  0x49   :  { %6909 = dma.done.wait [#allocation12], 5120  }
  0x4a   :  { %6910 = vsyncadd [#allocation12], 4294962176  ;;  %v150_v0 = vlaneseq  ;;  %s84_s13 = sld [smem:[#allocation0]]   ;;  %100 = sst [smem:[#allocation15 + $0x2]] %s6920_s27  ;;  %v6927_v3 = vmov 0.0   ;;  %vm178_vm4 = vcmask 1041409  }
  0x4b   :  { %102 = sst [smem:[#allocation15 + $0x3]] %s6924_s2  ;;  %s6926_s14 = smov [#allocation2]   ;;  %vm181_vm5 = vcmask 1047680   ;;  %vm354_vm6 = vcmask 15360   ;;  %vm349_vm7 = vcmask 7168   ;;  %vm359_vm8 = vcmask 23552  }
  0x4c   :  { %s92_s15 = sshll.u32 %s6926_s14, 4  ;;  %v7048_v1 = vshrl.u32 %v150_v0, 7  ;;  %106 = sst [smem:[#allocation15 + $0x5]] %s6920_s27  ;;  %v166_v5 = vand.u32 127, %v150_v0  ;;  %vm364_vm9 = vcmask 31744   ;;  %vm369_vm10 = vcmask 39936   ;;  %s93_s15 = int_to_ptr.vmem [resolvable:$true] %s92_s15 }
  0x4d   :  { %110 = sst [smem:[#allocation15 + $0x7]] %s6924_s2  ;;  %s6928_s4 = smov 256   ;;  %vm374_vm11 = vcmask 48128   ;;  %vm379_vm12 = vcmask 56320   ;;  %vm385_vm13 = vcmask 64512   ;;  %vm644_vm15 = vcmask 523264  }
  0x4e   :  { %v152_v2 = vadd.s32 8, %v7048_v1  ;;  %vm153_vm0 = vcmp.gt.s32.totalorder %v7048_v1, 0  ;;  %112 = sst [smem:[#allocation15 + $0x8]] %s6925_s1  ;;  %s6929_s17 = smov 128   ;;  %vm167_vm2 = vcmp.gt.s32.totalorder %v166_v5, 0  ;;  %vm170_vm3 = vcmp.lt.s32.totalorder %v166_v5, 15 }
  0x4f   :  { %v7055_v4 = vsel %vm153_vm0, 1.0, %v6927_v3  ;;  %96 = sst [smem:[#allocation15]] %s6928_s4  ;;  %s6930_s18 = smov [#allocation4]   ;;  %v5923_v7 = vsel %vm167_vm2, 1.0, %v6927_v3  ;;  %v5924_v8 = vsel %vm170_vm3, 1.0, %v6927_v3  ;;  %v7074_v14 = vsub.s32 1, %v7048_v1 }
  0x50   :  { %vm160_vm1 = vcmp.lt.s32.totalorder %v152_v2, 15  ;;  %s5917_s12 = sshll.u32 %s84_s13, 26  ;;  %98 = sst [smem:[#allocation15 + $0x1]] %s6928_s4  ;;  %v7081_v20 = vsub.s32 0, %v7048_v1  ;;  %vm611_vm14 = vcmp.lt.s32.totalorder %v7048_v1, 7  ;;  %vm578_vm0 = vcmp.lt.s32.totalorder %v7048_v1, 1 }
  0x51   :  { %v7057_v6 = vsel %vm160_vm1, 1.0, %v6927_v3  ;;  %s5918_s16 = sadd.s32 134217728, %s5917_s12  ;;  %104 = sst [smem:[#allocation15 + $0x4]] %s6929_s17 }
  0x52   :  { %108 = sst [smem:[#allocation15 + $0x6]] %s6929_s17  ;;  %s6931_s19 = smov [#allocation14]  }
  0x53   :  { %114 = dma.general %s9221_s5, 20480, %s93_s15, %s6930_s18, %s6931_s19, [#allocation15], %s5918_s16, 0  }
  0x54   :  { %131 = sst [smem:[#allocation17]] %s6923_s30  ;;  %s6932_s21 = smov [#allocation3]  }
  0x55   :  { %s127_s22 = sshll.u32 %s6932_s21, 4  ;;  %133 = sst [smem:[#allocation17 + $0x1]] %s6923_s30  ;;  %s128_s22 = int_to_ptr.vmem [resolvable:$true] %s127_s22 }
  0x56   :  { %135 = sst [smem:[#allocation17 + $0x2]] %s6925_s1  ;;  %s6933_s23 = smov 15  }
  0x57   :  { %137 = sst [smem:[#allocation17 + $0x3]] %s6924_s2  ;;  %189 = vrot.lane.b32.xlu1 %v5923_v7, %s6933_s23  ;;  %s6934_s5 = smov [#allocation4 + $0x1]  }
  0x58   :  { %139 = sst [smem:[#allocation17 + $0x4]] %s6929_s17  ;;  %s6935_s24 = smov [#allocation16]  }
  0x59   :  { %141 = sst [smem:[#allocation17 + $0x5]] %s6920_s27  ;;  %s6936_s27 = smov 16  }
  0x5a   :  { %143 = sst [smem:[#allocation17 + $0x6]] %s6928_s4  ;;  %s6937_s26 = smov 1  }
  0x5b   :  { %145 = sst [smem:[#allocation17 + $0x7]] %s6924_s2 }
  0x5c   :  { %147 = sst [smem:[#allocation17 + $0x8]] %s6925_s1 }
  0x5d   :  { %149 = dma.general %s9222_s6, 81920, %s128_s22, %s6934_s5, %s6935_s24, [#allocation17], %s5918_s16, 0  }
  0x5e   :  { %v173_v9 = vld [vmem:[#allocation5] sm:$0x3]  ;;  %v174_v10 = vld [vmem:[#allocation5 + $0x2] sm:$0x3]  ;;  %9237 = vst [vmem:[#allocation24_spill] sm:$0xff] %v7074_v14  ;;  %9238 = vst [vmem:[#allocation25_spill] sm:$0xff] %v7081_v20 }
  0x5f   :  { %v177_v11 = vrot.slane %v174_v10, 7  ;;  %v198_v12 = vrot.slane %v173_v9, 1  ;;  %v306_v16 = vrot.slane %v173_v9, %v7074_v14  ;;  %v317_v17 = vrot.slane %v174_v10, %v7074_v14  ;;  %v384_v38 = vld [vmem:[#allocation8] sm:$0xff]  ;;  %v7096_v44 = vld [vmem:[#allocation10] ss:$0 sm:$0xff] }
  0x60   :  { %v236_v23 = vrot.slane %v173_v9, %v7081_v20  ;;  %v247_v24 = vrot.slane %v174_v10, %v7081_v20  ;;  %6147 = vmatprep.subr.mxu0 %v384_v38 }
  0x61   :  { %v179_v13 = vsel %vm178_vm4, %v177_v11, %v173_v9  ;;  %v199_v15 = vsel %vm178_vm4, %v174_v10, %v198_v12  ;;  %6148 = vmatpush3.msra.mxu0 %v384_v38  ;;  %v6730_v38 = vld [vmem:[%s9219_s3] sm:$0xff]  }
  0x62   :  { %182 = vrot.lane.b32.xlu0 %v179_v13, %s6936_s27 }
  0x66   :  { %201 = vrot.lane.b32.xlu0 %v199_v15, %s6936_s27 }
  0x6a   :  { %194 = vrot.lane.b32.xlu0 %v5924_v8, %s6937_s26 }
  0x6e   :  { %308 = vbcast.lane.b32.xlu0 %v306_v16, 256 }
  0x72   :  { %319 = vbcast.lane.b32.xlu0 %v317_v17, 256 }
  0xc9   :  { %v190_v25 = vpop.permute.xlu1 %189 }
  0xd4   :  { %v183_v18 = vpop.permute.xlu0 %182 }
  0xd5   :  { %v184_v19 = vsel %vm181_vm5, %v183_v18, %v179_v13 }
  0xd6   :  { %185 = vrot.lane.b32.xlu1 %v184_v19, %s6936_s27 }
  0xd8   :  { %v202_v21 = vpop.permute.xlu0 %201 }
  0xd9   :  { %v203_v22 = vsel %vm181_vm5, %v202_v21, %v199_v15 }
  0xda   :  { %204 = vrot.lane.b32.xlu1 %v203_v22, %s6936_s27 }
  0xdc   :  { %v195_v26 = vpop.permute.xlu0 %194 }
  0xde   :  { %238 = vbcast.lane.b32.xlu1 %v236_v23, 256 }
  0xe0   :  { %v309_v50 = vpop.permute.xlu0 %308 }
  0xe2   :  { %242 = vbcast.lane.b32.xlu1 %v236_v23, 264 }
  0xe4   :  { %v320_v52 = vpop.permute.xlu0 %319 }
  0xe6   :  { %312 = vbcast.lane.b32.xlu1 %v306_v16, 264 }
  0xea   :  { %249 = vbcast.lane.b32.xlu1 %v247_v24, 256 }
  0xee   :  { %253 = vbcast.lane.b32.xlu1 %v247_v24, 264 }
  0xf2   :  { %323 = vbcast.lane.b32.xlu1 %v317_v17, 264 }
 0x148   :  { %v186_v27 = vpop.permute.xlu1 %185 }
 0x149   :  { %v187_v28 = vsel %vm181_vm5, %v186_v27, %v179_v13 }
 0x14a   :  { %v192_v29 = vmul.f32 %v190_v25, %v187_v28  ;;  %v197_v30 = vmul.f32 %v195_v26, %v187_v28 }
 0x14c   :  { %v205_v31 = vpop.permute.xlu1 %204  ;;  %v212_v32 = vrot.slane %v192_v29, %v7081_v20  ;;  %v258_v33 = vrot.slane %v197_v30, %v7081_v20  ;;  %v270_v40 = vrot.slane %v197_v30, %v7074_v14  ;;  %v224_v43 = vrot.slane %v192_v29, %v7074_v14 }
 0x14d   :  { %v206_v34 = vsel %vm181_vm5, %v205_v31, %v199_v15 }
 0x14e   :  { %v207_v35 = vmul.f32 %v206_v34, %v190_v25  ;;  %v208_v36 = vmul.f32 %v206_v34, %v195_v26  ;;  %215 = vbcast.lane.b32.xlu0 %v212_v32, 271  ;;  %265 = vbcast.lane.b32.xlu1 %v258_v33, 265 }
 0x150   :  { %v282_v37 = vrot.slane %v207_v35, %v7081_v20  ;;  %v328_v39 = vrot.slane %v208_v36, %v7081_v20  ;;  %v294_v41 = vrot.slane %v207_v35, %v7074_v14  ;;  %v340_v42 = vrot.slane %v208_v36, %v7074_v14  ;;  %v239_v45 = vpop.permute.xlu1 %238 }
 0x152   :  { %219 = vbcast.lane.b32.xlu0 %v212_v32, 279  ;;  %289 = vbcast.lane.b32.xlu1 %v282_v37, 279 }
 0x154   :  { %v243_v46 = vpop.permute.xlu1 %242 }
 0x156   :  { %261 = vbcast.lane.b32.xlu0 %v258_v33, 257  ;;  %335 = vbcast.lane.b32.xlu1 %v328_v39, 265 }
 0x158   :  { %v313_v47 = vpop.permute.xlu1 %312 }
 0x15a   :  { %285 = vbcast.lane.b32.xlu0 %v282_v37, 271  ;;  %277 = vbcast.lane.b32.xlu1 %v270_v40, 265 }
 0x15c   :  { %v250_v48 = vpop.permute.xlu1 %249 }
 0x15e   :  { %301 = vbcast.lane.b32.xlu1 %v294_v41, 279  ;;  %331 = vbcast.lane.b32.xlu0 %v328_v39, 257  ;;  %v6938_v39 = vmov 0  }
 0x15f   :  { %745 = vmatprep.subr.bf16.mxu0 %v6938_v39 }
 0x160   :  { %v254_v49 = vpop.permute.xlu1 %253 }
 0x162   :  { %347 = vbcast.lane.b32.xlu1 %v340_v42, 265  ;;  %227 = vbcast.lane.b32.xlu0 %v224_v43, 271 }
 0x164   :  { %v324_v51 = vpop.permute.xlu1 %323 }
 0x166   :  { %231 = vbcast.lane.b32.xlu0 %v224_v43, 279  ;;  %v6734_v43 = vld [vmem:[%s9219_s3 + $0x20] sm:$0xff]  }
 0x16a   :  { %273 = vbcast.lane.b32.xlu0 %v270_v40, 257  ;;  %v6731_v40 = vld [vmem:[%s9219_s3 + $0x8] sm:$0xff]  }
 0x16e   :  { %297 = vbcast.lane.b32.xlu0 %v294_v41, 271  ;;  %v6732_v41 = vld [vmem:[%s9219_s3 + $0x10] sm:$0xff]  }
 0x172   :  { %343 = vbcast.lane.b32.xlu0 %v340_v42, 257  ;;  %v6733_v42 = vld [vmem:[%s9219_s3 + $0x18] sm:$0xff]  }
 0x176   :  { %493 = vrot.lane.b32.xlu0 %v7096_v44, %s6924_s2 }
 0x1c0   :  { %v266_v53 = vpop.permute.xlu1 %265  ;;  %v216_v54 = vpop.permute.xlu0 %215 }
 0x1c1   :  { %v350_v61 = vsel %vm349_vm7, %v216_v54, %v239_v45  ;;  %v6735_v45 = vld [vmem:[%s9219_s3 + $0x28] sm:$0xff]  }
 0x1c4   :  { %v220_v55 = vpop.permute.xlu0 %219  ;;  %v290_v56 = vpop.permute.xlu1 %289 }
 0x1c5   :  { %v351_v57 = vsel %vm349_vm7, %v220_v55, %v243_v46  ;;  %v6736_v46 = vld [vmem:[%s9219_s3 + $0x30] sm:$0xff]  }
 0x1c6   :  { %v356_v58 = vsel %vm354_vm6, %v351_v57, %v266_v53 }
 0x1c7   :  { %v361_v59 = vsel %vm359_vm8, %v356_v58, %v290_v56  ;;  %v6739_v58 = vld [vmem:[%s9219_s3 + $0x48] sm:$0xff]  }
 0x1c8   :  { %v262_v60 = vpop.permute.xlu0 %261  ;;  %v336_v62 = vpop.permute.xlu1 %335  ;;  %v366_v63 = vsel %vm364_vm9, %v361_v59, %v313_v47  ;;  %v6737_v47 = vld [vmem:[%s9219_s3 + $0x38] sm:$0xff]  }
 0x1c9   :  { %v355_v0 = vsel %vm354_vm6, %v350_v61, %v262_v60  ;;  %v371_v5 = vsel %vm369_vm10, %v366_v63, %v336_v62  ;;  %v6740_v63 = vld [vmem:[%s9219_s3 + $0x50] sm:$0xff]  }
 0x1ca   :  { %v376_v9 = vsel %vm374_vm11, %v371_v5, 0.0 }
 0x1cb   :  { %v381_v15 = vsel %vm379_vm12, %v376_v9, 0.0 }
 0x1cc   :  { %v286_v2 = vpop.permute.xlu0 %285  ;;  %v278_v16 = vpop.permute.xlu1 %277 }
 0x1cd   :  { %v360_v3 = vsel %vm359_vm8, %v355_v0, %v286_v2 }
 0x1ce   :  { %v365_v7 = vsel %vm364_vm9, %v360_v3, %v309_v50 }
 0x1d0   :  { %v332_v8 = vpop.permute.xlu0 %331  ;;  %v302_v21 = vpop.permute.xlu1 %301 }
 0x1d1   :  { %v370_v10 = vsel %vm369_vm10, %v365_v7, %v332_v8  ;;  %v6741_v7 = vld [vmem:[%s9219_s3 + $0x58] sm:$0xff]  }
 0x1d2   :  { %v375_v11 = vsel %vm374_vm11, %v370_v10, 0.0 }
 0x1d3   :  { %v380_v12 = vsel %vm379_vm12, %v375_v11, 0.0 }
 0x1d4   :  { %6149 = vmatprep.mubr.msk.f32.mxu0 %vm385_vm13, %v380_v12  ;;  %v228_v13 = vpop.permute.xlu0 %227  ;;  %v348_v28 = vpop.permute.xlu1 %347 }
 0x1d5   :  { %6150 = vmatmul.mubr.msk.f32.vlgmr.msra.gmra.mrb[0].mxu0 %vm385_vm13, %v381_v15  ;;  %v352_v24 = vsel %vm349_vm7, %v228_v13, %v250_v48 }
 0x1d6   :  { %746 = vmatpush1.bf16.msra.mxu0 %v6730_v38 }
 0x1d7   :  { %747 = vmatprep.subr.bf16.mxu0 %v6938_v39 }
 0x1d8   :  { %v232_v17 = vpop.permute.xlu0 %231 }
 0x1d9   :  { %v353_v18 = vsel %vm349_vm7, %v232_v17, %v254_v49  ;;  %v6738_v49 = vld [vmem:[%s9219_s3 + $0x40] sm:$0xff]  }
 0x1da   :  { %v358_v19 = vsel %vm354_vm6, %v353_v18, %v278_v16  ;;  %748 = vmatpush1.bf16.msra.mxu0 %v6731_v40 }
 0x1db   :  { %v363_v22 = vsel %vm359_vm8, %v358_v19, %v302_v21  ;;  %749 = vmatprep.subr.bf16.mxu0 %v6938_v39 }
 0x1dc   :  { %v274_v23 = vpop.permute.xlu0 %273  ;;  %v368_v25 = vsel %vm364_vm9, %v363_v22, %v324_v51 }
 0x1dd   :  { %v357_v26 = vsel %vm354_vm6, %v352_v24, %v274_v23  ;;  %v373_v30 = vsel %vm369_vm10, %v368_v25, %v348_v28 }
 0x1de   :  { %v378_v34 = vsel %vm374_vm11, %v373_v30, 0.0  ;;  %750 = vmatpush1.bf16.msra.mxu0 %v6732_v41 }
 0x1df   :  { %v383_v37 = vsel %vm379_vm12, %v378_v34, 0.0  ;;  %751 = vmatprep.subr.bf16.mxu0 %v6938_v39 }
 0x1e0   :  { %v298_v27 = vpop.permute.xlu0 %297 }
 0x1e1   :  { %v362_v29 = vsel %vm359_vm8, %v357_v26, %v298_v27 }
 0x1e2   :  { %v367_v31 = vsel %vm364_vm9, %v362_v29, %v320_v52  ;;  %752 = vmatpush1.bf16.msra.mxu0 %v6733_v42 }
 0x1e3   :  { %753 = vmatprep.subr.bf16.mxu0 %v6938_v39 }
 0x1e4   :  { %v344_v32 = vpop.permute.xlu0 %343 }
 0x1e5   :  { %v372_v33 = vsel %vm369_vm10, %v367_v31, %v344_v32 }
 0x1e6   :  { %v377_v35 = vsel %vm374_vm11, %v372_v33, 0.0  ;;  %754 = vmatpush1.bf16.msra.mxu0 %v6734_v43 }
 0x1e7   :  { %v382_v36 = vsel %vm379_vm12, %v377_v35, 0.0  ;;  %755 = vmatprep.subr.bf16.mxu0 %v6938_v39 }
 0x1e8   :  { %6152 = vmatprep.mubr.msk.f32.mxu0 %vm385_vm13, %v382_v36  ;;  %v494_v48 = vpop.permute.xlu0 %493 }
 0x1e9   :  { %6153 = vmatmul.mubr.msk.f32.gmra.mrb[2].mxu0 %vm385_vm13, %v383_v37 }
 0x1ea   :  { %756 = vmatpush1.bf16.msra.mxu0 %v6735_v45 }
 0x1eb   :  { %757 = vmatprep.subr.bf16.mxu0 %v6938_v39 }
 0x1ee   :  { %758 = vmatpush1.bf16.msra.mxu0 %v6736_v46 }
 0x1ef   :  { %759 = vmatprep.subr.bf16.mxu0 %v6938_v39 }
 0x1f2   :  { %760 = vmatpush1.bf16.msra.mxu0 %v6737_v47 }
 0x1f3   :  { %761 = vmatprep.subr.bf16.mxu0 %v6938_v39 }
 0x1f6   :  { %762 = vmatpush1.bf16.msra.mxu0 %v6738_v49 }
 0x1f7   :  { %763 = vmatprep.subr.bf16.mxu0 %v6938_v39 }
 0x1fa   :  { %764 = vmatpush1.bf16.msra.mxu0 %v6739_v58 }
 0x1fb   :  { %765 = vmatprep.subr.bf16.mxu0 %v6938_v39 }
 0x1fe   :  { %766 = vmatpush1.bf16.msra.mxu0 %v6740_v63 }
 0x1ff   :  { %767 = vmatprep.subr.bf16.mxu0 %v6938_v39 }
 0x202   :  { %768 = vmatpush1.bf16.msra.mxu0 %v6741_v7 }
 0x203   :  { %998 = vmatprep.subr.bf16.mxu0 %v6938_v39 }
 0x2a8   :  { %v6151_v50 = vpop.f32.mrb[0].mxu0 }
 0x2a9   :  { %v485_v51 = vadd.f32 %v6151_v50, %v7096_v44  ;;  %v464_v52 = vpop.f32.mrb[1].mxu0  ;;  %v497_v53 = vadd.f32 %v6151_v50, %v494_v48 }
 0x2aa   :  { %v484_v54 = vadd.f32 %v7096_v44, %v464_v52  ;;  %v496_v55 = vadd.f32 %v494_v48, %v464_v52 }
 0x2ab   :  { %v7170_v56 = vmax.f32 %v485_v51, 0.0  ;;  %v501_v57 = vmax.f32 %v497_v53, 0.0 }
 0x2ac   :  { %v7175_v59 = vmax.f32 %v484_v54, 0.0  ;;  %v500_v60 = vmax.f32 %v496_v55, 0.0 }
 0x2ad   :  { %v607_v61 = vrot.slane %v7170_v56, 1  ;;  %510 = vrot.lane.b32.xlu0 %v501_v57, %s6924_s2  ;;  %v574_v24 = vrot.slane %v7170_v56, 7 }
 0x2ae   :  { %v603_v62 = vrot.slane %v7175_v59, 1  ;;  %508 = vrot.lane.b32.xlu1 %v500_v60, %s6924_s2  ;;  %v599_v21 = vpack.c.bf16 %v7170_v56, %v7175_v59  ;;  %v570_v25 = vrot.slane %v7175_v59, 7 }
 0x2b0   :  { %v616_v0 = vsel %vm611_vm14, %v607_v61, %v603_v62  ;;  %v612_v3 = vsel %vm611_vm14, %v603_v62, %v607_v61  ;;  %v583_v28 = vsel %vm578_vm0, %v574_v24, %v570_v25  ;;  %v579_v40 = vsel %vm578_vm0, %v570_v25, %v574_v24 }
 0x2b1   :  { %v621_v2 = vmul.f32 %v7057_v6, %v616_v0  ;;  %v587_v31 = vmul.f32 %v7055_v4, %v583_v28 }
 0x2b3   :  { %v628_v5 = vpack.c.bf16 %v621_v2, %v612_v3  ;;  %v595_v41 = vpack.c.bf16 %v579_v40, %v587_v31  ;;  %v6747_v31 = vld [vmem:[%s9219_s3 + $0x88] sm:$0xff]  }
 0x2b4   :  { %v7331_v40 = vld [vmem:[#allocation10 + $0x1] ss:$0 sm:$0xff] }
 0x2b5   :  { %5941 = vmatprep.mubr.msk.bf16.mxu0 %vm644_vm15, %v628_v5 }
 0x2bc   :  { %v6154_v8 = vpop.f32.mrb[2].mxu0 }
 0x2bd   :  { %v487_v9 = vadd.f32 %v6154_v8, %v7096_v44  ;;  %v499_v10 = vadd.f32 %v6154_v8, %v494_v48  ;;  %v474_v11 = vpop.f32.mrb[3].mxu0 }
 0x2be   :  { %v486_v12 = vadd.f32 %v7096_v44, %v474_v11  ;;  %v498_v13 = vadd.f32 %v494_v48, %v474_v11 }
 0x2bf   :  { %v7200_v15 = vmax.f32 %v487_v9, 0.0  ;;  %v503_v16 = vmax.f32 %v499_v10, 0.0 }
 0x2c0   :  { %v7202_v17 = vmax.f32 %v486_v12, 0.0  ;;  %v502_v18 = vmax.f32 %v498_v13, 0.0 }
 0x2c1   :  { %514 = vrot.lane.b32.xlu0 %v503_v16, %s6924_s2  ;;  %v608_v26 = vrot.slane %v7200_v15, 1  ;;  %v575_v32 = vrot.slane %v7200_v15, 7  ;;  %v6742_v16 = vld [vmem:[%s9219_s3 + $0x60] sm:$0xff]  }
 0x2c2   :  { %512 = vrot.lane.b32.xlu1 %v502_v18, %s6924_s2  ;;  %v600_v19 = vpack.c.bf16 %v7200_v15, %v7202_v17  ;;  %v604_v27 = vrot.slane %v7202_v17, 1  ;;  %v571_v33 = vrot.slane %v7202_v17, 7  ;;  %v6743_v18 = vld [vmem:[%s9219_s3 + $0x68] sm:$0xff]  }
 0x2c4   :  { %v617_v29 = vsel %vm611_vm14, %v608_v26, %v604_v27  ;;  %v613_v43 = vsel %vm611_vm14, %v604_v27, %v608_v26  ;;  %v584_v45 = vsel %vm578_vm0, %v575_v32, %v571_v33  ;;  %v580_v52 = vsel %vm578_vm0, %v571_v33, %v575_v32  ;;  %v6745_v26 = vld [vmem:[%s9219_s3 + $0x78] sm:$0xff]   ;;  %v6748_v32 = vld [vmem:[%s9219_s3 + $0x90] sm:$0xff]  }
 0x2c5   :  { %638 = vrot.lane.b32.xlu0 %v600_v19, %s6924_s2  ;;  %v623_v36 = vmul.f32 %v7057_v6, %v617_v29  ;;  %v589_v49 = vmul.f32 %v7055_v4, %v584_v45  ;;  %v6746_v29 = vld [vmem:[%s9219_s3 + $0x80] sm:$0xff]   ;;  %v6749_v33 = vld [vmem:[%s9219_s3 + $0x98] sm:$0xff]  }
 0x2c6   :  { %636 = vrot.lane.b32.xlu1 %v599_v21, %s6924_s2 }
 0x2c7   :  { %v629_v47 = vpack.c.bf16 %v623_v36, %v613_v43  ;;  %v596_v53 = vpack.c.bf16 %v580_v52, %v589_v49  ;;  %v6751_v36 = vld [vmem:[%s9219_s3 + $0xa8] sm:$0xff]  }
 0x31f   :  { %v7212_v44 = vpop.permute.xlu0 %510 }
 0x320   :  { %v7214_v22 = vpop.permute.xlu1 %508  ;;  %v609_v37 = vrot.slane %v7212_v44, 1  ;;  %v576_v58 = vrot.slane %v7212_v44, 7 }
 0x321   :  { %v601_v23 = vpack.c.bf16 %v7212_v44, %v7214_v22  ;;  %v605_v38 = vrot.slane %v7214_v22, 1  ;;  %v572_v60 = vrot.slane %v7214_v22, 7 }
 0x323   :  { %640 = vrot.lane.b32.xlu1 %v601_v23, %s6924_s2  ;;  %v618_v48 = vsel %vm611_vm14, %v609_v37, %v605_v38  ;;  %v614_v54 = vsel %vm611_vm14, %v605_v38, %v609_v37  ;;  %v585_v63 = vsel %vm578_vm0, %v576_v58, %v572_v60  ;;  %v581_v5 = vsel %vm578_vm0, %v572_v60, %v576_v58  ;;  %v6744_v23 = vld [vmem:[%s9219_s3 + $0x70] sm:$0xff]   ;;  %v6753_v38 = vld [vmem:[%s9219_s3 + $0xb8] sm:$0xff]  }
 0x324   :  { %v625_v50 = vmul.f32 %v7057_v6, %v618_v48  ;;  %v591_v2 = vmul.f32 %v7055_v4, %v585_v63  ;;  %v6752_v37 = vld [vmem:[%s9219_s3 + $0xb0] sm:$0xff]  }
 0x326   :  { %v630_v57 = vpack.c.bf16 %v625_v50, %v614_v54  ;;  %v597_v7 = vpack.c.bf16 %v581_v5, %v591_v2 }
 0x333   :  { %v7228_v30 = vpop.permute.xlu0 %514 }
 0x334   :  { %v7233_v34 = vpop.permute.xlu1 %512  ;;  %v610_v61 = vrot.slane %v7228_v30, 1  ;;  %v577_v12 = vrot.slane %v7228_v30, 7 }
 0x335   :  { %v602_v35 = vpack.c.bf16 %v7228_v30, %v7233_v34  ;;  %v606_v62 = vrot.slane %v7233_v34, 1  ;;  %v573_v13 = vrot.slane %v7233_v34, 7 }
 0x337   :  { %642 = vrot.lane.b32.xlu0 %v602_v35, %s6924_s2  ;;  %v639_v51 = vpop.permute.xlu0 %638  ;;  %v619_v0 = vsel %vm611_vm14, %v610_v61, %v606_v62  ;;  %v615_v9 = vsel %vm611_vm14, %v606_v62, %v610_v61  ;;  %v586_v19 = vsel %vm578_vm0, %v577_v12, %v573_v13  ;;  %v582_v24 = vsel %vm578_vm0, %v573_v13, %v577_v12  ;;  %v6750_v35 = vld [vmem:[%s9219_s3 + $0xa0] sm:$0xff]  }
 0x338   :  { %v637_v42 = vpop.permute.xlu1 %636  ;;  %v651_v55 = vsel %vm644_vm15, %v596_v53, %v639_v51  ;;  %v627_v3 = vmul.f32 %v7057_v6, %v619_v0  ;;  %v593_v21 = vmul.f32 %v7055_v4, %v586_v19 }
 0x339   :  { %v647_v46 = vsel %vm644_vm15, %v595_v41, %v637_v42 }
 0x33a   :  { %778 = vmatmul.mubr.bf16.vlgmr.msra.gmra.mrb[4].mxu0 %v647_v46  ;;  %v631_v11 = vpack.c.bf16 %v627_v3, %v615_v9  ;;  %v598_v25 = vpack.c.bf16 %v582_v24, %v593_v21 }
 0x33b   :  { %5942 = vmatprep.mubr.msk.bf16.mxu0 %vm644_vm15, %v629_v47  ;;  %999 = vmatpush1.bf16.msra.mxu0 %v6742_v16 }
 0x33c   :  { %1000 = vmatprep.subr.bf16.mxu0 %v6938_v39 }
 0x33f   :  { %1001 = vmatpush1.bf16.msra.mxu0 %v6743_v18 }
 0x340   :  { %1002 = vmatprep.subr.bf16.mxu0 %v6938_v39 }
 0x342   :  { %786 = vmatmul.mubr.bf16.gmra.mrb[8].mxu0 %v651_v55 }
 0x343   :  { %5943 = vmatprep.mubr.msk.bf16.mxu0 %vm644_vm15, %v630_v57  ;;  %1003 = vmatpush1.bf16.msra.mxu0 %v6744_v23 }
 0x344   :  { %1004 = vmatprep.subr.bf16.mxu0 %v6938_v39 }
 0x347   :  { %1005 = vmatpush1.bf16.msra.mxu0 %v6745_v26 }
 0x348   :  { %1006 = vmatprep.subr.bf16.mxu0 %v6938_v39 }
 0x34b   :  { %1007 = vmatpush1.bf16.msra.mxu0 %v6746_v29 }
 0x34c   :  { %1008 = vmatprep.subr.bf16.mxu0 %v6938_v39 }
 0x34f   :  { %1009 = vmatpush1.bf16.msra.mxu0 %v6747_v31 }
 0x350   :  { %1010 = vmatprep.subr.bf16.mxu0 %v6938_v39 }
 0x353   :  { %1011 = vmatpush1.bf16.msra.mxu0 %v6748_v32 }
 0x354   :  { %1012 = vmatprep.subr.bf16.mxu0 %v6938_v39 }
 0x357   :  { %1013 = vmatpush1.bf16.msra.mxu0 %v6749_v33 }
 0x358   :  { %1014 = vmatprep.subr.bf16.mxu0 %v6938_v39 }
 0x35b   :  { %1015 = vmatpush1.bf16.msra.mxu0 %v6750_v35 }
 0x35c   :  { %1016 = vmatprep.subr.bf16.mxu0 %v6938_v39 }
 0x35f   :  { %1017 = vmatpush1.bf16.msra.mxu0 %v6751_v36 }
 0x360   :  { %1018 = vmatprep.subr.bf16.mxu0 %v6938_v39 }
 0x363   :  { %1019 = vmatpush1.bf16.msra.mxu0 %v6752_v37 }
 0x364   :  { %1020 = vmatprep.subr.bf16.mxu0 %v6938_v39 }
 0x367   :  { %1021 = vmatpush1.bf16.msra.mxu0 %v6753_v38 }
 0x368   :  { %1451 = vmatprep.subr.bf16.mxu0 %v6938_v39 }
 0x395   :  { %v641_v8 = vpop.permute.xlu1 %640 }
 0x396   :  { %v655_v10 = vsel %vm644_vm15, %v597_v7, %v641_v8 }
 0x397   :  { %794 = vmatmul.mubr.bf16.gmra.mrb[12].mxu0 %v655_v10 }
 0x398   :  { %5944 = vmatprep.mubr.msk.bf16.mxu0 %vm644_vm15, %v631_v11 }
 0x3a9   :  { %v643_v27 = vpop.permute.xlu0 %642 }
 0x3aa   :  { %v659_v28 = vsel %vm644_vm15, %v598_v25, %v643_v27 }
 0x3ab   :  { %802 = vmatmul.mubr.bf16.gmra.mrb[16].mxu0 %v659_v28 }
 0x40d   :  { %v779_v41 = vpop.f32.mrb[4].mxu0 }
 0x40e   :  { %v810_v42 = vadd.f32 %v779_v41, %v7331_v40  ;;  %v781_v43 = vpop.f32.mrb[5].mxu0 }
 0x40f   :  { %v782_v45 = vpop.f32.mrb[6].mxu0 }
 0x410   :  { %v818_v46 = vmax.f32 %v810_v42, 0.0  ;;  %v811_v47 = vadd.f32 %v782_v45, %v7331_v40  ;;  %v784_v48 = vpop.f32.mrb[7].mxu0 }
 0x412   :  { %v819_v49 = vmax.f32 %v811_v47, 0.0  ;;  %v826_v50 = vrot.slane %v818_v46, 7  ;;  %v858_v51 = vrot.slane %v818_v46, 1 }
 0x414   :  { %v830_v52 = vrot.slane %v819_v49, 7  ;;  %v862_v53 = vrot.slane %v819_v49, 1  ;;  %v854_v54 = vpack.c.bf16 %v819_v49, %v818_v46 }
 0x415   :  { %v787_v55 = vpop.f32.mrb[8].mxu0 }
 0x416   :  { %v870_v57 = vsel %vm611_vm14, %v862_v53, %v858_v51  ;;  %v812_v58 = vadd.f32 %v787_v55, %v7331_v40  ;;  %890 = vrot.lane.b32.xlu1 %v854_v54, %s6924_s2  ;;  %v789_v60 = vpop.f32.mrb[9].mxu0  ;;  %v866_v61 = vsel %vm611_vm14, %v858_v51, %v862_v53  ;;  %v7343_v62 = vsel %vm578_vm0, %v826_v50, %v830_v52 }
 0x417   :  { %v790_v63 = vpop.f32.mrb[10].mxu0  ;;  %v875_v0 = vmul.f32 %v7057_v6, %v870_v57  ;;  %v838_v2 = vsel %vm578_vm0, %v830_v52, %v826_v50 }
 0x418   :  { %v820_v3 = vmax.f32 %v812_v58, 0.0  ;;  %v813_v5 = vadd.f32 %v790_v63, %v7331_v40  ;;  %v792_v7 = vpop.f32.mrb[11].mxu0  ;;  %v7350_v8 = vmul.f32 %v7055_v4, %v838_v2 }
 0x419   :  { %v882_v9 = vpack.c.bf16 %v875_v0, %v866_v61 }
 0x41a   :  { %v821_v10 = vmax.f32 %v813_v5, 0.0  ;;  %v850_v11 = vpack.c.bf16 %v7343_v62, %v7350_v8  ;;  %v827_v12 = vrot.slane %v820_v3, 7  ;;  %v859_v13 = vrot.slane %v820_v3, 1 }
 0x41b   :  { %5957 = vmatprep.mubr.msk.bf16.mxu0 %vm644_vm15, %v882_v9 }
 0x41c   :  { %v831_v16 = vrot.slane %v821_v10, 7  ;;  %v863_v18 = vrot.slane %v821_v10, 1  ;;  %v855_v19 = vpack.c.bf16 %v821_v10, %v820_v3 }
 0x41e   :  { %v871_v21 = vsel %vm611_vm14, %v863_v18, %v859_v13  ;;  %892 = vrot.lane.b32.xlu0 %v855_v19, %s6924_s2  ;;  %v867_v23 = vsel %vm611_vm14, %v859_v13, %v863_v18  ;;  %v835_v24 = vsel %vm578_vm0, %v827_v12, %v831_v16  ;;  %v839_v25 = vsel %vm578_vm0, %v831_v16, %v827_v12 }
 0x41f   :  { %v877_v26 = vmul.f32 %v7057_v6, %v871_v21  ;;  %v844_v27 = vmul.f32 %v7055_v4, %v839_v25 }
 0x421   :  { %v883_v28 = vpack.c.bf16 %v877_v26, %v867_v23  ;;  %v851_v29 = vpack.c.bf16 %v835_v24, %v844_v27  ;;  %v6754_v27 = vld [vmem:[#allocation11 + $0x120] sm:$0xff]  }
 0x422   :  { %6155 = vmatprep.subr.bf16.mxu1 %v6754_v27 }
 0x423   :  { %6156 = vmatpush3.bf16.msra.mxu1 %v6754_v27 }
 0x46a   :  { %v795_v31 = vpop.f32.mrb[12].mxu0 }
 0x46b   :  { %v814_v32 = vadd.f32 %v795_v31, %v7331_v40  ;;  %v797_v33 = vpop.f32.mrb[13].mxu0  ;;  %v6755_v31 = vld [vmem:[#allocation11 + $0x128] sm:$0xff]  }
 0x46c   :  { %v798_v35 = vpop.f32.mrb[14].mxu0  ;;  %6157 = vmatprep.subr.bf16.mxu1 %v6755_v31 }
 0x46d   :  { %v822_v36 = vmax.f32 %v814_v32, 0.0  ;;  %v815_v37 = vadd.f32 %v798_v35, %v7331_v40  ;;  %v800_v38 = vpop.f32.mrb[15].mxu0  ;;  %6158 = vmatpush3.bf16.msra.mxu1 %v6755_v31  ;;  %v6759_v35 = vld [vmem:[#allocation11 + $0x8] sm:$0xff]  }
 0x46f   :  { %v823_v41 = vmax.f32 %v815_v37, 0.0  ;;  %v828_v42 = vrot.slane %v822_v36, 7  ;;  %v860_v43 = vrot.slane %v822_v36, 1 }
 0x471   :  { %v832_v45 = vrot.slane %v823_v41, 7  ;;  %v864_v46 = vrot.slane %v823_v41, 1  ;;  %v856_v47 = vpack.c.bf16 %v823_v41, %v822_v36  ;;  %v6760_v36 = vld [vmem:[#allocation11 + $0x10] sm:$0xff]   ;;  %v6761_v41 = vld [vmem:[#allocation11 + $0x18] sm:$0xff]  }
 0x473   :  { %v872_v48 = vsel %vm611_vm14, %v864_v46, %v860_v43  ;;  %894 = vrot.lane.b32.xlu1 %v856_v47, %s6924_s2  ;;  %v868_v49 = vsel %vm611_vm14, %v860_v43, %v864_v46  ;;  %v836_v50 = vsel %vm578_vm0, %v828_v42, %v832_v45  ;;  %v840_v51 = vsel %vm578_vm0, %v832_v45, %v828_v42  ;;  %v6762_v42 = vld [vmem:[#allocation11 + $0x20] sm:$0xff]   ;;  %v6763_v43 = vld [vmem:[#allocation11 + $0x28] sm:$0xff]   ;;  %v6764_v45 = vld [vmem:[#allocation11 + $0x30] sm:$0xff]  }
 0x474   :  { %v879_v52 = vmul.f32 %v7057_v6, %v872_v48  ;;  %v846_v53 = vmul.f32 %v7055_v4, %v840_v51  ;;  %v6765_v46 = vld [vmem:[#allocation11 + $0x38] sm:$0xff]   ;;  %v6766_v47 = vld [vmem:[#allocation11 + $0x40] sm:$0xff]   ;;  %v6767_v48 = vld [vmem:[#allocation11 + $0x48] sm:$0xff]  }
 0x475   :  { %v7410_v51 = vld [vmem:[#allocation10 + $0x2] ss:$0 sm:$0xff] }
 0x476   :  { %v884_v54 = vpack.c.bf16 %v879_v52, %v868_v49  ;;  %v852_v55 = vpack.c.bf16 %v836_v50, %v846_v53  ;;  %v6768_v49 = vld [vmem:[#allocation11 + $0x50] sm:$0xff]   ;;  %v6769_v50 = vld [vmem:[#allocation11 + $0x58] sm:$0xff]  }
 0x47e   :  { %v803_v57 = vpop.f32.mrb[16].mxu0 }
 0x47f   :  { %v816_v58 = vadd.f32 %v803_v57, %v7331_v40  ;;  %v805_v60 = vpop.f32.mrb[17].mxu0 }
 0x480   :  { %v806_v61 = vpop.f32.mrb[18].mxu0 }
 0x481   :  { %v824_v62 = vmax.f32 %v816_v58, 0.0  ;;  %v817_v63 = vadd.f32 %v806_v61, %v7331_v40  ;;  %v808_v0 = vpop.f32.mrb[19].mxu0 }
 0x483   :  { %v825_v2 = vmax.f32 %v817_v63, 0.0  ;;  %v829_v3 = vrot.slane %v824_v62, 7  ;;  %v861_v5 = vrot.slane %v824_v62, 1 }
 0x485   :  { %v833_v7 = vrot.slane %v825_v2, 7  ;;  %v865_v8 = vrot.slane %v825_v2, 1  ;;  %v857_v9 = vpack.c.bf16 %v825_v2, %v824_v62 }
 0x487   :  { %v873_v10 = vsel %vm611_vm14, %v865_v8, %v861_v5  ;;  %896 = vrot.lane.b32.xlu0 %v857_v9, %s6924_s2  ;;  %v869_v12 = vsel %vm611_vm14, %v861_v5, %v865_v8  ;;  %v837_v13 = vsel %vm578_vm0, %v829_v3, %v833_v7  ;;  %v841_v40 = vsel %vm578_vm0, %v833_v7, %v829_v3 }
 0x488   :  { %v891_v16 = vpop.permute.xlu1 %890  ;;  %v881_v18 = vmul.f32 %v7057_v6, %v873_v10  ;;  %v848_v19 = vmul.f32 %v7055_v4, %v841_v40 }
 0x489   :  { %v900_v21 = vsel %vm644_vm15, %v850_v11, %v891_v16  ;;  %v6756_v11 = vld [vmem:[#allocation11 + $0x130] sm:$0xff]  }
 0x48a   :  { %1031 = vmatmul.mubr.bf16.vlgmr.msra.gmra.mrb[20].mxu0 %v900_v21  ;;  %v885_v23 = vpack.c.bf16 %v881_v18, %v869_v12  ;;  %v853_v24 = vpack.c.bf16 %v837_v13, %v848_v19  ;;  %6159 = vmatprep.subr.bf16.mxu1 %v6756_v11 }
 0x48b   :  { %5958 = vmatprep.mubr.msk.bf16.mxu0 %vm644_vm15, %v883_v28  ;;  %6160 = vmatpush3.bf16.msra.mxu1 %v6756_v11  ;;  %v6757_v28 = vld [vmem:[#allocation11 + $0x138] sm:$0xff]  }
 0x48c   :  { %6161 = vmatprep.subr.bf16.mxu1 %v6757_v28 }
 0x48f   :  { %6162 = vmatpush3.bf16.msra.mxu1 %v6757_v28 }
 0x490   :  { %v893_v25 = vpop.permute.xlu0 %892 }
 0x491   :  { %v904_v26 = vsel %vm644_vm15, %v851_v29, %v893_v25  ;;  %v6758_v29 = vld [vmem:[#allocation11] sm:$0xff]  }
 0x492   :  { %1039 = vmatmul.mubr.bf16.gmra.mrb[24].mxu0 %v904_v26 }
 0x493   :  { %5959 = vmatprep.mubr.msk.bf16.mxu0 %vm644_vm15, %v884_v54  ;;  %1452 = vmatpush1.bf16.msra.mxu0 %v6758_v29 }
 0x494   :  { %1453 = vmatprep.subr.bf16.mxu0 %v6938_v39 }
 0x497   :  { %1454 = vmatpush1.bf16.msra.mxu0 %v6759_v35 }
 0x498   :  { %1455 = vmatprep.subr.bf16.mxu0 %v6938_v39 }
 0x49b   :  { %1456 = vmatpush1.bf16.msra.mxu0 %v6760_v36 }
 0x49c   :  { %1457 = vmatprep.subr.bf16.mxu0 %v6938_v39 }
 0x49f   :  { %1458 = vmatpush1.bf16.msra.mxu0 %v6761_v41 }
 0x4a0   :  { %1459 = vmatprep.subr.bf16.mxu0 %v6938_v39 }
 0x4a3   :  { %1460 = vmatpush1.bf16.msra.mxu0 %v6762_v42 }
 0x4a4   :  { %1461 = vmatprep.subr.bf16.mxu0 %v6938_v39 }
 0x4a7   :  { %1462 = vmatpush1.bf16.msra.mxu0 %v6763_v43 }
 0x4a8   :  { %1463 = vmatprep.subr.bf16.mxu0 %v6938_v39 }
 0x4ab   :  { %1464 = vmatpush1.bf16.msra.mxu0 %v6764_v45 }
 0x4ac   :  { %1465 = vmatprep.subr.bf16.mxu0 %v6938_v39 }
 0x4af   :  { %1466 = vmatpush1.bf16.msra.mxu0 %v6765_v46 }
 0x4b0   :  { %1467 = vmatprep.subr.bf16.mxu0 %v6938_v39 }
 0x4b3   :  { %1468 = vmatpush1.bf16.msra.mxu0 %v6766_v47 }
 0x4b4   :  { %1469 = vmatprep.subr.bf16.mxu0 %v6938_v39 }
 0x4b7   :  { %1470 = vmatpush1.bf16.msra.mxu0 %v6767_v48 }
 0x4b8   :  { %1471 = vmatprep.subr.bf16.mxu0 %v6938_v39 }
 0x4bb   :  { %1472 = vmatpush1.bf16.msra.mxu0 %v6768_v49 }
 0x4bc   :  { %1473 = vmatprep.subr.bf16.mxu0 %v6938_v39 }
 0x4bf   :  { %1474 = vmatpush1.bf16.msra.mxu0 %v6769_v50 }
 0x4e5   :  { %v895_v32 = vpop.permute.xlu1 %894 }
 0x4e6   :  { %v908_v33 = vsel %vm644_vm15, %v852_v55, %v895_v32 }
 0x4e7   :  { %1047 = vmatmul.mubr.bf16.gmra.mrb[28].mxu0 %v908_v33 }
 0x4e8   :  { %5960 = vmatprep.mubr.msk.bf16.mxu0 %vm644_vm15, %v885_v23 }
 0x4f9   :  { %v897_v37 = vpop.permute.xlu0 %896 }
 0x4fa   :  { %v912_v38 = vsel %vm644_vm15, %v853_v24, %v897_v37 }
 0x4fb   :  { %1055 = vmatmul.mubr.bf16.gmra.mrb[32].mxu0 %v912_v38 }
 0x55d   :  { %v1032_v52 = vpop.f32.mrb[20].mxu0 }
 0x55e   :  { %v1063_v53 = vadd.f32 %v1032_v52, %v7410_v51  ;;  %v1034_v54 = vpop.f32.mrb[21].mxu0 }
 0x55f   :  { %v1035_v55 = vpop.f32.mrb[22].mxu0 }
 0x560   :  { %v1071_v57 = vadd.f32 %v1063_v53, %v7175_v59  ;;  %v1064_v58 = vadd.f32 %v1035_v55, %v7410_v51  ;;  %v1037_v60 = vpop.f32.mrb[23].mxu0 }
 0x562   :  { %v1079_v61 = vmax.f32 %v1071_v57, 0.0  ;;  %v1072_v62 = vadd.f32 %v1064_v58, %v7170_v56 }
 0x564   :  { %v1080_v63 = vmax.f32 %v1072_v62, 0.0  ;;  %v1311_v0 = vrot.slane %v1079_v61, 1  ;;  %v1283_v10 = vrot.slane %v1079_v61, 7 }
 0x565   :  { %v1040_v2 = vpop.f32.mrb[24].mxu0 }
 0x566   :  { %v1287_v3 = vrot.slane %v1080_v63, 7  ;;  %v1315_v5 = vrot.slane %v1080_v63, 1  ;;  %v1065_v7 = vadd.f32 %v1040_v2, %v7410_v51  ;;  %v1042_v8 = vpop.f32.mrb[25].mxu0  ;;  %v1170_v9 = vpack.c.bf16 %v1080_v63, %v1079_v61 }
 0x567   :  { %v1043_v12 = vpop.f32.mrb[26].mxu0 }
 0x568   :  { %v1073_v13 = vadd.f32 %v1065_v7, %v7202_v17  ;;  %v1066_v59 = vadd.f32 %v1043_v12, %v7410_v51  ;;  %1343 = vrot.lane.b32.xlu1 %v1170_v9, %s6924_s2  ;;  %v1045_v40 = vpop.f32.mrb[27].mxu0  ;;  %6163 = vmatprep.mubr.msk.bf16.mxu1 %vm644_vm15, %v1170_v9  ;;  %v1319_v56 = vsel %vm611_vm14, %v1311_v0, %v1315_v5  ;;  %v6770_v7 = vld [vmem:[#allocation11 + $0xa0] sm:$0xff]  }
 0x569   :  { %v1323_v16 = vsel %vm611_vm14, %v1315_v5, %v1311_v0  ;;  %v7427_v18 = vsel %vm578_vm0, %v1283_v10, %v1287_v3  ;;  %v1295_v17 = vsel %vm578_vm0, %v1287_v3, %v1283_v10  ;;  %v6775_v9 = vld [vmem:[#allocation11 + $0xe0] sm:$0xff]   ;;  %6025 = vmatprep.subr.bf16.mxu0 %v6770_v7 }
 0x56a   :  { %v1081_v19 = vmax.f32 %v1073_v13, 0.0  ;;  %v1074_v21 = vadd.f32 %v1066_v59, %v7200_v15  ;;  %v1328_v23 = vmul.f32 %v7057_v6, %v1323_v16  ;;  %v7434_v24 = vmul.f32 %v7055_v4, %v1295_v17  ;;  %v6778_v13 = vld [vmem:[#allocation11 + $0xe8] sm:$0xff]   ;;  %6171 = vmatprep.subr.bf16.mxu1 %v6775_v9  ;;  %v6781_v17 = vld [vmem:[#allocation11 + $0xf0] sm:$0xff]  }
 0x56c   :  { %v1082_v25 = vmax.f32 %v1074_v21, 0.0  ;;  %v1335_v26 = vpack.c.bf16 %v1328_v23, %v1319_v56  ;;  %v1284_v27 = vrot.slane %v1081_v19, 7  ;;  %v1307_v31 = vpack.c.bf16 %v7427_v18, %v7434_v24  ;;  %v6777_v24 = vld [vmem:[#allocation11 + $0xb8] sm:$0xff]  }
 0x56d   :  { %v1312_v32 = vrot.slane %v1081_v19, 1 }
 0x56e   :  { %v1288_v33 = vrot.slane %v1082_v25, 7  ;;  %v1316_v11 = vrot.slane %v1082_v25, 1  ;;  %5981 = vmatprep.mubr.msk.bf16.mxu0 %vm644_vm15, %v1335_v26  ;;  %v1171_v28 = vpack.c.bf16 %v1082_v25, %v1081_v19 }
 0x570   :  { %1345 = vrot.lane.b32.xlu0 %v1171_v28, %s6924_s2  ;;  %6164 = vmatmul.mubr.msk.bf16.vlgmr.msra.gmra.mrb[0].mxu1 %vm644_vm15, %v1171_v28  ;;  %v7443_v15 = vsel %vm611_vm14, %v1312_v32, %v1316_v11  ;;  %v1324_v29 = vsel %vm611_vm14, %v1316_v11, %v1312_v32  ;;  %v7449_v35 = vsel %vm578_vm0, %v1284_v27, %v1288_v33  ;;  %v6771_v11 = vld [vmem:[#allocation11 + $0x60] sm:$0xff]  }
 0x571   :  { %v7452_v36 = vmul.f32 %v7057_v6, %v1324_v29  ;;  %v1296_v37 = vsel %vm578_vm0, %v1288_v33, %v1284_v27  ;;  %6172 = vmatpush3.bf16.msra.mxu1 %v6775_v9 }
 0x572   :  { %v7457_v38 = vmul.f32 %v7055_v4, %v1296_v37  ;;  %6173 = vmatprep.subr.bf16.mxu1 %v6778_v13 }
 0x573   :  { %v1336_v41 = vpack.c.bf16 %v7452_v36, %v7443_v15  ;;  %v6779_v15 = vld [vmem:[#allocation11 + $0x78] sm:$0xff]   ;;  %v6780_v36 = vld [vmem:[#allocation11 + $0xc0] sm:$0xff]  }
 0x574   :  { %v1308_v42 = vpack.c.bf16 %v7449_v35, %v7457_v38  ;;  %v6786_v35 = vld [vmem:[#allocation11 + $0xd0] sm:$0xff]   ;;  %v6787_v38 = vld [vmem:[#allocation11 + $0x100] sm:$0xff]  }
 0x575   :  { %6174 = vmatpush3.bf16.msra.mxu1 %v6778_v13 }
 0x576   :  { %6175 = vmatprep.subr.bf16.mxu1 %v6781_v17 }
 0x579   :  { %6176 = vmatpush3.bf16.msra.mxu1 %v6781_v17 }
 0x5ba   :  { %v1048_v43 = vpop.f32.mrb[28].mxu0 }
 0x5bb   :  { %v1067_v45 = vadd.f32 %v1048_v43, %v7410_v51  ;;  %v1050_v46 = vpop.f32.mrb[29].mxu0  ;;  %v6772_v43 = vld [vmem:[#allocation11 + $0xa8] sm:$0xff]  }
 0x5bc   :  { %v1051_v47 = vpop.f32.mrb[30].mxu0 }
 0x5bd   :  { %v1075_v48 = vadd.f32 %v1067_v45, %v7214_v22  ;;  %v1068_v49 = vadd.f32 %v1051_v47, %v7410_v51  ;;  %v1053_v50 = vpop.f32.mrb[31].mxu0 }
 0x5be   :  { %v6774_v50 = vld [vmem:[#allocation11 + $0xb0] sm:$0xff]  }
 0x5bf   :  { %v1083_v52 = vmax.f32 %v1075_v48, 0.0  ;;  %v1076_v53 = vadd.f32 %v1068_v49, %v7212_v44  ;;  %v6773_v49 = vld [vmem:[#allocation11 + $0x68] sm:$0xff]  }
 0x5c1   :  { %v1084_v54 = vmax.f32 %v1076_v53, 0.0  ;;  %v1285_v55 = vrot.slane %v1083_v52, 7  ;;  %v1313_v57 = vrot.slane %v1083_v52, 1  ;;  %v6783_v53 = vld [vmem:[#allocation11 + $0xc8] sm:$0xff]  }
 0x5c3   :  { %v1289_v58 = vrot.slane %v1084_v54, 7  ;;  %v1317_v60 = vrot.slane %v1084_v54, 1  ;;  %v1172_v61 = vpack.c.bf16 %v1084_v54, %v1083_v52  ;;  %v6776_v52 = vld [vmem:[#allocation11 + $0x70] sm:$0xff]   ;;  %v6784_v54 = vld [vmem:[#allocation11 + $0xf8] sm:$0xff]  }
 0x5c4   :  { %6177 = vmatprep.subr.bf16.mxu1 %v6784_v54 }
 0x5c5   :  { %1347 = vrot.lane.b32.xlu1 %v1172_v61, %s6924_s2  ;;  %6167 = vmatprep.mubr.msk.bf16.mxu1 %vm644_vm15, %v1172_v61  ;;  %v1321_v62 = vsel %vm611_vm14, %v1313_v57, %v1317_v60  ;;  %v1325_v22 = vsel %vm611_vm14, %v1317_v60, %v1313_v57  ;;  %v7475_v63 = vsel %vm578_vm0, %v1285_v55, %v1289_v58  ;;  %v6789_v60 = vld [vmem:[#allocation11 + $0xd8] sm:$0xff]   ;;  %v6790_v61 = vld [vmem:[#allocation11 + $0x108] sm:$0xff]  }
 0x5c6   :  { %v1332_v44 = vmul.f32 %v7057_v6, %v1325_v22  ;;  %v1297_v0 = vsel %vm578_vm0, %v1289_v58, %v1285_v55  ;;  %v6785_v55 = vld [vmem:[#allocation11 + $0x88] sm:$0xff]   ;;  %6178 = vmatpush3.bf16.msra.mxu1 %v6784_v54  ;;  %v6792_v22 = vld [vmem:[#allocation11 + $0x110] sm:$0xff]  }
 0x5c7   :  { %v7481_v2 = vmul.f32 %v7055_v4, %v1297_v0  ;;  %6179 = vmatprep.subr.bf16.mxu1 %v6787_v38 }
 0x5c8   :  { %v1337_v3 = vpack.c.bf16 %v1332_v44, %v1321_v62  ;;  %v6791_v62 = vld [vmem:[#allocation11 + $0x98] sm:$0xff]  }
 0x5c9   :  { %v1309_v5 = vpack.c.bf16 %v7475_v63, %v7481_v2  ;;  %v6793_v44 = vld [vmem:[#allocation11 + $0x118] sm:$0xff]   ;;  %v7523_v2 = vld [vmem:[#allocation10 + $0x3] ss:$0 sm:$0xff] }
 0x5ca   :  { %6180 = vmatpush3.bf16.msra.mxu1 %v6787_v38 }
 0x5cb   :  { %6181 = vmatprep.subr.bf16.mxu1 %v6790_v61 }
 0x5ce   :  { %v1056_v8 = vpop.f32.mrb[32].mxu0  ;;  %6182 = vmatpush3.bf16.msra.mxu1 %v6790_v61 }
 0x5cf   :  { %v1069_v10 = vadd.f32 %v1056_v8, %v7410_v51  ;;  %v1058_v12 = vpop.f32.mrb[33].mxu0  ;;  %6183 = vmatprep.subr.bf16.mxu1 %v6792_v22 }
 0x5d0   :  { %v1059_v59 = vpop.f32.mrb[34].mxu0 }
 0x5d1   :  { %v1077_v40 = vadd.f32 %v1069_v10, %v7233_v34  ;;  %v1070_v56 = vadd.f32 %v1059_v59, %v7410_v51  ;;  %v1061_v16 = vpop.f32.mrb[35].mxu0 }
 0x5d2   :  { %6184 = vmatpush3.bf16.msra.mxu1 %v6792_v22 }
 0x5d3   :  { %v1085_v19 = vmax.f32 %v1077_v40, 0.0  ;;  %v1078_v21 = vadd.f32 %v1070_v56, %v7228_v30  ;;  %6185 = vmatprep.subr.bf16.mxu1 %v6793_v44 }
 0x5d5   :  { %v1086_v23 = vmax.f32 %v1078_v21, 0.0  ;;  %v1286_v25 = vrot.slane %v1085_v19, 7  ;;  %v1314_v26 = vrot.slane %v1085_v19, 1 }
 0x5d6   :  { %6186 = vmatpush3.bf16.msra.mxu1 %v6793_v44 }
 0x5d7   :  { %v1290_v27 = vrot.slane %v1086_v23, 7  ;;  %v1318_v32 = vrot.slane %v1086_v23, 1  ;;  %v1173_v33 = vpack.c.bf16 %v1086_v23, %v1085_v19 }
 0x5d9   :  { %1349 = vrot.lane.b32.xlu0 %v1173_v33, %s6924_s2  ;;  %6168 = vmatmul.mubr.msk.bf16.gmra.mrb[4].mxu1 %vm644_vm15, %v1173_v33  ;;  %v1322_v34 = vsel %vm611_vm14, %v1314_v26, %v1318_v32  ;;  %v1326_v51 = vsel %vm611_vm14, %v1318_v32, %v1314_v26  ;;  %v7497_v30 = vsel %vm578_vm0, %v1286_v25, %v1290_v27 }
 0x5da   :  { %v1344_v28 = vpop.permute.xlu1 %1343  ;;  %v1334_v29 = vmul.f32 %v7057_v6, %v1326_v51  ;;  %v1298_v37 = vsel %vm578_vm0, %v1290_v27, %v1286_v25 }
 0x5db   :  { %v1353_v45 = vsel %vm644_vm15, %v1307_v31, %v1344_v28  ;;  %v1305_v46 = vmul.f32 %v7055_v4, %v1298_v37 }
 0x5dc   :  { %1484 = vmatmul.mubr.bf16.vlgmr.msra.gmra.mrb[36].mxu0 %v1353_v45  ;;  %v1338_v47 = vpack.c.bf16 %v1334_v29, %v1322_v34 }
 0x5dd   :  { %5982 = vmatprep.mubr.msk.bf16.mxu0 %vm644_vm15, %v1336_v41  ;;  %v1310_v48 = vpack.c.bf16 %v7497_v30, %v1305_v46  ;;  %6026 = vmatpush3.bf16.msra.mxu0 %v6771_v11  ;;  %v6782_v41 = vld [vmem:[#allocation11 + $0x80] sm:$0xff]  }
 0x5de   :  { %6027 = vmatprep.subr.bf16.mxu0 %v6772_v43 }
 0x5e1   :  { %6028 = vmatpush3.bf16.msra.mxu0 %v6773_v49 }
 0x5e2   :  { %v1346_v18 = vpop.permute.xlu0 %1345  ;;  %6029 = vmatprep.subr.bf16.mxu0 %v6774_v50 }
 0x5e3   :  { %v1357_v31 = vsel %vm644_vm15, %v1308_v42, %v1346_v18  ;;  %v6788_v42 = vld [vmem:[#allocation11 + $0x90] sm:$0xff]  }
 0x5e4   :  { %1492 = vmatmul.mubr.bf16.gmra.mrb[40].mxu0 %v1357_v31 }
 0x5e5   :  { %5983 = vmatprep.mubr.msk.bf16.mxu0 %vm644_vm15, %v1337_v3  ;;  %6030 = vmatpush3.bf16.msra.mxu0 %v6776_v52 }
 0x5e6   :  { %6031 = vmatprep.subr.bf16.mxu0 %v6777_v24 }
 0x5e9   :  { %6032 = vmatpush3.bf16.msra.mxu0 %v6779_v15 }
 0x5ea   :  { %6033 = vmatprep.subr.bf16.mxu0 %v6780_v36 }
 0x5ed   :  { %6034 = vmatpush3.bf16.msra.mxu0 %v6782_v41 }
 0x5ee   :  { %6035 = vmatprep.subr.bf16.mxu0 %v6783_v53 }
 0x5f1   :  { %6036 = vmatpush3.bf16.msra.mxu0 %v6785_v55 }
 0x5f2   :  { %6037 = vmatprep.subr.bf16.mxu0 %v6786_v35 }
 0x5f5   :  { %6038 = vmatpush3.bf16.msra.mxu0 %v6788_v42 }
 0x5f6   :  { %6039 = vmatprep.subr.bf16.mxu0 %v6789_v60 }
 0x5f9   :  { %6040 = vmatpush3.bf16.msra.mxu0 %v6791_v62 }
 0x637   :  { %v1348_v57 = vpop.permute.xlu1 %1347 }
 0x638   :  { %v1361_v58 = vsel %vm644_vm15, %v1309_v5, %v1348_v57 }
 0x639   :  { %1500 = vmatmul.mubr.bf16.gmra.mrb[44].mxu0 %v1361_v58 }
 0x63a   :  { %5984 = vmatprep.mubr.msk.bf16.mxu0 %vm644_vm15, %v1338_v47 }
 0x64b   :  { %v1350_v63 = vpop.permute.xlu0 %1349 }
 0x64c   :  { %v1365_v0 = vsel %vm644_vm15, %v1310_v48, %v1350_v63 }
 0x64d   :  { %1508 = vmatmul.mubr.bf16.gmra.mrb[48].mxu0 %v1365_v0 }
 0x6af   :  { %v1485_v3 = vpop.f32.mrb[36].mxu0 }
 0x6b0   :  { %v1516_v5 = vadd.f32 %v1485_v3, %v7523_v2  ;;  %v1487_v7 = vpop.f32.mrb[37].mxu0 }
 0x6b1   :  { %v1488_v8 = vpop.f32.mrb[38].mxu0 }
 0x6b2   :  { %v1524_v9 = vmax.f32 %v1516_v5, 0.0  ;;  %v1517_v10 = vadd.f32 %v1488_v8, %v7523_v2  ;;  %v1490_v12 = vpop.f32.mrb[39].mxu0 }
 0x6b4   :  { %v1525_v13 = vmax.f32 %v1517_v10, 0.0  ;;  %v1532_v59 = vrot.slane %v1524_v9, 7  ;;  %v1564_v40 = vrot.slane %v1524_v9, 1 }
 0x6b6   :  { %v1536_v56 = vrot.slane %v1525_v13, 7  ;;  %v1568_v16 = vrot.slane %v1525_v13, 1  ;;  %v1560_v17 = vpack.c.bf16 %v1525_v13, %v1524_v9 }
 0x6b7   :  { %v1493_v19 = vpop.f32.mrb[40].mxu0 }
 0x6b8   :  { %v1540_v21 = vsel %vm578_vm0, %v1532_v59, %v1536_v56  ;;  %v1544_v23 = vsel %vm578_vm0, %v1536_v56, %v1532_v59  ;;  %v1518_v25 = vadd.f32 %v1493_v19, %v7523_v2  ;;  %v1495_v26 = vpop.f32.mrb[41].mxu0  ;;  %1768 = vmatprep.mubr.bf16.mxu0 %v1560_v17  ;;  %v1572_v27 = vsel %vm611_vm14, %v1564_v40, %v1568_v16 }
 0x6b9   :  { %v1548_v32 = vmul.f32 %v7055_v4, %v1544_v23  ;;  %v1496_v33 = vpop.f32.mrb[42].mxu0  ;;  %v1576_v34 = vsel %vm611_vm14, %v1568_v16, %v1564_v40 }
 0x6ba   :  { %v1526_v51 = vmax.f32 %v1518_v25, 0.0  ;;  %v1519_v30 = vadd.f32 %v1496_v33, %v7523_v2  ;;  %v1498_v11 = vpop.f32.mrb[43].mxu0  ;;  %v1581_v28 = vmul.f32 %v7057_v6, %v1576_v34 }
 0x6bb   :  { %v1556_v29 = vpack.c.bf16 %v1540_v21, %v1548_v32 }
 0x6bc   :  { %v1527_v37 = vmax.f32 %v1519_v30, 0.0  ;;  %v1588_v43 = vpack.c.bf16 %v1581_v28, %v1572_v27  ;;  %v1533_v45 = vrot.slane %v1526_v51, 7  ;;  %v1565_v46 = vrot.slane %v1526_v51, 1 }
 0x6bd   :  { %1769 = vmatmul.mubr.bf16.vlgmr.msra.gmra.mrb[52].mxu0 %v1556_v29 }
 0x6be   :  { %v1537_v47 = vrot.slane %v1527_v37, 7  ;;  %v1569_v48 = vrot.slane %v1527_v37, 1  ;;  %6187 = vmatprep.mubr.bf16.mxu1 %v1588_v43  ;;  %v1561_v49 = vpack.c.bf16 %v1527_v37, %v1526_v51  ;;  %v1160_v43 = vld [vmem:[#allocation10 + $0x4] ss:$0 sm:$0xff] }
 0x6c0   :  { %v1573_v50 = vsel %vm611_vm14, %v1565_v46, %v1569_v48  ;;  %v1577_v52 = vsel %vm611_vm14, %v1569_v48, %v1565_v46  ;;  %1776 = vmatprep.mubr.bf16.mxu0 %v1561_v49  ;;  %v1541_v18 = vsel %vm578_vm0, %v1533_v45, %v1537_v47  ;;  %v1545_v24 = vsel %vm578_vm0, %v1537_v47, %v1533_v45  ;;  %v1169_v45 = vld [vmem:[#allocation10 + $0x5] ss:$0 sm:$0xff] }
 0x6c1   :  { %v1583_v31 = vmul.f32 %v7057_v6, %v1577_v52  ;;  %v1550_v15 = vmul.f32 %v7055_v4, %v1545_v24 }
 0x6c3   :  { %v1589_v36 = vpack.c.bf16 %v1583_v31, %v1573_v50  ;;  %v1557_v41 = vpack.c.bf16 %v1541_v18, %v1550_v15  ;;  %v6262_v50 = vadd.f32 %v1169_v45, %v1160_v43 }
 0x6c5   :  { %1777 = vmatmul.mubr.bf16.gmra.mrb[56].mxu0 %v1557_v41  ;;  %6188 = vmatmul.mubr.bf16.vlgmr.msra.gmra.mrb[0].mxu1 %v1589_v36 }
 0x70c   :  { %v1501_v53 = vpop.f32.mrb[44].mxu0 }
 0x70d   :  { %v1520_v54 = vadd.f32 %v1501_v53, %v7523_v2  ;;  %v1503_v55 = vpop.f32.mrb[45].mxu0 }
 0x70e   :  { %v1504_v35 = vpop.f32.mrb[46].mxu0 }
 0x70f   :  { %v1528_v38 = vmax.f32 %v1520_v54, 0.0  ;;  %v1521_v42 = vadd.f32 %v1504_v35, %v7523_v2  ;;  %v1506_v57 = vpop.f32.mrb[47].mxu0 }
 0x711   :  { %v1529_v58 = vmax.f32 %v1521_v42, 0.0  ;;  %v1534_v60 = vrot.slane %v1528_v38, 7  ;;  %v1566_v61 = vrot.slane %v1528_v38, 1 }
 0x713   :  { %v1538_v62 = vrot.slane %v1529_v58, 7  ;;  %v1570_v22 = vrot.slane %v1529_v58, 1  ;;  %v1562_v44 = vpack.c.bf16 %v1529_v58, %v1528_v38 }
 0x715   :  { %1784 = vmatprep.mubr.bf16.mxu0 %v1562_v44  ;;  %v1542_v63 = vsel %vm578_vm0, %v1534_v60, %v1538_v62  ;;  %v1546_v0 = vsel %vm578_vm0, %v1538_v62, %v1534_v60  ;;  %v1574_v3 = vsel %vm611_vm14, %v1566_v61, %v1570_v22  ;;  %v1578_v5 = vsel %vm611_vm14, %v1570_v22, %v1566_v61 }
 0x716   :  { %v1552_v7 = vmul.f32 %v7055_v4, %v1546_v0  ;;  %v1585_v8 = vmul.f32 %v7057_v6, %v1578_v5 }
 0x718   :  { %v1558_v9 = vpack.c.bf16 %v1542_v63, %v1552_v7  ;;  %v1590_v10 = vpack.c.bf16 %v1585_v8, %v1574_v3 }
 0x71a   :  { %1785 = vmatmul.mubr.bf16.gmra.mrb[60].mxu0 %v1558_v9  ;;  %6191 = vmatprep.mubr.bf16.mxu1 %v1590_v10 }
 0x720   :  { %v1509_v12 = vpop.f32.mrb[48].mxu0 }
 0x721   :  { %v1522_v13 = vadd.f32 %v1509_v12, %v7523_v2  ;;  %v1511_v59 = vpop.f32.mrb[49].mxu0 }
 0x722   :  { %v1512_v40 = vpop.f32.mrb[50].mxu0 }
 0x723   :  { %v1530_v56 = vmax.f32 %v1522_v13, 0.0  ;;  %v1523_v16 = vadd.f32 %v1512_v40, %v7523_v2  ;;  %v1514_v17 = vpop.f32.mrb[51].mxu0 }
 0x725   :  { %v1531_v19 = vmax.f32 %v1523_v16, 0.0  ;;  %v1535_v21 = vrot.slane %v1530_v56, 7  ;;  %v1567_v23 = vrot.slane %v1530_v56, 1 }
 0x727   :  { %v1539_v25 = vrot.slane %v1531_v19, 7  ;;  %v1571_v26 = vrot.slane %v1531_v19, 1  ;;  %v1563_v27 = vpack.c.bf16 %v1531_v19, %v1530_v56 }
 0x729   :  { %1792 = vmatprep.mubr.bf16.mxu0 %v1563_v27  ;;  %v1543_v32 = vsel %vm578_vm0, %v1535_v21, %v1539_v25  ;;  %v1547_v33 = vsel %vm578_vm0, %v1539_v25, %v1535_v21  ;;  %v1575_v34 = vsel %vm611_vm14, %v1567_v23, %v1571_v26  ;;  %v1579_v2 = vsel %vm611_vm14, %v1571_v26, %v1567_v23 }
 0x72a   :  { %v1554_v51 = vmul.f32 %v7055_v4, %v1547_v33  ;;  %v1587_v30 = vmul.f32 %v7057_v6, %v1579_v2 }
 0x72c   :  { %v1559_v11 = vpack.c.bf16 %v1543_v32, %v1554_v51  ;;  %v1591_v28 = vpack.c.bf16 %v1587_v30, %v1575_v34 }
 0x72e   :  { %1793 = vmatmul.mubr.bf16.gmra.mrb[64].mxu0 %v1559_v11  ;;  %6192 = vmatmul.mubr.bf16.gmra.mrb[4].mxu1 %v1591_v28 }
 0x790   :  { %v6041_v29 = vpop.f32.mrb[52].mxu0 }
 0x791   :  { %v6042_v37 = vpop.f32.mrb[53].mxu0 }
 0x792   :  { %v6043_v46 = vadd.f32 %v6042_v37, %v6041_v29  ;;  %v6044_v47 = vpop.f32.mrb[54].mxu0 }
 0x793   :  { %v6045_v48 = vpop.f32.mrb[55].mxu0 }
 0x794   :  { %v6046_v49 = vadd.f32 %v6045_v48, %v6044_v47  ;;  %v6263_v24 = vadd.f32 %v6262_v50, %v6043_v46 }
 0x796   :  { %v6269_v55 = vadd.f32 %v6262_v50, %v6046_v49 }
 0x798   :  { %v6047_v52 = vpop.f32.mrb[56].mxu0  ;;  %v6189_v18 = vpop.f32.mrb[0].mxu1 }
 0x799   :  { %v6048_v31 = vpop.f32.mrb[57].mxu0  ;;  %v1835_v15 = vpop.f32.mrb[1].mxu1 }
 0x79a   :  { %v6049_v36 = vadd.f32 %v6048_v31, %v6047_v52  ;;  %v6264_v41 = vadd.f32 %v6263_v24, %v1835_v15  ;;  %v6050_v53 = vpop.f32.mrb[58].mxu0  ;;  %v6190_v54 = vpop.f32.mrb[2].mxu1 }
 0x79b   :  { %v6051_v35 = vpop.f32.mrb[59].mxu0  ;;  %v1838_v38 = vpop.f32.mrb[3].mxu1 }
 0x79c   :  { %v6260_v42 = vadd.f32 %v6262_v50, %v6049_v36  ;;  %v7573_v57 = vmax.f32 %v6264_v41, 0.0  ;;  %v6052_v58 = vadd.f32 %v6051_v35, %v6050_v53  ;;  %v6270_v60 = vadd.f32 %v6269_v55, %v1838_v38 }
 0x79e   :  { %v6261_v61 = vadd.f32 %v6260_v42, %v6189_v18  ;;  %v6266_v62 = vadd.f32 %v6262_v50, %v6052_v58  ;;  %v7575_v22 = vmax.f32 %v6270_v60, 0.0 }
 0x7a0   :  { %v7577_v44 = vmax.f32 %v6261_v61, 0.0  ;;  %v6267_v63 = vadd.f32 %v6266_v62, %v6190_v54 }
 0x7a2   :  { %v7579_v0 = vmax.f32 %v6267_v63, 0.0 }
 0x7ed   :  { %v6053_v3 = vpop.f32.mrb[60].mxu0 }
 0x7ee   :  { %v6054_v5 = vpop.f32.mrb[61].mxu0 }
 0x7ef   :  { %v6055_v7 = vadd.f32 %v6054_v5, %v6053_v3  ;;  %v6056_v8 = vpop.f32.mrb[62].mxu0 }
 0x7f0   :  { %v6057_v9 = vpop.f32.mrb[63].mxu0 }
 0x7f1   :  { %v6058_v10 = vadd.f32 %v6057_v9, %v6056_v8  ;;  %v6275_v59 = vadd.f32 %v6262_v50, %v6055_v7 }
 0x7f3   :  { %v6281_v23 = vadd.f32 %v6262_v50, %v6058_v10 }
 0x801   :  { %v6059_v12 = vpop.f32.mrb[64].mxu0  ;;  %v6193_v13 = vpop.f32.mrb[4].mxu1 }
 0x802   :  { %v6060_v40 = vpop.f32.mrb[65].mxu0  ;;  %v1851_v56 = vpop.f32.mrb[5].mxu1 }
 0x803   :  { %v6061_v16 = vadd.f32 %v6060_v40, %v6059_v12  ;;  %v6276_v17 = vadd.f32 %v6275_v59, %v1851_v56  ;;  %v6062_v19 = vpop.f32.mrb[66].mxu0  ;;  %v6194_v21 = vpop.f32.mrb[6].mxu1 }
 0x804   :  { %v6063_v25 = vpop.f32.mrb[67].mxu0  ;;  %v1854_v26 = vpop.f32.mrb[7].mxu1 }
 0x805   :  { %v6272_v27 = vadd.f32 %v6262_v50, %v6061_v16  ;;  %v7581_v32 = vmax.f32 %v6276_v17, 0.0  ;;  %v6064_v33 = vadd.f32 %v6063_v25, %v6062_v19  ;;  %v6282_v34 = vadd.f32 %v6281_v23, %v1854_v26 }
 0x807   :  { %v6273_v2 = vadd.f32 %v6272_v27, %v6193_v13  ;;  %v6278_v51 = vadd.f32 %v6262_v50, %v6064_v33  ;;  %v7583_v30 = vmax.f32 %v6282_v34, 0.0 }
 0x809   :  { %v7585_v11 = vmax.f32 %v6273_v2, 0.0  ;;  %v6279_v28 = vadd.f32 %v6278_v51, %v6194_v21 }
 0x80b   :  { %v7587_v29 = vmax.f32 %v6279_v28, 0.0 }
 0x80c   :  { %6911 = dma.done.wait [#allocation4], 20480 }
 0x80d   :  { %6912 = vsyncadd [#allocation4], 4294946816  ;;  %2096 = vmatprep.mubr.bf16.mxu0 %v6938_v39  ;;  %v2043_v37 = vld [vmem:[#allocation2 + $0x488] sm:$0xff]  ;;  %v2042_v43 = vld [vmem:[#allocation2 + $0x480] sm:$0xff]  ;;  %v2060_v55 = vpack.c.bf16 %v7575_v22, %v7573_v57  ;;  %v7595_v60 = vpack.c.bf16 %v7579_v0, %v7577_v44  ;;  %v7601_v5 = vpack.c.bf16 %v7583_v30, %v7581_v32  ;;  %v7607_v12 = vpack.c.bf16 %v7587_v29, %v7585_v11 }
 0x80e   :  { %v2045_v45 = vld [vmem:[#allocation2 + $0x498] sm:$0xff]  ;;  %2064 = vmatprep.subr.bf16.mxu0 %v2043_v37  ;;  %v2044_v46 = vld [vmem:[#allocation2 + $0x490] sm:$0xff]  ;;  %v2047_v47 = vld [vmem:[#allocation2 + $0x4a8] sm:$0xff]  ;;  %v2164_v2 = vrot.slane %v7573_v57, 7  ;;  %v2168_v51 = vrot.slane %v7575_v22, 7 }
 0x80f   :  { %2065 = vmatpush1.bf16.msra.mxu0 %v2042_v43  ;;  %v2046_v48 = vld [vmem:[#allocation2 + $0x4a0] sm:$0xff]  ;;  %v2049_v49 = vld [vmem:[#allocation2 + $0x4b8] sm:$0xff]  ;;  %v2048_v50 = vld [vmem:[#allocation2 + $0x4b0] sm:$0xff] }
 0x810   :  { %2066 = vmatprep.subr.bf16.mxu0 %v2045_v45  ;;  %v2051_v52 = vld [vmem:[#allocation2 + $0x4c8] sm:$0xff]  ;;  %v2050_v18 = vld [vmem:[#allocation2 + $0x4c0] sm:$0xff]  ;;  %v2053_v24 = vld [vmem:[#allocation2 + $0x4d8] sm:$0xff]  ;;  %v2176_v43 = vsel %vm578_vm0, %v2168_v51, %v2164_v2 }
 0x811   :  { %v2052_v31 = vld [vmem:[#allocation2 + $0x4d0] sm:$0xff]  ;;  %v2055_v15 = vld [vmem:[#allocation2 + $0x4e8] sm:$0xff]  ;;  %v2054_v36 = vld [vmem:[#allocation2 + $0x4e0] sm:$0xff] }
 0x812   :  { %v2057_v41 = vld [vmem:[#allocation2 + $0x4f8] sm:$0xff]  ;;  %v2056_v53 = vld [vmem:[#allocation2 + $0x4f0] sm:$0xff]  ;;  %v1895_v54 = vld [vmem:[#allocation2 + $0x8] sm:$0xff] }
 0x813   :  { %2067 = vmatpush1.bf16.msra.mxu0 %v2044_v46  ;;  %v1894_v35 = vld [vmem:[#allocation2] sm:$0xff]  ;;  %v1897_v38 = vld [vmem:[#allocation2 + $0x18] sm:$0xff]  ;;  %v1896_v42 = vld [vmem:[#allocation2 + $0x10] sm:$0xff] }
 0x814   :  { %2068 = vmatprep.subr.bf16.mxu0 %v2047_v47  ;;  %v1899_v58 = vld [vmem:[#allocation2 + $0x28] sm:$0xff]  ;;  %v1898_v61 = vld [vmem:[#allocation2 + $0x20] sm:$0xff]  ;;  %v1901_v62 = vld [vmem:[#allocation2 + $0x38] sm:$0xff]  ;;  %v2180_v47 = vmul.f32 %v7055_v4, %v2176_v43 }
 0x815   :  { %v1900_v63 = vld [vmem:[#allocation2 + $0x30] sm:$0xff]  ;;  %v1903_v3 = vld [vmem:[#allocation2 + $0x48] sm:$0xff]  ;;  %v1902_v7 = vld [vmem:[#allocation2 + $0x40] sm:$0xff] }
 0x816   :  { %v1905_v8 = vld [vmem:[#allocation2 + $0x58] sm:$0xff]  ;;  %v1904_v9 = vld [vmem:[#allocation2 + $0x50] sm:$0xff]  ;;  %v1907_v10 = vld [vmem:[#allocation2 + $0x68] sm:$0xff] }
 0x817   :  { %2069 = vmatpush1.bf16.msra.mxu0 %v2046_v48  ;;  %v1906_v13 = vld [vmem:[#allocation2 + $0x60] sm:$0xff]  ;;  %v1909_v59 = vld [vmem:[#allocation2 + $0x78] sm:$0xff]  ;;  %v1908_v40 = vld [vmem:[#allocation2 + $0x70] sm:$0xff]  ;;  %v2172_v48 = vsel %vm578_vm0, %v2164_v2, %v2168_v51 }
 0x818   :  { %2070 = vmatprep.subr.bf16.mxu0 %v2049_v49  ;;  %v1911_v56 = vld [vmem:[#allocation2 + $0x88] sm:$0xff]  ;;  %v1910_v16 = vld [vmem:[#allocation2 + $0x80] sm:$0xff]  ;;  %v1913_v17 = vld [vmem:[#allocation2 + $0x98] sm:$0xff]  ;;  %v2165_v49 = vrot.slane %v7577_v44, 7 }
 0x819   :  { %v1912_v19 = vld [vmem:[#allocation2 + $0x90] sm:$0xff]  ;;  %v1915_v21 = vld [vmem:[#allocation2 + $0xa8] sm:$0xff]  ;;  %v1914_v23 = vld [vmem:[#allocation2 + $0xa0] sm:$0xff] }
 0x81a   :  { %v1917_v25 = vld [vmem:[#allocation2 + $0xb8] sm:$0xff]  ;;  %v1916_v26 = vld [vmem:[#allocation2 + $0xb0] sm:$0xff]  ;;  %v1919_v27 = vld [vmem:[#allocation2 + $0xc8] sm:$0xff] }
 0x81b   :  { %2071 = vmatpush1.bf16.msra.mxu0 %v2048_v50  ;;  %v1918_v33 = vld [vmem:[#allocation2 + $0xc0] sm:$0xff]  ;;  %v1921_v34 = vld [vmem:[#allocation2 + $0xd8] sm:$0xff]  ;;  %v1920_v28 = vld [vmem:[#allocation2 + $0xd0] sm:$0xff]  ;;  %v2169_v50 = vrot.slane %v7579_v0, 7 }
 0x81c   :  { %2072 = vmatprep.subr.bf16.mxu0 %v2051_v52  ;;  %v1923_v37 = vld [vmem:[#allocation2 + $0xe8] sm:$0xff]  ;;  %v1922_v45 = vld [vmem:[#allocation2 + $0xe0] sm:$0xff]  ;;  %v1925_v46 = vld [vmem:[#allocation2 + $0xf8] sm:$0xff] }
 0x81d   :  { %v1924_v52 = vld [vmem:[#allocation2 + $0xf0] sm:$0xff]  ;;  %v1943_v2 = vld [vmem:[#allocation2 + $0x188] sm:$0xff]  ;;  %v1945_v43 = vld [vmem:[#allocation2 + $0x198] sm:$0xff] }
 0x81f   :  { %2073 = vmatpush1.bf16.msra.mxu0 %v2050_v18  ;;  %v1927_v18 = vld [vmem:[#allocation2 + $0x108] sm:$0xff] }
 0x820   :  { %2074 = vmatprep.subr.bf16.mxu0 %v2053_v24  ;;  %v2188_v24 = vpack.c.bf16 %v2172_v48, %v2180_v47  ;;  %v1944_v47 = vld [vmem:[#allocation2 + $0x190] sm:$0xff]  ;;  %v1947_v48 = vld [vmem:[#allocation2 + $0x1a8] sm:$0xff] }
 0x823   :  { %2075 = vmatpush1.bf16.msra.mxu0 %v2052_v31  ;;  %v2177_v31 = vsel %vm578_vm0, %v2169_v50, %v2165_v49 }
 0x824   :  { %2076 = vmatprep.subr.bf16.mxu0 %v2055_v15  ;;  %v1926_v15 = vld [vmem:[#allocation2 + $0x100] sm:$0xff] }
 0x827   :  { %2077 = vmatpush1.bf16.msra.mxu0 %v2054_v36  ;;  %v1929_v36 = vld [vmem:[#allocation2 + $0x118] sm:$0xff] }
 0x828   :  { %2078 = vmatprep.subr.bf16.mxu0 %v2057_v41  ;;  %v2182_v41 = vmul.f32 %v7055_v4, %v2177_v31  ;;  %v2199_v31 = vrot.slane %v7587_v29, 1 }
 0x82b   :  { %2079 = vmatpush1.bf16.msra.mxu0 %v2056_v53  ;;  %v2173_v53 = vsel %vm578_vm0, %v2165_v49, %v2169_v50 }
 0x82c   :  { %2220 = vmatprep.subr.bf16.mxu0 %v1895_v54  ;;  %v2166_v54 = vrot.slane %v7581_v32, 7 }
 0x82e   :  { %2097 = vmatmul.mubr.bf16.vlgmr.msra.gmra.mrb[68].mxu0 %v2060_v55 }
 0x82f   :  { %2221 = vmatpush1.bf16.msra.mxu0 %v1894_v35  ;;  %2106 = vmatprep.mubr.bf16.mxu0 %v6938_v39  ;;  %v1928_v35 = vld [vmem:[#allocation2 + $0x110] sm:$0xff] }
 0x830   :  { %2222 = vmatprep.subr.bf16.mxu0 %v1897_v38  ;;  %v1931_v38 = vld [vmem:[#allocation2 + $0x128] sm:$0xff] }
 0x833   :  { %2223 = vmatpush1.bf16.msra.mxu0 %v1896_v42  ;;  %v2189_v42 = vpack.c.bf16 %v2173_v53, %v2182_v41 }
 0x834   :  { %2224 = vmatprep.subr.bf16.mxu0 %v1899_v58 }
 0x836   :  { %2107 = vmatmul.mubr.bf16.gmra.mrb[72].mxu0 %v7595_v60 }
 0x837   :  { %2225 = vmatpush1.bf16.msra.mxu0 %v1898_v61  ;;  %2116 = vmatprep.mubr.bf16.mxu0 %v6938_v39  ;;  %v1930_v61 = vld [vmem:[#allocation2 + $0x120] sm:$0xff] }
 0x838   :  { %2226 = vmatprep.subr.bf16.mxu0 %v1901_v62  ;;  %v1933_v62 = vld [vmem:[#allocation2 + $0x138] sm:$0xff] }
 0x83b   :  { %2227 = vmatpush1.bf16.msra.mxu0 %v1900_v63 }
 0x83c   :  { %2228 = vmatprep.subr.bf16.mxu0 %v1903_v3  ;;  %v2167_v3 = vrot.slane %v7585_v11, 7 }
 0x83e   :  { %2117 = vmatmul.mubr.bf16.gmra.mrb[76].mxu0 %v7601_v5 }
 0x83f   :  { %2229 = vmatpush1.bf16.msra.mxu0 %v1902_v7  ;;  %2126 = vmatprep.mubr.bf16.mxu0 %v6938_v39  ;;  %v2171_v7 = vrot.slane %v7587_v29, 7  ;;  %v1952_v29 = vld [vmem:[#allocation2 + $0x1d0] sm:$0xff] }
 0x840   :  { %2230 = vmatprep.subr.bf16.mxu0 %v1905_v8  ;;  %v1932_v8 = vld [vmem:[#allocation2 + $0x130] sm:$0xff] }
 0x843   :  { %2231 = vmatpush1.bf16.msra.mxu0 %v1904_v9  ;;  %v1935_v9 = vld [vmem:[#allocation2 + $0x148] sm:$0xff] }
 0x844   :  { %2232 = vmatprep.subr.bf16.mxu0 %v1907_v10 }
 0x846   :  { %2127 = vmatmul.mubr.bf16.gmra.mrb[80].mxu0 %v7607_v12 }
 0x847   :  { %2233 = vmatpush1.bf16.msra.mxu0 %v1906_v13  ;;  %2252 = vmatprep.mubr.bf16.mxu0 %v2060_v55  ;;  %v2170_v55 = vrot.slane %v7583_v30, 7  ;;  %v2179_v13 = vsel %vm578_vm0, %v2171_v7, %v2167_v3 }
 0x848   :  { %2234 = vmatprep.subr.bf16.mxu0 %v1909_v59  ;;  %v1934_v59 = vld [vmem:[#allocation2 + $0x140] sm:$0xff] }
 0x849   :  { %v2178_v58 = vsel %vm578_vm0, %v2170_v55, %v2166_v54  ;;  %v2174_v63 = vsel %vm578_vm0, %v2166_v54, %v2170_v55  ;;  %v1950_v54 = vld [vmem:[#allocation2 + $0x1c0] sm:$0xff]  ;;  %v1953_v55 = vld [vmem:[#allocation2 + $0x1d8] sm:$0xff] }
 0x84b   :  { %2235 = vmatpush1.bf16.msra.mxu0 %v1908_v40  ;;  %v1937_v40 = vld [vmem:[#allocation2 + $0x158] sm:$0xff] }
 0x84c   :  { %2236 = vmatprep.subr.bf16.mxu0 %v1911_v56  ;;  %v2175_v56 = vsel %vm578_vm0, %v2167_v3, %v2171_v7  ;;  %v1960_v3 = vld [vmem:[#allocation2 + $0x210] sm:$0xff]  ;;  %v1963_v7 = vld [vmem:[#allocation2 + $0x228] sm:$0xff] }
 0x84f   :  { %2237 = vmatpush1.bf16.msra.mxu0 %v1910_v16  ;;  %v2192_v16 = vrot.slane %v7573_v57, 1 }
 0x850   :  { %2238 = vmatprep.subr.bf16.mxu0 %v1913_v17  ;;  %v2196_v17 = vrot.slane %v7575_v22, 1  ;;  %v2193_v22 = vrot.slane %v7577_v44, 1 }
 0x852   :  { %v2200_v57 = vsel %vm611_vm14, %v2192_v16, %v2196_v17 }
 0x853   :  { %2239 = vmatpush1.bf16.msra.mxu0 %v1912_v19  ;;  %v1936_v19 = vld [vmem:[#allocation2 + $0x150] sm:$0xff] }
 0x854   :  { %2240 = vmatprep.subr.bf16.mxu0 %v1915_v21  ;;  %v1939_v21 = vld [vmem:[#allocation2 + $0x168] sm:$0xff] }
 0x857   :  { %2241 = vmatpush1.bf16.msra.mxu0 %v1914_v23 }
 0x858   :  { %2242 = vmatprep.subr.bf16.mxu0 %v1917_v25  ;;  %v2204_v25 = vsel %vm611_vm14, %v2196_v17, %v2192_v16  ;;  %v1970_v16 = vld [vmem:[#allocation2 + $0x260] sm:$0xff]  ;;  %v1973_v17 = vld [vmem:[#allocation2 + $0x278] sm:$0xff] }
 0x85b   :  { %2243 = vmatpush1.bf16.msra.mxu0 %v1916_v26  ;;  %v1938_v26 = vld [vmem:[#allocation2 + $0x160] sm:$0xff] }
 0x85c   :  { %2244 = vmatprep.subr.bf16.mxu0 %v1919_v27  ;;  %v1941_v27 = vld [vmem:[#allocation2 + $0x178] sm:$0xff] }
 0x85f   :  { %2245 = vmatpush1.bf16.msra.mxu0 %v1918_v33  ;;  %v2197_v33 = vrot.slane %v7579_v0, 1  ;;  %v2194_v0 = vrot.slane %v7581_v32, 1 }
 0x860   :  { %2246 = vmatprep.subr.bf16.mxu0 %v1921_v34  ;;  %v1940_v34 = vld [vmem:[#allocation2 + $0x170] sm:$0xff] }
 0x861   :  { %v2201_v44 = vsel %vm611_vm14, %v2193_v22, %v2197_v33 }
 0x863   :  { %2247 = vmatpush1.bf16.msra.mxu0 %v1920_v28  ;;  %v2205_v28 = vsel %vm611_vm14, %v2197_v33, %v2193_v22 }
 0x864   :  { %2248 = vmatprep.subr.bf16.mxu0 %v1923_v37  ;;  %v1942_v37 = vld [vmem:[#allocation2 + $0x180] sm:$0xff] }
 0x867   :  { %2249 = vmatpush1.bf16.msra.mxu0 %v1922_v45  ;;  %v2211_v45 = vmul.f32 %v7057_v6, %v2205_v28 }
 0x868   :  { %2250 = vmatprep.subr.bf16.mxu0 %v1925_v46  ;;  %v2198_v46 = vrot.slane %v7583_v30, 1  ;;  %v2195_v30 = vrot.slane %v7585_v11, 1 }
 0x869   :  { %v2217_v49 = vpack.c.bf16 %v2211_v45, %v2201_v44 }
 0x86a   :  { %v2206_v50 = vsel %vm611_vm14, %v2198_v46, %v2194_v0  ;;  %v2202_v32 = vsel %vm611_vm14, %v2194_v0, %v2198_v46  ;;  %v2207_v53 = vsel %vm611_vm14, %v2199_v31, %v2195_v30  ;;  %v2203_v11 = vsel %vm611_vm14, %v2195_v30, %v2199_v31 }
 0x86b   :  { %2251 = vmatpush1.bf16.msra.mxu0 %v1924_v52  ;;  %v1946_v52 = vld [vmem:[#allocation2 + $0x1a0] sm:$0xff] }
 0x86c   :  { %2293 = vmatprep.subr.bf16.mxu0 %v1927_v18  ;;  %v1949_v18 = vld [vmem:[#allocation2 + $0x1b8] sm:$0xff] }
 0x86e   :  { %2253 = vmatmul.mubr.bf16.vlgmr.msra.gmra.mrb[84].mxu0 %v2188_v24  ;;  %v2213_v24 = vmul.f32 %v7057_v6, %v2206_v50 }
 0x86f   :  { %2294 = vmatpush1.bf16.msra.mxu0 %v1926_v15  ;;  %2262 = vmatprep.mubr.bf16.mxu0 %v7595_v60  ;;  %v2184_v60 = vmul.f32 %v7055_v4, %v2178_v58  ;;  %v1948_v15 = vld [vmem:[#allocation2 + $0x1b0] sm:$0xff]  ;;  %v1954_v58 = vld [vmem:[#allocation2 + $0x1e0] sm:$0xff] }
 0x870   :  { %2295 = vmatprep.subr.bf16.mxu0 %v1929_v36  ;;  %v1951_v36 = vld [vmem:[#allocation2 + $0x1c8] sm:$0xff]  ;;  %v2218_v41 = vpack.c.bf16 %v2213_v24, %v2202_v32 }
 0x871   :  { %v2190_v10 = vpack.c.bf16 %v2174_v63, %v2184_v60  ;;  %v1959_v60 = vld [vmem:[#allocation2 + $0x208] sm:$0xff]  ;;  %v1961_v63 = vld [vmem:[#allocation2 + $0x218] sm:$0xff] }
 0x873   :  { %2296 = vmatpush1.bf16.msra.mxu0 %v1928_v35  ;;  %v2215_v35 = vmul.f32 %v7057_v6, %v2207_v53 }
 0x874   :  { %2297 = vmatprep.subr.bf16.mxu0 %v1931_v38  ;;  %v1955_v38 = vld [vmem:[#allocation2 + $0x1e8] sm:$0xff] }
 0x876   :  { %2263 = vmatmul.mubr.bf16.gmra.mrb[88].mxu0 %v2189_v42  ;;  %v2219_v42 = vpack.c.bf16 %v2215_v35, %v2203_v11 }
 0x877   :  { %2298 = vmatpush1.bf16.msra.mxu0 %v1930_v61  ;;  %2272 = vmatprep.mubr.bf16.mxu0 %v7601_v5  ;;  %v2186_v5 = vmul.f32 %v7055_v4, %v2179_v13  ;;  %v1957_v61 = vld [vmem:[#allocation2 + $0x1f8] sm:$0xff]  ;;  %v1967_v13 = vld [vmem:[#allocation2 + $0x248] sm:$0xff] }
 0x878   :  { %2299 = vmatprep.subr.bf16.mxu0 %v1933_v62  ;;  %v1956_v62 = vld [vmem:[#allocation2 + $0x1f0] sm:$0xff] }
 0x879   :  { %v2191_v23 = vpack.c.bf16 %v2175_v56, %v2186_v5  ;;  %v1968_v5 = vld [vmem:[#allocation2 + $0x250] sm:$0xff]  ;;  %v1971_v56 = vld [vmem:[#allocation2 + $0x268] sm:$0xff] }
 0x87b   :  { %2300 = vmatpush1.bf16.msra.mxu0 %v1932_v8  ;;  %v1962_v8 = vld [vmem:[#allocation2 + $0x220] sm:$0xff] }
 0x87c   :  { %2301 = vmatprep.subr.bf16.mxu0 %v1935_v9  ;;  %v1965_v9 = vld [vmem:[#allocation2 + $0x238] sm:$0xff] }
 0x87e   :  { %2273 = vmatmul.mubr.bf16.gmra.mrb[92].mxu0 %v2190_v10  ;;  %v1964_v10 = vld [vmem:[#allocation2 + $0x230] sm:$0xff] }
 0x87f   :  { %2302 = vmatpush1.bf16.msra.mxu0 %v1934_v59  ;;  %2282 = vmatprep.mubr.bf16.mxu0 %v7607_v12  ;;  %v2209_v12 = vmul.f32 %v7057_v6, %v2204_v25  ;;  %v1966_v59 = vld [vmem:[#allocation2 + $0x240] sm:$0xff] }
 0x880   :  { %2303 = vmatprep.subr.bf16.mxu0 %v1937_v40  ;;  %v1969_v40 = vld [vmem:[#allocation2 + $0x258] sm:$0xff] }
 0x881   :  { %v2216_v51 = vpack.c.bf16 %v2209_v12, %v2200_v57 }
 0x883   :  { %2304 = vmatpush1.bf16.msra.mxu0 %v1936_v19  ;;  %v1972_v19 = vld [vmem:[#allocation2 + $0x270] sm:$0xff] }
 0x884   :  { %2305 = vmatprep.subr.bf16.mxu0 %v1939_v21  ;;  %v1975_v21 = vld [vmem:[#allocation2 + $0x288] sm:$0xff] }
 0x886   :  { %2283 = vmatmul.mubr.bf16.gmra.mrb[96].mxu0 %v2191_v23  ;;  %v2039_v23 = vld [vmem:[#allocation10 + $0x6] ss:$8 sm:$0x3] }
 0x887   :  { %2306 = vmatpush1.bf16.msra.mxu0 %v1938_v26  ;;  %2325 = vmatprep.mubr.bf16.mxu0 %v6938_v39  ;;  %v7674_v25 = vrot.slane %v2039_v23, %v7081_v20  ;;  %v7677_v26 = vrot.slane %v2039_v23, %v7074_v14 }
 0x888   :  { %2307 = vmatprep.subr.bf16.mxu0 %v1941_v27 }
 0x88b   :  { %2308 = vmatpush1.bf16.msra.mxu0 %v1940_v34 }
 0x88c   :  { %2529 = vmatprep.subr.bf16.mxu0 %v1943_v2 }
 0x88e   :  { %2326 = vmatmul.mubr.bf16.vlgmr.msra.gmra.mrb[84].mxu0 %v2216_v51 }
 0x88f   :  { %2335 = vmatprep.mubr.bf16.mxu0 %v6938_v39  ;;  %2530 = vmatpush1.bf16.msra.mxu0 %v1942_v37 }
 0x890   :  { %2531 = vmatprep.subr.bf16.mxu0 %v1945_v43 }
 0x893   :  { %2532 = vmatpush1.bf16.msra.mxu0 %v1944_v47 }
 0x894   :  { %2533 = vmatprep.subr.bf16.mxu0 %v1947_v48 }
 0x896   :  { %2336 = vmatmul.mubr.bf16.gmra.mrb[88].mxu0 %v2217_v49 }
 0x897   :  { %2345 = vmatprep.mubr.bf16.mxu0 %v6938_v39  ;;  %2534 = vmatpush1.bf16.msra.mxu0 %v1946_v52 }
 0x898   :  { %2535 = vmatprep.subr.bf16.mxu0 %v1949_v18 }
 0x89b   :  { %2536 = vmatpush1.bf16.msra.mxu0 %v1948_v15 }
 0x89c   :  { %2537 = vmatprep.subr.bf16.mxu0 %v1951_v36 }
 0x89e   :  { %2346 = vmatmul.mubr.bf16.gmra.mrb[92].mxu0 %v2218_v41 }
 0x89f   :  { %2355 = vmatprep.mubr.bf16.mxu0 %v6938_v39  ;;  %2538 = vmatpush1.bf16.msra.mxu0 %v1950_v54  ;;  %v1958_v39 = vld [vmem:[#allocation2 + $0x200] sm:$0xff] }
 0x8a0   :  { %2539 = vmatprep.subr.bf16.mxu0 %v1953_v55 }
 0x8a3   :  { %2540 = vmatpush1.bf16.msra.mxu0 %v1952_v29 }
 0x8a4   :  { %2541 = vmatprep.subr.bf16.mxu0 %v1955_v38 }
 0x8a6   :  { %2356 = vmatmul.mubr.bf16.gmra.mrb[96].mxu0 %v2219_v42 }
 0x8a7   :  { %2542 = vmatpush1.bf16.msra.mxu0 %v1954_v58 }
 0x8a8   :  { %2543 = vmatprep.subr.bf16.mxu0 %v1957_v61 }
 0x8ab   :  { %2544 = vmatpush1.bf16.msra.mxu0 %v1956_v62 }
 0x8ac   :  { %2545 = vmatprep.subr.bf16.mxu0 %v1959_v60 }
 0x8af   :  { %2546 = vmatpush1.bf16.msra.mxu0 %v1958_v39 }
 0x8b0   :  { %2547 = vmatprep.subr.bf16.mxu0 %v1961_v63 }
 0x8b3   :  { %2548 = vmatpush1.bf16.msra.mxu0 %v1960_v3 }
 0x8b4   :  { %2549 = vmatprep.subr.bf16.mxu0 %v1963_v7 }
 0x8b7   :  { %2550 = vmatpush1.bf16.msra.mxu0 %v1962_v8 }
 0x8b8   :  { %2551 = vmatprep.subr.bf16.mxu0 %v1965_v9 }
 0x8bb   :  { %2552 = vmatpush1.bf16.msra.mxu0 %v1964_v10 }
 0x8bc   :  { %2553 = vmatprep.subr.bf16.mxu0 %v1967_v13 }
 0x8bf   :  { %2554 = vmatpush1.bf16.msra.mxu0 %v1966_v59 }
 0x8c0   :  { %2555 = vmatprep.subr.bf16.mxu0 %v1969_v40 }
 0x8c3   :  { %2556 = vmatpush1.bf16.msra.mxu0 %v1968_v5 }
 0x8c4   :  { %2557 = vmatprep.subr.bf16.mxu0 %v1971_v56 }
 0x8c7   :  { %2558 = vmatpush1.bf16.msra.mxu0 %v1970_v16 }
 0x8c8   :  { %2559 = vmatprep.subr.bf16.mxu0 %v1973_v17 }
 0x8cb   :  { %2560 = vmatpush1.bf16.msra.mxu0 %v1972_v19 }
 0x8cc   :  { %2602 = vmatprep.subr.bf16.mxu0 %v1975_v21  ;;  %v1974_v21 = vld [vmem:[#allocation2 + $0x280] sm:$0xff] }
 0x961   :  { %v2327_v27 = vpop.f32.mrb[84].mxu0 }
 0x962   :  { %v2377_v12 = vadd.f32 %v7674_v25, %v2327_v27  ;;  %v2329_v57 = vpop.f32.mrb[85].mxu0 }
 0x963   :  { %v2378_v22 = vadd.f32 %v7677_v26, %v2329_v57  ;;  %v2331_v33 = vpop.f32.mrb[86].mxu0 }
 0x964   :  { %v7681_v34 = vmax.f32 %v2377_v12, 0.0  ;;  %v2379_v2 = vadd.f32 %v7674_v25, %v2331_v33  ;;  %v2333_v51 = vpop.f32.mrb[87].mxu0 }
 0x965   :  { %v7684_v28 = vmax.f32 %v2378_v22, 0.0  ;;  %v2380_v37 = vadd.f32 %v7677_v26, %v2333_v51 }
 0x966   :  { %v7687_v43 = vmax.f32 %v2379_v2, 0.0  ;;  %v2409_v45 = vrot.slane %v7681_v34, 7  ;;  %v2473_v44 = vrot.slane %v7681_v34, 1  ;;  %v1977_v2 = vld [vmem:[#allocation2 + $0x298] sm:$0xff] }
 0x967   :  { %v7691_v0 = vmax.f32 %v2380_v37, 0.0  ;;  %v2410_v46 = vrot.slane %v7684_v28, 7  ;;  %v2474_v50 = vrot.slane %v7684_v28, 1 }
 0x968   :  { %v2417_v47 = vrot.slane %v7687_v43, 7  ;;  %v2465_v48 = vpack.c.bf16 %v7687_v43, %v7681_v34  ;;  %v2481_v49 = vrot.slane %v7687_v43, 1  ;;  %v2012_v34 = vld [vmem:[#allocation2 + $0x3b0] sm:$0xff]  ;;  %v2015_v43 = vld [vmem:[#allocation2 + $0x3c8] sm:$0xff] }
 0x969   :  { %v2418_v52 = vrot.slane %v7691_v0, 7  ;;  %v2482_v18 = vrot.slane %v7691_v0, 1  ;;  %v2337_v24 = vpop.f32.mrb[88].mxu0  ;;  %v2466_v32 = vpack.c.bf16 %v7691_v0, %v7684_v28  ;;  %v1999_v28 = vld [vmem:[#allocation2 + $0x348] sm:$0xff]  ;;  %v1998_v0 = vld [vmem:[#allocation2 + $0x340] sm:$0xff] }
 0x96a   :  { %v2425_v30 = vsel %vm578_vm0, %v2409_v45, %v2417_v47  ;;  %v2433_v31 = vsel %vm578_vm0, %v2417_v47, %v2409_v45  ;;  %v7709_v15 = vsel %vm611_vm14, %v2473_v44, %v2481_v49  ;;  %v2497_v36 = vsel %vm611_vm14, %v2481_v49, %v2473_v44  ;;  %v2339_v41 = vpop.f32.mrb[89].mxu0 }
 0x96b   :  { %v2441_v53 = vmul.f32 %v7055_v4, %v2433_v31  ;;  %v7715_v54 = vmul.f32 %v7057_v6, %v2497_v36  ;;  %v2381_v55 = vadd.f32 %v7674_v25, %v2337_v24  ;;  %v2382_v35 = vadd.f32 %v7677_v26, %v2339_v41  ;;  %v2341_v11 = vpop.f32.mrb[90].mxu0  ;;  %v1976_v36 = vld [vmem:[#allocation2 + $0x290] sm:$0xff] }
 0x96c   :  { %v2383_v29 = vadd.f32 %v7674_v25, %v2341_v11  ;;  %v2343_v38 = vpop.f32.mrb[91].mxu0  ;;  %v2426_v42 = vsel %vm578_vm0, %v2410_v46, %v2418_v52  ;;  %v2434_v58 = vsel %vm578_vm0, %v2418_v52, %v2410_v46  ;;  %v7726_v61 = vsel %vm611_vm14, %v2474_v50, %v2482_v18 }
 0x96d   :  { %v2457_v62 = vpack.c.bf16 %v2425_v30, %v2441_v53  ;;  %v2521_v60 = vpack.c.bf16 %v7715_v54, %v7709_v15  ;;  %v7730_v39 = vmax.f32 %v2381_v55, 0.0  ;;  %v7732_v63 = vmax.f32 %v2382_v35, 0.0  ;;  %v2059_v15 = vld [vmem:[#allocation10 + $0x20] ss:$8 sm:$0x3] }
 0x96e   :  { %v7734_v3 = vmax.f32 %v2383_v29, 0.0  ;;  %v2384_v7 = vadd.f32 %v7677_v26, %v2343_v38  ;;  %v2442_v8 = vmul.f32 %v7055_v4, %v2434_v58  ;;  %v2498_v9 = vsel %vm611_vm14, %v2482_v18, %v2474_v50  ;;  %v1979_v29 = vld [vmem:[#allocation2 + $0x2a8] sm:$0xff]  ;;  %v2041_v54 = vld [vmem:[#allocation10 + $0x7] ss:$8 sm:$0x3] }
 0x96f   :  { %v2411_v10 = vrot.slane %v7730_v39, 7  ;;  %v2475_v13 = vrot.slane %v7730_v39, 1  ;;  %v2412_v59 = vrot.slane %v7732_v63, 7  ;;  %v2476_v16 = vrot.slane %v7732_v63, 1 }
 0x970   :  { %v2419_v40 = vrot.slane %v7734_v3, 7  ;;  %v7744_v5 = vmax.f32 %v2384_v7, 0.0  ;;  %v2458_v56 = vpack.c.bf16 %v2426_v42, %v2442_v8  ;;  %v2483_v17 = vrot.slane %v7734_v3, 1 }
 0x971   :  { %v2347_v19 = vpop.f32.mrb[92].mxu0  ;;  %v2467_v23 = vpack.c.bf16 %v7734_v3, %v7730_v39  ;;  %v7751_v27 = vmul.f32 %v7057_v6, %v2498_v9  ;;  %v2016_v39 = vld [vmem:[#allocation2 + $0x3d0] sm:$0xff]  ;;  %v2019_v3 = vld [vmem:[#allocation2 + $0x3e8] sm:$0xff] }
 0x972   :  { %v2420_v12 = vrot.slane %v7744_v5, 7  ;;  %v2484_v57 = vrot.slane %v7744_v5, 1  ;;  %2561 = vmatprep.mubr.bf16.mxu0 %v2458_v56  ;;  %v2385_v22 = vadd.f32 %v7674_v25, %v2347_v19  ;;  %v2349_v33 = vpop.f32.mrb[93].mxu0  ;;  %v2427_v51 = vsel %vm578_vm0, %v2411_v10, %v2419_v40 }
 0x973   :  { %2562 = vmatmul.mubr.bf16.vlgmr.msra.gmra.mrb[68].mxu0 %v2457_v62  ;;  %v2386_v37 = vadd.f32 %v7677_v26, %v2349_v33  ;;  %v2351_v45 = vpop.f32.mrb[94].mxu0  ;;  %v2435_v44 = vsel %vm578_vm0, %v2419_v40, %v2411_v10  ;;  %v2468_v46 = vpack.c.bf16 %v7744_v5, %v7732_v63  ;;  %v2522_v47 = vpack.c.bf16 %v7751_v27, %v7726_v61  ;;  %v2017_v63 = vld [vmem:[#allocation2 + $0x3d8] sm:$0xff]  ;;  %v2018_v5 = vld [vmem:[#allocation2 + $0x3e0] sm:$0xff]  ;;  %v2031_v61 = vld [vmem:[#allocation2 + $0x448] sm:$0xff] }
 0x974   :  { %v7765_v49 = vmax.f32 %v2385_v22, 0.0  ;;  %2603 = vmatpush1.bf16.msra.mxu0 %v1974_v21  ;;  %v2387_v50 = vadd.f32 %v7674_v25, %v2351_v45  ;;  %v2353_v52 = vpop.f32.mrb[95].mxu0  ;;  %v2428_v18 = vsel %vm578_vm0, %v2412_v59, %v2420_v12  ;;  %v2436_v24 = vsel %vm578_vm0, %v2420_v12, %v2412_v59  ;;  %v1978_v21 = vld [vmem:[#allocation2 + $0x2a0] sm:$0xff] }
 0x975   :  { %v7772_v30 = vmax.f32 %v2386_v37, 0.0  ;;  %v2388_v31 = vadd.f32 %v7677_v26, %v2353_v52  ;;  %2604 = vmatprep.subr.bf16.mxu0 %v1977_v2  ;;  %v2446_v41 = vmul.f32 %v7055_v4, %v2436_v24  ;;  %v2445_v53 = vmul.f32 %v7055_v4, %v2435_v44  ;;  %v2030_v27 = vld [vmem:[#allocation2 + $0x440] sm:$0xff] }
 0x976   :  { %v2413_v55 = vrot.slane %v7765_v49, 7  ;;  %v2477_v35 = vrot.slane %v7765_v49, 1  ;;  %v7779_v11 = vmax.f32 %v2387_v50, 0.0  ;;  %v7783_v38 = vsel %vm611_vm14, %v2476_v16, %v2484_v57 }
 0x977   :  { %v2414_v42 = vrot.slane %v7772_v30, 7  ;;  %v2478_v58 = vrot.slane %v7772_v30, 1  ;;  %v7787_v62 = vmax.f32 %v2388_v31, 0.0  ;;  %v2460_v7 = vpack.c.bf16 %v2428_v18, %v2446_v41 }
 0x978   :  { %v2421_v8 = vrot.slane %v7779_v11, 7  ;;  %v2485_v9 = vrot.slane %v7779_v11, 1  ;;  %2605 = vmatpush1.bf16.msra.mxu0 %v1976_v36  ;;  %v2459_v10 = vpack.c.bf16 %v2427_v51, %v2445_v53  ;;  %v2469_v59 = vpack.c.bf16 %v7779_v11, %v7765_v49  ;;  %v1981_v51 = vld [vmem:[#allocation2 + $0x2b8] sm:$0xff]  ;;  %v2023_v49 = vld [vmem:[#allocation2 + $0x408] sm:$0xff] }
 0x979   :  { %v2422_v40 = vrot.slane %v7787_v62, 7  ;;  %v2486_v56 = vrot.slane %v7787_v62, 1  ;;  %2571 = vmatprep.mubr.bf16.mxu0 %v2460_v7  ;;  %2606 = vmatprep.subr.bf16.mxu0 %v1979_v29  ;;  %v2357_v19 = vpop.f32.mrb[96].mxu0  ;;  %v2470_v12 = vpack.c.bf16 %v7787_v62, %v7772_v30  ;;  %v2500_v22 = vsel %vm611_vm14, %v2484_v57, %v2476_v16  ;;  %v1980_v7 = vld [vmem:[#allocation2 + $0x2b0] sm:$0xff]  ;;  %v2022_v30 = vld [vmem:[#allocation2 + $0x400] sm:$0xff]  ;;  %v2025_v11 = vld [vmem:[#allocation2 + $0x418] sm:$0xff] }
 0x97a   :  { %v2389_v33 = vadd.f32 %v7674_v25, %v2357_v19  ;;  %v2359_v2 = vpop.f32.mrb[97].mxu0  ;;  %v2429_v37 = vsel %vm578_vm0, %v2413_v55, %v2421_v8  ;;  %v2437_v45 = vsel %vm578_vm0, %v2421_v8, %v2413_v55  ;;  %v7805_v44 = vmul.f32 %v7057_v6, %v2500_v22  ;;  %v2024_v62 = vld [vmem:[#allocation2 + $0x410] sm:$0xff] }
 0x97b   :  { %2572 = vmatmul.mubr.bf16.gmra.mrb[72].mxu0 %v2459_v10  ;;  %v2390_v50 = vadd.f32 %v7677_v26, %v2359_v2  ;;  %v2361_v52 = vpop.f32.mrb[98].mxu0  ;;  %v2430_v16 = vsel %vm578_vm0, %v2414_v42, %v2422_v40  ;;  %v2438_v57 = vsel %vm578_vm0, %v2422_v40, %v2414_v42  ;;  %v2449_v18 = vmul.f32 %v7055_v4, %v2437_v45 }
 0x97c   :  { %v7813_v24 = vmax.f32 %v2389_v33, 0.0  ;;  %2607 = vmatpush1.bf16.msra.mxu0 %v1978_v21  ;;  %v2391_v31 = vadd.f32 %v7674_v25, %v2361_v52  ;;  %v2363_v36 = vpop.f32.mrb[99].mxu0  ;;  %v2450_v41 = vmul.f32 %v7055_v4, %v2438_v57  ;;  %v2524_v53 = vpack.c.bf16 %v7805_v44, %v7783_v38  ;;  %v1983_v21 = vld [vmem:[#allocation2 + $0x2c8] sm:$0xff]  ;;  %v1982_v57 = vld [vmem:[#allocation2 + $0x2c0] sm:$0xff] }
 0x97d   :  { %v7819_v55 = vmax.f32 %v2390_v50, 0.0  ;;  %v2392_v29 = vadd.f32 %v7677_v26, %v2363_v36  ;;  %2608 = vmatprep.subr.bf16.mxu0 %v1981_v51  ;;  %v2461_v42 = vpack.c.bf16 %v2429_v37, %v2449_v18  ;;  %v7828_v25 = vsel %vm611_vm14, %v2475_v13, %v2483_v17  ;;  %v1985_v18 = vld [vmem:[#allocation2 + $0x2d8] sm:$0xff] }
 0x97e   :  { %v2415_v8 = vrot.slane %v7813_v24, 7  ;;  %v2479_v10 = vrot.slane %v7813_v24, 1  ;;  %v7832_v40 = vmax.f32 %v2391_v31, 0.0  ;;  %v2462_v19 = vpack.c.bf16 %v2430_v16, %v2450_v41 }
 0x97f   :  { %v2416_v26 = vrot.slane %v7819_v55, 7  ;;  %v2480_v22 = vrot.slane %v7819_v55, 1  ;;  %v7836_v33 = vmax.f32 %v2392_v29, 0.0  ;;  %v2499_v2 = vsel %vm611_vm14, %v2483_v17, %v2475_v13 }
 0x980   :  { %v2423_v51 = vrot.slane %v7832_v40, 7  ;;  %v2487_v37 = vrot.slane %v7832_v40, 1  ;;  %2609 = vmatpush1.bf16.msra.mxu0 %v1980_v7  ;;  %2581 = vmatprep.mubr.bf16.mxu0 %v2462_v19  ;;  %v2471_v45 = vpack.c.bf16 %v7832_v40, %v7813_v24  ;;  %v7849_v50 = vmul.f32 %v7057_v6, %v2499_v2  ;;  %v2029_v24 = vld [vmem:[#allocation2 + $0x438] sm:$0xff]  ;;  %v2032_v40 = vld [vmem:[#allocation2 + $0x450] sm:$0xff] }
 0x981   :  { %v2424_v52 = vrot.slane %v7836_v33, 7  ;;  %v2488_v16 = vrot.slane %v7836_v33, 1  ;;  %2610 = vmatprep.subr.bf16.mxu0 %v1983_v21  ;;  %v2472_v13 = vpack.c.bf16 %v7836_v33, %v7819_v55  ;;  %v7859_v17 = vsel %vm611_vm14, %v2478_v58, %v2486_v56  ;;  %v2028_v55 = vld [vmem:[#allocation2 + $0x430] sm:$0xff]  ;;  %v2035_v33 = vld [vmem:[#allocation2 + $0x468] sm:$0xff] }
 0x982   :  { %v2431_v31 = vsel %vm578_vm0, %v2415_v8, %v2423_v51  ;;  %v2439_v36 = vsel %vm578_vm0, %v2423_v51, %v2415_v8  ;;  %v2523_v41 = vpack.c.bf16 %v7849_v50, %v7828_v25  ;;  %v2502_v29 = vsel %vm611_vm14, %v2486_v56, %v2478_v58 }
 0x983   :  { %2582 = vmatmul.mubr.bf16.gmra.mrb[76].mxu0 %v2461_v42  ;;  %v2432_v7 = vsel %vm578_vm0, %v2416_v26, %v2424_v52  ;;  %v2440_v19 = vsel %vm578_vm0, %v2424_v52, %v2416_v26  ;;  %v2453_v21 = vmul.f32 %v7055_v4, %v2439_v36  ;;  %v7877_v2 = vmul.f32 %v7057_v6, %v2502_v29  ;;  %v1984_v26 = vld [vmem:[#allocation2 + $0x2d0] sm:$0xff] }
 0x984   :  { %2611 = vmatpush1.bf16.msra.mxu0 %v1982_v57  ;;  %v2454_v8 = vmul.f32 %v7055_v4, %v2440_v19  ;;  %v7886_v58 = vsel %vm611_vm14, %v2477_v35, %v2485_v9  ;;  %v2501_v56 = vsel %vm611_vm14, %v2485_v9, %v2477_v35  ;;  %v7896_v42 = vsel %vm611_vm14, %v2480_v22, %v2488_v16  ;;  %v1987_v19 = vld [vmem:[#allocation2 + $0x2e8] sm:$0xff] }
 0x985   :  { %2612 = vmatprep.subr.bf16.mxu0 %v1985_v18  ;;  %v2463_v51 = vpack.c.bf16 %v2431_v31, %v2453_v21  ;;  %v2526_v52 = vpack.c.bf16 %v7877_v2, %v7859_v17  ;;  %v7901_v57 = vmul.f32 %v7057_v6, %v2501_v56  ;;  %v2504_v36 = vsel %vm611_vm14, %v2488_v16, %v2480_v22  ;;  %v1986_v16 = vld [vmem:[#allocation2 + $0x2e0] sm:$0xff] }
 0x986   :  { %v2464_v29 = vpack.c.bf16 %v2432_v7, %v2454_v8  ;;  %v7906_v35 = vmul.f32 %v7057_v6, %v2504_v36  ;;  %v7910_v9 = vsel %vm611_vm14, %v2479_v10, %v2487_v37  ;;  %v2503_v18 = vsel %vm611_vm14, %v2487_v37, %v2479_v10  ;;  %v1989_v8 = vld [vmem:[#allocation2 + $0x2f8] sm:$0xff]  ;;  %v1988_v10 = vld [vmem:[#allocation2 + $0x2f0] sm:$0xff]  ;;  %v1991_v37 = vld [vmem:[#allocation2 + $0x308] sm:$0xff] }
 0x987   :  { %v2525_v31 = vpack.c.bf16 %v7901_v57, %v7886_v58  ;;  %v7917_v21 = vmul.f32 %v7057_v6, %v2503_v18  ;;  %v1990_v56 = vld [vmem:[#allocation2 + $0x300] sm:$0xff]  ;;  %v1992_v36 = vld [vmem:[#allocation2 + $0x310] sm:$0xff]  ;;  %v2145_v38 = vrot.slane %v2059_v15, %v7074_v14  ;;  %v2752_v44 = vrot.slane %v2041_v54, %v7081_v20 }
 0x988   :  { %2613 = vmatpush1.bf16.msra.mxu0 %v1984_v26  ;;  %2591 = vmatprep.mubr.bf16.mxu0 %v2464_v29  ;;  %v2528_v22 = vpack.c.bf16 %v7906_v35, %v7896_v42  ;;  %v1993_v26 = vld [vmem:[#allocation2 + $0x318] sm:$0xff]  ;;  %v1995_v29 = vld [vmem:[#allocation2 + $0x328] sm:$0xff]  ;;  %v1996_v18 = vld [vmem:[#allocation2 + $0x330] sm:$0xff]  ;;  %v2756_v25 = vrot.slane %v2041_v54, %v7074_v14 }
 0x989   :  { %2614 = vmatprep.subr.bf16.mxu0 %v1987_v19  ;;  %v2527_v7 = vpack.c.bf16 %v7917_v21, %v7910_v9  ;;  %v1994_v19 = vld [vmem:[#allocation2 + $0x320] sm:$0xff] }
 0x98b   :  { %2592 = vmatmul.mubr.bf16.gmra.mrb[80].mxu0 %v2463_v51  ;;  %v1997_v51 = vld [vmem:[#allocation2 + $0x338] sm:$0xff] }
 0x98c   :  { %2615 = vmatpush1.bf16.msra.mxu0 %v1986_v16  ;;  %2634 = vmatprep.mubr.bf16.mxu0 %v2466_v32  ;;  %v2001_v32 = vld [vmem:[#allocation2 + $0x358] sm:$0xff]  ;;  %v2000_v16 = vld [vmem:[#allocation2 + $0x350] sm:$0xff] }
 0x98d   :  { %2616 = vmatprep.subr.bf16.mxu0 %v1989_v8  ;;  %v2003_v8 = vld [vmem:[#allocation2 + $0x368] sm:$0xff] }
 0x990   :  { %2617 = vmatpush1.bf16.msra.mxu0 %v1988_v10  ;;  %v2002_v10 = vld [vmem:[#allocation2 + $0x360] sm:$0xff] }
 0x991   :  { %2618 = vmatprep.subr.bf16.mxu0 %v1991_v37  ;;  %v2005_v37 = vld [vmem:[#allocation2 + $0x378] sm:$0xff] }
 0x994   :  { %2619 = vmatpush1.bf16.msra.mxu0 %v1990_v56  ;;  %v2004_v56 = vld [vmem:[#allocation2 + $0x370] sm:$0xff] }
 0x995   :  { %2620 = vmatprep.subr.bf16.mxu0 %v1993_v26  ;;  %v2007_v26 = vld [vmem:[#allocation2 + $0x388] sm:$0xff] }
 0x998   :  { %2621 = vmatpush1.bf16.msra.mxu0 %v1992_v36  ;;  %v2006_v36 = vld [vmem:[#allocation2 + $0x380] sm:$0xff] }
 0x999   :  { %2622 = vmatprep.subr.bf16.mxu0 %v1995_v29  ;;  %v2009_v29 = vld [vmem:[#allocation2 + $0x398] sm:$0xff] }
 0x99c   :  { %2623 = vmatpush1.bf16.msra.mxu0 %v1994_v19  ;;  %v2008_v19 = vld [vmem:[#allocation2 + $0x390] sm:$0xff] }
 0x99d   :  { %2624 = vmatprep.subr.bf16.mxu0 %v1997_v51  ;;  %v2011_v51 = vld [vmem:[#allocation2 + $0x3a8] sm:$0xff] }
 0x9a0   :  { %2625 = vmatpush1.bf16.msra.mxu0 %v1996_v18  ;;  %v2010_v18 = vld [vmem:[#allocation2 + $0x3a0] sm:$0xff] }
 0x9a1   :  { %2626 = vmatprep.subr.bf16.mxu0 %v1999_v28  ;;  %v2013_v28 = vld [vmem:[#allocation2 + $0x3b8] sm:$0xff] }
 0x9a4   :  { %2627 = vmatpush1.bf16.msra.mxu0 %v1998_v0  ;;  %v2036_v0 = vld [vmem:[#allocation2 + $0x470] sm:$0xff] }
 0x9a5   :  { %2628 = vmatprep.subr.bf16.mxu0 %v2001_v32 }
 0x9a8   :  { %2629 = vmatpush1.bf16.msra.mxu0 %v2000_v16 }
 0x9a9   :  { %2630 = vmatprep.subr.bf16.mxu0 %v2003_v8 }
 0x9ac   :  { %2631 = vmatpush1.bf16.msra.mxu0 %v2002_v10 }
 0x9ad   :  { %2632 = vmatprep.subr.bf16.mxu0 %v2005_v37 }
 0x9b0   :  { %2633 = vmatpush1.bf16.msra.mxu0 %v2004_v56 }
 0x9b1   :  { %2675 = vmatprep.subr.bf16.mxu0 %v2007_v26 }
 0x9b3   :  { %2635 = vmatmul.mubr.bf16.vlgmr.msra.gmra.mrb[68].mxu0 %v2465_v48  ;;  %v2014_v48 = vld [vmem:[#allocation2 + $0x3c0] sm:$0xff] }
 0x9b4   :  { %2644 = vmatprep.mubr.bf16.mxu0 %v2468_v46  ;;  %2676 = vmatpush1.bf16.msra.mxu0 %v2006_v36  ;;  %v2020_v46 = vld [vmem:[#allocation2 + $0x3f0] sm:$0xff] }
 0x9b5   :  { %2677 = vmatprep.subr.bf16.mxu0 %v2009_v29 }
 0x9b8   :  { %2678 = vmatpush1.bf16.msra.mxu0 %v2008_v19 }
 0x9b9   :  { %2679 = vmatprep.subr.bf16.mxu0 %v2011_v51 }
 0x9bb   :  { %2645 = vmatmul.mubr.bf16.gmra.mrb[72].mxu0 %v2467_v23  ;;  %v2021_v23 = vld [vmem:[#allocation2 + $0x3f8] sm:$0xff] }
 0x9bc   :  { %2654 = vmatprep.mubr.bf16.mxu0 %v2470_v12  ;;  %2680 = vmatpush1.bf16.msra.mxu0 %v2010_v18  ;;  %v2026_v12 = vld [vmem:[#allocation2 + $0x420] sm:$0xff] }
 0x9bd   :  { %2681 = vmatprep.subr.bf16.mxu0 %v2013_v28 }
 0x9c0   :  { %2682 = vmatpush1.bf16.msra.mxu0 %v2012_v34 }
 0x9c1   :  { %2683 = vmatprep.subr.bf16.mxu0 %v2015_v43 }
 0x9c3   :  { %2655 = vmatmul.mubr.bf16.gmra.mrb[76].mxu0 %v2469_v59  ;;  %v2027_v59 = vld [vmem:[#allocation2 + $0x428] sm:$0xff] }
 0x9c4   :  { %2664 = vmatprep.mubr.bf16.mxu0 %v2472_v13  ;;  %2684 = vmatpush1.bf16.msra.mxu0 %v2014_v48  ;;  %v2037_v13 = vld [vmem:[#allocation2 + $0x478] sm:$0xff] }
 0x9c5   :  { %2685 = vmatprep.subr.bf16.mxu0 %v2017_v63 }
 0x9c8   :  { %2686 = vmatpush1.bf16.msra.mxu0 %v2016_v39 }
 0x9c9   :  { %2687 = vmatprep.subr.bf16.mxu0 %v2019_v3 }
 0x9cb   :  { %2665 = vmatmul.mubr.bf16.gmra.mrb[80].mxu0 %v2471_v45  ;;  %v2034_v45 = vld [vmem:[#allocation2 + $0x460] sm:$0xff] }
 0x9cc   :  { %2688 = vmatpush1.bf16.msra.mxu0 %v2018_v5  ;;  %2707 = vmatprep.mubr.bf16.mxu0 %v2522_v47  ;;  %v2033_v47 = vld [vmem:[#allocation2 + $0x458] sm:$0xff] }
 0x9cd   :  { %2689 = vmatprep.subr.bf16.mxu0 %v2021_v23 }
 0x9d0   :  { %2690 = vmatpush1.bf16.msra.mxu0 %v2020_v46 }
 0x9d1   :  { %2691 = vmatprep.subr.bf16.mxu0 %v2023_v49 }
 0x9d4   :  { %2692 = vmatpush1.bf16.msra.mxu0 %v2022_v30 }
 0x9d5   :  { %2693 = vmatprep.subr.bf16.mxu0 %v2025_v11 }
 0x9d8   :  { %2694 = vmatpush1.bf16.msra.mxu0 %v2024_v62 }
 0x9d9   :  { %2695 = vmatprep.subr.bf16.mxu0 %v2027_v59 }
 0x9dc   :  { %2696 = vmatpush1.bf16.msra.mxu0 %v2026_v12 }
 0x9dd   :  { %2697 = vmatprep.subr.bf16.mxu0 %v2029_v24 }
 0x9e0   :  { %2698 = vmatpush1.bf16.msra.mxu0 %v2028_v55 }
 0x9e1   :  { %2699 = vmatprep.subr.bf16.mxu0 %v2031_v61 }
 0x9e4   :  { %2700 = vmatpush1.bf16.msra.mxu0 %v2030_v27 }
 0x9e5   :  { %2701 = vmatprep.subr.bf16.mxu0 %v2033_v47 }
 0x9e8   :  { %2702 = vmatpush1.bf16.msra.mxu0 %v2032_v40 }
 0x9e9   :  { %2703 = vmatprep.subr.bf16.mxu0 %v2035_v33 }
 0x9ec   :  { %2704 = vmatpush1.bf16.msra.mxu0 %v2034_v45 }
 0x9ed   :  { %2705 = vmatprep.subr.bf16.mxu0 %v2037_v13 }
 0x9f0   :  { %2706 = vmatpush1.bf16.msra.mxu0 %v2036_v0 }
 0x9f3   :  { %2708 = vmatmul.mubr.bf16.vlgmr.msra.gmra.mrb[68].mxu0 %v2521_v60  ;;  %v2141_v60 = vrot.slane %v2059_v15, %v7081_v20 }
 0x9f4   :  { %2717 = vmatprep.mubr.bf16.mxu0 %v2524_v53 }
 0x9fb   :  { %2718 = vmatmul.mubr.bf16.gmra.mrb[72].mxu0 %v2523_v41 }
 0x9fc   :  { %2727 = vmatprep.mubr.bf16.mxu0 %v2526_v52 }
 0xa03   :  { %2728 = vmatmul.mubr.bf16.gmra.mrb[76].mxu0 %v2525_v31 }
 0xa04   :  { %2737 = vmatprep.mubr.bf16.mxu0 %v2528_v22 }
 0xa0b   :  { %2738 = vmatmul.mubr.bf16.gmra.mrb[80].mxu0 %v2527_v7 }
 0xac6   :  { %v2709_v53 = vpop.f32.mrb[68].mxu0 }
 0xac7   :  { %v6283_v50 = vadd.f32 %v2709_v53, %v2141_v60  ;;  %v2711_v17 = vpop.f32.mrb[69].mxu0 }
 0xac8   :  { %v6285_v41 = vadd.f32 %v2711_v17, %v2145_v38  ;;  %v2713_v2 = vpop.f32.mrb[70].mxu0 }
 0xac9   :  { %v6284_v58 = vadd.f32 %v6283_v50, %v2752_v44  ;;  %v6287_v42 = vadd.f32 %v2713_v2, %v2141_v60  ;;  %v2715_v52 = vpop.f32.mrb[71].mxu0 }
 0xaca   :  { %v6286_v57 = vadd.f32 %v6285_v41, %v2756_v25  ;;  %v6289_v35 = vadd.f32 %v2715_v52, %v2145_v38 }
 0xacb   :  { %v7975_v9 = vmax.f32 %v6284_v58, 0.0  ;;  %v6288_v31 = vadd.f32 %v6287_v42, %v2752_v44 }
 0xacc   :  { %v7977_v21 = vmax.f32 %v6286_v57, 0.0  ;;  %v6290_v22 = vadd.f32 %v6289_v35, %v2756_v25 }
 0xacd   :  { %v7979_v7 = vmax.f32 %v6288_v31, 0.0 }
 0xace   :  { %v7981_v32 = vmax.f32 %v6290_v22, 0.0  ;;  %v2719_v16 = vpop.f32.mrb[72].mxu0 }
 0xacf   :  { %v6291_v8 = vadd.f32 %v2719_v16, %v2141_v60  ;;  %v2721_v10 = vpop.f32.mrb[73].mxu0 }
 0xad0   :  { %v6293_v37 = vadd.f32 %v2721_v10, %v2145_v38  ;;  %v2723_v56 = vpop.f32.mrb[74].mxu0 }
 0xad1   :  { %v6292_v26 = vadd.f32 %v6291_v8, %v2752_v44  ;;  %v6295_v36 = vadd.f32 %v2723_v56, %v2141_v60  ;;  %v2725_v29 = vpop.f32.mrb[75].mxu0 }
 0xad2   :  { %v6294_v19 = vadd.f32 %v6293_v37, %v2756_v25  ;;  %v6297_v51 = vadd.f32 %v2725_v29, %v2145_v38 }
 0xad3   :  { %v7983_v18 = vmax.f32 %v6292_v26, 0.0  ;;  %v6296_v28 = vadd.f32 %v6295_v36, %v2752_v44 }
 0xad4   :  { %v7985_v34 = vmax.f32 %v6294_v19, 0.0  ;;  %v6298_v43 = vadd.f32 %v6297_v51, %v2756_v25 }
 0xad5   :  { %v7987_v48 = vmax.f32 %v6296_v28, 0.0 }
 0xad6   :  { %v7989_v63 = vmax.f32 %v6298_v43, 0.0  ;;  %v2729_v39 = vpop.f32.mrb[76].mxu0 }
 0xad7   :  { %v6299_v3 = vadd.f32 %v2729_v39, %v2141_v60  ;;  %v2731_v5 = vpop.f32.mrb[77].mxu0 }
 0xad8   :  { %v6301_v23 = vadd.f32 %v2731_v5, %v2145_v38  ;;  %v2733_v46 = vpop.f32.mrb[78].mxu0 }
 0xad9   :  { %v6300_v49 = vadd.f32 %v6299_v3, %v2752_v44  ;;  %v6303_v30 = vadd.f32 %v2733_v46, %v2141_v60  ;;  %v2735_v11 = vpop.f32.mrb[79].mxu0 }
 0xada   :  { %v6302_v62 = vadd.f32 %v6301_v23, %v2756_v25  ;;  %v6305_v59 = vadd.f32 %v2735_v11, %v2145_v38 }
 0xadb   :  { %v7991_v12 = vmax.f32 %v6300_v49, 0.0  ;;  %v6304_v24 = vadd.f32 %v6303_v30, %v2752_v44 }
 0xadc   :  { %v7993_v55 = vmax.f32 %v6302_v62, 0.0  ;;  %v6306_v61 = vadd.f32 %v6305_v59, %v2756_v25 }
 0xadd   :  { %v7995_v27 = vmax.f32 %v6304_v24, 0.0 }
 0xade   :  { %v7997_v47 = vmax.f32 %v6306_v61, 0.0  ;;  %v2739_v40 = vpop.f32.mrb[80].mxu0 }
 0xadf   :  { %v6307_v33 = vadd.f32 %v2739_v40, %v2141_v60  ;;  %v2741_v45 = vpop.f32.mrb[81].mxu0 }
 0xae0   :  { %v6309_v13 = vadd.f32 %v2741_v45, %v2145_v38  ;;  %v2743_v0 = vpop.f32.mrb[82].mxu0 }
 0xae1   :  { %v6308_v15 = vadd.f32 %v6307_v33, %v2752_v44  ;;  %v6311_v54 = vadd.f32 %v2743_v0, %v2141_v60  ;;  %v2745_v53 = vpop.f32.mrb[83].mxu0 }
 0xae2   :  { %v6310_v50 = vadd.f32 %v6309_v13, %v2756_v25  ;;  %v6313_v17 = vadd.f32 %v2745_v53, %v2145_v38 }
 0xae3   :  { %v7999_v41 = vmax.f32 %v6308_v15, 0.0  ;;  %v6312_v2 = vadd.f32 %v6311_v54, %v2752_v44 }
 0xae4   :  { %v8001_v58 = vmax.f32 %v6310_v50, 0.0  ;;  %v6314_v42 = vadd.f32 %v6313_v17, %v2756_v25 }
 0xae5   :  { %v8003_v52 = vmax.f32 %v6312_v2, 0.0 }
 0xae6   :  { %v8005_v57 = vmax.f32 %v6314_v42, 0.0 }
 0xae7   :  { %6913 = dma.done.wait [#allocation4 + $0x1], 81920 }
 0xae8   :  { %6914 = vsyncadd [#allocation4 + $0x1], 4294885376  ;;  %v8009_v35 = vpack.c.bf16 %v7981_v32, %v7977_v21  ;;  %v3392_v60 = vld [vmem:[#allocation3 + $0x1208] sm:$0xff]  ;;  %v3391_v38 = vld [vmem:[#allocation3 + $0x1200] sm:$0xff]  ;;  %s6939_s11 = smov [#allocation13]   ;;  %vm5885_vm1 = vcmask 82944  }
 0xae9   :  { %v3396_v44 = vld [vmem:[#allocation3 + $0x1228] sm:$0xff]  ;;  %3465 = vmatprep.subr.bf16.mxu0 %v3392_v60  ;;  %v3395_v25 = vld [vmem:[#allocation3 + $0x1220] sm:$0xff]  ;;  %s5893_s13 = sshll.u32 %s6939_s11, 4  ;;  %s5894_s13 = int_to_ptr.vmem [resolvable:$true] %s5893_s13 }
 0xaea   :  { %3497 = vmatprep.mubr.bf16.mxu0 %v8009_v35  ;;  %3881 = vmatprep.mubr.bf16.mxu1 %v8009_v35  ;;  %v3400_v31 = vld [vmem:[#allocation3 + $0x1248] sm:$0xff]  ;;  %v3399_v22 = vld [vmem:[#allocation3 + $0x1240] sm:$0xff]  ;;  %s6883_s14 = scalar_lea.vmem %s5894_s13, 32  ;;  %p6888_p5 = scmp.lt.s32.totalorder %s5894_s13, %s5894_s13 }
 0xaeb   :  { %3466 = vmatpush1.bf16.msra.mxu0 %v3391_v38  ;;  %v3404_v16 = vld [vmem:[#allocation3 + $0x1268] sm:$0xff]  ;;  %v3403_v8 = vld [vmem:[#allocation3 + $0x1260] sm:$0xff]  ;;  %p6884_p4 = scmp.ne.s32.totalorder %s5894_s13, %s6883_s14  ;;  %p6889_p6 = scmp.lt.s32.totalorder %s6883_s14, %s6883_s14 }
 0xaec   :  { %3467 = vmatprep.subr.bf16.mxu0 %v3396_v44  ;;  %v2876_v10 = vld [vmem:[#allocation3 + $0x208] sm:$0xff]  ;;  %v2875_v37 = vld [vmem:[#allocation3 + $0x200] sm:$0xff] }
 0xaed   :  { %v3408_v56 = vld [vmem:[#allocation3 + $0x1288] sm:$0xff]  ;;  %3849 = vmatprep.subr.bf16.mxu1 %v2876_v10  ;;  %v2879_v36 = vld [vmem:[#allocation3 + $0x220] sm:$0xff]  ;;  %p6890_p7 = por %p6889_p6, %p6888_p5 }
 0xaee   :  { %v2880_v26 = vld [vmem:[#allocation3 + $0x228] sm:$0xff]  ;;  %3850 = vmatpush1.bf16.msra.mxu1 %v2875_v37  ;;  %v3407_v29 = vld [vmem:[#allocation3 + $0x1280] sm:$0xff] }
 0xaef   :  { %3468 = vmatpush1.bf16.msra.mxu0 %v3395_v25  ;;  %3851 = vmatprep.subr.bf16.mxu1 %v2880_v26  ;;  %v2884_v19 = vld [vmem:[#allocation3 + $0x248] sm:$0xff]  ;;  %v2883_v28 = vld [vmem:[#allocation3 + $0x240] sm:$0xff]  ;;  %p6891_p8 = pnand %p6890_p7, %p6884_p4 }
 0xaf0   :  { %3469 = vmatprep.subr.bf16.mxu0 %v3400_v31  ;;  %v3412_v51 = vld [vmem:[#allocation3 + $0x12a8] sm:$0xff]  ;;  %v3411_v43 = vld [vmem:[#allocation3 + $0x12a0] sm:$0xff] }
 0xaf1   :  { %v2888_v39 = vld [vmem:[#allocation3 + $0x268] sm:$0xff]  ;;  %v2887_v5 = vld [vmem:[#allocation3 + $0x260] sm:$0xff] }
 0xaf2   :  { %3852 = vmatpush1.bf16.msra.mxu1 %v2879_v36  ;;  %v3416_v3 = vld [vmem:[#allocation3 + $0x12c8] sm:$0xff]  ;;  %v3415_v23 = vld [vmem:[#allocation3 + $0x12c0] sm:$0xff] }
 0xaf3   :  { %3470 = vmatpush1.bf16.msra.mxu0 %v3399_v22  ;;  %3853 = vmatprep.subr.bf16.mxu1 %v2884_v19  ;;  %v2892_v46 = vld [vmem:[#allocation3 + $0x288] sm:$0xff]  ;;  %v2891_v30 = vld [vmem:[#allocation3 + $0x280] sm:$0xff] }
 0xaf4   :  { %3471 = vmatprep.subr.bf16.mxu0 %v3404_v16  ;;  %v3420_v49 = vld [vmem:[#allocation3 + $0x12e8] sm:$0xff]  ;;  %v3419_v11 = vld [vmem:[#allocation3 + $0x12e0] sm:$0xff] }
 0xaf5   :  { %v2896_v62 = vld [vmem:[#allocation3 + $0x2a8] sm:$0xff]  ;;  %v2895_v24 = vld [vmem:[#allocation3 + $0x2a0] sm:$0xff] }
 0xaf6   :  { %3854 = vmatpush1.bf16.msra.mxu1 %v2883_v28  ;;  %v3424_v59 = vld [vmem:[#allocation3 + $0x1308] sm:$0xff]  ;;  %v3423_v61 = vld [vmem:[#allocation3 + $0x1300] sm:$0xff] }
 0xaf7   :  { %3472 = vmatpush1.bf16.msra.mxu0 %v3403_v8  ;;  %3855 = vmatprep.subr.bf16.mxu1 %v2888_v39  ;;  %v2900_v40 = vld [vmem:[#allocation3 + $0x2c8] sm:$0xff]  ;;  %v2899_v45 = vld [vmem:[#allocation3 + $0x2c0] sm:$0xff]  ;;  %v8015_v39 = vpack.c.bf16 %v7979_v7, %v7975_v9 }
 0xaf8   :  { %3473 = vmatprep.subr.bf16.mxu0 %v3408_v56  ;;  %v3428_v33 = vld [vmem:[#allocation3 + $0x1328] sm:$0xff]  ;;  %v3427_v13 = vld [vmem:[#allocation3 + $0x1320] sm:$0xff] }
 0xaf9   :  { %v2904_v0 = vld [vmem:[#allocation3 + $0x2e8] sm:$0xff]  ;;  %v2903_v54 = vld [vmem:[#allocation3 + $0x2e0] sm:$0xff] }
 0xafa   :  { %3856 = vmatpush1.bf16.msra.mxu1 %v2887_v5  ;;  %v3432_v15 = vld [vmem:[#allocation3 + $0x1348] sm:$0xff]  ;;  %v3431_v53 = vld [vmem:[#allocation3 + $0x1340] sm:$0xff] }
 0xafb   :  { %3474 = vmatpush1.bf16.msra.mxu0 %v3407_v29  ;;  %3857 = vmatprep.subr.bf16.mxu1 %v2892_v46  ;;  %v2908_v50 = vld [vmem:[#allocation3 + $0x308] sm:$0xff]  ;;  %v2907_v2 = vld [vmem:[#allocation3 + $0x300] sm:$0xff]  ;;  %v3398_v46 = vld [vmem:[#allocation3 + $0x1238] sm:$0xff] }
 0xafc   :  { %3475 = vmatprep.subr.bf16.mxu0 %v3412_v51  ;;  %v3436_v17 = vld [vmem:[#allocation3 + $0x1368] sm:$0xff]  ;;  %v3435_v42 = vld [vmem:[#allocation3 + $0x1360] sm:$0xff] }
 0xafd   :  { %v2912_v60 = vld [vmem:[#allocation3 + $0x328] sm:$0xff]  ;;  %v2911_v44 = vld [vmem:[#allocation3 + $0x320] sm:$0xff] }
 0xafe   :  { %3858 = vmatpush1.bf16.msra.mxu1 %v2891_v30  ;;  %v3440_v38 = vld [vmem:[#allocation3 + $0x1388] sm:$0xff]  ;;  %v3439_v25 = vld [vmem:[#allocation3 + $0x1380] sm:$0xff] }
 0xaff   :  { %3476 = vmatpush1.bf16.msra.mxu0 %v3411_v43  ;;  %3859 = vmatprep.subr.bf16.mxu1 %v2896_v62  ;;  %v2916_v31 = vld [vmem:[#allocation3 + $0x348] sm:$0xff]  ;;  %v2915_v16 = vld [vmem:[#allocation3 + $0x340] sm:$0xff]  ;;  %v3394_v43 = vld [vmem:[#allocation3 + $0x1218] sm:$0xff] }
 0xb00   :  { %3477 = vmatprep.subr.bf16.mxu0 %v3416_v3  ;;  %v3444_v22 = vld [vmem:[#allocation3 + $0x13a8] sm:$0xff]  ;;  %v3443_v8 = vld [vmem:[#allocation3 + $0x13a0] sm:$0xff]  ;;  %v8019_v3 = vpack.c.bf16 %v7989_v63, %v7985_v34 }
 0xb01   :  { %v2920_v10 = vld [vmem:[#allocation3 + $0x368] sm:$0xff]  ;;  %v2919_v56 = vld [vmem:[#allocation3 + $0x360] sm:$0xff] }
 0xb02   :  { %3860 = vmatpush1.bf16.msra.mxu1 %v2895_v24  ;;  %v3448_v37 = vld [vmem:[#allocation3 + $0x13c8] sm:$0xff]  ;;  %v3447_v26 = vld [vmem:[#allocation3 + $0x13c0] sm:$0xff]  ;;  %v8025_v24 = vpack.c.bf16 %v7987_v48, %v7983_v18 }
 0xb03   :  { %3478 = vmatpush1.bf16.msra.mxu0 %v3415_v23  ;;  %3861 = vmatprep.subr.bf16.mxu1 %v2900_v40  ;;  %v2924_v36 = vld [vmem:[#allocation3 + $0x388] sm:$0xff]  ;;  %v2923_v19 = vld [vmem:[#allocation3 + $0x380] sm:$0xff]  ;;  %v3393_v23 = vld [vmem:[#allocation3 + $0x1210] sm:$0xff] }
 0xb04   :  { %3479 = vmatprep.subr.bf16.mxu0 %v3420_v49  ;;  %v3452_v29 = vld [vmem:[#allocation3 + $0x13e8] sm:$0xff]  ;;  %v3451_v51 = vld [vmem:[#allocation3 + $0x13e0] sm:$0xff] }
 0xb05   :  { %v2928_v28 = vld [vmem:[#allocation3 + $0x3a8] sm:$0xff]  ;;  %v2927_v5 = vld [vmem:[#allocation3 + $0x3a0] sm:$0xff] }
 0xb06   :  { %3862 = vmatpush1.bf16.msra.mxu1 %v2899_v45  ;;  %v2932_v49 = vld [vmem:[#allocation3 + $0x3c8] sm:$0xff]  ;;  %v2931_v30 = vld [vmem:[#allocation3 + $0x3c0] sm:$0xff]  ;;  %v3406_v45 = vld [vmem:[#allocation3 + $0x1278] sm:$0xff] }
 0xb07   :  { %3480 = vmatpush1.bf16.msra.mxu0 %v3419_v11  ;;  %3863 = vmatprep.subr.bf16.mxu1 %v2904_v0  ;;  %v3397_v11 = vld [vmem:[#allocation3 + $0x1230] sm:$0xff]  ;;  %v2936_v62 = vld [vmem:[#allocation3 + $0x3e8] sm:$0xff]  ;;  %v2935_v40 = vld [vmem:[#allocation3 + $0x3e0] sm:$0xff] }
 0xb08   :  { %3481 = vmatprep.subr.bf16.mxu0 %v3424_v59  ;;  %v3402_v59 = vld [vmem:[#allocation3 + $0x1258] sm:$0xff]  ;;  %v2939_v0 = vld [vmem:[#allocation3 + $0x400] sm:$0xff] }
 0xb0a   :  { %3864 = vmatpush1.bf16.msra.mxu1 %v2903_v54  ;;  %v2944_v54 = vld [vmem:[#allocation3 + $0x428] sm:$0xff] }
 0xb0b   :  { %3482 = vmatpush1.bf16.msra.mxu0 %v3423_v61  ;;  %3865 = vmatprep.subr.bf16.mxu1 %v2908_v50  ;;  %v8029_v61 = vpack.c.bf16 %v7997_v47, %v7993_v55  ;;  %v8036_v50 = vpack.c.bf16 %v7995_v27, %v7991_v12 }
 0xb0c   :  { %3483 = vmatprep.subr.bf16.mxu0 %v3428_v33  ;;  %v3401_v33 = vld [vmem:[#allocation3 + $0x1250] sm:$0xff] }
 0xb0e   :  { %3866 = vmatpush1.bf16.msra.mxu1 %v2907_v2  ;;  %v2943_v2 = vld [vmem:[#allocation3 + $0x420] sm:$0xff] }
 0xb0f   :  { %3484 = vmatpush1.bf16.msra.mxu0 %v3427_v13  ;;  %3867 = vmatprep.subr.bf16.mxu1 %v2912_v60  ;;  %v2940_v13 = vld [vmem:[#allocation3 + $0x408] sm:$0xff]  ;;  %v3414_v60 = vld [vmem:[#allocation3 + $0x12b8] sm:$0xff] }
 0xb10   :  { %3485 = vmatprep.subr.bf16.mxu0 %v3432_v15  ;;  %v3405_v15 = vld [vmem:[#allocation3 + $0x1270] sm:$0xff] }
 0xb12   :  { %3868 = vmatpush1.bf16.msra.mxu1 %v2911_v44  ;;  %v2947_v44 = vld [vmem:[#allocation3 + $0x440] sm:$0xff] }
 0xb13   :  { %3486 = vmatpush1.bf16.msra.mxu0 %v3431_v53  ;;  %3869 = vmatprep.subr.bf16.mxu1 %v2916_v31  ;;  %v3410_v53 = vld [vmem:[#allocation3 + $0x1298] sm:$0xff]  ;;  %v2952_v31 = vld [vmem:[#allocation3 + $0x468] sm:$0xff] }
 0xb14   :  { %3487 = vmatprep.subr.bf16.mxu0 %v3436_v17  ;;  %v8041_v17 = vpack.c.bf16 %v8005_v57, %v8001_v58 }
 0xb16   :  { %3870 = vmatpush1.bf16.msra.mxu1 %v2915_v16  ;;  %v8048_v16 = vpack.c.bf16 %v8003_v52, %v7999_v41 }
 0xb17   :  { %3488 = vmatpush1.bf16.msra.mxu0 %v3435_v42  ;;  %3871 = vmatprep.subr.bf16.mxu1 %v2920_v10  ;;  %v3409_v42 = vld [vmem:[#allocation3 + $0x1290] sm:$0xff]  ;;  %v3721_v10 = vrot.slane %v7977_v21, 1 }
 0xb18   :  { %3489 = vmatprep.subr.bf16.mxu0 %v3440_v38  ;;  %v2948_v38 = vld [vmem:[#allocation3 + $0x448] sm:$0xff] }
 0xb1a   :  { %3872 = vmatpush1.bf16.msra.mxu1 %v2919_v56  ;;  %v3417_v56 = vld [vmem:[#allocation3 + $0x12d0] sm:$0xff] }
 0xb1b   :  { %3490 = vmatpush1.bf16.msra.mxu0 %v3439_v25  ;;  %3873 = vmatprep.subr.bf16.mxu1 %v2924_v36  ;;  %v3413_v25 = vld [vmem:[#allocation3 + $0x12b0] sm:$0xff]  ;;  %v2956_v36 = vld [vmem:[#allocation3 + $0x488] sm:$0xff] }
 0xb1c   :  { %3491 = vmatprep.subr.bf16.mxu0 %v3444_v22  ;;  %v3418_v22 = vld [vmem:[#allocation3 + $0x12d8] sm:$0xff] }
 0xb1e   :  { %3874 = vmatpush1.bf16.msra.mxu1 %v2923_v19 }
 0xb1f   :  { %3492 = vmatpush1.bf16.msra.mxu0 %v3443_v8  ;;  %3875 = vmatprep.subr.bf16.mxu1 %v2928_v28  ;;  %v2951_v8 = vld [vmem:[#allocation3 + $0x460] sm:$0xff]  ;;  %v2960_v28 = vld [vmem:[#allocation3 + $0x4a8] sm:$0xff] }
 0xb20   :  { %3493 = vmatprep.subr.bf16.mxu0 %v3448_v37  ;;  %v3729_v37 = vrot.slane %v7981_v32, 1 }
 0xb22   :  { %3876 = vmatpush1.bf16.msra.mxu1 %v2927_v5  ;;  %v3745_v19 = vsel %vm611_vm14, %v3729_v37, %v3721_v10 }
 0xb23   :  { %3494 = vmatpush1.bf16.msra.mxu0 %v3447_v26  ;;  %3877 = vmatprep.subr.bf16.mxu1 %v2932_v49  ;;  %v3422_v26 = vld [vmem:[#allocation3 + $0x12f8] sm:$0xff]  ;;  %v3755_v5 = vmul.f32 %v7057_v6, %v3745_v19  ;;  %v3425_v49 = vld [vmem:[#allocation3 + $0x1310] sm:$0xff]  ;;  %v2987_v19 = vld [vmem:[#allocation3 + $0x580] sm:$0xff] }
 0xb24   :  { %3495 = vmatprep.subr.bf16.mxu0 %v3452_v29  ;;  %v2955_v29 = vld [vmem:[#allocation3 + $0x480] sm:$0xff] }
 0xb26   :  { %3878 = vmatpush1.bf16.msra.mxu1 %v2931_v30  ;;  %v2964_v30 = vld [vmem:[#allocation3 + $0x4c8] sm:$0xff] }
 0xb27   :  { %3496 = vmatpush1.bf16.msra.mxu0 %v3451_v51  ;;  %3879 = vmatprep.subr.bf16.mxu1 %v2936_v62  ;;  %v3421_v51 = vld [vmem:[#allocation3 + $0x12f0] sm:$0xff] }
 0xb28   :  { %3538 = vmatprep.subr.bf16.mxu0 %v3394_v43  ;;  %v3426_v43 = vld [vmem:[#allocation3 + $0x1318] sm:$0xff] }
 0xb2a   :  { %3498 = vmatmul.mubr.bf16.vlgmr.msra.gmra.mrb[100].mxu0 %v8015_v39  ;;  %3880 = vmatpush1.bf16.msra.mxu1 %v2935_v40  ;;  %v3429_v40 = vld [vmem:[#allocation3 + $0x1330] sm:$0xff] }
 0xb2b   :  { %3539 = vmatpush1.bf16.msra.mxu0 %v3393_v23  ;;  %3507 = vmatprep.mubr.bf16.mxu0 %v8019_v3  ;;  %v2959_v23 = vld [vmem:[#allocation3 + $0x4a0] sm:$0xff] }
 0xb2c   :  { %3540 = vmatprep.subr.bf16.mxu0 %v3398_v46  ;;  %3922 = vmatprep.subr.bf16.mxu1 %v2940_v13  ;;  %v3737_v46 = vsel %vm611_vm14, %v3721_v10, %v3729_v37  ;;  %v2967_v13 = vld [vmem:[#allocation3 + $0x4e0] sm:$0xff]  ;;  %v2984_v10 = vld [vmem:[#allocation3 + $0x568] sm:$0xff]  ;;  %v3450_v37 = vld [vmem:[#allocation3 + $0x13d8] sm:$0xff] }
 0xb2d   :  { %3882 = vmatmul.mubr.bf16.vlgmr.msra.gmra.mrb[8].mxu1 %v8015_v39  ;;  %v8062_v62 = vpack.c.bf16 %v3755_v5, %v3737_v46  ;;  %v3720_v5 = vrot.slane %v7975_v9, 1  ;;  %v2991_v46 = vld [vmem:[#allocation3 + $0x5a0] sm:$0xff] }
 0xb2e   :  { %3923 = vmatpush1.bf16.msra.mxu1 %v2939_v0  ;;  %3891 = vmatprep.mubr.bf16.mxu1 %v8019_v3  ;;  %v3433_v0 = vld [vmem:[#allocation3 + $0x1350] sm:$0xff] }
 0xb2f   :  { %3541 = vmatpush1.bf16.msra.mxu0 %v3397_v11  ;;  %3924 = vmatprep.subr.bf16.mxu1 %v2944_v54  ;;  %v3430_v11 = vld [vmem:[#allocation3 + $0x1338] sm:$0xff] }
 0xb30   :  { %3542 = vmatprep.subr.bf16.mxu0 %v3402_v59  ;;  %v2963_v59 = vld [vmem:[#allocation3 + $0x4c0] sm:$0xff]  ;;  %v3438_v54 = vld [vmem:[#allocation3 + $0x1378] sm:$0xff] }
 0xb32   :  { %3508 = vmatmul.mubr.bf16.gmra.mrb[104].mxu0 %v8025_v24  ;;  %3925 = vmatpush1.bf16.msra.mxu1 %v2943_v2  ;;  %v3437_v2 = vld [vmem:[#allocation3 + $0x1370] sm:$0xff] }
 0xb33   :  { %3543 = vmatpush1.bf16.msra.mxu0 %v3401_v33  ;;  %3517 = vmatprep.mubr.bf16.mxu0 %v8029_v61  ;;  %v2968_v33 = vld [vmem:[#allocation3 + $0x4e8] sm:$0xff] }
 0xb34   :  { %3544 = vmatprep.subr.bf16.mxu0 %v3406_v45  ;;  %3926 = vmatprep.subr.bf16.mxu1 %v2948_v38  ;;  %v3434_v45 = vld [vmem:[#allocation3 + $0x1358] sm:$0xff]  ;;  %v2975_v38 = vld [vmem:[#allocation3 + $0x520] sm:$0xff] }
 0xb35   :  { %3892 = vmatmul.mubr.bf16.gmra.mrb[12].mxu1 %v8025_v24 }
 0xb36   :  { %3927 = vmatpush1.bf16.msra.mxu1 %v2947_v44  ;;  %3901 = vmatprep.mubr.bf16.mxu1 %v8029_v61  ;;  %v3441_v44 = vld [vmem:[#allocation3 + $0x1390] sm:$0xff] }
 0xb37   :  { %3545 = vmatpush1.bf16.msra.mxu0 %v3405_v15  ;;  %3928 = vmatprep.subr.bf16.mxu1 %v2952_v31  ;;  %v2972_v15 = vld [vmem:[#allocation3 + $0x508] sm:$0xff]  ;;  %v3446_v31 = vld [vmem:[#allocation3 + $0x13b8] sm:$0xff] }
 0xb38   :  { %3546 = vmatprep.subr.bf16.mxu0 %v3410_v53  ;;  %v2971_v53 = vld [vmem:[#allocation3 + $0x500] sm:$0xff] }
 0xb3a   :  { %3518 = vmatmul.mubr.bf16.gmra.mrb[108].mxu0 %v8036_v50  ;;  %3929 = vmatpush1.bf16.msra.mxu1 %v2951_v8  ;;  %v3445_v8 = vld [vmem:[#allocation3 + $0x13b0] sm:$0xff] }
 0xb3b   :  { %3547 = vmatpush1.bf16.msra.mxu0 %v3409_v42  ;;  %3527 = vmatprep.mubr.bf16.mxu0 %v8041_v17  ;;  %v2976_v42 = vld [vmem:[#allocation3 + $0x528] sm:$0xff] }
 0xb3c   :  { %3548 = vmatprep.subr.bf16.mxu0 %v3414_v60  ;;  %3930 = vmatprep.subr.bf16.mxu1 %v2956_v36  ;;  %v3442_v60 = vld [vmem:[#allocation3 + $0x1398] sm:$0xff]  ;;  %v2988_v36 = vld [vmem:[#allocation3 + $0x588] sm:$0xff] }
 0xb3d   :  { %3902 = vmatmul.mubr.bf16.gmra.mrb[16].mxu1 %v8036_v50 }
 0xb3e   :  { %3931 = vmatpush1.bf16.msra.mxu1 %v2955_v29  ;;  %3911 = vmatprep.mubr.bf16.mxu1 %v8041_v17  ;;  %v3454_v29 = vld [vmem:[#allocation3 + $0x13f8] sm:$0xff] }
 0xb3f   :  { %3549 = vmatpush1.bf16.msra.mxu0 %v3413_v25  ;;  %3932 = vmatprep.subr.bf16.mxu1 %v2960_v28  ;;  %v2980_v25 = vld [vmem:[#allocation3 + $0x548] sm:$0xff] }
 0xb40   :  { %3550 = vmatprep.subr.bf16.mxu0 %v3418_v22  ;;  %v2979_v22 = vld [vmem:[#allocation3 + $0x540] sm:$0xff]  ;;  %v2992_v28 = vld [vmem:[#allocation3 + $0x5a8] sm:$0xff] }
 0xb42   :  { %3528 = vmatmul.mubr.bf16.gmra.mrb[112].mxu0 %v8048_v16  ;;  %3933 = vmatpush1.bf16.msra.mxu1 %v2959_v23  ;;  %v3728_v23 = vrot.slane %v7979_v7, 1 }
 0xb43   :  { %3551 = vmatpush1.bf16.msra.mxu0 %v3417_v56  ;;  %3570 = vmatprep.mubr.bf16.mxu0 %v8009_v35  ;;  %v2983_v56 = vld [vmem:[#allocation3 + $0x560] sm:$0xff] }
 0xb44   :  { %3552 = vmatprep.subr.bf16.mxu0 %v3422_v26  ;;  %3934 = vmatprep.subr.bf16.mxu1 %v2964_v30  ;;  %v3449_v26 = vld [vmem:[#allocation3 + $0x13d0] sm:$0xff]  ;;  %v3731_v30 = vrot.slane %v7989_v63, 1 }
 0xb45   :  { %3912 = vmatmul.mubr.bf16.gmra.mrb[20].mxu1 %v8048_v16 }
 0xb46   :  { %3935 = vmatpush1.bf16.msra.mxu1 %v2963_v59  ;;  %3954 = vmatprep.mubr.bf16.mxu1 %v8062_v62  ;;  %v2816_v59 = vld [vmem:[#allocation3 + $0x28] sm:$0xff] }
 0xb47   :  { %3553 = vmatpush1.bf16.msra.mxu0 %v3421_v51  ;;  %3936 = vmatprep.subr.bf16.mxu1 %v2968_v33  ;;  %v3453_v51 = vld [vmem:[#allocation3 + $0x13f0] sm:$0xff]  ;;  %v3744_v33 = vsel %vm611_vm14, %v3728_v23, %v3720_v5 }
 0xb48   :  { %3554 = vmatprep.subr.bf16.mxu0 %v3426_v43  ;;  %v2812_v43 = vld [vmem:[#allocation3 + $0x8] sm:$0xff] }
 0xb4a   :  { %3937 = vmatpush1.bf16.msra.mxu1 %v2967_v13 }
 0xb4b   :  { %3555 = vmatpush1.bf16.msra.mxu0 %v3425_v49  ;;  %3938 = vmatprep.subr.bf16.mxu1 %v2972_v15  ;;  %v3723_v49 = vrot.slane %v7985_v34, 1  ;;  %v3000_v15 = vld [vmem:[#allocation3 + $0x5e8] sm:$0xff] }
 0xb4c   :  { %3556 = vmatprep.subr.bf16.mxu0 %v3430_v11  ;;  %v2811_v11 = vld [vmem:[#allocation3] sm:$0xff] }
 0xb4d   :  { %v3747_v13 = vsel %vm611_vm14, %v3731_v30, %v3723_v49 }
 0xb4e   :  { %3939 = vmatpush1.bf16.msra.mxu1 %v2971_v53  ;;  %v3754_v53 = vmul.f32 %v7057_v6, %v3744_v33 }
 0xb4f   :  { %3557 = vmatpush1.bf16.msra.mxu0 %v3429_v40  ;;  %3940 = vmatprep.subr.bf16.mxu1 %v2976_v42  ;;  %v2996_v40 = vld [vmem:[#allocation3 + $0x5c8] sm:$0xff]  ;;  %v3759_v42 = vmul.f32 %v7057_v6, %v3747_v13 }
 0xb50   :  { %3558 = vmatprep.subr.bf16.mxu0 %v3434_v45  ;;  %v2995_v45 = vld [vmem:[#allocation3 + $0x5c0] sm:$0xff] }
 0xb52   :  { %3941 = vmatpush1.bf16.msra.mxu1 %v2975_v38  ;;  %v3730_v38 = vrot.slane %v7987_v48, 1 }
 0xb53   :  { %3559 = vmatpush1.bf16.msra.mxu0 %v3433_v0  ;;  %3942 = vmatprep.subr.bf16.mxu1 %v2980_v25  ;;  %v2815_v0 = vld [vmem:[#allocation3 + $0x20] sm:$0xff]  ;;  %v3739_v25 = vsel %vm611_vm14, %v3723_v49, %v3731_v30  ;;  %v3732_v49 = vrot.slane %v7995_v27, 1  ;;  %v3735_v30 = vrot.slane %v8005_v57, 1 }
 0xb54   :  { %3560 = vmatprep.subr.bf16.mxu0 %v3438_v54  ;;  %v2820_v54 = vld [vmem:[#allocation3 + $0x48] sm:$0xff] }
 0xb56   :  { %3943 = vmatpush1.bf16.msra.mxu1 %v2979_v22  ;;  %v3733_v22 = vrot.slane %v7997_v47, 1 }
 0xb57   :  { %3561 = vmatpush1.bf16.msra.mxu0 %v3437_v2  ;;  %3944 = vmatprep.subr.bf16.mxu1 %v2984_v10  ;;  %v3736_v2 = vsel %vm611_vm14, %v3720_v5, %v3728_v23  ;;  %v2824_v10 = vld [vmem:[#allocation3 + $0x68] sm:$0xff] }
 0xb58   :  { %3562 = vmatprep.subr.bf16.mxu0 %v3442_v60  ;;  %v3722_v60 = vrot.slane %v7983_v18, 1 }
 0xb5a   :  { %3945 = vmatpush1.bf16.msra.mxu1 %v2983_v56  ;;  %v8089_v56 = vpack.c.bf16 %v3759_v42, %v3739_v25  ;;  %v3738_v5 = vsel %vm611_vm14, %v3722_v60, %v3730_v38  ;;  %v3734_v25 = vrot.slane %v8003_v52, 1 }
 0xb5b   :  { %3563 = vmatpush1.bf16.msra.mxu0 %v3441_v44  ;;  %3946 = vmatprep.subr.bf16.mxu1 %v2988_v36  ;;  %v2999_v44 = vld [vmem:[#allocation3 + $0x5e0] sm:$0xff] }
 0xb5c   :  { %3564 = vmatprep.subr.bf16.mxu0 %v3446_v31  ;;  %v3725_v31 = vrot.slane %v7993_v55, 1 }
 0xb5e   :  { %3947 = vmatpush1.bf16.msra.mxu1 %v2987_v19  ;;  %v3749_v36 = vsel %vm611_vm14, %v3733_v22, %v3725_v31  ;;  %v3665_v19 = vrot.slane %v7977_v21, 7  ;;  %v3741_v21 = vsel %vm611_vm14, %v3725_v31, %v3733_v22 }
 0xb5f   :  { %3565 = vmatpush1.bf16.msra.mxu0 %v3445_v8  ;;  %3948 = vmatprep.subr.bf16.mxu1 %v2992_v28  ;;  %v2819_v8 = vld [vmem:[#allocation3 + $0x40] sm:$0xff]  ;;  %v2828_v28 = vld [vmem:[#allocation3 + $0x88] sm:$0xff]  ;;  %v3763_v23 = vmul.f32 %v7057_v6, %v3749_v36 }
 0xb60   :  { %3566 = vmatprep.subr.bf16.mxu0 %v3450_v37  ;;  %v8086_v37 = vpack.c.bf16 %v3754_v53, %v3736_v2  ;;  %v2836_v2 = vld [vmem:[#allocation3 + $0xc8] sm:$0xff] }
 0xb62   :  { %3949 = vmatpush1.bf16.msra.mxu1 %v2991_v46  ;;  %v3724_v46 = vrot.slane %v7991_v12, 1 }
 0xb63   :  { %3567 = vmatpush1.bf16.msra.mxu0 %v3449_v26  ;;  %3950 = vmatprep.subr.bf16.mxu1 %v2996_v40  ;;  %v3746_v26 = vsel %vm611_vm14, %v3730_v38, %v3722_v60  ;;  %v2832_v40 = vld [vmem:[#allocation3 + $0xa8] sm:$0xff] }
 0xb64   :  { %3568 = vmatprep.subr.bf16.mxu0 %v3454_v29  ;;  %v2823_v29 = vld [vmem:[#allocation3 + $0x60] sm:$0xff]  ;;  %v3748_v13 = vsel %vm611_vm14, %v3732_v49, %v3724_v46  ;;  %v3740_v60 = vsel %vm611_vm14, %v3724_v46, %v3732_v49 }
 0xb65   :  { %v3762_v42 = vmul.f32 %v7057_v6, %v3748_v13  ;;  %v2847_v49 = vld [vmem:[#allocation3 + $0x120] sm:$0xff]  ;;  %v2864_v13 = vld [vmem:[#allocation3 + $0x1a8] sm:$0xff] }
 0xb66   :  { %3951 = vmatpush1.bf16.msra.mxu1 %v2995_v45  ;;  %v8115_v45 = vpack.c.bf16 %v3763_v23, %v3741_v21  ;;  %v2848_v23 = vld [vmem:[#allocation3 + $0x128] sm:$0xff] }
 0xb67   :  { %3569 = vmatpush1.bf16.msra.mxu0 %v3453_v51  ;;  %3952 = vmatprep.subr.bf16.mxu1 %v3000_v15  ;;  %v3673_v51 = vrot.slane %v7981_v32, 7  ;;  %v3727_v32 = vrot.slane %v8001_v58, 1  ;;  %v2852_v21 = vld [vmem:[#allocation3 + $0x148] sm:$0xff] }
 0xb68   :  { %3776 = vmatprep.subr.bf16.mxu0 %v2812_v43  ;;  %v3758_v43 = vmul.f32 %v7057_v6, %v3746_v26  ;;  %v8137_v26 = vpack.c.bf16 %v3762_v42, %v3740_v60  ;;  %v2868_v42 = vld [vmem:[#allocation3 + $0x1c8] sm:$0xff] }
 0xb69   :  { %v3751_v15 = vsel %vm611_vm14, %v3735_v30, %v3727_v32  ;;  %v3681_v53 = vsel %vm578_vm0, %v3665_v19, %v3673_v51  ;;  %v3743_v22 = vsel %vm611_vm14, %v3727_v32, %v3735_v30  ;;  %v2851_v32 = vld [vmem:[#allocation3 + $0x140] sm:$0xff]  ;;  %v2856_v30 = vld [vmem:[#allocation3 + $0x168] sm:$0xff] }
 0xb6a   :  { %3571 = vmatmul.mubr.bf16.vlgmr.msra.gmra.mrb[116].mxu0 %v8015_v39  ;;  %3953 = vmatpush1.bf16.msra.mxu1 %v2999_v44  ;;  %v8112_v33 = vpack.c.bf16 %v3758_v43, %v3738_v5  ;;  %v3767_v38 = vmul.f32 %v7057_v6, %v3751_v15  ;;  %v3726_v44 = vrot.slane %v7999_v41, 1  ;;  %v2843_v5 = vld [vmem:[#allocation3 + $0x100] sm:$0xff]  ;;  %v3672_v15 = vrot.slane %v7979_v7, 7 }
 0xb6b   :  { %3777 = vmatpush1.bf16.msra.mxu0 %v2811_v11  ;;  %3580 = vmatprep.mubr.bf16.mxu0 %v8019_v3  ;;  %v2827_v11 = vld [vmem:[#allocation3 + $0x80] sm:$0xff] }
 0xb6c   :  { %3778 = vmatprep.subr.bf16.mxu0 %v2816_v59  ;;  %v3689_v59 = vsel %vm578_vm0, %v3673_v51, %v3665_v19  ;;  %v8140_v36 = vpack.c.bf16 %v3767_v38, %v3743_v22  ;;  %v2839_v19 = vld [vmem:[#allocation3 + $0xe0] sm:$0xff]  ;;  %v2844_v51 = vld [vmem:[#allocation3 + $0x108] sm:$0xff]  ;;  %v3742_v43 = vsel %vm611_vm14, %v3726_v44, %v3734_v25  ;;  %v3674_v22 = vrot.slane %v7987_v48, 7  ;;  %v2813_v48 = vld [vmem:[#allocation3 + $0x10] sm:$0xff] }
 0xb6d   :  { %3955 = vmatmul.mubr.bf16.vlgmr.msra.gmra.mrb[8].mxu1 %v8086_v37  ;;  %v2867_v38 = vld [vmem:[#allocation3 + $0x1c0] sm:$0xff] }
 0xb6e   :  { %3964 = vmatprep.mubr.bf16.mxu1 %v8089_v56 }
 0xb6f   :  { %3779 = vmatpush1.bf16.msra.mxu0 %v2815_v0  ;;  %v3697_v0 = vmul.f32 %v7055_v4, %v3689_v59  ;;  %v2860_v59 = vld [vmem:[#allocation3 + $0x188] sm:$0xff] }
 0xb70   :  { %3780 = vmatprep.subr.bf16.mxu0 %v2820_v54  ;;  %v2831_v54 = vld [vmem:[#allocation3 + $0xa0] sm:$0xff] }
 0xb71   :  { %v8133_v31 = vpack.c.bf16 %v3681_v53, %v3697_v0  ;;  %v3664_v0 = vrot.slane %v7975_v9, 7  ;;  %v3667_v53 = vrot.slane %v7985_v34, 7 }
 0xb72   :  { %3581 = vmatmul.mubr.bf16.gmra.mrb[120].mxu0 %v8025_v24 }
 0xb73   :  { %3781 = vmatpush1.bf16.msra.mxu0 %v2819_v8  ;;  %3590 = vmatprep.mubr.bf16.mxu0 %v8029_v61  ;;  %v2835_v8 = vld [vmem:[#allocation3 + $0xc0] sm:$0xff]  ;;  %v3688_v60 = vsel %vm578_vm0, %v3672_v15, %v3664_v0  ;;  %v3680_v7 = vsel %vm578_vm0, %v3664_v0, %v3672_v15 }
 0xb74   :  { %3782 = vmatprep.subr.bf16.mxu0 %v2824_v10  ;;  %v2840_v10 = vld [vmem:[#allocation3 + $0xe8] sm:$0xff]  ;;  %v3696_v9 = vmul.f32 %v7055_v4, %v3688_v60  ;;  %v3678_v60 = vrot.slane %v8003_v52, 7 }
 0xb75   :  { %3965 = vmatmul.mubr.bf16.gmra.mrb[12].mxu1 %v8112_v33 }
 0xb76   :  { %3974 = vmatprep.mubr.bf16.mxu1 %v8115_v45 }
 0xb77   :  { %3783 = vmatpush1.bf16.msra.mxu0 %v2823_v29  ;;  %v3750_v29 = vsel %vm611_vm14, %v3734_v25, %v3726_v44  ;;  %v2872_v25 = vld [vmem:[#allocation3 + $0x1e8] sm:$0xff] }
 0xb78   :  { %3784 = vmatprep.subr.bf16.mxu0 %v2828_v28  ;;  %v3766_v28 = vmul.f32 %v7057_v6, %v3750_v29  ;;  %v3669_v29 = vrot.slane %v7993_v55, 7 }
 0xb7a   :  { %3591 = vmatmul.mubr.bf16.gmra.mrb[124].mxu0 %v8036_v50  ;;  %v8150_v46 = vpack.c.bf16 %v3766_v28, %v3742_v43  ;;  %v8171_v28 = vpack.c.bf16 %v3680_v7, %v3696_v9 }
 0xb7b   :  { %3785 = vmatpush1.bf16.msra.mxu0 %v2827_v11  ;;  %3600 = vmatprep.mubr.bf16.mxu0 %v8041_v17  ;;  %v2855_v11 = vld [vmem:[#allocation3 + $0x160] sm:$0xff] }
 0xb7c   :  { %3786 = vmatprep.subr.bf16.mxu0 %v2832_v40  ;;  %v2859_v40 = vld [vmem:[#allocation3 + $0x180] sm:$0xff] }
 0xb7d   :  { %3975 = vmatmul.mubr.bf16.gmra.mrb[16].mxu1 %v8137_v26 }
 0xb7e   :  { %3984 = vmatprep.mubr.bf16.mxu1 %v8140_v36 }
 0xb7f   :  { %3787 = vmatpush1.bf16.msra.mxu0 %v2831_v54  ;;  %v2863_v54 = vld [vmem:[#allocation3 + $0x1a0] sm:$0xff] }
 0xb80   :  { %3788 = vmatprep.subr.bf16.mxu0 %v2836_v2  ;;  %v3675_v2 = vrot.slane %v7989_v63, 7  ;;  %v3666_v63 = vrot.slane %v7983_v18, 7 }
 0xb82   :  { %3601 = vmatmul.mubr.bf16.gmra.mrb[128].mxu0 %v8048_v16  ;;  %v3691_v44 = vsel %vm578_vm0, %v3675_v2, %v3667_v53  ;;  %v3690_v18 = vsel %vm578_vm0, %v3674_v22, %v3666_v63 }
 0xb83   :  { %3789 = vmatpush1.bf16.msra.mxu0 %v2835_v8  ;;  %3808 = vmatprep.mubr.bf16.mxu0 %v8133_v31  ;;  %v3701_v34 = vmul.f32 %v7055_v4, %v3691_v44  ;;  %v2871_v8 = vld [vmem:[#allocation3 + $0x1e0] sm:$0xff]  ;;  %v3700_v55 = vmul.f32 %v7055_v4, %v3690_v18  ;;  %v2841_v18 = vld [vmem:[#allocation3 + $0xf0] sm:$0xff] }
 0xb84   :  { %3790 = vmatprep.subr.bf16.mxu0 %v2840_v10  ;;  %v3683_v10 = vsel %vm578_vm0, %v3667_v53, %v3675_v2  ;;  %v2826_v53 = vld [vmem:[#allocation3 + $0x78] sm:$0xff] }
 0xb85   :  { %3985 = vmatmul.mubr.bf16.gmra.mrb[20].mxu1 %v8150_v46  ;;  %v8173_v43 = vpack.c.bf16 %v3683_v10, %v3701_v34  ;;  %v2838_v10 = vld [vmem:[#allocation3 + $0xd8] sm:$0xff] }
 0xb87   :  { %3791 = vmatpush1.bf16.msra.mxu0 %v2839_v19  ;;  %v3677_v19 = vrot.slane %v7997_v47, 7  ;;  %v3682_v47 = vsel %vm578_vm0, %v3666_v63, %v3674_v22  ;;  %v2829_v63 = vld [vmem:[#allocation3 + $0x90] sm:$0xff]  ;;  %v2834_v22 = vld [vmem:[#allocation3 + $0xb8] sm:$0xff] }
 0xb88   :  { %3792 = vmatprep.subr.bf16.mxu0 %v2844_v51  ;;  %v2814_v51 = vld [vmem:[#allocation3 + $0x18] sm:$0xff]  ;;  %v8191_v0 = vpack.c.bf16 %v3682_v47, %v3700_v55  ;;  %v2849_v55 = vld [vmem:[#allocation3 + $0x130] sm:$0xff] }
 0xb89   :  { %v2854_v47 = vld [vmem:[#allocation3 + $0x158] sm:$0xff] }
 0xb8b   :  { %3793 = vmatpush1.bf16.msra.mxu0 %v2843_v5  ;;  %v3693_v5 = vsel %vm578_vm0, %v3677_v19, %v3669_v29 }
 0xb8c   :  { %3794 = vmatprep.subr.bf16.mxu0 %v2848_v23  ;;  %v2818_v23 = vld [vmem:[#allocation3 + $0x38] sm:$0xff] }
 0xb8f   :  { %3795 = vmatpush1.bf16.msra.mxu0 %v2847_v49  ;;  %v3705_v49 = vmul.f32 %v7055_v4, %v3693_v5  ;;  %v2845_v5 = vld [vmem:[#allocation3 + $0x110] sm:$0xff] }
 0xb90   :  { %3796 = vmatprep.subr.bf16.mxu0 %v2852_v21  ;;  %v3668_v21 = vrot.slane %v7991_v12, 7 }
 0xb93   :  { %3797 = vmatpush1.bf16.msra.mxu0 %v2851_v32  ;;  %v3676_v32 = vrot.slane %v7995_v27, 7  ;;  %v2821_v27 = vld [vmem:[#allocation3 + $0x50] sm:$0xff] }
 0xb94   :  { %3798 = vmatprep.subr.bf16.mxu0 %v2856_v30  ;;  %v2817_v30 = vld [vmem:[#allocation3 + $0x30] sm:$0xff] }
 0xb95   :  { %v3692_v12 = vsel %vm578_vm0, %v3676_v32, %v3668_v21 }
 0xb97   :  { %3799 = vmatpush1.bf16.msra.mxu0 %v2855_v11  ;;  %v3685_v11 = vsel %vm578_vm0, %v3669_v29, %v3677_v19  ;;  %v2837_v19 = vld [vmem:[#allocation3 + $0xd0] sm:$0xff] }
 0xb98   :  { %3800 = vmatprep.subr.bf16.mxu0 %v2860_v59  ;;  %v3671_v59 = vrot.slane %v8001_v58, 7  ;;  %v8193_v15 = vpack.c.bf16 %v3685_v11, %v3705_v49  ;;  %v3704_v58 = vmul.f32 %v7055_v4, %v3692_v12  ;;  %v3004_v49 = vld [vmem:[#allocation3 + $0x608] sm:$0xff]  ;;  %v3007_v11 = vld [vmem:[#allocation3 + $0x620] sm:$0xff] }
 0xb99   :  { %4539 = vmatprep.subr.bf16.mxu1 %v3004_v49  ;;  %v3011_v12 = vld [vmem:[#allocation3 + $0x640] sm:$0xff] }
 0xb9a   :  { %v3039_v49 = vld [vmem:[#allocation3 + $0x720] sm:$0xff] }
 0xb9b   :  { %3801 = vmatpush1.bf16.msra.mxu0 %v2859_v40  ;;  %v3679_v40 = vrot.slane %v8005_v57, 7  ;;  %v3684_v57 = vsel %vm578_vm0, %v3668_v21, %v3676_v32  ;;  %v3003_v21 = vld [vmem:[#allocation3 + $0x600] sm:$0xff]  ;;  %v2853_v32 = vld [vmem:[#allocation3 + $0x150] sm:$0xff] }
 0xb9c   :  { %3802 = vmatprep.subr.bf16.mxu0 %v2864_v13  ;;  %v2822_v13 = vld [vmem:[#allocation3 + $0x58] sm:$0xff]  ;;  %v8209_v9 = vpack.c.bf16 %v3684_v57, %v3704_v58  ;;  %4540 = vmatpush1.bf16.msra.mxu1 %v3003_v21  ;;  %v3015_v58 = vld [vmem:[#allocation3 + $0x660] sm:$0xff]  ;;  %v2865_v57 = vld [vmem:[#allocation3 + $0x1b0] sm:$0xff] }
 0xb9d   :  { %v3687_v44 = vsel %vm578_vm0, %v3671_v59, %v3679_v40  ;;  %v2889_v21 = vld [vmem:[#allocation3 + $0x270] sm:$0xff] }
 0xb9f   :  { %3803 = vmatpush1.bf16.msra.mxu0 %v2863_v54  ;;  %v3695_v54 = vsel %vm578_vm0, %v3679_v40, %v3671_v59  ;;  %v2857_v59 = vld [vmem:[#allocation3 + $0x170] sm:$0xff]  ;;  %v2862_v40 = vld [vmem:[#allocation3 + $0x198] sm:$0xff] }
 0xba0   :  { %3804 = vmatprep.subr.bf16.mxu0 %v2868_v42  ;;  %v3709_v2 = vmul.f32 %v7055_v4, %v3695_v54  ;;  %v3670_v42 = vrot.slane %v7999_v41, 7  ;;  %v2866_v54 = vld [vmem:[#allocation3 + $0x1b8] sm:$0xff] }
 0xba2   :  { %v8211_v7 = vpack.c.bf16 %v3687_v44, %v3709_v2  ;;  %v3694_v34 = vsel %vm578_vm0, %v3678_v60, %v3670_v42  ;;  %v3686_v52 = vsel %vm578_vm0, %v3670_v42, %v3678_v60  ;;  %v2870_v2 = vld [vmem:[#allocation3 + $0x1d8] sm:$0xff]  ;;  %v3020_v42 = vld [vmem:[#allocation3 + $0x688] sm:$0xff]  ;;  %v3019_v60 = vld [vmem:[#allocation3 + $0x680] sm:$0xff] }
 0xba3   :  { %3805 = vmatpush1.bf16.msra.mxu0 %v2867_v38  ;;  %v2825_v38 = vld [vmem:[#allocation3 + $0x70] sm:$0xff]  ;;  %v3708_v41 = vmul.f32 %v7055_v4, %v3694_v34  ;;  %v2874_v44 = vld [vmem:[#allocation3 + $0x1f8] sm:$0xff]  ;;  %v3023_v34 = vld [vmem:[#allocation3 + $0x6a0] sm:$0xff] }
 0xba4   :  { %3806 = vmatprep.subr.bf16.mxu0 %v2872_v25  ;;  %v2830_v25 = vld [vmem:[#allocation3 + $0x98] sm:$0xff] }
 0xba5   :  { %v8220_v29 = vpack.c.bf16 %v3686_v52, %v3708_v41  ;;  %v3028_v41 = vld [vmem:[#allocation3 + $0x6c8] sm:$0xff]  ;;  %v3027_v52 = vld [vmem:[#allocation3 + $0x6c0] sm:$0xff] }
 0xba7   :  { %3807 = vmatpush1.bf16.msra.mxu0 %v2871_v8  ;;  %v2833_v8 = vld [vmem:[#allocation3 + $0xb0] sm:$0xff] }
 0xba8   :  { %3995 = vmatprep.subr.bf16.mxu0 %v2814_v51  ;;  %v2842_v51 = vld [vmem:[#allocation3 + $0xf8] sm:$0xff] }
 0xbaa   :  { %3809 = vmatmul.mubr.bf16.vlgmr.msra.gmra.mrb[132].mxu0 %v8171_v28 }
 0xbab   :  { %3996 = vmatpush1.bf16.msra.mxu0 %v2813_v48  ;;  %3818 = vmatprep.mubr.bf16.mxu0 %v8173_v43  ;;  %v2846_v48 = vld [vmem:[#allocation3 + $0x118] sm:$0xff] }
 0xbac   :  { %3997 = vmatprep.subr.bf16.mxu0 %v2818_v23  ;;  %v2850_v23 = vld [vmem:[#allocation3 + $0x138] sm:$0xff] }
 0xbaf   :  { %3998 = vmatpush1.bf16.msra.mxu0 %v2817_v30  ;;  %v2858_v30 = vld [vmem:[#allocation3 + $0x178] sm:$0xff] }
 0xbb0   :  { %3999 = vmatprep.subr.bf16.mxu0 %v2822_v13  ;;  %v3012_v13 = vld [vmem:[#allocation3 + $0x648] sm:$0xff] }
 0xbb2   :  { %3819 = vmatmul.mubr.bf16.gmra.mrb[136].mxu0 %v8191_v0 }
 0xbb3   :  { %4000 = vmatpush1.bf16.msra.mxu0 %v2821_v27  ;;  %3828 = vmatprep.mubr.bf16.mxu0 %v8193_v15  ;;  %v2861_v27 = vld [vmem:[#allocation3 + $0x190] sm:$0xff] }
 0xbb4   :  { %4001 = vmatprep.subr.bf16.mxu0 %v2826_v53  ;;  %v3016_v53 = vld [vmem:[#allocation3 + $0x668] sm:$0xff] }
 0xbb7   :  { %4002 = vmatpush1.bf16.msra.mxu0 %v2825_v38  ;;  %v2869_v38 = vld [vmem:[#allocation3 + $0x1d0] sm:$0xff] }
 0xbb8   :  { %4003 = vmatprep.subr.bf16.mxu0 %v2830_v25  ;;  %v3024_v25 = vld [vmem:[#allocation3 + $0x6a8] sm:$0xff] }
 0xbba   :  { %3829 = vmatmul.mubr.bf16.gmra.mrb[140].mxu0 %v8209_v9 }
 0xbbb   :  { %4004 = vmatpush1.bf16.msra.mxu0 %v2829_v63  ;;  %3838 = vmatprep.mubr.bf16.mxu0 %v8211_v7  ;;  %v2873_v63 = vld [vmem:[#allocation3 + $0x1f0] sm:$0xff] }
 0xbbc   :  { %4005 = vmatprep.subr.bf16.mxu0 %v2834_v22  ;;  %v2878_v22 = vld [vmem:[#allocation3 + $0x218] sm:$0xff] }
 0xbbf   :  { %4006 = vmatpush1.bf16.msra.mxu0 %v2833_v8  ;;  %v2877_v8 = vld [vmem:[#allocation3 + $0x210] sm:$0xff] }
 0xbc0   :  { %4007 = vmatprep.subr.bf16.mxu0 %v2838_v10  ;;  %v2882_v10 = vld [vmem:[#allocation3 + $0x238] sm:$0xff] }
 0xbc2   :  { %3839 = vmatmul.mubr.bf16.gmra.mrb[144].mxu0 %v8220_v29 }
 0xbc3   :  { %4008 = vmatpush1.bf16.msra.mxu0 %v2837_v19  ;;  %4027 = vmatprep.mubr.bf16.mxu0 %v8133_v31  ;;  %v3008_v31 = vld [vmem:[#allocation3 + $0x628] sm:$0xff] }
 0xbc4   :  { %4009 = vmatprep.subr.bf16.mxu0 %v2842_v51  ;;  %4541 = vmatprep.subr.bf16.mxu1 %v3008_v31  ;;  %v3032_v19 = vld [vmem:[#allocation3 + $0x6e8] sm:$0xff]  ;;  %v3031_v51 = vld [vmem:[#allocation3 + $0x6e0] sm:$0xff]  ;;  %v2893_v31 = vld [vmem:[#allocation3 + $0x290] sm:$0xff] }
 0xbc5   :  { %4542 = vmatpush1.bf16.msra.mxu1 %v3007_v11  ;;  %v2898_v11 = vld [vmem:[#allocation3 + $0x2b8] sm:$0xff] }
 0xbc6   :  { %4543 = vmatprep.subr.bf16.mxu1 %v3012_v13  ;;  %v2902_v13 = vld [vmem:[#allocation3 + $0x2d8] sm:$0xff] }
 0xbc7   :  { %4010 = vmatpush1.bf16.msra.mxu0 %v2841_v18  ;;  %v3036_v18 = vld [vmem:[#allocation3 + $0x708] sm:$0xff] }
 0xbc8   :  { %4011 = vmatprep.subr.bf16.mxu0 %v2846_v48  ;;  %v2881_v48 = vld [vmem:[#allocation3 + $0x230] sm:$0xff] }
 0xbc9   :  { %4544 = vmatpush1.bf16.msra.mxu1 %v3011_v12 }
 0xbca   :  { %4545 = vmatprep.subr.bf16.mxu1 %v3016_v53 }
 0xbcb   :  { %4012 = vmatpush1.bf16.msra.mxu0 %v2845_v5  ;;  %v2886_v5 = vld [vmem:[#allocation3 + $0x258] sm:$0xff] }
 0xbcc   :  { %4013 = vmatprep.subr.bf16.mxu0 %v2850_v23  ;;  %v3035_v23 = vld [vmem:[#allocation3 + $0x700] sm:$0xff] }
 0xbcd   :  { %4546 = vmatpush1.bf16.msra.mxu1 %v3015_v58  ;;  %v2901_v58 = vld [vmem:[#allocation3 + $0x2d0] sm:$0xff] }
 0xbce   :  { %4547 = vmatprep.subr.bf16.mxu1 %v3020_v42  ;;  %v2905_v42 = vld [vmem:[#allocation3 + $0x2f0] sm:$0xff] }
 0xbcf   :  { %4014 = vmatpush1.bf16.msra.mxu0 %v2849_v55  ;;  %v2885_v55 = vld [vmem:[#allocation3 + $0x250] sm:$0xff] }
 0xbd0   :  { %4015 = vmatprep.subr.bf16.mxu0 %v2854_v47  ;;  %v2890_v47 = vld [vmem:[#allocation3 + $0x278] sm:$0xff] }
 0xbd1   :  { %4548 = vmatpush1.bf16.msra.mxu1 %v3019_v60  ;;  %v2910_v60 = vld [vmem:[#allocation3 + $0x318] sm:$0xff] }
 0xbd2   :  { %4549 = vmatprep.subr.bf16.mxu1 %v3024_v25  ;;  %v3060_v25 = vld [vmem:[#allocation3 + $0x7c8] sm:$0xff] }
 0xbd3   :  { %4016 = vmatpush1.bf16.msra.mxu0 %v2853_v32  ;;  %v2894_v32 = vld [vmem:[#allocation3 + $0x298] sm:$0xff] }
 0xbd4   :  { %4017 = vmatprep.subr.bf16.mxu0 %v2858_v30  ;;  %v3043_v30 = vld [vmem:[#allocation3 + $0x740] sm:$0xff] }
 0xbd5   :  { %4550 = vmatpush1.bf16.msra.mxu1 %v3023_v34 }
 0xbd6   :  { %4551 = vmatprep.subr.bf16.mxu1 %v3028_v41  ;;  %v3064_v41 = vld [vmem:[#allocation3 + $0x7e8] sm:$0xff] }
 0xbd7   :  { %4018 = vmatpush1.bf16.msra.mxu0 %v2857_v59  ;;  %v3047_v59 = vld [vmem:[#allocation3 + $0x760] sm:$0xff] }
 0xbd8   :  { %4019 = vmatprep.subr.bf16.mxu0 %v2862_v40 }
 0xbd9   :  { %4552 = vmatpush1.bf16.msra.mxu1 %v3027_v52  ;;  %v3063_v52 = vld [vmem:[#allocation3 + $0x7e0] sm:$0xff] }
 0xbda   :  { %4553 = vmatprep.subr.bf16.mxu1 %v3032_v19 }
 0xbdb   :  { %4020 = vmatpush1.bf16.msra.mxu0 %v2861_v27  ;;  %v3052_v27 = vld [vmem:[#allocation3 + $0x788] sm:$0xff] }
 0xbdc   :  { %4021 = vmatprep.subr.bf16.mxu0 %v2866_v54 }
 0xbdd   :  { %4554 = vmatpush1.bf16.msra.mxu1 %v3031_v51 }
 0xbde   :  { %4555 = vmatprep.subr.bf16.mxu1 %v3036_v18 }
 0xbdf   :  { %4022 = vmatpush1.bf16.msra.mxu0 %v2865_v57  ;;  %v3056_v57 = vld [vmem:[#allocation3 + $0x7a8] sm:$0xff] }
 0xbe0   :  { %4023 = vmatprep.subr.bf16.mxu0 %v2870_v2  ;;  %v3055_v2 = vld [vmem:[#allocation3 + $0x7a0] sm:$0xff] }
 0xbe1   :  { %4556 = vmatpush1.bf16.msra.mxu1 %v3035_v23  ;;  %v2922_v23 = vld [vmem:[#allocation3 + $0x378] sm:$0xff] }
 0xbe3   :  { %4024 = vmatpush1.bf16.msra.mxu0 %v2869_v38 }
 0xbe4   :  { %4025 = vmatprep.subr.bf16.mxu0 %v2874_v44 }
 0xbe7   :  { %4026 = vmatpush1.bf16.msra.mxu0 %v2873_v63  ;;  %v2909_v63 = vld [vmem:[#allocation3 + $0x310] sm:$0xff] }
 0xbe8   :  { %4068 = vmatprep.subr.bf16.mxu0 %v2878_v22 }
 0xbea   :  { %4028 = vmatmul.mubr.bf16.vlgmr.msra.gmra.mrb[148].mxu0 %v8171_v28  ;;  %v3040_v28 = vld [vmem:[#allocation3 + $0x728] sm:$0xff] }
 0xbeb   :  { %4069 = vmatpush1.bf16.msra.mxu0 %v2877_v8  ;;  %4037 = vmatprep.mubr.bf16.mxu0 %v8173_v43  ;;  %v3044_v43 = vld [vmem:[#allocation3 + $0x748] sm:$0xff]  ;;  %v2913_v8 = vld [vmem:[#allocation3 + $0x330] sm:$0xff] }
 0xbec   :  { %4070 = vmatprep.subr.bf16.mxu0 %v2882_v10  ;;  %4557 = vmatprep.subr.bf16.mxu1 %v3040_v28  ;;  %v2918_v10 = vld [vmem:[#allocation3 + $0x358] sm:$0xff] }
 0xbed   :  { %4558 = vmatpush1.bf16.msra.mxu1 %v3039_v49 }
 0xbee   :  { %4559 = vmatprep.subr.bf16.mxu1 %v3044_v43 }
 0xbef   :  { %4071 = vmatpush1.bf16.msra.mxu0 %v2881_v48  ;;  %v2917_v48 = vld [vmem:[#allocation3 + $0x350] sm:$0xff] }
 0xbf0   :  { %4072 = vmatprep.subr.bf16.mxu0 %v2886_v5 }
 0xbf1   :  { %4560 = vmatpush1.bf16.msra.mxu1 %v3043_v30  ;;  %v2930_v30 = vld [vmem:[#allocation3 + $0x3b8] sm:$0xff] }
 0xbf2   :  { %4038 = vmatmul.mubr.bf16.gmra.mrb[152].mxu0 %v8191_v0  ;;  %v3048_v0 = vld [vmem:[#allocation3 + $0x768] sm:$0xff] }
 0xbf3   :  { %4073 = vmatpush1.bf16.msra.mxu0 %v2885_v55  ;;  %4047 = vmatprep.mubr.bf16.mxu0 %v8193_v15  ;;  %v2897_v15 = vld [vmem:[#allocation3 + $0x2b0] sm:$0xff] }
 0xbf4   :  { %4074 = vmatprep.subr.bf16.mxu0 %v2890_v47  ;;  %4561 = vmatprep.subr.bf16.mxu1 %v3048_v0  ;;  %v2921_v55 = vld [vmem:[#allocation3 + $0x370] sm:$0xff]  ;;  %v2926_v47 = vld [vmem:[#allocation3 + $0x398] sm:$0xff] }
 0xbf5   :  { %4562 = vmatpush1.bf16.msra.mxu1 %v3047_v59  ;;  %v2933_v0 = vld [vmem:[#allocation3 + $0x3d0] sm:$0xff]  ;;  %v2938_v59 = vld [vmem:[#allocation3 + $0x3f8] sm:$0xff] }
 0xbf6   :  { %4563 = vmatprep.subr.bf16.mxu1 %v3052_v27  ;;  %v2941_v27 = vld [vmem:[#allocation3 + $0x410] sm:$0xff] }
 0xbf7   :  { %4075 = vmatpush1.bf16.msra.mxu0 %v2889_v21  ;;  %v2925_v21 = vld [vmem:[#allocation3 + $0x390] sm:$0xff] }
 0xbf8   :  { %4076 = vmatprep.subr.bf16.mxu0 %v2894_v32 }
 0xbfa   :  { %4048 = vmatmul.mubr.bf16.gmra.mrb[156].mxu0 %v8209_v9  ;;  %v3051_v9 = vld [vmem:[#allocation3 + $0x780] sm:$0xff] }
 0xbfb   :  { %4077 = vmatpush1.bf16.msra.mxu0 %v2893_v31  ;;  %4057 = vmatprep.mubr.bf16.mxu0 %v8211_v7  ;;  %v2906_v7 = vld [vmem:[#allocation3 + $0x2f8] sm:$0xff]  ;;  %v2929_v31 = vld [vmem:[#allocation3 + $0x3b0] sm:$0xff] }
 0xbfc   :  { %4078 = vmatprep.subr.bf16.mxu0 %v2898_v11  ;;  %4564 = vmatpush1.bf16.msra.mxu1 %v3051_v9  ;;  %v2934_v11 = vld [vmem:[#allocation3 + $0x3d8] sm:$0xff] }
 0xbfd   :  { %v8230_v40 = vpop.f32.mrb[100].mxu0  ;;  %4565 = vmatprep.subr.bf16.mxu1 %v3056_v57  ;;  %v2946_v9 = vld [vmem:[#allocation3 + $0x438] sm:$0xff] }
 0xbfe   :  { %9239 = vst [vmem:[#allocation26_spill] sm:$0xff] %v8230_v40  ;;  %v8232_v12 = vpop.f32.mrb[101].mxu0  ;;  %v2950_v57 = vld [vmem:[#allocation3 + $0x458] sm:$0xff] }
 0xbff   :  { %9240 = vst [vmem:[#allocation27_spill] sm:$0xff] %v8232_v12  ;;  %v8234_v54 = vpop.f32.mrb[102].mxu0  ;;  %4079 = vmatpush1.bf16.msra.mxu0 %v2897_v15  ;;  %v2937_v15 = vld [vmem:[#allocation3 + $0x3f0] sm:$0xff] }
 0xc00   :  { %9241 = vst [vmem:[#allocation28_spill] sm:$0xff] %v8234_v54  ;;  %v8236_v53 = vpop.f32.mrb[103].mxu0  ;;  %4080 = vmatprep.subr.bf16.mxu0 %v2902_v13  ;;  %4566 = vmatpush1.bf16.msra.mxu1 %v3055_v2  ;;  %v2942_v13 = vld [vmem:[#allocation3 + $0x418] sm:$0xff]  ;;  %v2949_v2 = vld [vmem:[#allocation3 + $0x450] sm:$0xff] }
 0xc01   :  { %9242 = vst [vmem:[#allocation29_spill] sm:$0xff] %v8236_v53  ;;  %4567 = vmatprep.subr.bf16.mxu1 %v3060_v25  ;;  %v2958_v25 = vld [vmem:[#allocation3 + $0x498] sm:$0xff] }
 0xc02   :  { %4058 = vmatmul.mubr.bf16.gmra.mrb[160].mxu0 %v8220_v29  ;;  %v3059_v29 = vld [vmem:[#allocation3 + $0x7c0] sm:$0xff] }
 0xc03   :  { %4081 = vmatpush1.bf16.msra.mxu0 %v2901_v58  ;;  %4100 = vmatprep.mubr.bf16.mxu0 %v8009_v35  ;;  %v2914_v35 = vld [vmem:[#allocation3 + $0x338] sm:$0xff]  ;;  %v3068_v58 = vld [vmem:[#allocation3 + $0x808] sm:$0xff] }
 0xc04   :  { %4082 = vmatprep.subr.bf16.mxu0 %v2906_v7  ;;  %4568 = vmatpush1.bf16.msra.mxu1 %v3059_v29  ;;  %v2945_v7 = vld [vmem:[#allocation3 + $0x430] sm:$0xff] }
 0xc05   :  { %v8240_v38 = vpop.f32.mrb[104].mxu0  ;;  %4569 = vmatprep.subr.bf16.mxu1 %v3064_v41  ;;  %v2957_v29 = vld [vmem:[#allocation3 + $0x490] sm:$0xff] }
 0xc06   :  { %9243 = vst [vmem:[#allocation30_spill] sm:$0xff] %v8240_v38  ;;  %v8242_v44 = vpop.f32.mrb[105].mxu0 }
 0xc07   :  { %9244 = vst [vmem:[#allocation31_spill] sm:$0xff] %v8242_v44  ;;  %4083 = vmatpush1.bf16.msra.mxu0 %v2905_v42  ;;  %v8244_v34 = vpop.f32.mrb[106].mxu0  ;;  %v2954_v42 = vld [vmem:[#allocation3 + $0x478] sm:$0xff] }
 0xc08   :  { %9245 = vst [vmem:[#allocation32_spill] sm:$0xff] %v8244_v34  ;;  %4084 = vmatprep.subr.bf16.mxu0 %v2910_v60  ;;  %v8246_v22 = vpop.f32.mrb[107].mxu0  ;;  %4570 = vmatpush1.bf16.msra.mxu1 %v3063_v52  ;;  %v2953_v60 = vld [vmem:[#allocation3 + $0x470] sm:$0xff] }
 0xc09   :  { %9246 = vst [vmem:[#allocation33_spill] sm:$0xff] %v8246_v22  ;;  %4612 = vmatprep.subr.bf16.mxu1 %v3068_v58 }
 0xc0b   :  { %4085 = vmatpush1.bf16.msra.mxu0 %v2909_v63  ;;  %v3456_v63 = vld [vmem:[#allocation10 + $0x23] ss:$8 sm:$0xf] }
 0xc0c   :  { %4086 = vmatprep.subr.bf16.mxu0 %v2914_v35  ;;  %v2962_v35 = vld [vmem:[#allocation3 + $0x4b8] sm:$0xff] }
 0xc0d   :  { %v8248_v19 = vpop.f32.mrb[108].mxu0 }
 0xc0e   :  { %9247 = vst [vmem:[#allocation34_spill] sm:$0xff] %v8248_v19  ;;  %v8250_v51 = vpop.f32.mrb[109].mxu0 }
 0xc0f   :  { %9248 = vst [vmem:[#allocation35_spill] sm:$0xff] %v8250_v51  ;;  %4087 = vmatpush1.bf16.msra.mxu0 %v2913_v8  ;;  %v8252_v18 = vpop.f32.mrb[110].mxu0  ;;  %v2966_v8 = vld [vmem:[#allocation3 + $0x4d8] sm:$0xff] }
 0xc10   :  { %9249 = vst [vmem:[#allocation36_spill] sm:$0xff] %v8252_v18  ;;  %4088 = vmatprep.subr.bf16.mxu0 %v2918_v10  ;;  %v8254_v5 = vpop.f32.mrb[111].mxu0 }
 0xc11   :  { %9250 = vst [vmem:[#allocation37_spill] sm:$0xff] %v8254_v5 }
 0xc13   :  { %4089 = vmatpush1.bf16.msra.mxu0 %v2917_v48 }
 0xc14   :  { %4090 = vmatprep.subr.bf16.mxu0 %v2922_v23 }
 0xc15   :  { %v8256_v28 = vpop.f32.mrb[112].mxu0 }
 0xc16   :  { %9251 = vst [vmem:[#allocation38_spill] sm:$0xff] %v8256_v28  ;;  %v8258_v49 = vpop.f32.mrb[113].mxu0 }
 0xc17   :  { %9252 = vst [vmem:[#allocation39_spill] sm:$0xff] %v8258_v49  ;;  %4091 = vmatpush1.bf16.msra.mxu0 %v2921_v55  ;;  %v8260_v43 = vpop.f32.mrb[114].mxu0  ;;  %v3087_v49 = vld [vmem:[#allocation3 + $0x8a0] sm:$0xff] }
 0xc18   :  { %9253 = vst [vmem:[#allocation40_spill] sm:$0xff] %v8260_v43  ;;  %4092 = vmatprep.subr.bf16.mxu0 %v2926_v47  ;;  %v8262_v32 = vpop.f32.mrb[115].mxu0  ;;  %v3075_v43 = vld [vmem:[#allocation3 + $0x840] sm:$0xff] }
 0xc19   :  { %9254 = vst [vmem:[#allocation41_spill] sm:$0xff] %v8262_v32 }
 0xc1b   :  { %4093 = vmatpush1.bf16.msra.mxu0 %v2925_v21  ;;  %v2965_v21 = vld [vmem:[#allocation3 + $0x4d0] sm:$0xff] }
 0xc1c   :  { %4094 = vmatprep.subr.bf16.mxu0 %v2930_v30  ;;  %v2970_v30 = vld [vmem:[#allocation3 + $0x4f8] sm:$0xff] }
 0xc1f   :  { %4095 = vmatpush1.bf16.msra.mxu0 %v2929_v31  ;;  %v2969_v31 = vld [vmem:[#allocation3 + $0x4f0] sm:$0xff] }
 0xc20   :  { %4096 = vmatprep.subr.bf16.mxu0 %v2934_v11  ;;  %v2974_v11 = vld [vmem:[#allocation3 + $0x518] sm:$0xff] }
 0xc23   :  { %4097 = vmatpush1.bf16.msra.mxu0 %v2933_v0 }
 0xc24   :  { %4098 = vmatprep.subr.bf16.mxu0 %v2938_v59 }
 0xc27   :  { %4099 = vmatpush1.bf16.msra.mxu0 %v2937_v15 }
 0xc28   :  { %4141 = vmatprep.subr.bf16.mxu0 %v2942_v13 }
 0xc2a   :  { %4101 = vmatmul.mubr.bf16.vlgmr.msra.gmra.mrb[148].mxu0 %v8015_v39  ;;  %v8269_v39 = vsub.s32 2, %v7048_v1 }
 0xc2b   :  { %4142 = vmatpush1.bf16.msra.mxu0 %v2941_v27  ;;  %4110 = vmatprep.mubr.bf16.mxu0 %v8019_v3  ;;  %v8272_v3 = vsub.s32 3, %v7048_v1  ;;  %v3159_v1 = vld [vmem:[#allocation3 + $0xae0] sm:$0xff] }
 0xc2c   :  { %4143 = vmatprep.subr.bf16.mxu0 %v2946_v9  ;;  %9255 = vst [vmem:[#allocation42_spill] sm:$0xff] %v8269_v39  ;;  %v8275_v41 = vrot.slane %v3456_v63, %v8269_v39  ;;  %v2973_v9 = vld [vmem:[#allocation3 + $0x510] sm:$0xff] }
 0xc2d   :  { %9256 = vst [vmem:[#allocation43_spill] sm:$0xff] %v8272_v3 }
 0xc2f   :  { %4144 = vmatpush1.bf16.msra.mxu0 %v2945_v7  ;;  %v2978_v7 = vld [vmem:[#allocation3 + $0x538] sm:$0xff] }
 0xc30   :  { %4145 = vmatprep.subr.bf16.mxu0 %v2950_v57 }
 0xc32   :  { %4111 = vmatmul.mubr.bf16.gmra.mrb[152].mxu0 %v8025_v24  ;;  %v8279_v24 = vrot.slane %v3456_v63, %v8272_v3 }
 0xc33   :  { %4146 = vmatpush1.bf16.msra.mxu0 %v2949_v2  ;;  %4120 = vmatprep.mubr.bf16.mxu0 %v8029_v61  ;;  %v2961_v61 = vld [vmem:[#allocation3 + $0x4b0] sm:$0xff] }
 0xc34   :  { %4147 = vmatprep.subr.bf16.mxu0 %v2954_v42 }
 0xc37   :  { %4148 = vmatpush1.bf16.msra.mxu0 %v2953_v60 }
 0xc38   :  { %4149 = vmatprep.subr.bf16.mxu0 %v2958_v25  ;;  %v2977_v25 = vld [vmem:[#allocation3 + $0x530] sm:$0xff] }
 0xc3a   :  { %4121 = vmatmul.mubr.bf16.gmra.mrb[156].mxu0 %v8036_v50 }
 0xc3b   :  { %4150 = vmatpush1.bf16.msra.mxu0 %v2957_v29  ;;  %4130 = vmatprep.mubr.bf16.mxu0 %v8041_v17  ;;  %v2982_v29 = vld [vmem:[#allocation3 + $0x558] sm:$0xff] }
 0xc3c   :  { %4151 = vmatprep.subr.bf16.mxu0 %v2962_v35 }
 0xc3d   :  { %v3572_v52 = vpop.f32.mrb[116].mxu0 }
 0xc3e   :  { %v8283_v10 = vadd.f32 %v8275_v41, %v3572_v52  ;;  %v3574_v48 = vpop.f32.mrb[117].mxu0 }
 0xc3f   :  { %v8286_v23 = vadd.f32 %v8279_v24, %v3574_v48  ;;  %v3576_v55 = vpop.f32.mrb[118].mxu0  ;;  %4152 = vmatpush1.bf16.msra.mxu0 %v2961_v61  ;;  %v2981_v48 = vld [vmem:[#allocation3 + $0x550] sm:$0xff] }
 0xc40   :  { %9257 = vst [vmem:[#allocation44_spill] sm:$0xff] %v8283_v10  ;;  %v8289_v50 = vadd.f32 %v8275_v41, %v3576_v55  ;;  %v3578_v47 = vpop.f32.mrb[119].mxu0  ;;  %4153 = vmatprep.subr.bf16.mxu0 %v2966_v8 }
 0xc41   :  { %9258 = vst [vmem:[#allocation45_spill] sm:$0xff] %v8286_v23  ;;  %v8292_v17 = vadd.f32 %v8279_v24, %v3578_v47 }
 0xc42   :  { %9259 = vst [vmem:[#allocation46_spill] sm:$0xff] %v8289_v50  ;;  %4131 = vmatmul.mubr.bf16.gmra.mrb[160].mxu0 %v8048_v16 }
 0xc43   :  { %9260 = vst [vmem:[#allocation47_spill] sm:$0xff] %v8292_v17  ;;  %4154 = vmatpush1.bf16.msra.mxu0 %v2965_v21  ;;  %4173 = vmatprep.mubr.bf16.mxu0 %v8062_v62  ;;  %v8305_v62 = vpop.f32.mrb[8].mxu1 }
 0xc44   :  { %4155 = vmatprep.subr.bf16.mxu0 %v2970_v30  ;;  %v8310_v2 = vpop.f32.mrb[9].mxu1  ;;  %v2986_v30 = vld [vmem:[#allocation3 + $0x578] sm:$0xff] }
 0xc45   :  { %v3582_v0 = vpop.f32.mrb[120].mxu0  ;;  %v8312_v42 = vpop.f32.mrb[10].mxu1 }
 0xc46   :  { %v8297_v59 = vadd.f32 %v8275_v41, %v3582_v0  ;;  %v3584_v15 = vpop.f32.mrb[121].mxu0  ;;  %v8314_v60 = vpop.f32.mrb[11].mxu1 }
 0xc47   :  { %4156 = vmatpush1.bf16.msra.mxu0 %v2969_v31  ;;  %v8300_v13 = vadd.f32 %v8279_v24, %v3584_v15  ;;  %v3586_v27 = vpop.f32.mrb[122].mxu0 }
 0xc48   :  { %9261 = vst [vmem:[#allocation48_spill] sm:$0xff] %v8297_v59  ;;  %4157 = vmatprep.subr.bf16.mxu0 %v2974_v11  ;;  %v8303_v16 = vadd.f32 %v8275_v41, %v3586_v27  ;;  %v3588_v58 = vpop.f32.mrb[123].mxu0  ;;  %v8325_v21 = vpop.f32.mrb[12].mxu1  ;;  %v2985_v27 = vld [vmem:[#allocation3 + $0x570] sm:$0xff] }
 0xc49   :  { %9262 = vst [vmem:[#allocation49_spill] sm:$0xff] %v8300_v13  ;;  %v8308_v57 = vadd.f32 %v8279_v24, %v3588_v58  ;;  %v8330_v11 = vpop.f32.mrb[13].mxu1 }
 0xc4a   :  { %9263 = vst [vmem:[#allocation50_spill] sm:$0xff] %v8303_v16  ;;  %v8332_v0 = vpop.f32.mrb[14].mxu1 }
 0xc4b   :  { %9264 = vst [vmem:[#allocation51_spill] sm:$0xff] %v8308_v57  ;;  %4158 = vmatpush1.bf16.msra.mxu0 %v2973_v9  ;;  %v8334_v15 = vpop.f32.mrb[15].mxu1  ;;  %v2990_v9 = vld [vmem:[#allocation3 + $0x598] sm:$0xff] }
 0xc4c   :  { %4159 = vmatprep.subr.bf16.mxu0 %v2978_v7 }
 0xc4d   :  { %v3592_v63 = vpop.f32.mrb[124].mxu0 }
 0xc4e   :  { %v8317_v35 = vadd.f32 %v8275_v41, %v3592_v63  ;;  %v3594_v61 = vpop.f32.mrb[125].mxu0 }
 0xc4f   :  { %4160 = vmatpush1.bf16.msra.mxu0 %v2977_v25  ;;  %v8320_v52 = vadd.f32 %v8279_v24, %v3594_v61  ;;  %v3596_v8 = vpop.f32.mrb[126].mxu0  ;;  %v2989_v61 = vld [vmem:[#allocation3 + $0x590] sm:$0xff] }
 0xc50   :  { %9265 = vst [vmem:[#allocation52_spill] sm:$0xff] %v8317_v35  ;;  %4161 = vmatprep.subr.bf16.mxu0 %v2982_v29  ;;  %v8323_v55 = vadd.f32 %v8275_v41, %v3596_v8  ;;  %v3598_v47 = vpop.f32.mrb[127].mxu0 }
 0xc51   :  { %9266 = vst [vmem:[#allocation53_spill] sm:$0xff] %v8320_v52  ;;  %v8328_v31 = vadd.f32 %v8279_v24, %v3598_v47  ;;  %v8345_v47 = vpop.f32.mrb[16].mxu1 }
 0xc52   :  { %9267 = vst [vmem:[#allocation54_spill] sm:$0xff] %v8323_v55 }
 0xc53   :  { %9268 = vst [vmem:[#allocation55_spill] sm:$0xff] %v8328_v31  ;;  %4162 = vmatpush1.bf16.msra.mxu0 %v2981_v48 }
 0xc54   :  { %4163 = vmatprep.subr.bf16.mxu0 %v2986_v30  ;;  %v2994_v30 = vld [vmem:[#allocation3 + $0x5b8] sm:$0xff] }
 0xc55   :  { %v3602_v58 = vpop.f32.mrb[128].mxu0 }
 0xc56   :  { %v8337_v7 = vadd.f32 %v8275_v41, %v3602_v58  ;;  %v3604_v25 = vpop.f32.mrb[129].mxu0  ;;  %v8350_v58 = vpop.f32.mrb[17].mxu1 }
 0xc57   :  { %4164 = vmatpush1.bf16.msra.mxu0 %v2985_v27  ;;  %v8340_v29 = vadd.f32 %v8279_v24, %v3604_v25  ;;  %v3606_v63 = vpop.f32.mrb[130].mxu0  ;;  %v2998_v25 = vld [vmem:[#allocation3 + $0x5d8] sm:$0xff] }
 0xc58   :  { %9269 = vst [vmem:[#allocation56_spill] sm:$0xff] %v8337_v7  ;;  %4165 = vmatprep.subr.bf16.mxu0 %v2990_v9  ;;  %v8343_v8 = vadd.f32 %v8275_v41, %v3606_v63  ;;  %v3608_v48 = vpop.f32.mrb[131].mxu0  ;;  %v8352_v7 = vpop.f32.mrb[18].mxu1  ;;  %v2993_v9 = vld [vmem:[#allocation3 + $0x5b0] sm:$0xff] }
 0xc59   :  { %9270 = vst [vmem:[#allocation57_spill] sm:$0xff] %v8340_v29  ;;  %v8348_v31 = vadd.f32 %v8279_v24, %v3608_v48  ;;  %v8354_v27 = vpop.f32.mrb[19].mxu1  ;;  %v2997_v41 = vld [vmem:[#allocation3 + $0x5d0] sm:$0xff] }
 0xc5a   :  { %9271 = vst [vmem:[#allocation58_spill] sm:$0xff] %v8343_v8  ;;  %v8356_v63 = vpop.f32.mrb[20].mxu1  ;;  %v3002_v8 = vld [vmem:[#allocation3 + $0x5f8] sm:$0xff] }
 0xc5b   :  { %9272 = vst [vmem:[#allocation59_spill] sm:$0xff] %v8348_v31  ;;  %4166 = vmatpush1.bf16.msra.mxu0 %v2989_v61  ;;  %v8358_v29 = vpop.f32.mrb[21].mxu1  ;;  %v3001_v61 = vld [vmem:[#allocation3 + $0x5f0] sm:$0xff] }
 0xc5c   :  { %4167 = vmatprep.subr.bf16.mxu0 %v2994_v30  ;;  %v8360_v24 = vpop.f32.mrb[22].mxu1  ;;  %v8368_v30 = vld [vmem:[#allocation10 + $0x21] ss:$8 sm:$0xf] }
 0xc5d   :  { %v8362_v48 = vpop.f32.mrb[23].mxu1 }
 0xc5f   :  { %4168 = vmatpush1.bf16.msra.mxu0 %v2993_v9  ;;  %v8374_v9 = vrot.slane %v8368_v30, %v7081_v20 }
 0xc60   :  { %4169 = vmatprep.subr.bf16.mxu0 %v2998_v25 }
 0xc63   :  { %4170 = vmatpush1.bf16.msra.mxu0 %v2997_v41 }
 0xc64   :  { %4171 = vmatprep.subr.bf16.mxu0 %v3002_v8 }
 0xc67   :  { %4172 = vmatpush1.bf16.msra.mxu0 %v3001_v61 }
 0xc6a   :  { %4174 = vmatmul.mubr.bf16.vlgmr.msra.gmra.mrb[148].mxu0 %v8086_v37  ;;  %v8378_v37 = vrot.slane %v8368_v30, %v7074_v14 }
 0xc6b   :  { %4183 = vmatprep.mubr.bf16.mxu0 %v8089_v56 }
 0xc72   :  { %4184 = vmatmul.mubr.bf16.gmra.mrb[152].mxu0 %v8112_v33 }
 0xc73   :  { %4193 = vmatprep.mubr.bf16.mxu0 %v8115_v45 }
 0xc7a   :  { %4194 = vmatmul.mubr.bf16.gmra.mrb[156].mxu0 %v8137_v26 }
 0xc7b   :  { %4203 = vmatprep.mubr.bf16.mxu0 %v8140_v36 }
 0xc7d   :  { %v3810_v8 = vpop.f32.mrb[132].mxu0 }
 0xc7e   :  { %v6411_v56 = vadd.f32 %v8305_v62, %v3810_v8  ;;  %v3812_v33 = vpop.f32.mrb[133].mxu0 }
 0xc7f   :  { %v6412_v45 = vadd.f32 %v8310_v2, %v3812_v33  ;;  %v3814_v25 = vpop.f32.mrb[134].mxu0 }
 0xc80   :  { %v4235_v41 = vadd.f32 %v6411_v56, %v8374_v9  ;;  %v6413_v26 = vadd.f32 %v8312_v42, %v3814_v25  ;;  %v3816_v36 = vpop.f32.mrb[135].mxu0 }
 0xc81   :  { %v4236_v61 = vadd.f32 %v6412_v45, %v8378_v37  ;;  %v6414_v31 = vadd.f32 %v8314_v60, %v3816_v36 }
 0xc82   :  { %v4267_v55 = vmax.f32 %v4235_v41, 0.0  ;;  %v4239_v52 = vadd.f32 %v6413_v26, %v8374_v9  ;;  %4204 = vmatmul.mubr.bf16.gmra.mrb[160].mxu0 %v8150_v46 }
 0xc83   :  { %v4268_v35 = vmax.f32 %v4236_v61, 0.0  ;;  %v4240_v62 = vadd.f32 %v6414_v31, %v8378_v37 }
 0xc84   :  { %v4299_v8 = vrot.slane %v4267_v55, 7  ;;  %v4427_v2 = vrot.slane %v4267_v55, 1  ;;  %v4271_v33 = vmax.f32 %v4239_v52, 0.0 }
 0xc85   :  { %v4272_v57 = vmax.f32 %v4240_v62, 0.0  ;;  %v4300_v56 = vrot.slane %v4268_v35, 7  ;;  %v3820_v16 = vpop.f32.mrb[136].mxu0  ;;  %v4428_v42 = vrot.slane %v4268_v35, 1 }
 0xc86   :  { %v4315_v25 = vrot.slane %v4271_v33, 7  ;;  %v8389_v13 = vpack.c.bf16 %v4271_v33, %v4267_v55  ;;  %v4443_v45 = vrot.slane %v4271_v33, 1  ;;  %v6415_v60 = vadd.f32 %v8325_v21, %v3820_v16  ;;  %v3822_v41 = vpop.f32.mrb[137].mxu0 }
 0xc87   :  { %v4316_v26 = vrot.slane %v4272_v57, 7  ;;  %v6416_v46 = vadd.f32 %v8330_v11, %v3822_v41  ;;  %v3824_v36 = vpop.f32.mrb[138].mxu0  ;;  %v8393_v61 = vpack.c.bf16 %v4272_v57, %v4268_v35  ;;  %v4444_v31 = vrot.slane %v4272_v57, 1 }
 0xc88   :  { %v4331_v52 = vsel %vm578_vm0, %v4299_v8, %v4315_v25  ;;  %v4347_v62 = vsel %vm578_vm0, %v4315_v25, %v4299_v8  ;;  %v4459_v55 = vsel %vm611_vm14, %v4427_v2, %v4443_v45  ;;  %v4475_v16 = vsel %vm611_vm14, %v4443_v45, %v4427_v2  ;;  %v3826_v21 = vpop.f32.mrb[139].mxu0 }
 0xc89   :  { %v4363_v33 = vmul.f32 %v7055_v4, %v4347_v62  ;;  %v4495_v11 = vmul.f32 %v7057_v6, %v4475_v16  ;;  %v4332_v57 = vsel %vm578_vm0, %v4300_v56, %v4316_v26  ;;  %v4348_v35 = vsel %vm578_vm0, %v4316_v26, %v4300_v56 }
 0xc8a   :  { %v4364_v41 = vmul.f32 %v7055_v4, %v4348_v35  ;;  %v4243_v8 = vadd.f32 %v6415_v60, %v8374_v9  ;;  %v4244_v25 = vadd.f32 %v6416_v46, %v8378_v37  ;;  %v6417_v59 = vadd.f32 %v8332_v0, %v3824_v36  ;;  %v3067_v36 = vld [vmem:[#allocation3 + $0x800] sm:$0xff] }
 0xc8b   :  { %v8413_v2 = vpack.c.bf16 %v4331_v52, %v4363_v33  ;;  %v8415_v45 = vpack.c.bf16 %v4495_v11, %v4459_v55  ;;  %v6418_v62 = vadd.f32 %v8334_v15, %v3826_v21  ;;  %v4460_v16 = vsel %vm611_vm14, %v4428_v42, %v4444_v31 }
 0xc8c   :  { %v8420_v17 = vpack.c.bf16 %v4332_v57, %v4364_v41  ;;  %v8422_v56 = vmax.f32 %v4243_v8, 0.0  ;;  %v8424_v26 = vmax.f32 %v4244_v25, 0.0  ;;  %v4247_v60 = vadd.f32 %v6417_v59, %v8374_v9  ;;  %v3072_v57 = vld [vmem:[#allocation3 + $0x828] sm:$0xff] }
 0xc8d   :  { %v4248_v46 = vadd.f32 %v6418_v62, %v8378_v37  ;;  %v3830_v0 = vpop.f32.mrb[140].mxu0  ;;  %v4476_v52 = vsel %vm611_vm14, %v4444_v31, %v4428_v42 }
 0xc8e   :  { %4571 = vmatprep.mubr.bf16.mxu1 %v8420_v17  ;;  %v8431_v15 = vmax.f32 %v4247_v60, 0.0  ;;  %v6419_v55 = vadd.f32 %v8345_v47, %v3830_v0  ;;  %v3832_v21 = vpop.f32.mrb[141].mxu0  ;;  %v4304_v33 = vrot.slane %v8424_v26, 7  ;;  %v4303_v11 = vrot.slane %v8422_v56, 7 }
 0xc8f   :  { %4572 = vmatmul.mubr.bf16.vlgmr.msra.gmra.mrb[24].mxu1 %v8413_v2  ;;  %v8437_v59 = vmax.f32 %v4248_v46, 0.0  ;;  %v6420_v35 = vadd.f32 %v8350_v58, %v3832_v21  ;;  %v3834_v41 = vpop.f32.mrb[142].mxu0  ;;  %v4496_v42 = vmul.f32 %v7057_v6, %v4476_v52  ;;  %v3071_v52 = vld [vmem:[#allocation3 + $0x820] sm:$0xff] }
 0xc90   :  { %v4251_v8 = vadd.f32 %v6419_v55, %v8374_v9  ;;  %v6421_v47 = vadd.f32 %v8352_v7, %v3834_v41  ;;  %v3836_v25 = vpop.f32.mrb[143].mxu0  ;;  %v4319_v62 = vrot.slane %v8431_v15, 7  ;;  %4613 = vmatpush1.bf16.msra.mxu1 %v3067_v36  ;;  %v8447_v60 = vpack.c.bf16 %v8431_v15, %v8422_v56  ;;  %v3076_v41 = vld [vmem:[#allocation3 + $0x848] sm:$0xff] }
 0xc91   :  { %v4252_v46 = vadd.f32 %v6420_v35, %v8378_v37  ;;  %v6422_v58 = vadd.f32 %v8354_v27, %v3836_v25  ;;  %v4320_v0 = vrot.slane %v8437_v59, 7  ;;  %4614 = vmatprep.subr.bf16.mxu1 %v3072_v57  ;;  %v8454_v55 = vpack.c.bf16 %v8437_v59, %v8424_v26 }
 0xc92   :  { %v8456_v7 = vmax.f32 %v4251_v8, 0.0  ;;  %v4255_v36 = vadd.f32 %v6421_v47, %v8374_v9  ;;  %v4335_v21 = vsel %vm578_vm0, %v4303_v11, %v4319_v62  ;;  %v4351_v35 = vsel %vm578_vm0, %v4319_v62, %v4303_v11 }
 0xc93   :  { %v8463_v27 = vmax.f32 %v4252_v46, 0.0  ;;  %v4256_v57 = vadd.f32 %v6422_v58, %v8378_v37  ;;  %v4336_v25 = vsel %vm578_vm0, %v4304_v33, %v4320_v0  ;;  %v4352_v8 = vsel %vm578_vm0, %v4320_v0, %v4304_v33 }
 0xc94   :  { %v8470_v31 = vmax.f32 %v4255_v36, 0.0  ;;  %v4372_v47 = vmul.f32 %v7055_v4, %v4352_v8  ;;  %v4371_v50 = vmul.f32 %v7055_v4, %v4351_v35  ;;  %v4307_v23 = vrot.slane %v8456_v7, 7  ;;  %4615 = vmatpush1.bf16.msra.mxu1 %v3071_v52 }
 0xc95   :  { %v8475_v11 = vmax.f32 %v4256_v57, 0.0  ;;  %v3840_v62 = vpop.f32.mrb[144].mxu0  ;;  %v4308_v46 = vrot.slane %v8463_v27, 7  ;;  %4616 = vmatprep.subr.bf16.mxu1 %v3076_v41  ;;  %v8478_v58 = vpack.c.bf16 %v4496_v42, %v4460_v16  ;;  %v4448_v10 = vrot.slane %v8437_v59, 1  ;;  %v3080_v41 = vld [vmem:[#allocation3 + $0x868] sm:$0xff] }
 0xc96   :  { %v6423_v33 = vadd.f32 %v8356_v63, %v3840_v62  ;;  %v3842_v0 = vpop.f32.mrb[145].mxu0  ;;  %v8482_v36 = vpack.c.bf16 %v4336_v25, %v4372_v47  ;;  %v8484_v8 = vpack.c.bf16 %v4335_v21, %v4371_v50  ;;  %v4323_v35 = vrot.slane %v8470_v31, 7 }
 0xc97   :  { %v6424_v52 = vadd.f32 %v8358_v29, %v3842_v0  ;;  %v3844_v57 = vpop.f32.mrb[146].mxu0  ;;  %v4324_v32 = vrot.slane %v8475_v11, 7  ;;  %v8491_v16 = vpack.c.bf16 %v8475_v11, %v8463_v27  ;;  %v8495_v63 = vpack.c.bf16 %v8470_v31, %v8456_v7 }
 0xc98   :  { %v4259_v59 = vadd.f32 %v6423_v33, %v8374_v9  ;;  %4581 = vmatprep.mubr.bf16.mxu1 %v8482_v36  ;;  %v6425_v50 = vadd.f32 %v8360_v24, %v3844_v57  ;;  %v3846_v42 = vpop.f32.mrb[147].mxu0  ;;  %v4339_v29 = vsel %vm578_vm0, %v4307_v23, %v4323_v35  ;;  %v4355_v21 = vsel %vm578_vm0, %v4323_v35, %v4307_v23 }
 0xc99   :  { %v4260_v25 = vadd.f32 %v6424_v52, %v8378_v37  ;;  %4582 = vmatmul.mubr.bf16.gmra.mrb[28].mxu1 %v8484_v8  ;;  %v6426_v47 = vadd.f32 %v8362_v48, %v3846_v42  ;;  %v4340_v62 = vsel %vm578_vm0, %v4308_v46, %v4324_v32  ;;  %v4356_v24 = vsel %vm578_vm0, %v4324_v32, %v4308_v46  ;;  %v3079_v48 = vld [vmem:[#allocation3 + $0x860] sm:$0xff] }
 0xc9a   :  { %v8511_v33 = vmax.f32 %v4259_v59, 0.0  ;;  %v4263_v0 = vadd.f32 %v6425_v50, %v8374_v9  ;;  %v4380_v57 = vmul.f32 %v7055_v4, %v4356_v24  ;;  %v4379_v23 = vmul.f32 %v7055_v4, %v4355_v21  ;;  %4617 = vmatpush1.bf16.msra.mxu1 %v3075_v43 }
 0xc9b   :  { %v8516_v35 = vmax.f32 %v4260_v25, 0.0  ;;  %v4264_v52 = vadd.f32 %v6426_v47, %v8378_v37  ;;  %4618 = vmatprep.subr.bf16.mxu1 %v3080_v41  ;;  %v9273_v42 = vrot.slane %v8424_v26, 1  ;;  %v3084_v37 = vld [vmem:[#allocation3 + $0x888] sm:$0xff]  ;;  %v4431_v24 = vrot.slane %v8422_v56, 1 }
 0xc9c   :  { %v4295_v59 = vmax.f32 %v4263_v0, 0.0  ;;  %v8527_v50 = vpack.c.bf16 %v4340_v62, %v4380_v57  ;;  %v8529_v43 = vpack.c.bf16 %v4339_v29, %v4379_v23  ;;  %v4311_v21 = vrot.slane %v8511_v33, 7  ;;  %v3083_v57 = vld [vmem:[#allocation3 + $0x880] sm:$0xff] }
 0xc9d   :  { %v4464_v32 = vsel %vm611_vm14, %v9273_v42, %v4448_v10  ;;  %v9274_v46 = vmov %v9273_v42  ;;  %v4296_v41 = vmax.f32 %v4264_v52, 0.0  ;;  %v4312_v25 = vrot.slane %v8516_v35, 7 }
 0xc9e   :  { %v4480_v9 = vsel %vm611_vm14, %v4448_v10, %v9274_v46  ;;  %4591 = vmatprep.mubr.bf16.mxu1 %v8527_v50  ;;  %v4327_v26 = vrot.slane %v4295_v59, 7  ;;  %4619 = vmatpush1.bf16.msra.mxu1 %v3079_v48  ;;  %v8537_v10 = vpack.c.bf16 %v4295_v59, %v8511_v33  ;;  %v4447_v29 = vrot.slane %v8431_v15, 1  ;;  %v3088_v46 = vld [vmem:[#allocation3 + $0x8a8] sm:$0xff] }
 0xc9f   :  { %v4504_v47 = vmul.f32 %v7057_v6, %v4480_v9  ;;  %v4436_v62 = vrot.slane %v8463_v27, 1  ;;  %v4328_v0 = vrot.slane %v4296_v41, 7  ;;  %4620 = vmatprep.subr.bf16.mxu1 %v3084_v37  ;;  %v8542_v23 = vpack.c.bf16 %v4296_v41, %v8516_v35 }
 0xca0   :  { %v4452_v56 = vrot.slane %v8475_v11, 1  ;;  %v4343_v48 = vsel %vm578_vm0, %v4311_v21, %v4327_v26  ;;  %v4359_v42 = vsel %vm578_vm0, %v4327_v26, %v4311_v21  ;;  %v4463_v15 = vsel %vm611_vm14, %v4431_v24, %v4447_v29 }
 0xca1   :  { %v8544_v52 = vpack.c.bf16 %v4504_v47, %v4464_v32  ;;  %v4479_v27 = vsel %vm611_vm14, %v4447_v29, %v4431_v24  ;;  %4592 = vmatmul.mubr.bf16.gmra.mrb[32].mxu1 %v8529_v43  ;;  %v4344_v32 = vsel %vm578_vm0, %v4312_v25, %v4328_v0  ;;  %v4360_v11 = vsel %vm578_vm0, %v4328_v0, %v4312_v25 }
 0xca2   :  { %v4387_v9 = vmul.f32 %v7055_v4, %v4359_v42  ;;  %v4503_v37 = vmul.f32 %v7057_v6, %v4479_v27  ;;  %v4388_v21 = vmul.f32 %v7055_v4, %v4360_v11  ;;  %4621 = vmatpush1.bf16.msra.mxu1 %v3083_v57  ;;  %v4468_v47 = vsel %vm611_vm14, %v4436_v62, %v4452_v56  ;;  %v3092_v57 = vld [vmem:[#allocation3 + $0x8c8] sm:$0xff] }
 0xca3   :  { %v4484_v24 = vsel %vm611_vm14, %v4452_v56, %v4436_v62  ;;  %v4435_v26 = vrot.slane %v8456_v7, 1  ;;  %4622 = vmatprep.subr.bf16.mxu1 %v3088_v46  ;;  %v4451_v42 = vrot.slane %v8470_v31, 1  ;;  %v4440_v11 = vrot.slane %v8516_v35, 1 }
 0xca4   :  { %v8568_v29 = vpack.c.bf16 %v4343_v48, %v4387_v9  ;;  %v8570_v25 = vpack.c.bf16 %v4503_v37, %v4463_v15  ;;  %v4512_v0 = vmul.f32 %v7057_v6, %v4484_v24  ;;  %v8574_v27 = vpack.c.bf16 %v4344_v32, %v4388_v21  ;;  %v3096_v9 = vld [vmem:[#allocation3 + $0x8e8] sm:$0xff] }
 0xca5   :  { %v4456_v28 = vrot.slane %v4296_v41, 1  ;;  %v4439_v62 = vrot.slane %v8511_v33, 1  ;;  %v4467_v7 = vsel %vm611_vm14, %v4435_v26, %v4451_v42  ;;  %v4483_v48 = vsel %vm611_vm14, %v4451_v42, %v4435_v26  ;;  %v3091_v41 = vld [vmem:[#allocation3 + $0x8c0] sm:$0xff]  ;;  %v3100_v24 = vld [vmem:[#allocation3 + $0x908] sm:$0xff] }
 0xca6   :  { %9275 = vst [vmem:[#allocation60_spill] sm:$0xff] %v8568_v29  ;;  %9276 = vst [vmem:[#allocation61_spill] sm:$0xff] %v8574_v27  ;;  %v8578_v56 = vpack.c.bf16 %v4512_v0, %v4468_v47  ;;  %v4455_v46 = vrot.slane %v4295_v59, 1  ;;  %4601 = vmatprep.mubr.bf16.mxu1 %v8574_v27  ;;  %4623 = vmatpush1.bf16.msra.mxu1 %v3087_v49  ;;  %v4511_v31 = vmul.f32 %v7057_v6, %v4483_v48  ;;  %v3095_v47 = vld [vmem:[#allocation3 + $0x8e0] sm:$0xff]  ;;  %v3104_v0 = vld [vmem:[#allocation3 + $0x928] sm:$0xff] }
 0xca7   :  { %v4472_v35 = vsel %vm611_vm14, %v4440_v11, %v4456_v28  ;;  %v4488_v33 = vsel %vm611_vm14, %v4456_v28, %v4440_v11  ;;  %4624 = vmatprep.subr.bf16.mxu1 %v3092_v57  ;;  %v3099_v26 = vld [vmem:[#allocation3 + $0x900] sm:$0xff]  ;;  %v3108_v57 = vld [vmem:[#allocation3 + $0x948] sm:$0xff] }
 0xca8   :  { %v4520_v15 = vmul.f32 %v7057_v6, %v4488_v33  ;;  %v4471_v32 = vsel %vm611_vm14, %v4439_v62, %v4455_v46  ;;  %v4487_v59 = vsel %vm611_vm14, %v4455_v46, %v4439_v62  ;;  %v8595_v49 = vpack.c.bf16 %v4511_v31, %v4467_v7  ;;  %v3103_v42 = vld [vmem:[#allocation3 + $0x920] sm:$0xff]  ;;  %v3112_v62 = vld [vmem:[#allocation3 + $0x968] sm:$0xff] }
 0xca9   :  { %v4519_v37 = vmul.f32 %v7057_v6, %v4487_v59  ;;  %4602 = vmatmul.mubr.bf16.gmra.mrb[36].mxu1 %v8568_v29  ;;  %v3107_v11 = vld [vmem:[#allocation3 + $0x940] sm:$0xff]  ;;  %v3116_v48 = vld [vmem:[#allocation3 + $0x988] sm:$0xff] }
 0xcaa   :  { %v8599_v21 = vpack.c.bf16 %v4520_v15, %v4472_v35  ;;  %4625 = vmatpush1.bf16.msra.mxu1 %v3091_v41  ;;  %v3111_v7 = vld [vmem:[#allocation3 + $0x960] sm:$0xff]  ;;  %v3120_v31 = vld [vmem:[#allocation3 + $0x9a8] sm:$0xff] }
 0xcab   :  { %v8601_v28 = vpack.c.bf16 %v4519_v37, %v4471_v32  ;;  %4626 = vmatprep.subr.bf16.mxu1 %v3096_v9  ;;  %v3115_v46 = vld [vmem:[#allocation3 + $0x980] sm:$0xff]  ;;  %v3124_v33 = vld [vmem:[#allocation3 + $0x9c8] sm:$0xff]  ;;  %v8605_v9 = vrot.slane %v8368_v30, %v8269_v39  ;;  %v8609_v37 = vrot.slane %v8368_v30, %v8272_v3 }
 0xcac   :  { %v3119_v35 = vld [vmem:[#allocation3 + $0x9a0] sm:$0xff]  ;;  %v3128_v15 = vld [vmem:[#allocation3 + $0x9e8] sm:$0xff] }
 0xcad   :  { %v3123_v41 = vld [vmem:[#allocation3 + $0x9c0] sm:$0xff]  ;;  %v3132_v59 = vld [vmem:[#allocation3 + $0xa08] sm:$0xff] }
 0xcae   :  { %4627 = vmatpush1.bf16.msra.mxu1 %v3095_v47  ;;  %v3127_v32 = vld [vmem:[#allocation3 + $0x9e0] sm:$0xff] }
 0xcaf   :  { %4628 = vmatprep.subr.bf16.mxu1 %v3100_v24  ;;  %v3143_v29 = vld [vmem:[#allocation3 + $0xa60] sm:$0xff] }
 0xcb2   :  { %4629 = vmatpush1.bf16.msra.mxu1 %v3099_v26 }
 0xcb3   :  { %4630 = vmatprep.subr.bf16.mxu1 %v3104_v0 }
 0xcb6   :  { %4631 = vmatpush1.bf16.msra.mxu1 %v3103_v42 }
 0xcb7   :  { %4632 = vmatprep.subr.bf16.mxu1 %v3108_v57 }
 0xcba   :  { %4633 = vmatpush1.bf16.msra.mxu1 %v3107_v11 }
 0xcbb   :  { %4634 = vmatprep.subr.bf16.mxu1 %v3112_v62 }
 0xcbe   :  { %4635 = vmatpush1.bf16.msra.mxu1 %v3111_v7 }
 0xcbf   :  { %4636 = vmatprep.subr.bf16.mxu1 %v3116_v48 }
 0xcc2   :  { %4637 = vmatpush1.bf16.msra.mxu1 %v3115_v46 }
 0xcc3   :  { %4638 = vmatprep.subr.bf16.mxu1 %v3120_v31 }
 0xcc6   :  { %4639 = vmatpush1.bf16.msra.mxu1 %v3119_v35 }
 0xcc7   :  { %4640 = vmatprep.subr.bf16.mxu1 %v3124_v33 }
 0xcca   :  { %4641 = vmatpush1.bf16.msra.mxu1 %v3123_v41 }
 0xccb   :  { %4642 = vmatprep.subr.bf16.mxu1 %v3128_v15 }
 0xcce   :  { %4643 = vmatpush1.bf16.msra.mxu1 %v3127_v32 }
 0xccf   :  { %4685 = vmatprep.subr.bf16.mxu1 %v3132_v59 }
 0xd3d   :  { %v4175_v47 = vpop.f32.mrb[148].mxu0 }
 0xd3e   :  { %v4237_v24 = vadd.f32 %v8605_v9, %v4175_v47  ;;  %v4177_v26 = vpop.f32.mrb[149].mxu0 }
 0xd3f   :  { %v4238_v0 = vadd.f32 %v8609_v37, %v4177_v26  ;;  %v4179_v42 = vpop.f32.mrb[150].mxu0 }
 0xd40   :  { %v4269_v57 = vmax.f32 %v4237_v24, 0.0  ;;  %v4241_v11 = vadd.f32 %v8605_v9, %v4179_v42  ;;  %v4181_v62 = vpop.f32.mrb[151].mxu0 }
 0xd41   :  { %v4270_v7 = vmax.f32 %v4238_v0, 0.0  ;;  %v4242_v48 = vadd.f32 %v8609_v37, %v4181_v62 }
 0xd42   :  { %v4273_v46 = vmax.f32 %v4241_v11, 0.0  ;;  %v4301_v31 = vrot.slane %v4269_v57, 7  ;;  %v4429_v35 = vrot.slane %v4269_v57, 1 }
 0xd43   :  { %v4274_v33 = vmax.f32 %v4242_v48, 0.0  ;;  %v4302_v30 = vrot.slane %v4270_v7, 7  ;;  %v4430_v59 = vrot.slane %v4270_v7, 1 }
 0xd44   :  { %v4317_v41 = vrot.slane %v4273_v46, 7  ;;  %v8615_v15 = vpack.c.bf16 %v4273_v46, %v4269_v57  ;;  %v4445_v32 = vrot.slane %v4273_v46, 1 }
 0xd45   :  { %v4318_v47 = vrot.slane %v4274_v33, 7  ;;  %v4446_v26 = vrot.slane %v4274_v33, 1  ;;  %v4185_v3 = vpop.f32.mrb[152].mxu0  ;;  %v8617_v24 = vpack.c.bf16 %v4274_v33, %v4270_v7 }
 0xd46   :  { %v4333_v0 = vsel %vm578_vm0, %v4301_v31, %v4317_v41  ;;  %v4349_v42 = vsel %vm578_vm0, %v4317_v41, %v4301_v31  ;;  %v4461_v11 = vsel %vm611_vm14, %v4429_v35, %v4445_v32  ;;  %v4477_v57 = vsel %vm611_vm14, %v4445_v32, %v4429_v35  ;;  %v4187_v62 = vpop.f32.mrb[153].mxu0 }
 0xd47   :  { %v4365_v48 = vmul.f32 %v7055_v4, %v4349_v42  ;;  %v4497_v46 = vmul.f32 %v7057_v6, %v4477_v57  ;;  %v4245_v7 = vadd.f32 %v8605_v9, %v4185_v3  ;;  %v4246_v33 = vadd.f32 %v8609_v37, %v4187_v62  ;;  %v4189_v39 = vpop.f32.mrb[154].mxu0 }
 0xd48   :  { %v4249_v5 = vadd.f32 %v8605_v9, %v4189_v39  ;;  %v4191_v18 = vpop.f32.mrb[155].mxu0  ;;  %v4334_v31 = vsel %vm578_vm0, %v4302_v30, %v4318_v47  ;;  %v4350_v41 = vsel %vm578_vm0, %v4318_v47, %v4302_v30  ;;  %v4462_v35 = vsel %vm611_vm14, %v4430_v59, %v4446_v26 }
 0xd49   :  { %v8638_v32 = vpack.c.bf16 %v4333_v0, %v4365_v48  ;;  %v8640_v42 = vpack.c.bf16 %v4497_v46, %v4461_v11  ;;  %v8642_v3 = vmax.f32 %v4245_v7, 0.0  ;;  %v8644_v57 = vmax.f32 %v4246_v33, 0.0 }
 0xd4a   :  { %v8646_v62 = vmax.f32 %v4249_v5, 0.0  ;;  %v4250_v39 = vadd.f32 %v8609_v37, %v4191_v18  ;;  %v4366_v51 = vmul.f32 %v7055_v4, %v4350_v41  ;;  %v4478_v30 = vsel %vm611_vm14, %v4446_v26, %v4430_v59  ;;  %v3131_v41 = vld [vmem:[#allocation3 + $0xa00] sm:$0xff] }
 0xd4b   :  { %9277 = vst [vmem:[#allocation62_spill] sm:$0xff] %v8638_v32  ;;  %v4305_v47 = vrot.slane %v8642_v3, 7  ;;  %v4306_v11 = vrot.slane %v8644_v57, 7  ;;  %v4434_v5 = vrot.slane %v8644_v57, 1  ;;  %v4498_v26 = vmul.f32 %v7057_v6, %v4478_v30 }
 0xd4c   :  { %v4321_v48 = vrot.slane %v8646_v62, 7  ;;  %v4282_v46 = vmax.f32 %v4250_v39, 0.0  ;;  %v8656_v7 = vpack.c.bf16 %v4334_v31, %v4366_v51  ;;  %v8662_v59 = vpack.c.bf16 %v8646_v62, %v8642_v3  ;;  %v3136_v31 = vld [vmem:[#allocation3 + $0xa28] sm:$0xff] }
 0xd4d   :  { %v4195_v33 = vpop.f32.mrb[156].mxu0  ;;  %v8676_v38 = vpack.c.bf16 %v4498_v26, %v4462_v35  ;;  %v3140_v26 = vld [vmem:[#allocation3 + $0xa48] sm:$0xff] }
 0xd4e   :  { %9278 = vst [vmem:[#allocation63_spill] sm:$0xff] %v8656_v7  ;;  %v4322_v0 = vrot.slane %v4282_v46, 7  ;;  %v4450_v19 = vrot.slane %v4282_v46, 1  ;;  %4644 = vmatprep.mubr.bf16.mxu1 %v8656_v7  ;;  %v4253_v39 = vadd.f32 %v8605_v9, %v4195_v33  ;;  %v4197_v51 = vpop.f32.mrb[157].mxu0  ;;  %v4337_v22 = vsel %vm578_vm0, %v4305_v47, %v4321_v48 }
 0xd4f   :  { %4645 = vmatmul.mubr.bf16.vlgmr.msra.gmra.mrb[24].mxu1 %v8638_v32  ;;  %v4254_v18 = vadd.f32 %v8609_v37, %v4197_v51  ;;  %v4199_v34 = vpop.f32.mrb[158].mxu0  ;;  %v4353_v44 = vsel %vm578_vm0, %v4321_v48, %v4305_v47  ;;  %v8674_v30 = vpack.c.bf16 %v4282_v46, %v8644_v57  ;;  %v3135_v57 = vld [vmem:[#allocation3 + $0xa20] sm:$0xff] }
 0xd50   :  { %v8678_v53 = vmax.f32 %v4253_v39, 0.0  ;;  %4686 = vmatpush1.bf16.msra.mxu1 %v3131_v41  ;;  %v4257_v33 = vadd.f32 %v8605_v9, %v4199_v34  ;;  %v4201_v54 = vpop.f32.mrb[159].mxu0  ;;  %v4338_v12 = vsel %vm578_vm0, %v4306_v11, %v4322_v0  ;;  %v4354_v51 = vsel %vm578_vm0, %v4322_v0, %v4306_v11 }
 0xd51   :  { %v8685_v40 = vmax.f32 %v4254_v18, 0.0  ;;  %v4258_v47 = vadd.f32 %v8609_v37, %v4201_v54  ;;  %4687 = vmatprep.subr.bf16.mxu1 %v3136_v31  ;;  %v4374_v35 = vmul.f32 %v7055_v4, %v4354_v51  ;;  %v4373_v48 = vmul.f32 %v7055_v4, %v4353_v44  ;;  %v3144_v31 = vld [vmem:[#allocation3 + $0xa68] sm:$0xff] }
 0xd52   :  { %v4309_v46 = vrot.slane %v8678_v53, 7  ;;  %v8692_v41 = vmax.f32 %v4257_v33, 0.0  ;;  %v4466_v0 = vsel %vm611_vm14, %v4434_v5, %v4450_v19 }
 0xd53   :  { %v4310_v11 = vrot.slane %v8685_v40, 7  ;;  %v8698_v18 = vmax.f32 %v4258_v47, 0.0  ;;  %v8700_v39 = vpack.c.bf16 %v4338_v12, %v4374_v35  ;;  %v8704_v51 = vpack.c.bf16 %v4337_v22, %v4373_v48  ;;  %v3139_v47 = vld [vmem:[#allocation3 + $0xa40] sm:$0xff] }
 0xd54   :  { %v4325_v44 = vrot.slane %v8692_v41, 7  ;;  %4688 = vmatpush1.bf16.msra.mxu1 %v3135_v57  ;;  %v8708_v33 = vpack.c.bf16 %v8692_v41, %v8678_v53  ;;  %v4482_v22 = vsel %vm611_vm14, %v4450_v19, %v4434_v5 }
 0xd55   :  { %9279 = vst [vmem:[#allocation64_spill] sm:$0xff] %v8700_v39  ;;  %9280 = vst [vmem:[#allocation65_spill] sm:$0xff] %v8704_v51  ;;  %v4326_v34 = vrot.slane %v8698_v18, 7  ;;  %v4454_v14 = vrot.slane %v8698_v18, 1  ;;  %4654 = vmatprep.mubr.bf16.mxu1 %v8700_v39  ;;  %4689 = vmatprep.subr.bf16.mxu1 %v3140_v26  ;;  %v4205_v12 = vpop.f32.mrb[160].mxu0  ;;  %v8715_v35 = vpack.c.bf16 %v8698_v18, %v8685_v40 }
 0xd56   :  { %v4261_v57 = vadd.f32 %v8605_v9, %v4205_v12  ;;  %v4207_v48 = vpop.f32.mrb[161].mxu0  ;;  %v4341_v54 = vsel %vm578_vm0, %v4309_v46, %v4325_v44  ;;  %v4357_v20 = vsel %vm578_vm0, %v4325_v44, %v4309_v46  ;;  %v4506_v26 = vmul.f32 %v7057_v6, %v4482_v22 }
 0xd57   :  { %4655 = vmatmul.mubr.bf16.gmra.mrb[28].mxu1 %v8704_v51  ;;  %v4262_v18 = vadd.f32 %v8609_v37, %v4207_v48  ;;  %v4209_v39 = vpop.f32.mrb[162].mxu0  ;;  %v4342_v19 = vsel %vm578_vm0, %v4310_v11, %v4326_v34  ;;  %v4358_v5 = vsel %vm578_vm0, %v4326_v34, %v4310_v11  ;;  %v4381_v12 = vmul.f32 %v7055_v4, %v4357_v20 }
 0xd58   :  { %v4293_v32 = vmax.f32 %v4261_v57, 0.0  ;;  %4690 = vmatpush1.bf16.msra.mxu1 %v3139_v47  ;;  %v4265_v7 = vadd.f32 %v8605_v9, %v4209_v39  ;;  %v4211_v46 = vpop.f32.mrb[163].mxu0  ;;  %v4382_v44 = vmul.f32 %v7055_v4, %v4358_v5  ;;  %v8734_v22 = vpack.c.bf16 %v4506_v26, %v4466_v0  ;;  %v3148_v0 = vld [vmem:[#allocation3 + $0xa88] sm:$0xff] }
 0xd59   :  { %v4294_v51 = vmax.f32 %v4262_v18, 0.0  ;;  %v4266_v48 = vadd.f32 %v8609_v37, %v4211_v46  ;;  %4691 = vmatprep.subr.bf16.mxu1 %v3144_v31  ;;  %v8737_v27 = vpack.c.bf16 %v4341_v54, %v4381_v12  ;;  %v9281_v34 = vrot.slane %v8646_v62, 1 }
 0xd5a   :  { %v9282_v20 = vrot.slane %v8642_v3, 1  ;;  %v4313_v9 = vrot.slane %v4293_v32, 7  ;;  %v4441_v39 = vrot.slane %v4293_v32, 1  ;;  %v4297_v47 = vmax.f32 %v4265_v7, 0.0 }
 0xd5b   :  { %v8745_v57 = vpack.c.bf16 %v4342_v19, %v4382_v44  ;;  %v4314_v26 = vrot.slane %v4294_v51, 7  ;;  %v4442_v18 = vrot.slane %v4294_v51, 1  ;;  %v4298_v37 = vmax.f32 %v4266_v48, 0.0  ;;  %v3147_v48 = vld [vmem:[#allocation3 + $0xa80] sm:$0xff] }
 0xd5c   :  { %v4465_v11 = vsel %vm611_vm14, %v9282_v20, %v9281_v34  ;;  %v9283_v31 = vmov %v9282_v20  ;;  %v9284_v54 = vmov %v9281_v34  ;;  %v4329_v12 = vrot.slane %v4297_v47, 7  ;;  %4692 = vmatpush1.bf16.msra.mxu1 %v3143_v29 }
 0xd5d   :  { %v4481_v5 = vsel %vm611_vm14, %v9284_v54, %v9283_v31  ;;  %v4457_v46 = vrot.slane %v4297_v47, 1  ;;  %4664 = vmatprep.mubr.bf16.mxu1 %v8745_v57  ;;  %v8754_v34 = vpack.c.bf16 %v4297_v47, %v4293_v32  ;;  %v4330_v19 = vrot.slane %v4298_v37, 7  ;;  %4693 = vmatprep.subr.bf16.mxu1 %v3148_v0  ;;  %v3152_v31 = vld [vmem:[#allocation3 + $0xaa8] sm:$0xff] }
 0xd5e   :  { %v4505_v7 = vmul.f32 %v7057_v6, %v4481_v5  ;;  %v4458_v44 = vrot.slane %v4298_v37, 1  ;;  %v8757_v20 = vpack.c.bf16 %v4298_v37, %v4294_v51  ;;  %v9285_v3 = vrot.slane %v8685_v40, 1 }
 0xd5f   :  { %v4345_v29 = vsel %vm578_vm0, %v4313_v9, %v4329_v12  ;;  %v4361_v32 = vsel %vm578_vm0, %v4329_v12, %v4313_v9  ;;  %4665 = vmatmul.mubr.bf16.gmra.mrb[32].mxu1 %v8737_v27  ;;  %v4346_v0 = vsel %vm578_vm0, %v4314_v26, %v4330_v19  ;;  %v4362_v37 = vsel %vm578_vm0, %v4330_v19, %v4314_v26 }
 0xd60   :  { %v4470_v62 = vsel %vm611_vm14, %v9285_v3, %v4454_v14  ;;  %v8767_v47 = vpack.c.bf16 %v4505_v7, %v4465_v11  ;;  %v9286_v54 = vmov %v9285_v3  ;;  %v4389_v5 = vmul.f32 %v7055_v4, %v4361_v32  ;;  %4694 = vmatpush1.bf16.msra.mxu1 %v3147_v48  ;;  %v3151_v48 = vld [vmem:[#allocation3 + $0xaa0] sm:$0xff] }
 0xd61   :  { %v4486_v51 = vsel %vm611_vm14, %v4454_v14, %v9286_v54  ;;  %v4390_v11 = vmul.f32 %v7055_v4, %v4362_v37  ;;  %v9287_v40 = vrot.slane %v8692_v41, 1  ;;  %v9288_v9 = vrot.slane %v8678_v53, 1  ;;  %4695 = vmatprep.subr.bf16.mxu1 %v3152_v31  ;;  %v3156_v41 = vld [vmem:[#allocation3 + $0xac8] sm:$0xff] }
 0xd62   :  { %v4514_v3 = vmul.f32 %v7057_v6, %v4486_v51  ;;  %v4474_v19 = vsel %vm611_vm14, %v4442_v18, %v4458_v44  ;;  %v8795_v4 = vpack.c.bf16 %v4345_v29, %v4389_v5  ;;  %v4490_v51 = vsel %vm611_vm14, %v4458_v44, %v4442_v18  ;;  %v3155_v18 = vld [vmem:[#allocation3 + $0xac0] sm:$0xff] }
 0xd63   :  { %v4469_v14 = vsel %vm611_vm14, %v9288_v9, %v9287_v40  ;;  %v9289_v12 = vmov %v9288_v9  ;;  %v9290_v7 = vmov %v9287_v40  ;;  %v8802_v53 = vpack.c.bf16 %v4346_v0, %v4390_v11  ;;  %v3160_v0 = vld [vmem:[#allocation3 + $0xae8] sm:$0xff]  ;;  %v3171_v9 = vld [vmem:[#allocation3 + $0xb40] sm:$0xff] }
 0xd64   :  { %v4485_v26 = vsel %vm611_vm14, %v9290_v7, %v9289_v12  ;;  %v8797_v32 = vpack.c.bf16 %v4514_v3, %v4470_v62  ;;  %v4522_v37 = vmul.f32 %v7057_v6, %v4490_v51  ;;  %v4473_v40 = vsel %vm611_vm14, %v4441_v39, %v4457_v46  ;;  %4696 = vmatpush1.bf16.msra.mxu1 %v3151_v48  ;;  %v3167_v3 = vld [vmem:[#allocation3 + $0xb20] sm:$0xff]  ;;  %v3172_v11 = vld [vmem:[#allocation3 + $0xb48] sm:$0xff] }
 0xd65   :  { %v4513_v54 = vmul.f32 %v7057_v6, %v4485_v26  ;;  %v4489_v31 = vsel %vm611_vm14, %v4457_v46, %v4441_v39  ;;  %4674 = vmatprep.mubr.bf16.mxu1 %v8802_v53  ;;  %4697 = vmatprep.subr.bf16.mxu1 %v3156_v41  ;;  %v3164_v39 = vld [vmem:[#allocation3 + $0xb08] sm:$0xff]  ;;  %v3175_v12 = vld [vmem:[#allocation3 + $0xb60] sm:$0xff] }
 0xd66   :  { %v4521_v62 = vmul.f32 %v7057_v6, %v4489_v31  ;;  %v8813_v5 = vpack.c.bf16 %v4522_v37, %v4474_v19  ;;  %v3163_v6 = vld [vmem:[#allocation3 + $0xb00] sm:$0xff]  ;;  %v3168_v46 = vld [vmem:[#allocation3 + $0xb28] sm:$0xff] }
 0xd67   :  { %v8809_v29 = vpack.c.bf16 %v4513_v54, %v4469_v14  ;;  %4675 = vmatmul.mubr.bf16.gmra.mrb[36].mxu1 %v8795_v4  ;;  %v3176_v14 = vld [vmem:[#allocation3 + $0xb68] sm:$0xff]  ;;  %v3179_v26 = vld [vmem:[#allocation3 + $0xb80] sm:$0xff] }
 0xd68   :  { %v8815_v44 = vpack.c.bf16 %v4521_v62, %v4473_v40  ;;  %4698 = vmatpush1.bf16.msra.mxu1 %v3155_v18  ;;  %4717 = vmatprep.mubr.bf16.mxu1 %v8393_v61  ;;  %v3180_v7 = vld [vmem:[#allocation3 + $0xb88] sm:$0xff]  ;;  %v3183_v48 = vld [vmem:[#allocation3 + $0xba0] sm:$0xff] }
 0xd69   :  { %4699 = vmatprep.subr.bf16.mxu1 %v3160_v0  ;;  %v3184_v19 = vld [vmem:[#allocation3 + $0xba8] sm:$0xff]  ;;  %v3187_v51 = vld [vmem:[#allocation3 + $0xbc0] sm:$0xff] }
 0xd6a   :  { %v3188_v54 = vld [vmem:[#allocation3 + $0xbc8] sm:$0xff]  ;;  %v3191_v37 = vld [vmem:[#allocation3 + $0xbe0] sm:$0xff] }
 0xd6b   :  { %v3192_v41 = vld [vmem:[#allocation3 + $0xbe8] sm:$0xff]  ;;  %v3195_v31 = vld [vmem:[#allocation3 + $0xc00] sm:$0xff] }
 0xd6c   :  { %4700 = vmatpush1.bf16.msra.mxu1 %v3159_v1  ;;  %v3196_v40 = vld [vmem:[#allocation3 + $0xc08] sm:$0xff]  ;;  %v3199_v18 = vld [vmem:[#allocation3 + $0xc20] sm:$0xff] }
 0xd6d   :  { %4701 = vmatprep.subr.bf16.mxu1 %v3164_v39  ;;  %v3200_v62 = vld [vmem:[#allocation3 + $0xc28] sm:$0xff]  ;;  %v3203_v1 = vld [vmem:[#allocation3 + $0xc40] sm:$0xff] }
 0xd6e   :  { %v3204_v0 = vld [vmem:[#allocation3 + $0xc48] sm:$0xff] }
 0xd6f   :  { %v3208_v39 = vld [vmem:[#allocation3 + $0xc68] sm:$0xff] }
 0xd70   :  { %4702 = vmatpush1.bf16.msra.mxu1 %v3163_v6  ;;  %v3207_v6 = vld [vmem:[#allocation3 + $0xc60] sm:$0xff] }
 0xd71   :  { %4703 = vmatprep.subr.bf16.mxu1 %v3168_v46  ;;  %v3212_v46 = vld [vmem:[#allocation3 + $0xc88] sm:$0xff] }
 0xd74   :  { %4704 = vmatpush1.bf16.msra.mxu1 %v3167_v3  ;;  %v3211_v3 = vld [vmem:[#allocation3 + $0xc80] sm:$0xff] }
 0xd75   :  { %4705 = vmatprep.subr.bf16.mxu1 %v3172_v11  ;;  %v3216_v11 = vld [vmem:[#allocation3 + $0xca8] sm:$0xff] }
 0xd78   :  { %4706 = vmatpush1.bf16.msra.mxu1 %v3171_v9  ;;  %v3215_v9 = vld [vmem:[#allocation3 + $0xca0] sm:$0xff] }
 0xd79   :  { %4707 = vmatprep.subr.bf16.mxu1 %v3176_v14  ;;  %v3220_v14 = vld [vmem:[#allocation3 + $0xcc8] sm:$0xff] }
 0xd7c   :  { %4708 = vmatpush1.bf16.msra.mxu1 %v3175_v12  ;;  %v3219_v12 = vld [vmem:[#allocation3 + $0xcc0] sm:$0xff] }
 0xd7d   :  { %4709 = vmatprep.subr.bf16.mxu1 %v3180_v7  ;;  %v3224_v7 = vld [vmem:[#allocation3 + $0xce8] sm:$0xff] }
 0xd80   :  { %4710 = vmatpush1.bf16.msra.mxu1 %v3179_v26  ;;  %v3223_v26 = vld [vmem:[#allocation3 + $0xce0] sm:$0xff] }
 0xd81   :  { %4711 = vmatprep.subr.bf16.mxu1 %v3184_v19  ;;  %v3228_v19 = vld [vmem:[#allocation3 + $0xd08] sm:$0xff] }
 0xd84   :  { %4712 = vmatpush1.bf16.msra.mxu1 %v3183_v48  ;;  %v3227_v48 = vld [vmem:[#allocation3 + $0xd00] sm:$0xff] }
 0xd85   :  { %4713 = vmatprep.subr.bf16.mxu1 %v3188_v54  ;;  %v3232_v54 = vld [vmem:[#allocation3 + $0xd28] sm:$0xff] }
 0xd88   :  { %4714 = vmatpush1.bf16.msra.mxu1 %v3187_v51  ;;  %v3231_v51 = vld [vmem:[#allocation3 + $0xd20] sm:$0xff] }
 0xd89   :  { %4715 = vmatprep.subr.bf16.mxu1 %v3192_v41  ;;  %v3236_v41 = vld [vmem:[#allocation3 + $0xd48] sm:$0xff] }
 0xd8c   :  { %4716 = vmatpush1.bf16.msra.mxu1 %v3191_v37  ;;  %v3235_v37 = vld [vmem:[#allocation3 + $0xd40] sm:$0xff] }
 0xd8d   :  { %4758 = vmatprep.subr.bf16.mxu1 %v3196_v40  ;;  %v3240_v40 = vld [vmem:[#allocation3 + $0xd68] sm:$0xff] }
 0xd8f   :  { %4718 = vmatmul.mubr.bf16.vlgmr.msra.gmra.mrb[24].mxu1 %v8389_v13 }
 0xd90   :  { %4727 = vmatprep.mubr.bf16.mxu1 %v8454_v55  ;;  %4759 = vmatpush1.bf16.msra.mxu1 %v3195_v31  ;;  %v3239_v31 = vld [vmem:[#allocation3 + $0xd60] sm:$0xff] }
 0xd91   :  { %4760 = vmatprep.subr.bf16.mxu1 %v3200_v62  ;;  %v3244_v62 = vld [vmem:[#allocation3 + $0xd88] sm:$0xff] }
 0xd94   :  { %4761 = vmatpush1.bf16.msra.mxu1 %v3199_v18  ;;  %v3243_v18 = vld [vmem:[#allocation3 + $0xd80] sm:$0xff] }
 0xd95   :  { %4762 = vmatprep.subr.bf16.mxu1 %v3204_v0  ;;  %v3248_v0 = vld [vmem:[#allocation3 + $0xda8] sm:$0xff] }
 0xd97   :  { %4728 = vmatmul.mubr.bf16.gmra.mrb[28].mxu1 %v8447_v60 }
 0xd98   :  { %4737 = vmatprep.mubr.bf16.mxu1 %v8491_v16  ;;  %4763 = vmatpush1.bf16.msra.mxu1 %v3203_v1  ;;  %v3247_v1 = vld [vmem:[#allocation3 + $0xda0] sm:$0xff] }
 0xd99   :  { %4764 = vmatprep.subr.bf16.mxu1 %v3208_v39  ;;  %v3252_v39 = vld [vmem:[#allocation3 + $0xdc8] sm:$0xff] }
 0xd9c   :  { %4765 = vmatpush1.bf16.msra.mxu1 %v3207_v6  ;;  %v3251_v6 = vld [vmem:[#allocation3 + $0xdc0] sm:$0xff] }
 0xd9d   :  { %4766 = vmatprep.subr.bf16.mxu1 %v3212_v46  ;;  %v3256_v46 = vld [vmem:[#allocation3 + $0xde8] sm:$0xff] }
 0xd9f   :  { %4738 = vmatmul.mubr.bf16.gmra.mrb[32].mxu1 %v8495_v63 }
 0xda0   :  { %4747 = vmatprep.mubr.bf16.mxu1 %v8542_v23  ;;  %4767 = vmatpush1.bf16.msra.mxu1 %v3211_v3  ;;  %v3255_v3 = vld [vmem:[#allocation3 + $0xde0] sm:$0xff] }
 0xda1   :  { %4768 = vmatprep.subr.bf16.mxu1 %v3216_v11  ;;  %v3260_v11 = vld [vmem:[#allocation3 + $0xe08] sm:$0xff] }
 0xda4   :  { %4769 = vmatpush1.bf16.msra.mxu1 %v3215_v9  ;;  %v3259_v9 = vld [vmem:[#allocation3 + $0xe00] sm:$0xff] }
 0xda5   :  { %4770 = vmatprep.subr.bf16.mxu1 %v3220_v14  ;;  %v3264_v14 = vld [vmem:[#allocation3 + $0xe28] sm:$0xff] }
 0xda7   :  { %4748 = vmatmul.mubr.bf16.gmra.mrb[36].mxu1 %v8537_v10 }
 0xda8   :  { %4771 = vmatpush1.bf16.msra.mxu1 %v3219_v12  ;;  %4790 = vmatprep.mubr.bf16.mxu1 %v8617_v24  ;;  %v3263_v12 = vld [vmem:[#allocation3 + $0xe20] sm:$0xff] }
 0xda9   :  { %4772 = vmatprep.subr.bf16.mxu1 %v3224_v7  ;;  %v3268_v7 = vld [vmem:[#allocation3 + $0xe48] sm:$0xff] }
 0xdac   :  { %4773 = vmatpush1.bf16.msra.mxu1 %v3223_v26  ;;  %v3267_v26 = vld [vmem:[#allocation3 + $0xe40] sm:$0xff] }
 0xdad   :  { %4774 = vmatprep.subr.bf16.mxu1 %v3228_v19  ;;  %v3272_v19 = vld [vmem:[#allocation3 + $0xe68] sm:$0xff] }
 0xdb0   :  { %4775 = vmatpush1.bf16.msra.mxu1 %v3227_v48  ;;  %v3271_v48 = vld [vmem:[#allocation3 + $0xe60] sm:$0xff] }
 0xdb1   :  { %4776 = vmatprep.subr.bf16.mxu1 %v3232_v54  ;;  %v3276_v54 = vld [vmem:[#allocation3 + $0xe88] sm:$0xff] }
 0xdb4   :  { %4777 = vmatpush1.bf16.msra.mxu1 %v3231_v51  ;;  %v3275_v51 = vld [vmem:[#allocation3 + $0xe80] sm:$0xff] }
 0xdb5   :  { %4778 = vmatprep.subr.bf16.mxu1 %v3236_v41  ;;  %v3280_v41 = vld [vmem:[#allocation3 + $0xea8] sm:$0xff] }
 0xdb8   :  { %4779 = vmatpush1.bf16.msra.mxu1 %v3235_v37  ;;  %v3279_v37 = vld [vmem:[#allocation3 + $0xea0] sm:$0xff] }
 0xdb9   :  { %4780 = vmatprep.subr.bf16.mxu1 %v3240_v40  ;;  %v3284_v40 = vld [vmem:[#allocation3 + $0xec8] sm:$0xff] }
 0xdbc   :  { %4781 = vmatpush1.bf16.msra.mxu1 %v3239_v31  ;;  %v3283_v31 = vld [vmem:[#allocation3 + $0xec0] sm:$0xff] }
 0xdbd   :  { %4782 = vmatprep.subr.bf16.mxu1 %v3244_v62  ;;  %v3288_v62 = vld [vmem:[#allocation3 + $0xee8] sm:$0xff] }
 0xdc0   :  { %4783 = vmatpush1.bf16.msra.mxu1 %v3243_v18  ;;  %v3287_v18 = vld [vmem:[#allocation3 + $0xee0] sm:$0xff] }
 0xdc1   :  { %4784 = vmatprep.subr.bf16.mxu1 %v3248_v0  ;;  %v3292_v0 = vld [vmem:[#allocation3 + $0xf08] sm:$0xff] }
 0xdc4   :  { %4785 = vmatpush1.bf16.msra.mxu1 %v3247_v1  ;;  %v3291_v1 = vld [vmem:[#allocation3 + $0xf00] sm:$0xff] }
 0xdc5   :  { %4786 = vmatprep.subr.bf16.mxu1 %v3252_v39  ;;  %v3296_v39 = vld [vmem:[#allocation3 + $0xf28] sm:$0xff] }
 0xdc8   :  { %4787 = vmatpush1.bf16.msra.mxu1 %v3251_v6  ;;  %v3295_v6 = vld [vmem:[#allocation3 + $0xf20] sm:$0xff] }
 0xdc9   :  { %4788 = vmatprep.subr.bf16.mxu1 %v3256_v46  ;;  %v3300_v46 = vld [vmem:[#allocation3 + $0xf48] sm:$0xff] }
 0xdcc   :  { %4789 = vmatpush1.bf16.msra.mxu1 %v3255_v3  ;;  %v3299_v3 = vld [vmem:[#allocation3 + $0xf40] sm:$0xff] }
 0xdcd   :  { %4831 = vmatprep.subr.bf16.mxu1 %v3260_v11  ;;  %v3304_v11 = vld [vmem:[#allocation3 + $0xf68] sm:$0xff] }
 0xdcf   :  { %4791 = vmatmul.mubr.bf16.vlgmr.msra.gmra.mrb[24].mxu1 %v8615_v15 }
 0xdd0   :  { %4800 = vmatprep.mubr.bf16.mxu1 %v8674_v30  ;;  %4832 = vmatpush1.bf16.msra.mxu1 %v3259_v9  ;;  %v3303_v9 = vld [vmem:[#allocation3 + $0xf60] sm:$0xff] }
 0xdd1   :  { %4833 = vmatprep.subr.bf16.mxu1 %v3264_v14  ;;  %v3308_v14 = vld [vmem:[#allocation3 + $0xf88] sm:$0xff] }
 0xdd4   :  { %4834 = vmatpush1.bf16.msra.mxu1 %v3263_v12  ;;  %v3307_v12 = vld [vmem:[#allocation3 + $0xf80] sm:$0xff] }
 0xdd5   :  { %4835 = vmatprep.subr.bf16.mxu1 %v3268_v7  ;;  %v3312_v7 = vld [vmem:[#allocation3 + $0xfa8] sm:$0xff] }
 0xdd7   :  { %4801 = vmatmul.mubr.bf16.gmra.mrb[28].mxu1 %v8662_v59 }
 0xdd8   :  { %4810 = vmatprep.mubr.bf16.mxu1 %v8715_v35  ;;  %4836 = vmatpush1.bf16.msra.mxu1 %v3267_v26  ;;  %v3311_v26 = vld [vmem:[#allocation3 + $0xfa0] sm:$0xff] }
 0xdd9   :  { %4837 = vmatprep.subr.bf16.mxu1 %v3272_v19  ;;  %v3316_v19 = vld [vmem:[#allocation3 + $0xfc8] sm:$0xff] }
 0xddc   :  { %4838 = vmatpush1.bf16.msra.mxu1 %v3271_v48  ;;  %v3315_v48 = vld [vmem:[#allocation3 + $0xfc0] sm:$0xff] }
 0xddd   :  { %4839 = vmatprep.subr.bf16.mxu1 %v3276_v54  ;;  %v3320_v54 = vld [vmem:[#allocation3 + $0xfe8] sm:$0xff] }
 0xddf   :  { %4811 = vmatmul.mubr.bf16.gmra.mrb[32].mxu1 %v8708_v33 }
 0xde0   :  { %4820 = vmatprep.mubr.bf16.mxu1 %v8757_v20  ;;  %4840 = vmatpush1.bf16.msra.mxu1 %v3275_v51  ;;  %v3319_v51 = vld [vmem:[#allocation3 + $0xfe0] sm:$0xff] }
 0xde1   :  { %4841 = vmatprep.subr.bf16.mxu1 %v3280_v41  ;;  %v3324_v41 = vld [vmem:[#allocation3 + $0x1008] sm:$0xff] }
 0xde4   :  { %4842 = vmatpush1.bf16.msra.mxu1 %v3279_v37  ;;  %v3323_v37 = vld [vmem:[#allocation3 + $0x1000] sm:$0xff] }
 0xde5   :  { %4843 = vmatprep.subr.bf16.mxu1 %v3284_v40  ;;  %v3328_v40 = vld [vmem:[#allocation3 + $0x1028] sm:$0xff] }
 0xde7   :  { %4821 = vmatmul.mubr.bf16.gmra.mrb[36].mxu1 %v8754_v34 }
 0xde8   :  { %4844 = vmatpush1.bf16.msra.mxu1 %v3283_v31  ;;  %4863 = vmatprep.mubr.bf16.mxu1 %v8478_v58  ;;  %v3327_v31 = vld [vmem:[#allocation3 + $0x1020] sm:$0xff] }
 0xde9   :  { %4845 = vmatprep.subr.bf16.mxu1 %v3288_v62  ;;  %v3332_v62 = vld [vmem:[#allocation3 + $0x1048] sm:$0xff] }
 0xdec   :  { %4846 = vmatpush1.bf16.msra.mxu1 %v3287_v18  ;;  %v3331_v18 = vld [vmem:[#allocation3 + $0x1040] sm:$0xff] }
 0xded   :  { %4847 = vmatprep.subr.bf16.mxu1 %v3292_v0  ;;  %v3336_v0 = vld [vmem:[#allocation3 + $0x1068] sm:$0xff] }
 0xdf0   :  { %4848 = vmatpush1.bf16.msra.mxu1 %v3291_v1  ;;  %v3335_v1 = vld [vmem:[#allocation3 + $0x1060] sm:$0xff] }
 0xdf1   :  { %4849 = vmatprep.subr.bf16.mxu1 %v3296_v39  ;;  %v3340_v39 = vld [vmem:[#allocation3 + $0x1088] sm:$0xff] }
 0xdf4   :  { %4850 = vmatpush1.bf16.msra.mxu1 %v3295_v6  ;;  %v3339_v6 = vld [vmem:[#allocation3 + $0x1080] sm:$0xff] }
 0xdf5   :  { %4851 = vmatprep.subr.bf16.mxu1 %v3300_v46  ;;  %v3344_v46 = vld [vmem:[#allocation3 + $0x10a8] sm:$0xff] }
 0xdf8   :  { %4852 = vmatpush1.bf16.msra.mxu1 %v3299_v3  ;;  %v3343_v3 = vld [vmem:[#allocation3 + $0x10a0] sm:$0xff] }
 0xdf9   :  { %4853 = vmatprep.subr.bf16.mxu1 %v3304_v11  ;;  %v3348_v11 = vld [vmem:[#allocation3 + $0x10c8] sm:$0xff] }
 0xdfc   :  { %4854 = vmatpush1.bf16.msra.mxu1 %v3303_v9  ;;  %v3347_v9 = vld [vmem:[#allocation3 + $0x10c0] sm:$0xff] }
 0xdfd   :  { %4855 = vmatprep.subr.bf16.mxu1 %v3308_v14  ;;  %v3352_v14 = vld [vmem:[#allocation3 + $0x10e8] sm:$0xff] }
 0xe00   :  { %4856 = vmatpush1.bf16.msra.mxu1 %v3307_v12  ;;  %v3351_v12 = vld [vmem:[#allocation3 + $0x10e0] sm:$0xff] }
 0xe01   :  { %4857 = vmatprep.subr.bf16.mxu1 %v3312_v7  ;;  %v3356_v7 = vld [vmem:[#allocation3 + $0x1108] sm:$0xff] }
 0xe04   :  { %4858 = vmatpush1.bf16.msra.mxu1 %v3311_v26  ;;  %v3355_v26 = vld [vmem:[#allocation3 + $0x1100] sm:$0xff] }
 0xe05   :  { %4859 = vmatprep.subr.bf16.mxu1 %v3316_v19  ;;  %v3360_v19 = vld [vmem:[#allocation3 + $0x1128] sm:$0xff] }
 0xe08   :  { %4860 = vmatpush1.bf16.msra.mxu1 %v3315_v48  ;;  %v3359_v48 = vld [vmem:[#allocation3 + $0x1120] sm:$0xff] }
 0xe09   :  { %4861 = vmatprep.subr.bf16.mxu1 %v3320_v54  ;;  %v3364_v54 = vld [vmem:[#allocation3 + $0x1148] sm:$0xff] }
 0xe0c   :  { %4862 = vmatpush1.bf16.msra.mxu1 %v3319_v51  ;;  %v3363_v51 = vld [vmem:[#allocation3 + $0x1140] sm:$0xff] }
 0xe0d   :  { %4904 = vmatprep.subr.bf16.mxu1 %v3324_v41  ;;  %v3368_v41 = vld [vmem:[#allocation3 + $0x1168] sm:$0xff] }
 0xe0f   :  { %4864 = vmatmul.mubr.bf16.vlgmr.msra.gmra.mrb[24].mxu1 %v8415_v45 }
 0xe10   :  { %4873 = vmatprep.mubr.bf16.mxu1 %v8544_v52  ;;  %4905 = vmatpush1.bf16.msra.mxu1 %v3323_v37  ;;  %v3367_v37 = vld [vmem:[#allocation3 + $0x1160] sm:$0xff] }
 0xe11   :  { %4906 = vmatprep.subr.bf16.mxu1 %v3328_v40  ;;  %v3372_v40 = vld [vmem:[#allocation3 + $0x1188] sm:$0xff] }
 0xe14   :  { %4907 = vmatpush1.bf16.msra.mxu1 %v3327_v31  ;;  %v3371_v31 = vld [vmem:[#allocation3 + $0x1180] sm:$0xff] }
 0xe15   :  { %4908 = vmatprep.subr.bf16.mxu1 %v3332_v62  ;;  %v3376_v62 = vld [vmem:[#allocation3 + $0x11a8] sm:$0xff] }
 0xe17   :  { %4874 = vmatmul.mubr.bf16.gmra.mrb[28].mxu1 %v8570_v25 }
 0xe18   :  { %4883 = vmatprep.mubr.bf16.mxu1 %v8578_v56  ;;  %4909 = vmatpush1.bf16.msra.mxu1 %v3331_v18  ;;  %v3375_v18 = vld [vmem:[#allocation3 + $0x11a0] sm:$0xff] }
 0xe19   :  { %4910 = vmatprep.subr.bf16.mxu1 %v3336_v0  ;;  %v3380_v0 = vld [vmem:[#allocation3 + $0x11c8] sm:$0xff] }
 0xe1c   :  { %4911 = vmatpush1.bf16.msra.mxu1 %v3335_v1  ;;  %v3379_v1 = vld [vmem:[#allocation3 + $0x11c0] sm:$0xff] }
 0xe1d   :  { %4912 = vmatprep.subr.bf16.mxu1 %v3340_v39  ;;  %v3384_v39 = vld [vmem:[#allocation3 + $0x11e8] sm:$0xff] }
 0xe1f   :  { %4884 = vmatmul.mubr.bf16.gmra.mrb[32].mxu1 %v8595_v49 }
 0xe20   :  { %4893 = vmatprep.mubr.bf16.mxu1 %v8599_v21  ;;  %4913 = vmatpush1.bf16.msra.mxu1 %v3339_v6  ;;  %v3383_v6 = vld [vmem:[#allocation3 + $0x11e0] sm:$0xff] }
 0xe21   :  { %4914 = vmatprep.subr.bf16.mxu1 %v3344_v46  ;;  %v3006_v46 = vld [vmem:[#allocation3 + $0x618] sm:$0xff] }
 0xe24   :  { %4915 = vmatpush1.bf16.msra.mxu1 %v3343_v3  ;;  %v3005_v3 = vld [vmem:[#allocation3 + $0x610] sm:$0xff] }
 0xe25   :  { %4916 = vmatprep.subr.bf16.mxu1 %v3348_v11  ;;  %v3010_v11 = vld [vmem:[#allocation3 + $0x638] sm:$0xff] }
 0xe27   :  { %4894 = vmatmul.mubr.bf16.gmra.mrb[36].mxu1 %v8601_v28 }
 0xe28   :  { %4917 = vmatpush1.bf16.msra.mxu1 %v3347_v9  ;;  %4936 = vmatprep.mubr.bf16.mxu1 %v8676_v38  ;;  %v3009_v9 = vld [vmem:[#allocation3 + $0x630] sm:$0xff] }
 0xe29   :  { %4918 = vmatprep.subr.bf16.mxu1 %v3352_v14  ;;  %v3014_v14 = vld [vmem:[#allocation3 + $0x658] sm:$0xff] }
 0xe2c   :  { %4919 = vmatpush1.bf16.msra.mxu1 %v3351_v12  ;;  %v3013_v12 = vld [vmem:[#allocation3 + $0x650] sm:$0xff] }
 0xe2d   :  { %4920 = vmatprep.subr.bf16.mxu1 %v3356_v7  ;;  %v3018_v7 = vld [vmem:[#allocation3 + $0x678] sm:$0xff] }
 0xe30   :  { %4921 = vmatpush1.bf16.msra.mxu1 %v3355_v26  ;;  %v3017_v26 = vld [vmem:[#allocation3 + $0x670] sm:$0xff] }
 0xe31   :  { %4922 = vmatprep.subr.bf16.mxu1 %v3360_v19  ;;  %v3022_v19 = vld [vmem:[#allocation3 + $0x698] sm:$0xff] }
 0xe34   :  { %4923 = vmatpush1.bf16.msra.mxu1 %v3359_v48  ;;  %v3021_v48 = vld [vmem:[#allocation3 + $0x690] sm:$0xff] }
 0xe35   :  { %4924 = vmatprep.subr.bf16.mxu1 %v3364_v54  ;;  %v3026_v54 = vld [vmem:[#allocation3 + $0x6b8] sm:$0xff] }
 0xe38   :  { %4925 = vmatpush1.bf16.msra.mxu1 %v3363_v51  ;;  %v3025_v51 = vld [vmem:[#allocation3 + $0x6b0] sm:$0xff] }
 0xe39   :  { %4926 = vmatprep.subr.bf16.mxu1 %v3368_v41  ;;  %v3030_v41 = vld [vmem:[#allocation3 + $0x6d8] sm:$0xff] }
 0xe3c   :  { %4927 = vmatpush1.bf16.msra.mxu1 %v3367_v37  ;;  %v3029_v37 = vld [vmem:[#allocation3 + $0x6d0] sm:$0xff] }
 0xe3d   :  { %4928 = vmatprep.subr.bf16.mxu1 %v3372_v40  ;;  %v3034_v40 = vld [vmem:[#allocation3 + $0x6f8] sm:$0xff] }
 0xe40   :  { %4929 = vmatpush1.bf16.msra.mxu1 %v3371_v31  ;;  %v3033_v31 = vld [vmem:[#allocation3 + $0x6f0] sm:$0xff] }
 0xe41   :  { %4930 = vmatprep.subr.bf16.mxu1 %v3376_v62  ;;  %v3038_v62 = vld [vmem:[#allocation3 + $0x718] sm:$0xff] }
 0xe44   :  { %4931 = vmatpush1.bf16.msra.mxu1 %v3375_v18  ;;  %v3037_v18 = vld [vmem:[#allocation3 + $0x710] sm:$0xff] }
 0xe45   :  { %4932 = vmatprep.subr.bf16.mxu1 %v3380_v0  ;;  %v3042_v0 = vld [vmem:[#allocation3 + $0x738] sm:$0xff] }
 0xe48   :  { %4933 = vmatpush1.bf16.msra.mxu1 %v3379_v1  ;;  %v3041_v1 = vld [vmem:[#allocation3 + $0x730] sm:$0xff] }
 0xe49   :  { %4934 = vmatprep.subr.bf16.mxu1 %v3384_v39  ;;  %v3046_v39 = vld [vmem:[#allocation3 + $0x758] sm:$0xff] }
 0xe4c   :  { %4935 = vmatpush1.bf16.msra.mxu1 %v3383_v6  ;;  %v3045_v6 = vld [vmem:[#allocation3 + $0x750] sm:$0xff] }
 0xe4d   :  { %4977 = vmatprep.subr.bf16.mxu1 %v3006_v46  ;;  %v3050_v46 = vld [vmem:[#allocation3 + $0x778] sm:$0xff] }
 0xe4f   :  { %4937 = vmatmul.mubr.bf16.vlgmr.msra.gmra.mrb[24].mxu1 %v8640_v42 }
 0xe50   :  { %4946 = vmatprep.mubr.bf16.mxu1 %v8734_v22  ;;  %4978 = vmatpush1.bf16.msra.mxu1 %v3005_v3  ;;  %v3049_v3 = vld [vmem:[#allocation3 + $0x770] sm:$0xff] }
 0xe51   :  { %4979 = vmatprep.subr.bf16.mxu1 %v3010_v11  ;;  %v3054_v11 = vld [vmem:[#allocation3 + $0x798] sm:$0xff] }
 0xe54   :  { %4980 = vmatpush1.bf16.msra.mxu1 %v3009_v9  ;;  %v3058_v9 = vld [vmem:[#allocation3 + $0x7b8] sm:$0xff] }
 0xe55   :  { %4981 = vmatprep.subr.bf16.mxu1 %v3014_v14  ;;  %v3057_v14 = vld [vmem:[#allocation3 + $0x7b0] sm:$0xff] }
 0xe57   :  { %4947 = vmatmul.mubr.bf16.gmra.mrb[28].mxu1 %v8767_v47 }
 0xe58   :  { %4956 = vmatprep.mubr.bf16.mxu1 %v8797_v32  ;;  %4982 = vmatpush1.bf16.msra.mxu1 %v3013_v12  ;;  %v3062_v12 = vld [vmem:[#allocation3 + $0x7d8] sm:$0xff] }
 0xe59   :  { %4983 = vmatprep.subr.bf16.mxu1 %v3018_v7  ;;  %v3061_v7 = vld [vmem:[#allocation3 + $0x7d0] sm:$0xff] }
 0xe5c   :  { %4984 = vmatpush1.bf16.msra.mxu1 %v3017_v26  ;;  %v3066_v26 = vld [vmem:[#allocation3 + $0x7f8] sm:$0xff] }
 0xe5d   :  { %4985 = vmatprep.subr.bf16.mxu1 %v3022_v19  ;;  %v3065_v19 = vld [vmem:[#allocation3 + $0x7f0] sm:$0xff] }
 0xe5f   :  { %4957 = vmatmul.mubr.bf16.gmra.mrb[32].mxu1 %v8809_v29 }
 0xe60   :  { %4966 = vmatprep.mubr.bf16.mxu1 %v8813_v5  ;;  %4986 = vmatpush1.bf16.msra.mxu1 %v3021_v48  ;;  %v3070_v48 = vld [vmem:[#allocation3 + $0x818] sm:$0xff] }
 0xe61   :  { %4987 = vmatprep.subr.bf16.mxu1 %v3026_v54  ;;  %v3069_v54 = vld [vmem:[#allocation3 + $0x810] sm:$0xff] }
 0xe64   :  { %4988 = vmatpush1.bf16.msra.mxu1 %v3025_v51  ;;  %v3074_v51 = vld [vmem:[#allocation3 + $0x838] sm:$0xff] }
 0xe65   :  { %4989 = vmatprep.subr.bf16.mxu1 %v3030_v41  ;;  %v3073_v41 = vld [vmem:[#allocation3 + $0x830] sm:$0xff] }
 0xe67   :  { %4967 = vmatmul.mubr.bf16.gmra.mrb[36].mxu1 %v8815_v44 }
 0xe68   :  { %4990 = vmatpush1.bf16.msra.mxu1 %v3029_v37  ;;  %5009 = vmatprep.mubr.bf16.mxu1 %v8420_v17  ;;  %v3053_v17 = vld [vmem:[#allocation3 + $0x790] sm:$0xff]  ;;  %v3078_v37 = vld [vmem:[#allocation3 + $0x858] sm:$0xff] }
 0xe69   :  { %4991 = vmatprep.subr.bf16.mxu1 %v3034_v40  ;;  %v3077_v40 = vld [vmem:[#allocation3 + $0x850] sm:$0xff] }
 0xe6c   :  { %4992 = vmatpush1.bf16.msra.mxu1 %v3033_v31  ;;  %v3082_v31 = vld [vmem:[#allocation3 + $0x878] sm:$0xff] }
 0xe6d   :  { %4993 = vmatprep.subr.bf16.mxu1 %v3038_v62  ;;  %v3081_v62 = vld [vmem:[#allocation3 + $0x870] sm:$0xff] }
 0xe70   :  { %4994 = vmatpush1.bf16.msra.mxu1 %v3037_v18  ;;  %v3086_v18 = vld [vmem:[#allocation3 + $0x898] sm:$0xff] }
 0xe71   :  { %4995 = vmatprep.subr.bf16.mxu1 %v3042_v0  ;;  %v9291_v0 = vld [vmem:[#allocation61_spill] sm:$0xff] }
 0xe74   :  { %4996 = vmatpush1.bf16.msra.mxu1 %v3041_v1  ;;  %v3089_v1 = vld [vmem:[#allocation3 + $0x8b0] sm:$0xff] }
 0xe75   :  { %4997 = vmatprep.subr.bf16.mxu1 %v3046_v39  ;;  %v3094_v39 = vld [vmem:[#allocation3 + $0x8d8] sm:$0xff] }
 0xe78   :  { %4998 = vmatpush1.bf16.msra.mxu1 %v3045_v6  ;;  %v9292_v6 = vld [vmem:[#allocation60_spill] sm:$0xff] }
 0xe79   :  { %4999 = vmatprep.subr.bf16.mxu1 %v3050_v46  ;;  %v9293_v46 = vld [vmem:[#allocation63_spill] sm:$0xff] }
 0xe7c   :  { %5000 = vmatpush1.bf16.msra.mxu1 %v3049_v3  ;;  %v3097_v3 = vld [vmem:[#allocation3 + $0x8f0] sm:$0xff] }
 0xe7d   :  { %5001 = vmatprep.subr.bf16.mxu1 %v3054_v11  ;;  %v3102_v11 = vld [vmem:[#allocation3 + $0x918] sm:$0xff] }
 0xe80   :  { %5002 = vmatpush1.bf16.msra.mxu1 %v3053_v17  ;;  %v3106_v17 = vld [vmem:[#allocation3 + $0x938] sm:$0xff] }
 0xe81   :  { %5003 = vmatprep.subr.bf16.mxu1 %v3058_v9  ;;  %v3105_v9 = vld [vmem:[#allocation3 + $0x930] sm:$0xff] }
 0xe84   :  { %5004 = vmatpush1.bf16.msra.mxu1 %v3057_v14  ;;  %v3110_v14 = vld [vmem:[#allocation3 + $0x958] sm:$0xff] }
 0xe85   :  { %5005 = vmatprep.subr.bf16.mxu1 %v3062_v12  ;;  %v3109_v12 = vld [vmem:[#allocation3 + $0x950] sm:$0xff] }
 0xe88   :  { %5006 = vmatpush1.bf16.msra.mxu1 %v3061_v7  ;;  %v3114_v7 = vld [vmem:[#allocation3 + $0x978] sm:$0xff] }
 0xe89   :  { %5007 = vmatprep.subr.bf16.mxu1 %v3066_v26  ;;  %v3113_v26 = vld [vmem:[#allocation3 + $0x970] sm:$0xff] }
 0xe8c   :  { %5008 = vmatpush1.bf16.msra.mxu1 %v3065_v19  ;;  %v3118_v19 = vld [vmem:[#allocation3 + $0x998] sm:$0xff] }
 0xe8d   :  { %5050 = vmatprep.subr.bf16.mxu1 %v3070_v48  ;;  %v3117_v48 = vld [vmem:[#allocation3 + $0x990] sm:$0xff] }
 0xe8f   :  { %5010 = vmatmul.mubr.bf16.vlgmr.msra.gmra.mrb[40].mxu1 %v8413_v2  ;;  %v3085_v2 = vld [vmem:[#allocation3 + $0x890] sm:$0xff] }
 0xe90   :  { %5019 = vmatprep.mubr.bf16.mxu1 %v8482_v36  ;;  %5051 = vmatpush1.bf16.msra.mxu1 %v3069_v54  ;;  %v3090_v36 = vld [vmem:[#allocation3 + $0x8b8] sm:$0xff] }
 0xe91   :  { %5052 = vmatprep.subr.bf16.mxu1 %v3074_v51  ;;  %v3122_v54 = vld [vmem:[#allocation3 + $0x9b8] sm:$0xff]  ;;  %v5676_v51 = vld [vmem:[%s9223_s7 + $0x80] sm:$0xff] }
 0xe94   :  { %5053 = vmatpush1.bf16.msra.mxu1 %v3073_v41  ;;  %v5677_v41 = vld [vmem:[%s9223_s7 + $0x88] sm:$0xff] }
 0xe95   :  { %5054 = vmatprep.subr.bf16.mxu1 %v3078_v37  ;;  %v6195_v37 = vpack.c.bf16 %v5677_v41, %v5676_v51  ;;  %v5667_v51 = vld [vmem:[%s9223_s7 + $0x38] sm:$0xff]  ;;  %v3133_v41 = vld [vmem:[#allocation3 + $0xa10] sm:$0xff] }
 0xe97   :  { %5020 = vmatmul.mubr.bf16.gmra.mrb[44].mxu1 %v8484_v8  ;;  %v3093_v8 = vld [vmem:[#allocation3 + $0x8d0] sm:$0xff]  ;;  %6196 = vmatprep.subr.bf16.mxu0 %v6195_v37  ;;  %v3138_v37 = vld [vmem:[#allocation3 + $0xa38] sm:$0xff] }
 0xe98   :  { %5029 = vmatprep.mubr.bf16.mxu1 %v8527_v50  ;;  %5055 = vmatpush1.bf16.msra.mxu1 %v3077_v40  ;;  %v3098_v50 = vld [vmem:[#allocation3 + $0x8f8] sm:$0xff]  ;;  %v5660_v40 = vld [vmem:[%s9223_s7] sm:$0xff] }
 0xe99   :  { %5056 = vmatprep.subr.bf16.mxu1 %v3082_v31  ;;  %v5661_v31 = vld [vmem:[%s9223_s7 + $0x8] sm:$0xff] }
 0xe9c   :  { %5057 = vmatpush1.bf16.msra.mxu1 %v3081_v62  ;;  %v3121_v62 = vld [vmem:[#allocation3 + $0x9b0] sm:$0xff] }
 0xe9d   :  { %5058 = vmatprep.subr.bf16.mxu1 %v3086_v18  ;;  %v6197_v18 = vpack.c.bf16 %v5661_v31, %v5660_v40  ;;  %v5684_v31 = vld [vmem:[%s9223_s7 + $0xc0] sm:$0xff] }
 0xe9f   :  { %5030 = vmatmul.mubr.bf16.gmra.mrb[48].mxu1 %v8529_v43  ;;  %v3101_v43 = vld [vmem:[#allocation3 + $0x910] sm:$0xff]  ;;  %6198 = vmatpush3.bf16.msra.mxu0 %v6197_v18  ;;  %v5668_v18 = vld [vmem:[%s9223_s7 + $0x40] sm:$0xff] }
 0xea0   :  { %5039 = vmatprep.mubr.bf16.mxu1 %v9291_v0  ;;  %5059 = vmatpush1.bf16.msra.mxu1 %v3085_v2  ;;  %v3126_v2 = vld [vmem:[#allocation3 + $0x9d8] sm:$0xff] }
 0xea1   :  { %5060 = vmatprep.subr.bf16.mxu1 %v3090_v36  ;;  %v5678_v36 = vld [vmem:[%s9223_s7 + $0x90] sm:$0xff]  ;;  %v5679_v0 = vld [vmem:[%s9223_s7 + $0x98] sm:$0xff] }
 0xea4   :  { %5061 = vmatpush1.bf16.msra.mxu1 %v3089_v1  ;;  %v6199_v1 = vpack.c.bf16 %v5679_v0, %v5678_v36  ;;  %v5669_v0 = vld [vmem:[%s9223_s7 + $0x48] sm:$0xff] }
 0xea5   :  { %5062 = vmatprep.subr.bf16.mxu1 %v3094_v39  ;;  %v5662_v39 = vld [vmem:[%s9223_s7 + $0x10] sm:$0xff] }
 0xea6   :  { %6200 = vmatprep.subr.bf16.mxu0 %v6199_v1  ;;  %v9295_v1 = vld [vmem:[#allocation64_spill] sm:$0xff] }
 0xea7   :  { %5040 = vmatmul.mubr.bf16.gmra.mrb[52].mxu1 %v9292_v6 }
 0xea8   :  { %5063 = vmatpush1.bf16.msra.mxu1 %v3093_v8  ;;  %5082 = vmatprep.mubr.bf16.mxu1 %v9293_v46  ;;  %v5663_v8 = vld [vmem:[%s9223_s7 + $0x18] sm:$0xff] }
 0xea9   :  { %5064 = vmatprep.subr.bf16.mxu1 %v3098_v50  ;;  %v3125_v50 = vld [vmem:[#allocation3 + $0x9d0] sm:$0xff]  ;;  %v6201_v6 = vpack.c.bf16 %v5663_v8, %v5662_v39  ;;  %v3130_v46 = vld [vmem:[#allocation3 + $0x9f8] sm:$0xff]  ;;  %v6213_v39 = vpack.c.bf16 %v5669_v0, %v5668_v18 }
 0xeaa   :  { %v5686_v8 = vld [vmem:[%s9223_s7 + $0xd0] sm:$0xff]  ;;  %v3154_v0 = vld [vmem:[#allocation3 + $0xab8] sm:$0xff] }
 0xeab   :  { %6202 = vmatpush3.bf16.msra.mxu0 %v6201_v6  ;;  %v5670_v6 = vld [vmem:[%s9223_s7 + $0x50] sm:$0xff] }
 0xeac   :  { %5065 = vmatpush1.bf16.msra.mxu1 %v3097_v3  ;;  %v5680_v3 = vld [vmem:[%s9223_s7 + $0xa0] sm:$0xff]  ;;  %v3145_v18 = vld [vmem:[#allocation3 + $0xa70] sm:$0xff] }
 0xead   :  { %5066 = vmatprep.subr.bf16.mxu1 %v3102_v11  ;;  %v5681_v11 = vld [vmem:[%s9223_s7 + $0xa8] sm:$0xff] }
 0xeb0   :  { %5067 = vmatpush1.bf16.msra.mxu1 %v3101_v43  ;;  %v6203_v43 = vpack.c.bf16 %v5681_v11, %v5680_v3  ;;  %v5671_v11 = vld [vmem:[%s9223_s7 + $0x58] sm:$0xff] }
 0xeb1   :  { %5068 = vmatprep.subr.bf16.mxu1 %v3106_v17  ;;  %v5664_v17 = vld [vmem:[%s9223_s7 + $0x20] sm:$0xff] }
 0xeb2   :  { %6204 = vmatprep.subr.bf16.mxu0 %v6203_v43  ;;  %v3142_v43 = vld [vmem:[#allocation3 + $0xa58] sm:$0xff] }
 0xeb4   :  { %5069 = vmatpush1.bf16.msra.mxu1 %v3105_v9  ;;  %v5665_v9 = vld [vmem:[%s9223_s7 + $0x28] sm:$0xff] }
 0xeb5   :  { %5070 = vmatprep.subr.bf16.mxu1 %v3110_v14  ;;  %v3129_v14 = vld [vmem:[#allocation3 + $0x9f0] sm:$0xff] }
 0xeb8   :  { %5071 = vmatpush1.bf16.msra.mxu1 %v3109_v12  ;;  %v6205_v12 = vpack.c.bf16 %v5665_v9, %v5664_v17  ;;  %v5688_v17 = vld [vmem:[%s9223_s7 + $0xe0] sm:$0xff]  ;;  %v5689_v9 = vld [vmem:[%s9223_s7 + $0xe8] sm:$0xff] }
 0xeb9   :  { %5072 = vmatprep.subr.bf16.mxu1 %v3114_v7  ;;  %v3134_v7 = vld [vmem:[#allocation3 + $0xa18] sm:$0xff] }
 0xeba   :  { %6206 = vmatpush3.bf16.msra.mxu0 %v6205_v12  ;;  %v5672_v12 = vld [vmem:[%s9223_s7 + $0x60] sm:$0xff] }
 0xebc   :  { %5073 = vmatpush1.bf16.msra.mxu1 %v3113_v26  ;;  %v5682_v26 = vld [vmem:[%s9223_s7 + $0xb0] sm:$0xff] }
 0xebd   :  { %5074 = vmatprep.subr.bf16.mxu1 %v3118_v19  ;;  %v5683_v19 = vld [vmem:[%s9223_s7 + $0xb8] sm:$0xff] }
 0xec0   :  { %5075 = vmatpush1.bf16.msra.mxu1 %v3117_v48  ;;  %v6207_v48 = vpack.c.bf16 %v5683_v19, %v5682_v26  ;;  %v3141_v26 = vld [vmem:[#allocation3 + $0xa50] sm:$0xff]  ;;  %v6219_v19 = vpack.c.bf16 %v5689_v9, %v5688_v17  ;;  %v3178_v17 = vld [vmem:[#allocation3 + $0xb78] sm:$0xff] }
 0xec1   :  { %5076 = vmatprep.subr.bf16.mxu1 %v3122_v54  ;;  %v5666_v54 = vld [vmem:[%s9223_s7 + $0x30] sm:$0xff]  ;;  %v3182_v9 = vld [vmem:[#allocation3 + $0xb98] sm:$0xff] }
 0xec2   :  { %v6209_v40 = vpack.c.bf16 %v5667_v51, %v5666_v54  ;;  %6208 = vmatprep.subr.bf16.mxu0 %v6207_v48  ;;  %v5690_v48 = vld [vmem:[%s9223_s7 + $0xf0] sm:$0xff]  ;;  %v5691_v54 = vld [vmem:[%s9223_s7 + $0xf8] sm:$0xff] }
 0xec3   :  { %v3146_v51 = vld [vmem:[#allocation3 + $0xa78] sm:$0xff] }
 0xec4   :  { %5077 = vmatpush1.bf16.msra.mxu1 %v3121_v62  ;;  %v5685_v62 = vld [vmem:[%s9223_s7 + $0xc8] sm:$0xff]  ;;  %6210 = vmatpush3.bf16.msra.mxu0 %v6209_v40  ;;  %v6223_v40 = vpack.c.bf16 %v5691_v54, %v5690_v48  ;;  %v3193_v48 = vld [vmem:[#allocation3 + $0xbf0] sm:$0xff]  ;;  %v3198_v54 = vld [vmem:[#allocation3 + $0xc18] sm:$0xff] }
 0xec5   :  { %5078 = vmatprep.subr.bf16.mxu1 %v3126_v2  ;;  %v9294_v2 = vld [vmem:[#allocation62_spill] sm:$0xff]  ;;  %v6211_v36 = vpack.c.bf16 %v5685_v62, %v5684_v31  ;;  %v5674_v31 = vld [vmem:[%s9223_s7 + $0x70] sm:$0xff] }
 0xec6   :  { %v5675_v62 = vld [vmem:[%s9223_s7 + $0x78] sm:$0xff] }
 0xec7   :  { %6212 = vmatprep.subr.bf16.mxu0 %v6211_v36  ;;  %v6225_v36 = vpack.c.bf16 %v5675_v62, %v5674_v31  ;;  %v3205_v31 = vld [vmem:[#allocation3 + $0xc50] sm:$0xff]  ;;  %v3210_v62 = vld [vmem:[#allocation3 + $0xc78] sm:$0xff] }
 0xec8   :  { %5079 = vmatpush1.bf16.msra.mxu1 %v3125_v50  ;;  %v5687_v50 = vld [vmem:[%s9223_s7 + $0xd8] sm:$0xff]  ;;  %6214 = vmatpush3.bf16.msra.mxu0 %v6213_v39 }
 0xec9   :  { %5080 = vmatprep.subr.bf16.mxu1 %v3130_v46  ;;  %v3137_v46 = vld [vmem:[#allocation3 + $0xa30] sm:$0xff]  ;;  %v6215_v3 = vpack.c.bf16 %v5687_v50, %v5686_v8  ;;  %v3158_v39 = vld [vmem:[#allocation3 + $0xad8] sm:$0xff] }
 0xeca   :  { %v3157_v8 = vld [vmem:[#allocation3 + $0xad0] sm:$0xff]  ;;  %v3162_v50 = vld [vmem:[#allocation3 + $0xaf8] sm:$0xff] }
 0xecb   :  { %6216 = vmatprep.subr.bf16.mxu0 %v6215_v3  ;;  %v3169_v3 = vld [vmem:[#allocation3 + $0xb30] sm:$0xff] }
 0xecc   :  { %5081 = vmatpush1.bf16.msra.mxu1 %v3129_v14  ;;  %v6217_v14 = vpack.c.bf16 %v5671_v11, %v5670_v6  ;;  %v3161_v6 = vld [vmem:[#allocation3 + $0xaf0] sm:$0xff]  ;;  %v3174_v11 = vld [vmem:[#allocation3 + $0xb58] sm:$0xff] }
 0xecd   :  { %5123 = vmatprep.subr.bf16.mxu1 %v3134_v7  ;;  %v5673_v7 = vld [vmem:[%s9223_s7 + $0x68] sm:$0xff] }
 0xece   :  { %6218 = vmatpush3.bf16.msra.mxu0 %v6217_v14  ;;  %v3186_v14 = vld [vmem:[#allocation3 + $0xbb8] sm:$0xff] }
 0xecf   :  { %5083 = vmatmul.mubr.bf16.vlgmr.msra.gmra.mrb[40].mxu1 %v9294_v2  ;;  %6220 = vmatprep.subr.bf16.mxu0 %v6219_v19  ;;  %v3150_v2 = vld [vmem:[#allocation3 + $0xa98] sm:$0xff] }
 0xed0   :  { %5092 = vmatprep.mubr.bf16.mxu1 %v9295_v1  ;;  %5124 = vmatpush1.bf16.msra.mxu1 %v3133_v41  ;;  %v9296_v41 = vld [vmem:[#allocation65_spill] sm:$0xff] }
 0xed1   :  { %5125 = vmatprep.subr.bf16.mxu1 %v3138_v37  ;;  %v6221_v37 = vpack.c.bf16 %v5673_v7, %v5672_v12  ;;  %v3153_v1 = vld [vmem:[#allocation3 + $0xab0] sm:$0xff]  ;;  %v3190_v7 = vld [vmem:[#allocation3 + $0xbd8] sm:$0xff] }
 0xed2   :  { %v3185_v12 = vld [vmem:[#allocation3 + $0xbb0] sm:$0xff]  ;;  %v3194_v19 = vld [vmem:[#allocation3 + $0xbf8] sm:$0xff] }
 0xed3   :  { %6222 = vmatpush3.bf16.msra.mxu0 %v6221_v37  ;;  %v3201_v37 = vld [vmem:[#allocation3 + $0xc30] sm:$0xff] }
 0xed4   :  { %5126 = vmatpush1.bf16.msra.mxu1 %v3137_v46  ;;  %6224 = vmatprep.subr.bf16.mxu0 %v6223_v40  ;;  %v3166_v46 = vld [vmem:[#allocation3 + $0xb18] sm:$0xff] }
 0xed5   :  { %5127 = vmatprep.subr.bf16.mxu1 %v3142_v43  ;;  %v3173_v43 = vld [vmem:[#allocation3 + $0xb50] sm:$0xff]  ;;  %v3206_v40 = vld [vmem:[#allocation3 + $0xc58] sm:$0xff] }
 0xed7   :  { %5093 = vmatmul.mubr.bf16.gmra.mrb[44].mxu1 %v9296_v41  ;;  %6226 = vmatpush3.bf16.msra.mxu0 %v6225_v36  ;;  %v3202_v41 = vld [vmem:[#allocation3 + $0xc38] sm:$0xff] }
 0xed8   :  { %5102 = vmatprep.mubr.bf16.mxu1 %v8745_v57  ;;  %5128 = vmatpush1.bf16.msra.mxu1 %v3141_v26  ;;  %v3149_v57 = vld [vmem:[#allocation3 + $0xa90] sm:$0xff] }
 0xed9   :  { %5129 = vmatprep.subr.bf16.mxu1 %v3146_v51  ;;  %v3189_v26 = vld [vmem:[#allocation3 + $0xbd0] sm:$0xff] }
 0xeda   :  { %v3197_v51 = vld [vmem:[#allocation3 + $0xc10] sm:$0xff] }
 0xedb   :  { %v9297_v36 = vld [vmem:[#allocation25_spill] sm:$0xff] }
 0xedc   :  { %5130 = vmatpush1.bf16.msra.mxu1 %v3145_v18  ;;  %v3209_v18 = vld [vmem:[#allocation3 + $0xc70] sm:$0xff] }
 0xedd   :  { %5131 = vmatprep.subr.bf16.mxu1 %v3150_v2  ;;  %v3214_v2 = vld [vmem:[#allocation3 + $0xc98] sm:$0xff] }
 0xedf   :  { %5103 = vmatmul.mubr.bf16.gmra.mrb[48].mxu1 %v8737_v27  ;;  %v3165_v27 = vld [vmem:[#allocation3 + $0xb10] sm:$0xff] }
 0xee0   :  { %5112 = vmatprep.mubr.bf16.mxu1 %v8802_v53  ;;  %5132 = vmatpush1.bf16.msra.mxu1 %v3149_v57  ;;  %v3170_v53 = vld [vmem:[#allocation3 + $0xb38] sm:$0xff]  ;;  %v3213_v57 = vld [vmem:[#allocation3 + $0xc90] sm:$0xff] }
 0xee1   :  { %5133 = vmatprep.subr.bf16.mxu1 %v3154_v0  ;;  %v9298_v0 = vld [vmem:[#allocation24_spill] sm:$0xff] }
 0xee4   :  { %5134 = vmatpush1.bf16.msra.mxu1 %v3153_v1 }
 0xee5   :  { %5135 = vmatprep.subr.bf16.mxu1 %v3158_v39  ;;  %v8973_v39 = vld [vmem:[#allocation10 + $0x22] ss:$8 sm:$0xf] }
 0xee7   :  { %5113 = vmatmul.mubr.bf16.gmra.mrb[52].mxu1 %v8795_v4  ;;  %v3177_v4 = vld [vmem:[#allocation3 + $0xb70] sm:$0xff] }
 0xee8   :  { %5136 = vmatpush1.bf16.msra.mxu1 %v3157_v8  ;;  %5155 = vmatprep.mubr.bf16.mxu1 %v8393_v61  ;;  %v3181_v61 = vld [vmem:[#allocation3 + $0xb90] sm:$0xff]  ;;  %v3218_v8 = vld [vmem:[#allocation3 + $0xcb8] sm:$0xff] }
 0xee9   :  { %5137 = vmatprep.subr.bf16.mxu1 %v3162_v50  ;;  %v8981_v50 = vrot.slane %v8973_v39, %v9297_v36 }
 0xeec   :  { %5138 = vmatpush1.bf16.msra.mxu1 %v3161_v6  ;;  %v3217_v6 = vld [vmem:[#allocation3 + $0xcb0] sm:$0xff] }
 0xeed   :  { %5139 = vmatprep.subr.bf16.mxu1 %v3166_v46  ;;  %v9300_v46 = vld [vmem:[#allocation27_spill] sm:$0xff] }
 0xef0   :  { %5140 = vmatpush1.bf16.msra.mxu1 %v3165_v27 }
 0xef1   :  { %5141 = vmatprep.subr.bf16.mxu1 %v3170_v53 }
 0xef4   :  { %5142 = vmatpush1.bf16.msra.mxu1 %v3169_v3  ;;  %v8987_v3 = vrot.slane %v8973_v39, %v9298_v0 }
 0xef5   :  { %5143 = vmatprep.subr.bf16.mxu1 %v3174_v11 }
 0xef8   :  { %5144 = vmatpush1.bf16.msra.mxu1 %v3173_v43 }
 0xef9   :  { %5145 = vmatprep.subr.bf16.mxu1 %v3178_v17 }
 0xefc   :  { %5146 = vmatpush1.bf16.msra.mxu1 %v3177_v4  ;;  %v9302_v4 = vld [vmem:[#allocation29_spill] sm:$0xff] }
 0xefd   :  { %5147 = vmatprep.subr.bf16.mxu1 %v3182_v9 }
 0xf00   :  { %5148 = vmatpush1.bf16.msra.mxu1 %v3181_v61 }
 0xf01   :  { %5149 = vmatprep.subr.bf16.mxu1 %v3186_v14 }
 0xf04   :  { %5150 = vmatpush1.bf16.msra.mxu1 %v3185_v12 }
 0xf05   :  { %5151 = vmatprep.subr.bf16.mxu1 %v3190_v7 }
 0xf08   :  { %5152 = vmatpush1.bf16.msra.mxu1 %v3189_v26 }
 0xf09   :  { %5153 = vmatprep.subr.bf16.mxu1 %v3194_v19  ;;  %v3221_v19 = vld [vmem:[#allocation3 + $0xcd0] sm:$0xff] }
 0xf0c   :  { %5154 = vmatpush1.bf16.msra.mxu1 %v3193_v48 }
 0xf0d   :  { %5196 = vmatprep.subr.bf16.mxu1 %v3198_v54 }
 0xf0f   :  { %5156 = vmatmul.mubr.bf16.vlgmr.msra.gmra.mrb[40].mxu1 %v8389_v13  ;;  %v6794_v13 = vld [vmem:[#allocation10 + $0x23] ss:$8 sm:$0xf] }
 0xf10   :  { %5165 = vmatprep.mubr.bf16.mxu1 %v8454_v55  ;;  %5197 = vmatpush1.bf16.msra.mxu1 %v3197_v51  ;;  %v8968_v55 = vrot.slane %v6794_v13, %v9297_v36  ;;  %v8971_v1 = vrot.slane %v6794_v13, %v9298_v0  ;;  %v3226_v51 = vld [vmem:[#allocation3 + $0xcf8] sm:$0xff]  ;;  %v9304_v13 = vld [vmem:[#allocation31_spill] sm:$0xff] }
 0xf11   :  { %5198 = vmatprep.subr.bf16.mxu1 %v3202_v41 }
 0xf12   :  { %v3633_v27 = vadd.f32 %v8971_v1, %v9300_v46  ;;  %v3637_v9 = vadd.f32 %v8971_v1, %v9302_v4  ;;  %v3641_v36 = vadd.f32 %v8971_v1, %v9304_v13  ;;  %v9309_v13 = vld [vmem:[#allocation36_spill] sm:$0xff] }
 0xf14   :  { %5199 = vmatpush1.bf16.msra.mxu1 %v3201_v37 }
 0xf15   :  { %5200 = vmatprep.subr.bf16.mxu1 %v3206_v40  ;;  %v9303_v40 = vld [vmem:[#allocation30_spill] sm:$0xff] }
 0xf17   :  { %5166 = vmatmul.mubr.bf16.gmra.mrb[44].mxu1 %v8447_v60  ;;  %v9299_v60 = vld [vmem:[#allocation26_spill] sm:$0xff] }
 0xf18   :  { %5175 = vmatprep.mubr.bf16.mxu1 %v8491_v16  ;;  %5201 = vmatpush1.bf16.msra.mxu1 %v3205_v31  ;;  %v3632_v16 = vadd.f32 %v8968_v55, %v9299_v60  ;;  %v3640_v31 = vadd.f32 %v8968_v55, %v9303_v40  ;;  %v3230_v60 = vld [vmem:[#allocation3 + $0xd18] sm:$0xff] }
 0xf19   :  { %5202 = vmatprep.subr.bf16.mxu1 %v3210_v62 }
 0xf1c   :  { %5203 = vmatpush1.bf16.msra.mxu1 %v3209_v18 }
 0xf1d   :  { %5204 = vmatprep.subr.bf16.mxu1 %v3214_v2  ;;  %v3225_v2 = vld [vmem:[#allocation3 + $0xcf0] sm:$0xff] }
 0xf1f   :  { %5176 = vmatmul.mubr.bf16.gmra.mrb[48].mxu1 %v8495_v63  ;;  %v3222_v63 = vld [vmem:[#allocation3 + $0xcd8] sm:$0xff] }
 0xf20   :  { %5185 = vmatprep.mubr.bf16.mxu1 %v8542_v23  ;;  %5205 = vmatpush1.bf16.msra.mxu1 %v3213_v57  ;;  %v9301_v23 = vld [vmem:[#allocation28_spill] sm:$0xff] }
 0xf21   :  { %5206 = vmatprep.subr.bf16.mxu1 %v3218_v8  ;;  %v3636_v11 = vadd.f32 %v8968_v55, %v9301_v23 }
 0xf22   :  { %v4938_v53 = vpop.f32.mrb[24].mxu1 }
 0xf23   :  { %v6316_v43 = vadd.f32 %v4938_v53, %v3632_v16  ;;  %v4940_v17 = vpop.f32.mrb[25].mxu1 }
 0xf24   :  { %v6319_v61 = vadd.f32 %v4940_v17, %v3633_v27  ;;  %v4942_v14 = vpop.f32.mrb[26].mxu1  ;;  %5207 = vmatpush1.bf16.msra.mxu1 %v3217_v6  ;;  %v9306_v27 = vld [vmem:[#allocation33_spill] sm:$0xff] }
 0xf25   :  { %v6317_v12 = vadd.f32 %v6316_v43, %v8981_v50  ;;  %v6322_v7 = vadd.f32 %v4942_v14, %v3636_v11  ;;  %v4944_v26 = vpop.f32.mrb[27].mxu1  ;;  %5208 = vmatprep.subr.bf16.mxu1 %v3222_v63  ;;  %v3645_v53 = vadd.f32 %v8971_v1, %v9306_v27 }
 0xf26   :  { %v6320_v48 = vadd.f32 %v6319_v61, %v8987_v3  ;;  %v6325_v54 = vadd.f32 %v4944_v26, %v3637_v9  ;;  %v3229_v9 = vld [vmem:[#allocation3 + $0xd10] sm:$0xff] }
 0xf27   :  { %v6323_v41 = vadd.f32 %v6322_v7, %v8981_v50  ;;  %5186 = vmatmul.mubr.bf16.gmra.mrb[52].mxu1 %v8537_v10  ;;  %v5500_v62 = vmax.f32 %v6317_v12, 0.0  ;;  %v9305_v10 = vld [vmem:[#allocation32_spill] sm:$0xff]  ;;  %v3234_v12 = vld [vmem:[#allocation3 + $0xd38] sm:$0xff] }
 0xf28   :  { %v6326_v37 = vadd.f32 %v6325_v54, %v8987_v3  ;;  %5209 = vmatpush1.bf16.msra.mxu1 %v3221_v19  ;;  %5228 = vmatprep.mubr.bf16.mxu1 %v8617_v24  ;;  %v5501_v57 = vmax.f32 %v6320_v48, 0.0  ;;  %v3644_v16 = vadd.f32 %v8968_v55, %v9305_v10  ;;  %v9307_v19 = vld [vmem:[#allocation34_spill] sm:$0xff]  ;;  %v9310_v10 = vld [vmem:[#allocation37_spill] sm:$0xff] }
 0xf29   :  { %v5504_v18 = vmax.f32 %v6323_v41, 0.0  ;;  %5210 = vmatprep.subr.bf16.mxu1 %v3226_v51  ;;  %v3648_v48 = vadd.f32 %v8968_v55, %v9307_v19  ;;  %v3233_v41 = vld [vmem:[#allocation3 + $0xd30] sm:$0xff]  ;;  %v9311_v19 = vld [vmem:[#allocation38_spill] sm:$0xff] }
 0xf2a   :  { %v5505_v0 = vmax.f32 %v6326_v37, 0.0  ;;  %v4948_v8 = vpop.f32.mrb[28].mxu1  ;;  %v9308_v37 = vld [vmem:[#allocation35_spill] sm:$0xff] }
 0xf2b   :  { %v5532_v6 = vadd.f32 %v5504_v18, %v5500_v62  ;;  %v6328_v46 = vadd.f32 %v4948_v8, %v3640_v31  ;;  %v4950_v24 = vpop.f32.mrb[29].mxu1  ;;  %v3649_v40 = vadd.f32 %v8971_v1, %v9308_v37 }
 0xf2c   :  { %v5539_v63 = vadd.f32 %v5505_v0, %v5501_v57  ;;  %v6331_v23 = vadd.f32 %v4950_v24, %v3641_v36  ;;  %v4952_v11 = vpop.f32.mrb[30].mxu1  ;;  %5211 = vmatpush1.bf16.msra.mxu1 %v3225_v2  ;;  %v3238_v2 = vld [vmem:[#allocation3 + $0xd58] sm:$0xff]  ;;  %v3652_v36 = vadd.f32 %v8968_v55, %v9309_v13 }
 0xf2d   :  { %v6329_v43 = vadd.f32 %v6328_v46, %v8981_v50  ;;  %v6334_v17 = vadd.f32 %v4952_v11, %v3644_v16  ;;  %v4954_v4 = vpop.f32.mrb[31].mxu1  ;;  %5212 = vmatprep.subr.bf16.mxu1 %v3230_v60  ;;  %v5533_v57 = vrot.slane %v5532_v6, 4  ;;  %v3653_v16 = vadd.f32 %v8971_v1, %v9310_v10 }
 0xf2e   :  { %v6332_v61 = vadd.f32 %v6331_v23, %v8987_v3  ;;  %v6337_v14 = vadd.f32 %v4954_v4, %v3645_v53  ;;  %v5540_v46 = vrot.slane %v5539_v63, 4 }
 0xf2f   :  { %v6335_v7 = vadd.f32 %v6334_v17, %v8981_v50  ;;  %v5508_v54 = vmax.f32 %v6329_v43, 0.0  ;;  %v3237_v17 = vld [vmem:[#allocation3 + $0xd50] sm:$0xff] }
 0xf30   :  { %v6338_v26 = vadd.f32 %v6337_v14, %v8987_v3  ;;  %5213 = vmatpush1.bf16.msra.mxu1 %v3229_v9  ;;  %v5509_v31 = vmax.f32 %v6332_v61, 0.0  ;;  %v3242_v61 = vld [vmem:[#allocation3 + $0xd78] sm:$0xff]  ;;  %v5534_v14 = vadd.f32 %v5533_v57, %v5532_v6 }
 0xf31   :  { %v5512_v51 = vmax.f32 %v6335_v7, 0.0  ;;  %5214 = vmatprep.subr.bf16.mxu1 %v3234_v12  ;;  %v5541_v7 = vadd.f32 %v5540_v46, %v5539_v63  ;;  %v9314_v6 = vld [vmem:[#allocation41_spill] sm:$0xff] }
 0xf32   :  { %v5513_v62 = vmax.f32 %v6338_v26, 0.0  ;;  %v4958_v18 = vpop.f32.mrb[32].mxu1  ;;  %v5535_v57 = vrot.slane %v5534_v14, 2 }
 0xf33   :  { %v5560_v0 = vadd.f32 %v5512_v51, %v5508_v54  ;;  %v6340_v8 = vadd.f32 %v4958_v18, %v3648_v48  ;;  %v4960_v60 = vpop.f32.mrb[33].mxu1  ;;  %v3656_v48 = vadd.f32 %v8968_v55, %v9311_v19  ;;  %v9312_v54 = vld [vmem:[#allocation39_spill] sm:$0xff]  ;;  %v3661_v18 = vadd.f32 %v8971_v1, %v9314_v6 }
 0xf34   :  { %v5567_v24 = vadd.f32 %v5513_v62, %v5509_v31  ;;  %v6343_v27 = vadd.f32 %v4960_v60, %v3649_v40  ;;  %v4962_v53 = vpop.f32.mrb[34].mxu1  ;;  %5215 = vmatpush1.bf16.msra.mxu1 %v3233_v41  ;;  %v3657_v51 = vadd.f32 %v8971_v1, %v9312_v54  ;;  %v3241_v40 = vld [vmem:[#allocation3 + $0xd70] sm:$0xff]  ;;  %v5542_v46 = vrot.slane %v5541_v7, 2 }
 0xf35   :  { %v6341_v23 = vadd.f32 %v6340_v8, %v8981_v50  ;;  %v6346_v11 = vadd.f32 %v4962_v53, %v3652_v36  ;;  %v4964_v43 = vpop.f32.mrb[35].mxu1  ;;  %5216 = vmatprep.subr.bf16.mxu1 %v3238_v2  ;;  %v9313_v31 = vld [vmem:[#allocation40_spill] sm:$0xff]  ;;  %v3246_v36 = vld [vmem:[#allocation3 + $0xd98] sm:$0xff]  ;;  %v5561_v8 = vrot.slane %v5560_v0, 4  ;;  %v5536_v19 = vadd.f32 %v5535_v57, %v5534_v14 }
 0xf36   :  { %v6344_v4 = vadd.f32 %v6343_v27, %v8987_v3  ;;  %v6349_v9 = vadd.f32 %v4964_v43, %v3653_v16  ;;  %v3660_v62 = vadd.f32 %v8968_v55, %v9313_v31  ;;  %v5568_v27 = vrot.slane %v5567_v24, 4 }
 0xf37   :  { %v6347_v12 = vadd.f32 %v6346_v11, %v8981_v50  ;;  %v5516_v41 = vmax.f32 %v6341_v23, 0.0  ;;  %v5543_v31 = vadd.f32 %v5542_v46, %v5541_v7  ;;  %v5537_v14 = vrot.slane %v5536_v19, 1  ;;  %v3253_v46 = vld [vmem:[#allocation3 + $0xdd0] sm:$0xff] }
 0xf38   :  { %v6350_v26 = vadd.f32 %v6349_v9, %v8987_v3  ;;  %5217 = vmatpush1.bf16.msra.mxu1 %v3237_v17  ;;  %v5517_v63 = vmax.f32 %v6344_v4, 0.0  ;;  %v3245_v4 = vld [vmem:[#allocation3 + $0xd90] sm:$0xff] }
 0xf39   :  { %v5520_v37 = vmax.f32 %v6347_v12, 0.0  ;;  %5218 = vmatprep.subr.bf16.mxu1 %v3242_v61 }
 0xf3a   :  { %v5521_v2 = vmax.f32 %v6350_v26, 0.0  ;;  %v4968_v13 = vpop.f32.mrb[36].mxu1  ;;  %v3250_v26 = vld [vmem:[#allocation3 + $0xdb8] sm:$0xff] }
 0xf3b   :  { %v5588_v60 = vadd.f32 %v5520_v37, %v5516_v41  ;;  %v6352_v10 = vadd.f32 %v4968_v13, %v3656_v48  ;;  %v4970_v16 = vpop.f32.mrb[37].mxu1  ;;  %v5562_v48 = vadd.f32 %v5561_v8, %v5560_v0 }
 0xf3c   :  { %v5595_v53 = vadd.f32 %v5521_v2, %v5517_v63  ;;  %v6355_v23 = vadd.f32 %v4970_v16, %v3657_v51  ;;  %v4972_v11 = vpop.f32.mrb[38].mxu1  ;;  %5219 = vmatpush1.bf16.msra.mxu1 %v3241_v40  ;;  %v5569_v51 = vadd.f32 %v5568_v27, %v5567_v24  ;;  %v3249_v2 = vld [vmem:[#allocation3 + $0xdb0] sm:$0xff] }
 0xf3d   :  { %v5589_v43 = vrot.slane %v5588_v60, 4  ;;  %v6353_v55 = vadd.f32 %v6352_v10, %v8981_v50  ;;  %v6358_v17 = vadd.f32 %v4972_v11, %v3660_v62  ;;  %v4974_v1 = vpop.f32.mrb[39].mxu1  ;;  %5220 = vmatprep.subr.bf16.mxu1 %v3246_v36  ;;  %v3254_v10 = vld [vmem:[#allocation3 + $0xdd8] sm:$0xff]  ;;  %v5563_v0 = vrot.slane %v5562_v48, 2 }
 0xf3e   :  { %v5596_v9 = vrot.slane %v5595_v53, 4  ;;  %v6356_v61 = vadd.f32 %v6355_v23, %v8987_v3  ;;  %v6361_v12 = vadd.f32 %v4974_v1, %v3661_v18 }
 0xf3f   :  { %v5590_v54 = vadd.f32 %v5589_v43, %v5588_v60  ;;  %v6359_v41 = vadd.f32 %v6358_v17, %v8981_v50  ;;  %v5524_v6 = vmax.f32 %v6353_v55, 0.0  ;;  %v5570_v50 = vrot.slane %v5569_v51, 2 }
 0xf40   :  { %v5597_v37 = vadd.f32 %v5596_v9, %v5595_v53  ;;  %v6362_v40 = vadd.f32 %v6361_v12, %v8987_v3  ;;  %5221 = vmatpush1.bf16.msra.mxu1 %v3245_v4  ;;  %v5525_v36 = vmax.f32 %v6356_v61, 0.0  ;;  %v5544_v60 = vrot.slane %v5543_v31, 1  ;;  %v3258_v53 = vld [vmem:[#allocation3 + $0xdf8] sm:$0xff] }
 0xf41   :  { %v5591_v62 = vrot.slane %v5590_v54, 2  ;;  %v5528_v63 = vmax.f32 %v6359_v41, 0.0  ;;  %5222 = vmatprep.subr.bf16.mxu1 %v3250_v26  ;;  %v5564_v11 = vadd.f32 %v5563_v0, %v5562_v48  ;;  %v5538_v55 = vadd.f32 %v5537_v14, %v5536_v19  ;;  %v3257_v26 = vld [vmem:[#allocation3 + $0xdf0] sm:$0xff] }
 0xf42   :  { %v5598_v13 = vrot.slane %v5597_v37, 2  ;;  %v5529_v18 = vmax.f32 %v6362_v40, 0.0  ;;  %v5545_v4 = vadd.f32 %v5544_v60, %v5543_v31  ;;  %v5571_v9 = vadd.f32 %v5570_v50, %v5569_v51  ;;  %v3261_v19 = vld [vmem:[#allocation3 + $0xe10] sm:$0xff] }
 0xf43   :  { %v5592_v57 = vadd.f32 %v5591_v62, %v5590_v54  ;;  %v5616_v8 = vadd.f32 %v5528_v63, %v5524_v6  ;;  %v5565_v62 = vrot.slane %v5564_v11, 1  ;;  %v3265_v14 = vld [vmem:[#allocation3 + $0xe30] sm:$0xff] }
 0xf44   :  { %v5623_v24 = vadd.f32 %v5529_v18, %v5525_v36  ;;  %5223 = vmatpush1.bf16.msra.mxu1 %v3249_v2  ;;  %v5599_v3 = vadd.f32 %v5598_v13, %v5597_v37  ;;  %v3262_v37 = vld [vmem:[#allocation3 + $0xe18] sm:$0xff]  ;;  %v5572_v63 = vrot.slane %v5571_v9, 1 }
 0xf45   :  { %v5593_v16 = vrot.slane %v5592_v57, 1  ;;  %v5617_v7 = vrot.slane %v5616_v8, 4  ;;  %5224 = vmatprep.subr.bf16.mxu1 %v3254_v10  ;;  %v3266_v13 = vld [vmem:[#allocation3 + $0xe38] sm:$0xff]  ;;  %v5566_v51 = vadd.f32 %v5565_v62, %v5564_v11  ;;  %v3281_v11 = vld [vmem:[#allocation3 + $0xeb0] sm:$0xff] }
 0xf46   :  { %v5624_v27 = vrot.slane %v5623_v24, 4  ;;  %v5600_v23 = vrot.slane %v5599_v3, 1  ;;  %v5573_v18 = vadd.f32 %v5572_v63, %v5571_v9  ;;  %v3301_v9 = vld [vmem:[#allocation3 + $0xf50] sm:$0xff] }
 0xf47   :  { %v5618_v43 = vadd.f32 %v5617_v7, %v5616_v8  ;;  %v5594_v17 = vadd.f32 %v5593_v16, %v5592_v57  ;;  %v3270_v57 = vld [vmem:[#allocation3 + $0xe58] sm:$0xff]  ;;  %v3269_v16 = vld [vmem:[#allocation3 + $0xe50] sm:$0xff] }
 0xf48   :  { %v5625_v1 = vadd.f32 %v5624_v27, %v5623_v24  ;;  %5225 = vmatpush1.bf16.msra.mxu1 %v3253_v46  ;;  %v5601_v61 = vadd.f32 %v5600_v23, %v5599_v3  ;;  %v3273_v46 = vld [vmem:[#allocation3 + $0xe70] sm:$0xff]  ;;  %v3278_v27 = vld [vmem:[#allocation3 + $0xe98] sm:$0xff] }
 0xf49   :  { %v5619_v12 = vrot.slane %v5618_v43, 2  ;;  %5226 = vmatprep.subr.bf16.mxu1 %v3258_v53  ;;  %v5644_v54 = vadd.f32 %v5594_v17, %v5538_v55  ;;  %v3277_v53 = vld [vmem:[#allocation3 + $0xe90] sm:$0xff]  ;;  %v3282_v23 = vld [vmem:[#allocation3 + $0xeb8] sm:$0xff] }
 0xf4a   :  { %v5626_v41 = vrot.slane %v5625_v1, 2  ;;  %v5645_v40 = vadd.f32 %v5601_v61, %v5545_v4  ;;  %v3289_v55 = vld [vmem:[#allocation3 + $0xef0] sm:$0xff]  ;;  %v3294_v17 = vld [vmem:[#allocation3 + $0xf18] sm:$0xff] }
 0xf4b   :  { %v5620_v6 = vadd.f32 %v5619_v12, %v5618_v43  ;;  %v5652_v50 = vmul.f32 0.03125, %v5644_v54  ;;  %v3290_v43 = vld [vmem:[#allocation3 + $0xef8] sm:$0xff]  ;;  %v3313_v54 = vld [vmem:[#allocation3 + $0xfb0] sm:$0xff] }
 0xf4c   :  { %5227 = vmatpush1.bf16.msra.mxu1 %v3257_v26  ;;  %v5627_v48 = vadd.f32 %v5626_v41, %v5625_v1  ;;  %v5653_v60 = vmul.f32 0.03125, %v5645_v40  ;;  %v3297_v1 = vld [vmem:[#allocation3 + $0xf30] sm:$0xff]  ;;  %v3302_v4 = vld [vmem:[#allocation3 + $0xf58] sm:$0xff] }
 0xf4d   :  { %v5621_v2 = vrot.slane %v5620_v6, 1  ;;  %5269 = vmatprep.subr.bf16.mxu1 %v3262_v37  ;;  %v3306_v61 = vld [vmem:[#allocation3 + $0xf78] sm:$0xff]  ;;  %v3317_v37 = vld [vmem:[#allocation3 + $0xfd0] sm:$0xff] }
 0xf4e   :  { %v5628_v36 = vrot.slane %v5627_v48, 1  ;;  %v3310_v12 = vld [vmem:[#allocation3 + $0xf98] sm:$0xff]  ;;  %v3321_v62 = vld [vmem:[#allocation3 + $0xff0] sm:$0xff] }
 0xf4f   :  { %5229 = vmatmul.mubr.bf16.vlgmr.msra.gmra.mrb[40].mxu1 %v8615_v15  ;;  %v5622_v31 = vadd.f32 %v5621_v2, %v5620_v6  ;;  %v3314_v26 = vld [vmem:[#allocation3 + $0xfb8] sm:$0xff]  ;;  %v3325_v63 = vld [vmem:[#allocation3 + $0x1010] sm:$0xff] }
 0xf50   :  { %5238 = vmatprep.mubr.bf16.mxu1 %v8674_v30  ;;  %5270 = vmatpush1.bf16.msra.mxu1 %v3261_v19  ;;  %v5629_v10 = vadd.f32 %v5628_v36, %v5627_v48  ;;  %v3274_v30 = vld [vmem:[#allocation3 + $0xe78] sm:$0xff]  ;;  %v3329_v2 = vld [vmem:[#allocation3 + $0x1030] sm:$0xff] }
 0xf51   :  { %5271 = vmatprep.subr.bf16.mxu1 %v3266_v13  ;;  %v5648_v0 = vadd.f32 %v5622_v31, %v5566_v51  ;;  %v3318_v41 = vld [vmem:[#allocation3 + $0xfd8] sm:$0xff]  ;;  %v3333_v13 = vld [vmem:[#allocation3 + $0x1050] sm:$0xff] }
 0xf52   :  { %v5649_v8 = vadd.f32 %v5629_v10, %v5573_v18  ;;  %v3322_v40 = vld [vmem:[#allocation3 + $0xff8] sm:$0xff]  ;;  %v3337_v51 = vld [vmem:[#allocation3 + $0x1070] sm:$0xff] }
 0xf53   :  { %v5656_v24 = vmul.f32 0.03125, %v5648_v0  ;;  %v3326_v6 = vld [vmem:[#allocation3 + $0x1018] sm:$0xff]  ;;  %v3345_v18 = vld [vmem:[#allocation3 + $0x10b0] sm:$0xff] }
 0xf54   :  { %5272 = vmatpush1.bf16.msra.mxu1 %v3265_v14  ;;  %v5657_v3 = vmul.f32 0.03125, %v5649_v8  ;;  %v3330_v48 = vld [vmem:[#allocation3 + $0x1038] sm:$0xff]  ;;  %v3353_v14 = vld [vmem:[#allocation3 + $0x10f0] sm:$0xff] }
 0xf55   :  { %5273 = vmatprep.subr.bf16.mxu1 %v3270_v57  ;;  %v5737_v15 = vsel %vm178_vm4, %v5656_v24, %v5652_v50  ;;  %v3334_v19 = vld [vmem:[#allocation3 + $0x1058] sm:$0xff]  ;;  %v3361_v57 = vld [vmem:[#allocation3 + $0x1130] sm:$0xff] }
 0xf56   :  { %v5738_v7 = vsel %vm178_vm4, %v5657_v3, %v5653_v60  ;;  %v3338_v36 = vld [vmem:[#allocation3 + $0x1078] sm:$0xff]  ;;  %v3365_v50 = vld [vmem:[#allocation3 + $0x1150] sm:$0xff] }
 0xf57   :  { %5239 = vmatmul.mubr.bf16.gmra.mrb[44].mxu1 %v8662_v59  ;;  %5809 = vmatprep.mubr.f32.mxu0 %v5738_v7  ;;  %v3286_v59 = vld [vmem:[#allocation3 + $0xed8] sm:$0xff]  ;;  %v3381_v7 = vld [vmem:[#allocation3 + $0x11d0] sm:$0xff] }
 0xf58   :  { %5248 = vmatprep.mubr.bf16.mxu1 %v8715_v35  ;;  %5274 = vmatpush1.bf16.msra.mxu1 %v3269_v16  ;;  %v3285_v35 = vld [vmem:[#allocation3 + $0xed0] sm:$0xff]  ;;  %v3342_v31 = vld [vmem:[#allocation3 + $0x1098] sm:$0xff] }
 0xf59   :  { %5810 = vmatmul.mubr.f32.vlgmr.msra.gmra.mrb[164].mxu0 %v5737_v15  ;;  %5275 = vmatprep.subr.bf16.mxu1 %v3274_v30  ;;  %v3350_v10 = vld [vmem:[#allocation3 + $0x10d8] sm:$0xff]  ;;  %v3377_v16 = vld [vmem:[#allocation3 + $0x11b0] sm:$0xff] }
 0xf5a   :  { %v3358_v0 = vld [vmem:[#allocation3 + $0x1118] sm:$0xff] }
 0xf5b   :  { %v3366_v8 = vld [vmem:[#allocation3 + $0x1158] sm:$0xff] }
 0xf5c   :  { %5276 = vmatpush1.bf16.msra.mxu1 %v3273_v46  ;;  %v3370_v24 = vld [vmem:[#allocation3 + $0x1178] sm:$0xff]  ;;  %v3385_v46 = vld [vmem:[#allocation3 + $0x11f0] sm:$0xff] }
 0xf5d   :  { %5277 = vmatprep.subr.bf16.mxu1 %v3278_v27  ;;  %v3374_v60 = vld [vmem:[#allocation3 + $0x1198] sm:$0xff] }
 0xf5e   :  { %v3378_v3 = vld [vmem:[#allocation3 + $0x11b8] sm:$0xff] }
 0xf5f   :  { %5249 = vmatmul.mubr.bf16.gmra.mrb[48].mxu1 %v8708_v33  ;;  %v3293_v33 = vld [vmem:[#allocation3 + $0xf10] sm:$0xff]  ;;  %v3382_v15 = vld [vmem:[#allocation3 + $0x11d8] sm:$0xff] }
 0xf60   :  { %5258 = vmatprep.mubr.bf16.mxu1 %v8757_v20  ;;  %5278 = vmatpush1.bf16.msra.mxu1 %v3277_v53  ;;  %v3298_v20 = vld [vmem:[#allocation3 + $0xf38] sm:$0xff] }
 0xf61   :  { %5279 = vmatprep.subr.bf16.mxu1 %v3282_v23  ;;  %v3386_v30 = vld [vmem:[#allocation3 + $0x11f8] sm:$0xff] }
 0xf64   :  { %5280 = vmatpush1.bf16.msra.mxu1 %v3281_v11  ;;  %v5711_v11 = vld [vmem:[%s9223_s7 + $0x198] sm:$0xff] }
 0xf65   :  { %5281 = vmatprep.subr.bf16.mxu1 %v3286_v59 }
 0xf67   :  { %5259 = vmatmul.mubr.bf16.gmra.mrb[52].mxu1 %v8754_v34  ;;  %v3305_v34 = vld [vmem:[#allocation3 + $0xf70] sm:$0xff] }
 0xf68   :  { %5282 = vmatpush1.bf16.msra.mxu1 %v3285_v35  ;;  %5301 = vmatprep.mubr.bf16.mxu1 %v8478_v58  ;;  %v3309_v58 = vld [vmem:[#allocation3 + $0xf90] sm:$0xff] }
 0xf69   :  { %5283 = vmatprep.subr.bf16.mxu1 %v3290_v43  ;;  %v5694_v35 = vld [vmem:[%s9223_s7 + $0x110] sm:$0xff]  ;;  %v5695_v43 = vld [vmem:[%s9223_s7 + $0x118] sm:$0xff] }
 0xf6c   :  { %5284 = vmatpush1.bf16.msra.mxu1 %v3289_v55  ;;  %v6233_v55 = vpack.c.bf16 %v5695_v43, %v5694_v35 }
 0xf6d   :  { %5285 = vmatprep.subr.bf16.mxu1 %v3294_v17  ;;  %v5712_v17 = vld [vmem:[%s9223_s7 + $0x1a0] sm:$0xff] }
 0xf70   :  { %5286 = vmatpush1.bf16.msra.mxu1 %v3293_v33  ;;  %v5713_v33 = vld [vmem:[%s9223_s7 + $0x1a8] sm:$0xff] }
 0xf71   :  { %5287 = vmatprep.subr.bf16.mxu1 %v3298_v20  ;;  %v6235_v20 = vpack.c.bf16 %v5713_v33, %v5712_v17 }
 0xf74   :  { %5288 = vmatpush1.bf16.msra.mxu1 %v3297_v1  ;;  %v5696_v1 = vld [vmem:[%s9223_s7 + $0x120] sm:$0xff] }
 0xf75   :  { %5289 = vmatprep.subr.bf16.mxu1 %v3302_v4  ;;  %v5697_v4 = vld [vmem:[%s9223_s7 + $0x128] sm:$0xff] }
 0xf78   :  { %5290 = vmatpush1.bf16.msra.mxu1 %v3301_v9  ;;  %v6237_v9 = vpack.c.bf16 %v5697_v4, %v5696_v1  ;;  %v9322_v1 = vld [vmem:[#allocation49_spill] sm:$0xff] }
 0xf79   :  { %5291 = vmatprep.subr.bf16.mxu1 %v3306_v61  ;;  %v5714_v61 = vld [vmem:[%s9223_s7 + $0x1b0] sm:$0xff] }
 0xf7c   :  { %5292 = vmatpush1.bf16.msra.mxu1 %v3305_v34  ;;  %v5715_v34 = vld [vmem:[%s9223_s7 + $0x1b8] sm:$0xff] }
 0xf7d   :  { %5293 = vmatprep.subr.bf16.mxu1 %v3310_v12  ;;  %v5698_v12 = vld [vmem:[%s9223_s7 + $0x130] sm:$0xff] }
 0xf80   :  { %5294 = vmatpush1.bf16.msra.mxu1 %v3309_v58  ;;  %v6239_v58 = vpack.c.bf16 %v5715_v34, %v5714_v61  ;;  %v9323_v34 = vld [vmem:[#allocation50_spill] sm:$0xff] }
 0xf81   :  { %5295 = vmatprep.subr.bf16.mxu1 %v3314_v26  ;;  %v5699_v26 = vld [vmem:[%s9223_s7 + $0x138] sm:$0xff] }
 0xf84   :  { %5296 = vmatpush1.bf16.msra.mxu1 %v3313_v54  ;;  %v5716_v54 = vld [vmem:[%s9223_s7 + $0x1c0] sm:$0xff] }
 0xf85   :  { %5297 = vmatprep.subr.bf16.mxu1 %v3318_v41  ;;  %v5717_v41 = vld [vmem:[%s9223_s7 + $0x1c8] sm:$0xff] }
 0xf88   :  { %5298 = vmatpush1.bf16.msra.mxu1 %v3317_v37  ;;  %v6241_v37 = vpack.c.bf16 %v5699_v26, %v5698_v12 }
 0xf89   :  { %5299 = vmatprep.subr.bf16.mxu1 %v3322_v40  ;;  %v6243_v40 = vpack.c.bf16 %v5717_v41, %v5716_v54  ;;  %v9324_v54 = vld [vmem:[#allocation51_spill] sm:$0xff] }
 0xf8c   :  { %5300 = vmatpush1.bf16.msra.mxu1 %v3321_v62  ;;  %v5700_v62 = vld [vmem:[%s9223_s7 + $0x140] sm:$0xff] }
 0xf8d   :  { %5342 = vmatprep.subr.bf16.mxu1 %v3326_v6  ;;  %v5701_v6 = vld [vmem:[%s9223_s7 + $0x148] sm:$0xff] }
 0xf8f   :  { %5302 = vmatmul.mubr.bf16.vlgmr.msra.gmra.mrb[40].mxu1 %v8415_v45  ;;  %v3341_v45 = vld [vmem:[#allocation3 + $0x1090] sm:$0xff] }
 0xf90   :  { %5311 = vmatprep.mubr.bf16.mxu1 %v8544_v52  ;;  %5343 = vmatpush1.bf16.msra.mxu1 %v3325_v63  ;;  %v3346_v52 = vld [vmem:[#allocation3 + $0x10b8] sm:$0xff]  ;;  %v5718_v63 = vld [vmem:[%s9223_s7 + $0x1d0] sm:$0xff] }
 0xf91   :  { %5344 = vmatprep.subr.bf16.mxu1 %v3330_v48  ;;  %v5719_v48 = vld [vmem:[%s9223_s7 + $0x1d8] sm:$0xff] }
 0xf94   :  { %5345 = vmatpush1.bf16.msra.mxu1 %v3329_v2  ;;  %v6245_v2 = vpack.c.bf16 %v5701_v6, %v5700_v62 }
 0xf95   :  { %5346 = vmatprep.subr.bf16.mxu1 %v3334_v19  ;;  %v6247_v19 = vpack.c.bf16 %v5719_v48, %v5718_v63 }
 0xf97   :  { %5312 = vmatmul.mubr.bf16.gmra.mrb[44].mxu1 %v8570_v25  ;;  %v3349_v25 = vld [vmem:[#allocation3 + $0x10d0] sm:$0xff] }
 0xf98   :  { %5321 = vmatprep.mubr.bf16.mxu1 %v8578_v56  ;;  %5347 = vmatpush1.bf16.msra.mxu1 %v3333_v13  ;;  %v3354_v56 = vld [vmem:[#allocation3 + $0x10f8] sm:$0xff]  ;;  %v5702_v13 = vld [vmem:[%s9223_s7 + $0x150] sm:$0xff] }
 0xf99   :  { %5348 = vmatprep.subr.bf16.mxu1 %v3338_v36  ;;  %v5703_v36 = vld [vmem:[%s9223_s7 + $0x158] sm:$0xff] }
 0xf9c   :  { %5349 = vmatpush1.bf16.msra.mxu1 %v3337_v51  ;;  %v5720_v51 = vld [vmem:[%s9223_s7 + $0x1e0] sm:$0xff] }
 0xf9d   :  { %5350 = vmatprep.subr.bf16.mxu1 %v3342_v31  ;;  %v5721_v31 = vld [vmem:[%s9223_s7 + $0x1e8] sm:$0xff] }
 0xf9f   :  { %5322 = vmatmul.mubr.bf16.gmra.mrb[48].mxu1 %v8595_v49  ;;  %v3357_v49 = vld [vmem:[#allocation3 + $0x1110] sm:$0xff] }
 0xfa0   :  { %5331 = vmatprep.mubr.bf16.mxu1 %v8599_v21  ;;  %5351 = vmatpush1.bf16.msra.mxu1 %v3341_v45  ;;  %v3362_v21 = vld [vmem:[#allocation3 + $0x1138] sm:$0xff]  ;;  %v6249_v45 = vpack.c.bf16 %v5703_v36, %v5702_v13  ;;  %v9325_v36 = vld [vmem:[#allocation52_spill] sm:$0xff] }
 0xfa1   :  { %5352 = vmatprep.subr.bf16.mxu1 %v3346_v52  ;;  %v6251_v52 = vpack.c.bf16 %v5721_v31, %v5720_v51 }
 0xfa4   :  { %5353 = vmatpush1.bf16.msra.mxu1 %v3345_v18  ;;  %v5704_v18 = vld [vmem:[%s9223_s7 + $0x160] sm:$0xff] }
 0xfa5   :  { %5354 = vmatprep.subr.bf16.mxu1 %v3350_v10  ;;  %v5705_v10 = vld [vmem:[%s9223_s7 + $0x168] sm:$0xff] }
 0xfa7   :  { %5332 = vmatmul.mubr.bf16.gmra.mrb[52].mxu1 %v8601_v28  ;;  %v3369_v28 = vld [vmem:[#allocation3 + $0x1170] sm:$0xff] }
 0xfa8   :  { %5355 = vmatpush1.bf16.msra.mxu1 %v3349_v25  ;;  %5374 = vmatprep.mubr.bf16.mxu1 %v8676_v38  ;;  %v3373_v38 = vld [vmem:[#allocation3 + $0x1190] sm:$0xff] }
 0xfa9   :  { %5356 = vmatprep.subr.bf16.mxu1 %v3354_v56  ;;  %v5722_v25 = vld [vmem:[%s9223_s7 + $0x1f0] sm:$0xff]  ;;  %v5723_v56 = vld [vmem:[%s9223_s7 + $0x1f8] sm:$0xff] }
 0xfac   :  { %5357 = vmatpush1.bf16.msra.mxu1 %v3353_v14  ;;  %v6253_v14 = vpack.c.bf16 %v5705_v10, %v5704_v18  ;;  %v9326_v18 = vld [vmem:[#allocation53_spill] sm:$0xff] }
 0xfad   :  { %5358 = vmatprep.subr.bf16.mxu1 %v3358_v0  ;;  %v6255_v0 = vpack.c.bf16 %v5723_v56, %v5722_v25 }
 0xfb0   :  { %5359 = vmatpush1.bf16.msra.mxu1 %v3357_v49  ;;  %v5706_v49 = vld [vmem:[%s9223_s7 + $0x170] sm:$0xff] }
 0xfb1   :  { %5360 = vmatprep.subr.bf16.mxu1 %v3362_v21  ;;  %v5707_v21 = vld [vmem:[%s9223_s7 + $0x178] sm:$0xff] }
 0xfb4   :  { %5361 = vmatpush1.bf16.msra.mxu1 %v3361_v57  ;;  %v6257_v57 = vpack.c.bf16 %v5707_v21, %v5706_v49 }
 0xfb5   :  { %5362 = vmatprep.subr.bf16.mxu1 %v3366_v8  ;;  %v9315_v8 = vld [vmem:[#allocation42_spill] sm:$0xff] }
 0xfb8   :  { %5363 = vmatpush1.bf16.msra.mxu1 %v3365_v50  ;;  %v9160_v50 = vrot.slane %v8973_v39, %v9315_v8 }
 0xfb9   :  { %5364 = vmatprep.subr.bf16.mxu1 %v3370_v24 }
 0xfbc   :  { %5365 = vmatpush1.bf16.msra.mxu1 %v3369_v28  ;;  %v9316_v28 = vld [vmem:[#allocation43_spill] sm:$0xff] }
 0xfbd   :  { %5366 = vmatprep.subr.bf16.mxu1 %v3374_v60  ;;  %v9164_v60 = vrot.slane %v8973_v39, %v9316_v28 }
 0xfc0   :  { %5367 = vmatpush1.bf16.msra.mxu1 %v3373_v38  ;;  %v9317_v38 = vld [vmem:[#allocation44_spill] sm:$0xff] }
 0xfc1   :  { %5368 = vmatprep.subr.bf16.mxu1 %v3378_v3 }
 0xfc4   :  { %5369 = vmatpush1.bf16.msra.mxu1 %v3377_v16 }
 0xfc5   :  { %5370 = vmatprep.subr.bf16.mxu1 %v3382_v15  ;;  %v9318_v15 = vld [vmem:[#allocation45_spill] sm:$0xff] }
 0xfc8   :  { %5371 = vmatpush1.bf16.msra.mxu1 %v3381_v7 }
 0xfc9   :  { %5372 = vmatprep.subr.bf16.mxu1 %v3386_v30 }
 0xfcc   :  { %5373 = vmatpush1.bf16.msra.mxu1 %v3385_v46 }
 0xfcf   :  { %5375 = vmatmul.mubr.bf16.vlgmr.msra.gmra.mrb[40].mxu1 %v8640_v42  ;;  %v5708_v42 = vld [vmem:[%s9223_s7 + $0x180] sm:$0xff] }
 0xfd0   :  { %5384 = vmatprep.mubr.bf16.mxu1 %v8734_v22  ;;  %v5709_v22 = vld [vmem:[%s9223_s7 + $0x188] sm:$0xff] }
 0xfd7   :  { %5385 = vmatmul.mubr.bf16.gmra.mrb[44].mxu1 %v8767_v47  ;;  %v6227_v47 = vpack.c.bf16 %v5709_v22, %v5708_v42 }
 0xfd8   :  { %5394 = vmatprep.mubr.bf16.mxu1 %v8797_v32  ;;  %v5692_v32 = vld [vmem:[%s9223_s7 + $0x100] sm:$0xff] }
 0xfd9   :  { %6228 = vmatprep.subr.bf16.mxu0 %v6227_v47  ;;  %v9320_v47 = vld [vmem:[#allocation47_spill] sm:$0xff] }
 0xfdf   :  { %5395 = vmatmul.mubr.bf16.gmra.mrb[48].mxu1 %v8809_v29  ;;  %v5693_v29 = vld [vmem:[%s9223_s7 + $0x108] sm:$0xff] }
 0xfe0   :  { %5404 = vmatprep.mubr.bf16.mxu1 %v8813_v5  ;;  %v6229_v5 = vpack.c.bf16 %v5693_v29, %v5692_v32 }
 0xfe2   :  { %6230 = vmatpush3.bf16.msra.mxu0 %v6229_v5 }
 0xfe7   :  { %5405 = vmatmul.mubr.bf16.gmra.mrb[52].mxu1 %v8815_v44  ;;  %v5710_v44 = vld [vmem:[%s9223_s7 + $0x190] sm:$0xff] }
 0xfe8   :  { %v6231_v59 = vpack.c.bf16 %v5711_v11, %v5710_v44 }
 0xfea   :  { %6232 = vmatprep.subr.bf16.mxu0 %v6231_v59 }
 0xfeb   :  { %6234 = vmatpush3.bf16.msra.mxu0 %v6233_v55  ;;  %v9321_v55 = vld [vmem:[#allocation48_spill] sm:$0xff] }
 0xfec   :  { %6236 = vmatprep.subr.bf16.mxu0 %v6235_v20 }
 0xfef   :  { %6238 = vmatpush3.bf16.msra.mxu0 %v6237_v9 }
 0xff0   :  { %6240 = vmatprep.subr.bf16.mxu0 %v6239_v58 }
 0xff3   :  { %6242 = vmatpush3.bf16.msra.mxu0 %v6241_v37 }
 0xff4   :  { %6244 = vmatprep.subr.bf16.mxu0 %v6243_v40 }
 0xff7   :  { %6246 = vmatpush3.bf16.msra.mxu0 %v6245_v2 }
 0xff8   :  { %6248 = vmatprep.subr.bf16.mxu0 %v6247_v19 }
 0xffb   :  { %6250 = vmatpush3.bf16.msra.mxu0 %v6249_v45 }
 0xffc   :  { %6252 = vmatprep.subr.bf16.mxu0 %v6251_v52 }
 0xfff   :  { %6254 = vmatpush3.bf16.msra.mxu0 %v6253_v14  ;;  %v9327_v14 = vld [vmem:[#allocation54_spill] sm:$0xff] }
0x1000   :  { %6256 = vmatprep.subr.bf16.mxu0 %v6255_v0 }
0x1003   :  { %6258 = vmatpush3.bf16.msra.mxu0 %v6257_v57  ;;  %v9328_v57 = vld [vmem:[#allocation55_spill] sm:$0xff] }
0x102c   :  { %v6109_v27 = vpop.f32.mrb[164].mxu0 }
0x102d   :  { %v6110_v53 = vpop.f32.mrb[165].mxu0 }
0x102e   :  { %v9060_v23 = vadd.f32 %v6110_v53, %v6109_v27  ;;  %v9319_v27 = vld [vmem:[#allocation46_spill] sm:$0xff] }
0x10a2   :  { %v5376_v24 = vpop.f32.mrb[40].mxu1 }
0x10a3   :  { %v6364_v3 = vadd.f32 %v5376_v24, %v9317_v38  ;;  %v5378_v16 = vpop.f32.mrb[41].mxu1 }
0x10a4   :  { %v6367_v7 = vadd.f32 %v5378_v16, %v9318_v15  ;;  %v5380_v30 = vpop.f32.mrb[42].mxu1 }
0x10a5   :  { %v6365_v46 = vadd.f32 %v6364_v3, %v9160_v50  ;;  %v6370_v53 = vadd.f32 %v5380_v30, %v9319_v27  ;;  %v5382_v42 = vpop.f32.mrb[43].mxu1 }
0x10a6   :  { %v6368_v22 = vadd.f32 %v6367_v7, %v9164_v60  ;;  %v6373_v32 = vadd.f32 %v5382_v42, %v9320_v47 }
0x10a7   :  { %v6371_v29 = vadd.f32 %v6370_v53, %v9160_v50  ;;  %v5502_v5 = vmax.f32 %v6365_v46, 0.0 }
0x10a8   :  { %v6374_v39 = vadd.f32 %v6373_v32, %v9164_v60  ;;  %v5503_v11 = vmax.f32 %v6368_v22, 0.0  ;;  %v9329_v22 = vld [vmem:[#allocation56_spill] sm:$0xff] }
0x10a9   :  { %v5506_v44 = vmax.f32 %v6371_v29, 0.0 }
0x10aa   :  { %v5507_v59 = vmax.f32 %v6374_v39, 0.0  ;;  %v5386_v35 = vpop.f32.mrb[44].mxu1 }
0x10ab   :  { %v5546_v43 = vadd.f32 %v5506_v44, %v5502_v5  ;;  %v6376_v17 = vadd.f32 %v5386_v35, %v9321_v55  ;;  %v5388_v33 = vpop.f32.mrb[45].mxu1  ;;  %v9330_v44 = vld [vmem:[#allocation57_spill] sm:$0xff]  ;;  %v9331_v55 = vld [vmem:[#allocation58_spill] sm:$0xff] }
0x10ac   :  { %v5553_v20 = vadd.f32 %v5507_v59, %v5503_v11  ;;  %v6379_v4 = vadd.f32 %v5388_v33, %v9322_v1  ;;  %v5390_v9 = vpop.f32.mrb[46].mxu1 }
0x10ad   :  { %v6377_v61 = vadd.f32 %v6376_v17, %v9160_v50  ;;  %v6382_v12 = vadd.f32 %v5390_v9, %v9323_v34  ;;  %v5392_v58 = vpop.f32.mrb[47].mxu1  ;;  %v5547_v19 = vrot.slane %v5546_v43, 4 }
0x10ae   :  { %v6380_v26 = vadd.f32 %v6379_v4, %v9164_v60  ;;  %v6385_v41 = vadd.f32 %v5392_v58, %v9324_v54  ;;  %v5554_v45 = vrot.slane %v5553_v20, 4  ;;  %v9332_v4 = vld [vmem:[#allocation59_spill] sm:$0xff] }
0x10af   :  { %v6383_v37 = vadd.f32 %v6382_v12, %v9160_v50  ;;  %v5510_v62 = vmax.f32 %v6377_v61, 0.0  ;;  %v5548_v24 = vadd.f32 %v5547_v19, %v5546_v43 }
0x10b0   :  { %v6386_v40 = vadd.f32 %v6385_v41, %v9164_v60  ;;  %v5511_v63 = vmax.f32 %v6380_v26, 0.0  ;;  %v5555_v38 = vadd.f32 %v5554_v45, %v5553_v20 }
0x10b1   :  { %v5514_v6 = vmax.f32 %v6383_v37, 0.0  ;;  %v5549_v27 = vrot.slane %v5548_v24, 2 }
0x10b2   :  { %v5515_v48 = vmax.f32 %v6386_v40, 0.0  ;;  %v5396_v2 = vpop.f32.mrb[48].mxu1  ;;  %v5556_v29 = vrot.slane %v5555_v38, 2 }
0x10b3   :  { %v5574_v13 = vadd.f32 %v5514_v6, %v5510_v62  ;;  %v6388_v51 = vadd.f32 %v5396_v2, %v9325_v36  ;;  %v5398_v31 = vpop.f32.mrb[49].mxu1  ;;  %v5550_v61 = vadd.f32 %v5549_v27, %v5548_v24 }
0x10b4   :  { %v5581_v52 = vadd.f32 %v5515_v48, %v5511_v63  ;;  %v6391_v10 = vadd.f32 %v5398_v31, %v9326_v18  ;;  %v5400_v25 = vpop.f32.mrb[50].mxu1  ;;  %v5557_v37 = vadd.f32 %v5556_v29, %v5555_v38 }
0x10b5   :  { %v6389_v56 = vadd.f32 %v6388_v51, %v9160_v50  ;;  %v6394_v0 = vadd.f32 %v5400_v25, %v9327_v14  ;;  %v5402_v49 = vpop.f32.mrb[51].mxu1  ;;  %v5575_v53 = vrot.slane %v5574_v13, 4  ;;  %v5551_v31 = vrot.slane %v5550_v61, 1 }
0x10b6   :  { %v6392_v21 = vadd.f32 %v6391_v10, %v9164_v60  ;;  %v6397_v8 = vadd.f32 %v5402_v49, %v9328_v57  ;;  %v5582_v39 = vrot.slane %v5581_v52, 4  ;;  %v5558_v18 = vrot.slane %v5557_v37, 1 }
0x10b7   :  { %v6395_v28 = vadd.f32 %v6394_v0, %v9160_v50  ;;  %v5518_v16 = vmax.f32 %v6389_v56, 0.0  ;;  %v5576_v34 = vadd.f32 %v5575_v53, %v5574_v13  ;;  %v5552_v0 = vadd.f32 %v5551_v31, %v5550_v61 }
0x10b8   :  { %v6398_v3 = vadd.f32 %v6397_v8, %v9164_v60  ;;  %v5519_v7 = vmax.f32 %v6392_v21, 0.0  ;;  %v5583_v26 = vadd.f32 %v5582_v39, %v5581_v52  ;;  %v5559_v57 = vadd.f32 %v5558_v18, %v5557_v37 }
0x10b9   :  { %v5522_v15 = vmax.f32 %v6395_v28, 0.0  ;;  %v5577_v19 = vrot.slane %v5576_v34, 2 }
0x10ba   :  { %v5523_v30 = vmax.f32 %v6398_v3, 0.0  ;;  %v5406_v46 = vpop.f32.mrb[52].mxu1  ;;  %v5584_v45 = vrot.slane %v5583_v26, 2 }
0x10bb   :  { %v5602_v42 = vadd.f32 %v5522_v15, %v5518_v16  ;;  %v6400_v47 = vadd.f32 %v5406_v46, %v9329_v22  ;;  %v5408_v32 = vpop.f32.mrb[53].mxu1 }
0x10bc   :  { %v5609_v5 = vadd.f32 %v5523_v30, %v5519_v7  ;;  %v6403_v11 = vadd.f32 %v5408_v32, %v9330_v44  ;;  %v5410_v59 = vpop.f32.mrb[54].mxu1  ;;  %v5585_v8 = vadd.f32 %v5584_v45, %v5583_v26 }
0x10bd   :  { %v5603_v35 = vrot.slane %v5602_v42, 4  ;;  %v6401_v43 = vadd.f32 %v6400_v47, %v9160_v50  ;;  %v6406_v17 = vadd.f32 %v5410_v59, %v9331_v55  ;;  %v5412_v33 = vpop.f32.mrb[55].mxu1  ;;  %v6009_v55 = vld [vmem:[%s9223_s7 + $0x200] ss:$0 sm:$0xff] }
0x10be   :  { %v5610_v20 = vrot.slane %v5609_v5, 4  ;;  %v6404_v1 = vadd.f32 %v6403_v11, %v9164_v60  ;;  %v6409_v9 = vadd.f32 %v5412_v33, %v9332_v4  ;;  %v5586_v30 = vrot.slane %v5585_v8, 1 }
0x10bf   :  { %v5604_v12 = vadd.f32 %v5603_v35, %v5602_v42  ;;  %v6407_v58 = vadd.f32 %v6406_v17, %v9160_v50  ;;  %v5526_v62 = vmax.f32 %v6401_v43, 0.0 }
0x10c0   :  { %v5611_v54 = vadd.f32 %v5610_v20, %v5609_v5  ;;  %v6410_v41 = vadd.f32 %v6409_v9, %v9164_v60  ;;  %v5527_v48 = vmax.f32 %v6404_v1, 0.0  ;;  %v5578_v60 = vadd.f32 %v5577_v19, %v5576_v34 }
0x10c1   :  { %v5605_v40 = vrot.slane %v5604_v12, 2  ;;  %v5530_v6 = vmax.f32 %v6407_v58, 0.0  ;;  %v5587_v47 = vadd.f32 %v5586_v30, %v5585_v8  ;;  %v5812_v20 = vadd.f32 %v9060_v23, %v6009_v55 }
0x10c2   :  { %v5612_v63 = vrot.slane %v5611_v54, 2  ;;  %v5531_v2 = vmax.f32 %v6410_v41, 0.0  ;;  %v5579_v7 = vrot.slane %v5578_v60, 1 }
0x10c3   :  { %v5606_v36 = vadd.f32 %v5605_v40, %v5604_v12  ;;  %v5630_v51 = vadd.f32 %v5530_v6, %v5526_v62 }
0x10c4   :  { %v5637_v13 = vadd.f32 %v5531_v2, %v5527_v48  ;;  %v5613_v10 = vadd.f32 %v5612_v63, %v5611_v54  ;;  %v5580_v42 = vadd.f32 %v5579_v7, %v5578_v60 }
0x10c5   :  { %v5631_v50 = vrot.slane %v5630_v51, 4  ;;  %v5607_v52 = vrot.slane %v5606_v36, 1 }
0x10c6   :  { %v5638_v25 = vrot.slane %v5637_v13, 4  ;;  %v5614_v56 = vrot.slane %v5613_v10, 1 }
0x10c7   :  { %v5632_v14 = vadd.f32 %v5631_v50, %v5630_v51  ;;  %v5608_v49 = vadd.f32 %v5607_v52, %v5606_v36 }
0x10c8   :  { %v5639_v21 = vadd.f32 %v5638_v25, %v5637_v13  ;;  %v5615_v24 = vadd.f32 %v5614_v56, %v5613_v10 }
0x10c9   :  { %v5633_v28 = vrot.slane %v5632_v14, 2  ;;  %v5646_v38 = vadd.f32 %v5608_v49, %v5552_v0 }
0x10ca   :  { %v5640_v3 = vrot.slane %v5639_v21, 2  ;;  %v5647_v16 = vadd.f32 %v5615_v24, %v5559_v57 }
0x10cb   :  { %v5634_v15 = vadd.f32 %v5633_v28, %v5632_v14  ;;  %v5654_v5 = vmul.f32 0.03125, %v5646_v38 }
0x10cc   :  { %v5641_v46 = vadd.f32 %v5640_v3, %v5639_v21  ;;  %v5655_v11 = vmul.f32 0.03125, %v5647_v16 }
0x10cd   :  { %v5635_v27 = vrot.slane %v5634_v15, 1 }
0x10ce   :  { %v5642_v53 = vrot.slane %v5641_v46, 1 }
0x10cf   :  { %v5636_v22 = vadd.f32 %v5635_v27, %v5634_v15 }
0x10d0   :  { %v5643_v32 = vadd.f32 %v5642_v53, %v5641_v46 }
0x10d1   :  { %v5650_v29 = vadd.f32 %v5636_v22, %v5580_v42 }
0x10d2   :  { %v5651_v39 = vadd.f32 %v5643_v32, %v5587_v47 }
0x10d3   :  { %v5658_v44 = vmul.f32 0.03125, %v5650_v29 }
0x10d4   :  { %v5659_v59 = vmul.f32 0.03125, %v5651_v39 }
0x10d5   :  { %v5739_v35 = vsel %vm178_vm4, %v5658_v44, %v5654_v5 }
0x10d6   :  { %v5740_v43 = vsel %vm178_vm4, %v5659_v59, %v5655_v11 }
0x10d7   :  { %5879 = vmatprep.mubr.f32.mxu0 %v5740_v43 }
0x10d8   :  { %5880 = vmatmul.mubr.f32.vlgmr.msra.gmra.mrb[166].mxu0 %v5739_v35 }
0x11ab   :  { %v6144_v17 = vpop.f32.mrb[166].mxu0 }
0x11ac   :  { %v6145_v33 = vpop.f32.mrb[167].mxu0 }
0x11ad   :  { %v6146_v1 = vadd.f32 %v6145_v33, %v6144_v17 }
0x11af   :  { %v5882_v4 = vadd.f32 %v6146_v1, %v5812_v20 }
0x11b1   :  { %5886 = vst.msk [vmem:[#allocation13] sm:$0x3] %vm5885_vm1, %v5882_v4 }
0x11b2   :  { %6894 = shalt.err (!%p6891_p8)
}
0x11b3   :  { %s6895_s4 = scalar_lea.hbm %s9224_s8, 32 }
0x11b4   :  { %p6896_p9 = scmp.ne.s32.totalorder %s9224_s8, %s6895_s4  ;;  %p6899_p10 = scmp.lt.u32.totalorder %s6895_s4, %s9224_s8 }
0x11b6   :  { %p6901_p11 = pnand %p6899_p10, %p6896_p9 }
0x11b8   :  { %6904 = shalt.err (!%p6901_p11)
}
0x11b9   :  { %5896 = dma.vmem_to_hbm [thread:$0]  %s5894_s13, 32, %s9224_s8, [#allocation7]  }
0x11ba   :  { %6915 = dma.done.wait [#allocation7], 32  }
0x11bb   :  { %6916 = vsyncadd [#allocation7], 4294967264 }
0x11bc   :  { %5900 = vsyncpa [#allocation6], 1 }
0x11bd   :  { %5901 = vsyncpa [#allocation9], 1 }
0x11be   :  { %5902 = vsyncpa [#allocation12], 1 }
0x11bf   :  { %5903 = vsyncpa [#allocation7], 1 }
0x11c0   :  { %5904 = vsyncmov [#allocation4] }
0x11c3   :  { %s5905_s20 = vpop.sfrf %5904 }
0x11c4   :  { %p6010_p12 = scmp.ne.s32.totalorder %s5905_s20, 0 }
0x11c6   :  { %5909 = shalt.err (%p6010_p12)  }
0x11c7   :  { %5911 = vsyncmov [#allocation4 + $0x1] }
0x11ca   :  { %s5912_s21 = vpop.sfrf %5911 }
0x11cb   :  { %p6011_p13 = scmp.ne.s32.totalorder %s5912_s21, 0 }
0x11cd   :  { %5916 = shalt.err (%p6011_p13)  }

</bundles_post_ra>
